<compile_context>
chip_gen: v7x
topology: tpu7x:2x2x1
jax: 0.10.0
libtpu: 0.0.40
codegen_flags: <defaults>
</compile_context>

<pallas_src>
import functools

import jax
import jax.numpy as jnp
from jax.experimental import pallas as pl
from jax.experimental.pallas import tpu as pltpu


# ----------------------------------------------------------------------------
# Fused Pallas kernel: 3 conv stages + 2x2 maxpool, per batch element.
# ----------------------------------------------------------------------------
def _fused_hcn_kernel(h, w,
                      x_ref, w1_ref, w2_ref, w3_ref, b1_ref, b2_ref, b3_ref,
                      o_ref, xpad_ref, c0_ref):
    # x_ref   : (1, h+2, w+2, 116) bf16  -- spatially pre-padded, packed channels
    # w{1,2,3}: (9, Cin, Cout)     bf16  -- per-tap block(-diagonal) weight mats
    # b{1,2,3}: (1, Cout)          f32
    # o_ref   : (1, h//2, w//2, 32) f32  -- pooled output
    # xpad_ref: (h+2, w+2, 96)     bf16 scratch (padded activations, stages 2/3)
    # c0_ref  : (h*w, 32)          f32  scratch (conv0 result, for pooling)
    hw = h * w

    def conv3x3(window, wref, bref):
        # 3x3 same-padded conv as 9 shifted matmuls, f32 accumulation.
        acc = None
        for dy in range(3):
            for dx in range(3):
                win = window(dy, dx)                       # (h, w, cin) bf16
                win = win.reshape(hw, win.shape[-1])       # (hw, cin)
                part = jnp.dot(win, wref[dy * 3 + dx],
                               preferred_element_type=jnp.float32)
                acc = part if acc is None else acc + part
        return acc + bref[...]                             # (hw, cout) f32

    # ---- stage 1: convla/conflh/convra/confrh/convf as one block-diag GEMM --
    s1 = conv3x3(lambda dy, dx: x_ref[0, dy:dy + h, dx:dx + w, :],
                 w1_ref, b1_ref)                           # (hw, 96) = [l1|l2|r1|r2|f]

    # Zero the padded scratch (border must be zero) and write the interior.
    xpad_ref[...] = jnp.zeros(xpad_ref.shape, xpad_ref.dtype)
    xpad_ref[1:h + 1, 1:w + 1, :] = s1.astype(jnp.bfloat16).reshape(h, w, 96)

    # ---- stage 2: convl/convr block-diag over [l1|l2|r1|r2] (f rows are 0) --
    s2 = conv3x3(lambda dy, dx: xpad_ref[dy:dy + h, dx:dx + w, :],
                 w2_ref, b2_ref)                           # (hw, 64) = [l|r]

    # Overwrite channels 0:64 with [l|r]; channels 64:96 keep f from stage 1.
    xpad_ref[1:h + 1, 1:w + 1, 0:64] = s2.astype(jnp.bfloat16).reshape(h, w, 64)

    # ---- stage 3: conv0 over [l|r|f] -----------------------------------------
    s3 = conv3x3(lambda dy, dx: xpad_ref[dy:dy + h, dx:dx + w, :],
                 w3_ref, b3_ref)                           # (hw, 32) f32

    # ---- fused 2x2 maxpool (row index = y*w + x) -----------------------------
    c0_ref[...] = s3
    # width pairs are adjacent rows -> strided pair max
    m = jnp.maximum(c0_ref[pl.ds(0, hw // 2, 2), :],
                    c0_ref[pl.ds(1, hw // 2, 2), :])       # (h*w/2, 32)
    # height pairs: rows differ by w//2 after width pooling
    m = m.reshape(h // 2, 2, w // 2, 32)
    pooled = jnp.max(m, axis=1)                            # (h//2, w//2, 32)
    o_ref[0] = pooled.astype(o_ref.dtype)


def hierarchy_conv_fused(x_pad_bf16, packed, *, h, w):
    n = x_pad_bf16.shape[0]
    cin = x_pad_bf16.shape[-1]
    kernel = functools.partial(_fused_hcn_kernel, h, w)
    return pl.pallas_call(
        kernel,
        out_shape=jax.ShapeDtypeStruct((n, h // 2, w // 2, 32), jnp.float32),
        grid_spec=pltpu.PrefetchScalarGridSpec(
            num_scalar_prefetch=0,
            grid=(n,),
            in_specs=[
                pl.BlockSpec((1, h + 2, w + 2, cin), lambda i: (i, 0, 0, 0)),
                pl.BlockSpec((9, cin, 96), lambda i: (0, 0, 0)),
                pl.BlockSpec((9, 96, 64), lambda i: (0, 0, 0)),
                pl.BlockSpec((9, 96, 32), lambda i: (0, 0, 0)),
                pl.BlockSpec((1, 96), lambda i: (0, 0)),
                pl.BlockSpec((1, 64), lambda i: (0, 0)),
                pl.BlockSpec((1, 32), lambda i: (0, 0)),
            ],
            out_specs=pl.BlockSpec((1, h // 2, w // 2, 32),
                                   lambda i: (i, 0, 0, 0)),
            scratch_shapes=[
                pltpu.VMEM((h + 2, w + 2, 96), jnp.bfloat16),
                pltpu.VMEM((h * w, 32), jnp.float32),
            ],
        ),
        compiler_params=pltpu.CompilerParams(
            dimension_semantics=("parallel",)),   # lets v7x use both TensorCores
    )(x_pad_bf16, packed["w1"], packed["w2"], packed["w3"],
      packed["b1"], packed["b2"], packed["b3"])


# ----------------------------------------------------------------------------
# Parameters: init + one-time packing into block-diagonal per-tap matrices.
# ----------------------------------------------------------------------------
def init_params(key):
    """Deterministic synthetic parameters (PyTorch Conv2d-style shapes)."""
    layer_defs = {
        "convla": (16, 2),
        "convra": (16, 2),
        "conflh": (16, 21),
        "confrh": (16, 21),
        "convf": (32, 70),
        "convl": (32, 32),
        "convr": (32, 32),
        "conv0": (32, 3 * 32),   # nn.Sequential's Conv2d(parts*32, 32, 3, 1, 1)
    }
    params = {}
    for name, (cout, cin) in layer_defs.items():
        key, k1, k2 = jax.random.split(key, 3)
        bound = 1.0 / float(cin * 9) ** 0.5
        w = jax.random.uniform(k1, (cout, cin, 3, 3), jnp.float32, -bound, bound)
        b = jax.random.uniform(k2, (cout,), jnp.float32, -bound, bound)
        params[name] = (w, b)
    return params


def pack_params(params):
    """Pre-pack PyTorch-style (Cout, Cin, 3, 3) weights into per-tap
    block-diagonal (9, Cin_total, Cout_total) bf16 matrices + f32 biases."""
    def taps(wt):  # (Cout, Cin, 3, 3) -> (9, Cin, Cout), tap index = dy*3 + dx
        return jnp.transpose(wt, (2, 3, 1, 0)).reshape(9, wt.shape[1], wt.shape[0])

    wla, bla = params["convla"]; wra, bra = params["convra"]
    wlh, blh = params["conflh"]; wrh, brh = params["confrh"]
    wf, bf = params["convf"]
    wl, bl = params["convl"]; wr, br = params["convr"]
    w0, b0 = params["conv0"]

    # Stage 1: input channel order [la(2) | lh(21) | ra(2) | rh(21) | face(70)]
    #          output channel order [l1(16) | l2(16) | r1(16) | r2(16) | f(32)]
    w1 = jnp.zeros((9, 116, 96), jnp.float32)
    w1 = w1.at[:, 0:2, 0:16].set(taps(wla))
    w1 = w1.at[:, 2:23, 16:32].set(taps(wlh))
    w1 = w1.at[:, 23:25, 32:48].set(taps(wra))
    w1 = w1.at[:, 25:46, 48:64].set(taps(wrh))
    w1 = w1.at[:, 46:116, 64:96].set(taps(wf))
    b1 = jnp.concatenate([bla, blh, bra, brh, bf]).reshape(1, 96)

    # Stage 2: input [l1|l2|r1|r2|f] (f rows left zero), output [l(32)|r(32)]
    w2 = jnp.zeros((9, 96, 64), jnp.float32)
    w2 = w2.at[:, 0:32, 0:32].set(taps(wl))
    w2 = w2.at[:, 32:64, 32:64].set(taps(wr))
    b2 = jnp.concatenate([bl, br]).reshape(1, 64)

    # Stage 3: conv0 over [l|r|f]
    w3 = taps(w0)                      # (9, 96, 32)
    b3 = b0.reshape(1, 32)

    return dict(w1=w1.astype(jnp.bfloat16), w2=w2.astype(jnp.bfloat16),
                w3=w3.astype(jnp.bfloat16), b1=b1, b2=b2, b3=b3)


# ----------------------------------------------------------------------------
# HierarchyConv forward (wrapper: channel gather + spatial pad, then one kernel)
# ----------------------------------------------------------------------------
@jax.jit
def hierarchy_conv_forward(x_nchw, packed):
    n, c, h, w = x_nchw.shape
    xh = jnp.transpose(x_nchw, (0, 2, 3, 1))               # NCHW -> NHWC
    # Pack only the channels the module uses, in the order stage-1 expects.
    x_sel = jnp.concatenate(
        [xh[..., 3:5],      # left arm
         xh[..., 95:116],   # left hand
         xh[..., 6:8],      # right arm
         xh[..., 116:137],  # right hand
         xh[..., 25:95]],   # face
        axis=-1)                                           # (N, H, W, 116)
    x_pad = jnp.pad(x_sel, ((0, 0), (1, 1), (1, 1), (0, 0))).astype(jnp.bfloat16)
    out = hierarchy_conv_fused(x_pad, packed, h=h, w=w)    # (N, H/2, W/2, 32)
    return jnp.transpose(out, (0, 3, 1, 2))                # -> NCHW


# ----------------------------------------------------------------------------
# Pure-JAX reference (for correctness checking only)
# ----------------------------------------------------------------------------
def _conv_ref(x_nchw, w, b):
    out = jax.lax.conv_general_dilated(
        x_nchw, w, window_strides=(1, 1), padding=((1, 1), (1, 1)),
        dimension_numbers=("NCHW", "OIHW", "NCHW"),
        precision=jax.lax.Precision.HIGHEST)
    return out + b[None, :, None, None]


def forward_ref(x, params):
    la, ra = x[:, 3:5], x[:, 6:8]
    face, lh, rh = x[:, 25:95], x[:, 95:116], x[:, 116:137]
    l1 = _conv_ref(la, *params["convla"])
    r1 = _conv_ref(ra, *params["convra"])
    l2 = _conv_ref(lh, *params["conflh"])
    r2 = _conv_ref(rh, *params["confrh"])
    l = _conv_ref(jnp.concatenate([l1, l2], 1), *params["convl"])
    r = _conv_ref(jnp.concatenate([r1, r2], 1), *params["convr"])
    f = _conv_ref(face, *params["convf"])
    out = _conv_ref(jnp.concatenate([l, r, f], 1), *params["conv0"])
    n, c, h, w = out.shape
    return out.reshape(n, c, h // 2, 2, w // 2, 2).max(axis=(3, 5))


# ----------------------------------------------------------------------------
if __name__ == "__main__":
    key = jax.random.PRNGKey(0)
    key, kx, kp = jax.random.split(key, 3)

    N, C, H, W = 2, 137, 16, 16
    x = jax.random.normal(kx, (N, C, H, W), jnp.float32)
    params = init_params(kp)
    packed = pack_params(params)   # one-time weight packing (bf16 block matrices)

    out = jax.block_until_ready(hierarchy_conv_forward(x, packed))
    assert out.shape == (N, 32, H // 2, W // 2), out.shape

    ref = jax.block_until_ready(forward_ref(x, params))
    err = float(jnp.max(jnp.abs(out - ref)))
    assert jnp.allclose(out, ref, atol=2e-2, rtol=2e-2), err

    print("KERNEL_OK")
</pallas_src>

<mosaic_0001>
module attributes {stable_mosaic.version = 11 : i64} {
  func.func @_fused_hcn_kernel(%arg0: i32, %arg1: memref<1x18x18x116xbf16, #tpu.memory_space<vmem>>, %arg2: memref<9x116x96xbf16, #tpu.memory_space<vmem>>, %arg3: memref<9x96x64xbf16, #tpu.memory_space<vmem>>, %arg4: memref<9x96x32xbf16, #tpu.memory_space<vmem>>, %arg5: memref<1x96xf32, #tpu.memory_space<vmem>>, %arg6: memref<1x64xf32, #tpu.memory_space<vmem>>, %arg7: memref<1x32xf32, #tpu.memory_space<vmem>>, %arg8: memref<1x8x8x32xf32, #tpu.memory_space<vmem>>, %arg9: memref<18x18x96xbf16, #tpu.memory_space<vmem>>, %arg10: memref<256x32xf32, #tpu.memory_space<vmem>>) attributes {dimension_semantics = [#tpu.dimension_semantics<parallel>], iteration_bounds = array<i64: 2>, scalar_prefetch = 0 : i64, scratch_operands = 2 : i64, tpu.core_type = #tpu.core_type<tc>, window_params = [{transform_indices = @transform_0, window_bounds = array<i64: 1, 18, 18, 116>}, {pipeline_mode = #tpu.pipeline_mode<synchronous>, transform_indices = @transform_1, window_bounds = array<i64: 9, 116, 96>}, {pipeline_mode = #tpu.pipeline_mode<synchronous>, transform_indices = @transform_2, window_bounds = array<i64: 9, 96, 64>}, {pipeline_mode = #tpu.pipeline_mode<synchronous>, transform_indices = @transform_3, window_bounds = array<i64: 9, 96, 32>}, {pipeline_mode = #tpu.pipeline_mode<synchronous>, transform_indices = @transform_4, window_bounds = array<i64: 1, 96>}, {pipeline_mode = #tpu.pipeline_mode<synchronous>, transform_indices = @transform_5, window_bounds = array<i64: 1, 64>}, {pipeline_mode = #tpu.pipeline_mode<synchronous>, transform_indices = @transform_6, window_bounds = array<i64: 1, 32>}, {transform_indices = @transform_7, window_bounds = array<i64: 1, 8, 8, 32>}]} {
    %c0 = arith.constant 0 : index
    %c0_0 = arith.constant 0 : index
    %c0_1 = arith.constant 0 : index
    %c0_2 = arith.constant 0 : index
    %0 = vector.load %arg1[%c0, %c0_0, %c0_1, %c0_2] : memref<1x18x18x116xbf16, #tpu.memory_space<vmem>>, vector<1x16x16x116xbf16>
    %1 = vector.shape_cast %0 : vector<1x16x16x116xbf16> to vector<16x16x116xbf16>
    %2 = vector.shape_cast %1 : vector<16x16x116xbf16> to vector<256x116xbf16>
    %c0_3 = arith.constant 0 : index
    %c0_4 = arith.constant 0 : index
    %c0_5 = arith.constant 0 : index
    %3 = vector.load %arg2[%c0_3, %c0_4, %c0_5] : memref<9x116x96xbf16, #tpu.memory_space<vmem>>, vector<1x116x96xbf16>
    %4 = vector.shape_cast %3 : vector<1x116x96xbf16> to vector<116x96xbf16>
    %cst = arith.constant dense<0.000000e+00> : vector<256x96xf32>
    %5 = tpu.matmul %2, %4, %cst {dimension_numbers = #tpu.dot_dimension_numbers<[1], [0], [0], [1], [0, 0, 1, 1], [], []>} : vector<256x116xbf16>, vector<116x96xbf16>, vector<256x96xf32> -> vector<256x96xf32>
    %c0_6 = arith.constant 0 : index
    %c0_7 = arith.constant 0 : index
    %c1 = arith.constant 1 : index
    %c0_8 = arith.constant 0 : index
    %6 = vector.load %arg1[%c0_6, %c0_7, %c1, %c0_8] : memref<1x18x18x116xbf16, #tpu.memory_space<vmem>>, vector<1x16x16x116xbf16>
    %7 = vector.shape_cast %6 : vector<1x16x16x116xbf16> to vector<16x16x116xbf16>
    %8 = vector.shape_cast %7 : vector<16x16x116xbf16> to vector<256x116xbf16>
    %c1_9 = arith.constant 1 : index
    %c0_10 = arith.constant 0 : index
    %c0_11 = arith.constant 0 : index
    %9 = vector.load %arg2[%c1_9, %c0_10, %c0_11] : memref<9x116x96xbf16, #tpu.memory_space<vmem>>, vector<1x116x96xbf16>
    %10 = vector.shape_cast %9 : vector<1x116x96xbf16> to vector<116x96xbf16>
    %cst_12 = arith.constant dense<0.000000e+00> : vector<256x96xf32>
    %11 = tpu.matmul %8, %10, %cst_12 {dimension_numbers = #tpu.dot_dimension_numbers<[1], [0], [0], [1], [0, 0, 1, 1], [], []>} : vector<256x116xbf16>, vector<116x96xbf16>, vector<256x96xf32> -> vector<256x96xf32>
    %12 = arith.addf %5, %11 : vector<256x96xf32>
    %c0_13 = arith.constant 0 : index
    %c0_14 = arith.constant 0 : index
    %c2 = arith.constant 2 : index
    %c0_15 = arith.constant 0 : index
    %13 = vector.load %arg1[%c0_13, %c0_14, %c2, %c0_15] : memref<1x18x18x116xbf16, #tpu.memory_space<vmem>>, vector<1x16x16x116xbf16>
    %14 = vector.shape_cast %13 : vector<1x16x16x116xbf16> to vector<16x16x116xbf16>
    %15 = vector.shape_cast %14 : vector<16x16x116xbf16> to vector<256x116xbf16>
    %c2_16 = arith.constant 2 : index
    %c0_17 = arith.constant 0 : index
    %c0_18 = arith.constant 0 : index
    %16 = vector.load %arg2[%c2_16, %c0_17, %c0_18] : memref<9x116x96xbf16, #tpu.memory_space<vmem>>, vector<1x116x96xbf16>
    %17 = vector.shape_cast %16 : vector<1x116x96xbf16> to vector<116x96xbf16>
    %cst_19 = arith.constant dense<0.000000e+00> : vector<256x96xf32>
    %18 = tpu.matmul %15, %17, %cst_19 {dimension_numbers = #tpu.dot_dimension_numbers<[1], [0], [0], [1], [0, 0, 1, 1], [], []>} : vector<256x116xbf16>, vector<116x96xbf16>, vector<256x96xf32> -> vector<256x96xf32>
    %19 = arith.addf %12, %18 : vector<256x96xf32>
    %c0_20 = arith.constant 0 : index
    %c1_21 = arith.constant 1 : index
    %c0_22 = arith.constant 0 : index
    %c0_23 = arith.constant 0 : index
    %20 = vector.load %arg1[%c0_20, %c1_21, %c0_22, %c0_23] : memref<1x18x18x116xbf16, #tpu.memory_space<vmem>>, vector<1x16x16x116xbf16>
    %21 = vector.shape_cast %20 : vector<1x16x16x116xbf16> to vector<16x16x116xbf16>
    %22 = vector.shape_cast %21 : vector<16x16x116xbf16> to vector<256x116xbf16>
    %c3 = arith.constant 3 : index
    %c0_24 = arith.constant 0 : index
    %c0_25 = arith.constant 0 : index
    %23 = vector.load %arg2[%c3, %c0_24, %c0_25] : memref<9x116x96xbf16, #tpu.memory_space<vmem>>, vector<1x116x96xbf16>
    %24 = vector.shape_cast %23 : vector<1x116x96xbf16> to vector<116x96xbf16>
    %cst_26 = arith.constant dense<0.000000e+00> : vector<256x96xf32>
    %25 = tpu.matmul %22, %24, %cst_26 {dimension_numbers = #tpu.dot_dimension_numbers<[1], [0], [0], [1], [0, 0, 1, 1], [], []>} : vector<256x116xbf16>, vector<116x96xbf16>, vector<256x96xf32> -> vector<256x96xf32>
    %26 = arith.addf %19, %25 : vector<256x96xf32>
    %c0_27 = arith.constant 0 : index
    %c1_28 = arith.constant 1 : index
    %c1_29 = arith.constant 1 : index
    %c0_30 = arith.constant 0 : index
    %27 = vector.load %arg1[%c0_27, %c1_28, %c1_29, %c0_30] : memref<1x18x18x116xbf16, #tpu.memory_space<vmem>>, vector<1x16x16x116xbf16>
    %28 = vector.shape_cast %27 : vector<1x16x16x116xbf16> to vector<16x16x116xbf16>
    %29 = vector.shape_cast %28 : vector<16x16x116xbf16> to vector<256x116xbf16>
    %c4 = arith.constant 4 : index
    %c0_31 = arith.constant 0 : index
    %c0_32 = arith.constant 0 : index
    %30 = vector.load %arg2[%c4, %c0_31, %c0_32] : memref<9x116x96xbf16, #tpu.memory_space<vmem>>, vector<1x116x96xbf16>
    %31 = vector.shape_cast %30 : vector<1x116x96xbf16> to vector<116x96xbf16>
    %cst_33 = arith.constant dense<0.000000e+00> : vector<256x96xf32>
    %32 = tpu.matmul %29, %31, %cst_33 {dimension_numbers = #tpu.dot_dimension_numbers<[1], [0], [0], [1], [0, 0, 1, 1], [], []>} : vector<256x116xbf16>, vector<116x96xbf16>, vector<256x96xf32> -> vector<256x96xf32>
    %33 = arith.addf %26, %32 : vector<256x96xf32>
    %c0_34 = arith.constant 0 : index
    %c1_35 = arith.constant 1 : index
    %c2_36 = arith.constant 2 : index
    %c0_37 = arith.constant 0 : index
    %34 = vector.load %arg1[%c0_34, %c1_35, %c2_36, %c0_37] : memref<1x18x18x116xbf16, #tpu.memory_space<vmem>>, vector<1x16x16x116xbf16>
    %35 = vector.shape_cast %34 : vector<1x16x16x116xbf16> to vector<16x16x116xbf16>
    %36 = vector.shape_cast %35 : vector<16x16x116xbf16> to vector<256x116xbf16>
    %c5 = arith.constant 5 : index
    %c0_38 = arith.constant 0 : index
    %c0_39 = arith.constant 0 : index
    %37 = vector.load %arg2[%c5, %c0_38, %c0_39] : memref<9x116x96xbf16, #tpu.memory_space<vmem>>, vector<1x116x96xbf16>
    %38 = vector.shape_cast %37 : vector<1x116x96xbf16> to vector<116x96xbf16>
    %cst_40 = arith.constant dense<0.000000e+00> : vector<256x96xf32>
    %39 = tpu.matmul %36, %38, %cst_40 {dimension_numbers = #tpu.dot_dimension_numbers<[1], [0], [0], [1], [0, 0, 1, 1], [], []>} : vector<256x116xbf16>, vector<116x96xbf16>, vector<256x96xf32> -> vector<256x96xf32>
    %40 = arith.addf %33, %39 : vector<256x96xf32>
    %c0_41 = arith.constant 0 : index
    %c2_42 = arith.constant 2 : index
    %c0_43 = arith.constant 0 : index
    %c0_44 = arith.constant 0 : index
    %41 = vector.load %arg1[%c0_41, %c2_42, %c0_43, %c0_44] : memref<1x18x18x116xbf16, #tpu.memory_space<vmem>>, vector<1x16x16x116xbf16>
    %42 = vector.shape_cast %41 : vector<1x16x16x116xbf16> to vector<16x16x116xbf16>
    %43 = vector.shape_cast %42 : vector<16x16x116xbf16> to vector<256x116xbf16>
    %c6 = arith.constant 6 : index
    %c0_45 = arith.constant 0 : index
    %c0_46 = arith.constant 0 : index
    %44 = vector.load %arg2[%c6, %c0_45, %c0_46] : memref<9x116x96xbf16, #tpu.memory_space<vmem>>, vector<1x116x96xbf16>
    %45 = vector.shape_cast %44 : vector<1x116x96xbf16> to vector<116x96xbf16>
    %cst_47 = arith.constant dense<0.000000e+00> : vector<256x96xf32>
    %46 = tpu.matmul %43, %45, %cst_47 {dimension_numbers = #tpu.dot_dimension_numbers<[1], [0], [0], [1], [0, 0, 1, 1], [], []>} : vector<256x116xbf16>, vector<116x96xbf16>, vector<256x96xf32> -> vector<256x96xf32>
    %47 = arith.addf %40, %46 : vector<256x96xf32>
    %c0_48 = arith.constant 0 : index
    %c2_49 = arith.constant 2 : index
    %c1_50 = arith.constant 1 : index
    %c0_51 = arith.constant 0 : index
    %48 = vector.load %arg1[%c0_48, %c2_49, %c1_50, %c0_51] : memref<1x18x18x116xbf16, #tpu.memory_space<vmem>>, vector<1x16x16x116xbf16>
    %49 = vector.shape_cast %48 : vector<1x16x16x116xbf16> to vector<16x16x116xbf16>
    %50 = vector.shape_cast %49 : vector<16x16x116xbf16> to vector<256x116xbf16>
    %c7 = arith.constant 7 : index
    %c0_52 = arith.constant 0 : index
    %c0_53 = arith.constant 0 : index
    %51 = vector.load %arg2[%c7, %c0_52, %c0_53] : memref<9x116x96xbf16, #tpu.memory_space<vmem>>, vector<1x116x96xbf16>
    %52 = vector.shape_cast %51 : vector<1x116x96xbf16> to vector<116x96xbf16>
    %cst_54 = arith.constant dense<0.000000e+00> : vector<256x96xf32>
    %53 = tpu.matmul %50, %52, %cst_54 {dimension_numbers = #tpu.dot_dimension_numbers<[1], [0], [0], [1], [0, 0, 1, 1], [], []>} : vector<256x116xbf16>, vector<116x96xbf16>, vector<256x96xf32> -> vector<256x96xf32>
    %54 = arith.addf %47, %53 : vector<256x96xf32>
    %c0_55 = arith.constant 0 : index
    %c2_56 = arith.constant 2 : index
    %c2_57 = arith.constant 2 : index
    %c0_58 = arith.constant 0 : index
    %55 = vector.load %arg1[%c0_55, %c2_56, %c2_57, %c0_58] : memref<1x18x18x116xbf16, #tpu.memory_space<vmem>>, vector<1x16x16x116xbf16>
    %56 = vector.shape_cast %55 : vector<1x16x16x116xbf16> to vector<16x16x116xbf16>
    %57 = vector.shape_cast %56 : vector<16x16x116xbf16> to vector<256x116xbf16>
    %c8 = arith.constant 8 : index
    %c0_59 = arith.constant 0 : index
    %c0_60 = arith.constant 0 : index
    %58 = vector.load %arg2[%c8, %c0_59, %c0_60] : memref<9x116x96xbf16, #tpu.memory_space<vmem>>, vector<1x116x96xbf16>
    %59 = vector.shape_cast %58 : vector<1x116x96xbf16> to vector<116x96xbf16>
    %cst_61 = arith.constant dense<0.000000e+00> : vector<256x96xf32>
    %60 = tpu.matmul %57, %59, %cst_61 {dimension_numbers = #tpu.dot_dimension_numbers<[1], [0], [0], [1], [0, 0, 1, 1], [], []>} : vector<256x116xbf16>, vector<116x96xbf16>, vector<256x96xf32> -> vector<256x96xf32>
    %61 = arith.addf %54, %60 : vector<256x96xf32>
    %c0_62 = arith.constant 0 : index
    %c0_63 = arith.constant 0 : index
    %62 = vector.load %arg5[%c0_62, %c0_63] : memref<1x96xf32, #tpu.memory_space<vmem>>, vector<1x96xf32>
    %63 = vector.broadcast %62 : vector<1x96xf32> to vector<256x96xf32>
    %64 = arith.addf %61, %63 : vector<256x96xf32>
    %cst_64 = arith.constant 0.000000e+00 : bf16
    %65 = vector.broadcast %cst_64 : bf16 to vector<18x18x96xbf16>
    %c0_65 = arith.constant 0 : index
    %c0_66 = arith.constant 0 : index
    %c0_67 = arith.constant 0 : index
    %66 = vector.load %arg9[%c0_65, %c0_66, %c0_67] : memref<18x18x96xbf16, #tpu.memory_space<vmem>>, vector<18x18x96xbf16>
    tpu.vector_store %arg9[%c0_65, %c0_66, %c0_67], %65 {strides = array<i32>} : memref<18x18x96xbf16, #tpu.memory_space<vmem>>, vector<18x18x96xbf16>,
    %67 = arith.truncf %64 : vector<256x96xf32> to vector<256x96xbf16>
    %68 = vector.shape_cast %67 : vector<256x96xbf16> to vector<16x16x96xbf16>
    %c1_68 = arith.constant 1 : index
    %c1_69 = arith.constant 1 : index
    %c0_70 = arith.constant 0 : index
    %69 = vector.load %arg9[%c1_68, %c1_69, %c0_70] : memref<18x18x96xbf16, #tpu.memory_space<vmem>>, vector<16x16x96xbf16>
    tpu.vector_store %arg9[%c1_68, %c1_69, %c0_70], %68 {strides = array<i32>} : memref<18x18x96xbf16, #tpu.memory_space<vmem>>, vector<16x16x96xbf16>,
    %c0_71 = arith.constant 0 : index
    %c0_72 = arith.constant 0 : index
    %c0_73 = arith.constant 0 : index
    %70 = vector.load %arg9[%c0_71, %c0_72, %c0_73] : memref<18x18x96xbf16, #tpu.memory_space<vmem>>, vector<16x16x96xbf16>
    %71 = vector.shape_cast %70 : vector<16x16x96xbf16> to vector<256x96xbf16>
    %c0_74 = arith.constant 0 : index
    %c0_75 = arith.constant 0 : index
    %c0_76 = arith.constant 0 : index
    %72 = vector.load %arg3[%c0_74, %c0_75, %c0_76] : memref<9x96x64xbf16, #tpu.memory_space<vmem>>, vector<1x96x64xbf16>
    %73 = vector.shape_cast %72 : vector<1x96x64xbf16> to vector<96x64xbf16>
    %cst_77 = arith.constant dense<0.000000e+00> : vector<256x64xf32>
    %74 = tpu.matmul %71, %73, %cst_77 {dimension_numbers = #tpu.dot_dimension_numbers<[1], [0], [0], [1], [0, 0, 1, 1], [], []>} : vector<256x96xbf16>, vector<96x64xbf16>, vector<256x64xf32> -> vector<256x64xf32>
    %c0_78 = arith.constant 0 : index
    %c1_79 = arith.constant 1 : index
    %c0_80 = arith.constant 0 : index
    %75 = vector.load %arg9[%c0_78, %c1_79, %c0_80] : memref<18x18x96xbf16, #tpu.memory_space<vmem>>, vector<16x16x96xbf16>
    %76 = vector.shape_cast %75 : vector<16x16x96xbf16> to vector<256x96xbf16>
    %c1_81 = arith.constant 1 : index
    %c0_82 = arith.constant 0 : index
    %c0_83 = arith.constant 0 : index
    %77 = vector.load %arg3[%c1_81, %c0_82, %c0_83] : memref<9x96x64xbf16, #tpu.memory_space<vmem>>, vector<1x96x64xbf16>
    %78 = vector.shape_cast %77 : vector<1x96x64xbf16> to vector<96x64xbf16>
    %cst_84 = arith.constant dense<0.000000e+00> : vector<256x64xf32>
    %79 = tpu.matmul %76, %78, %cst_84 {dimension_numbers = #tpu.dot_dimension_numbers<[1], [0], [0], [1], [0, 0, 1, 1], [], []>} : vector<256x96xbf16>, vector<96x64xbf16>, vector<256x64xf32> -> vector<256x64xf32>
    %80 = arith.addf %74, %79 : vector<256x64xf32>
    %c0_85 = arith.constant 0 : index
    %c2_86 = arith.constant 2 : index
    %c0_87 = arith.constant 0 : index
    %81 = vector.load %arg9[%c0_85, %c2_86, %c0_87] : memref<18x18x96xbf16, #tpu.memory_space<vmem>>, vector<16x16x96xbf16>
    %82 = vector.shape_cast %81 : vector<16x16x96xbf16> to vector<256x96xbf16>
    %c2_88 = arith.constant 2 : index
    %c0_89 = arith.constant 0 : index
    %c0_90 = arith.constant 0 : index
    %83 = vector.load %arg3[%c2_88, %c0_89, %c0_90] : memref<9x96x64xbf16, #tpu.memory_space<vmem>>, vector<1x96x64xbf16>
    %84 = vector.shape_cast %83 : vector<1x96x64xbf16> to vector<96x64xbf16>
    %cst_91 = arith.constant dense<0.000000e+00> : vector<256x64xf32>
    %85 = tpu.matmul %82, %84, %cst_91 {dimension_numbers = #tpu.dot_dimension_numbers<[1], [0], [0], [1], [0, 0, 1, 1], [], []>} : vector<256x96xbf16>, vector<96x64xbf16>, vector<256x64xf32> -> vector<256x64xf32>
    %86 = arith.addf %80, %85 : vector<256x64xf32>
    %c1_92 = arith.constant 1 : index
    %c0_93 = arith.constant 0 : index
    %c0_94 = arith.constant 0 : index
    %87 = vector.load %arg9[%c1_92, %c0_93, %c0_94] : memref<18x18x96xbf16, #tpu.memory_space<vmem>>, vector<16x16x96xbf16>
    %88 = vector.shape_cast %87 : vector<16x16x96xbf16> to vector<256x96xbf16>
    %c3_95 = arith.constant 3 : index
    %c0_96 = arith.constant 0 : index
    %c0_97 = arith.constant 0 : index
    %89 = vector.load %arg3[%c3_95, %c0_96, %c0_97] : memref<9x96x64xbf16, #tpu.memory_space<vmem>>, vector<1x96x64xbf16>
    %90 = vector.shape_cast %89 : vector<1x96x64xbf16> to vector<96x64xbf16>
    %cst_98 = arith.constant dense<0.000000e+00> : vector<256x64xf32>
    %91 = tpu.matmul %88, %90, %cst_98 {dimension_numbers = #tpu.dot_dimension_numbers<[1], [0], [0], [1], [0, 0, 1, 1], [], []>} : vector<256x96xbf16>, vector<96x64xbf16>, vector<256x64xf32> -> vector<256x64xf32>
    %92 = arith.addf %86, %91 : vector<256x64xf32>
    %c1_99 = arith.constant 1 : index
    %c1_100 = arith.constant 1 : index
    %c0_101 = arith.constant 0 : index
    %93 = vector.load %arg9[%c1_99, %c1_100, %c0_101] : memref<18x18x96xbf16, #tpu.memory_space<vmem>>, vector<16x16x96xbf16>
    %94 = vector.shape_cast %93 : vector<16x16x96xbf16> to vector<256x96xbf16>
    %c4_102 = arith.constant 4 : index
    %c0_103 = arith.constant 0 : index
    %c0_104 = arith.constant 0 : index
    %95 = vector.load %arg3[%c4_102, %c0_103, %c0_104] : memref<9x96x64xbf16, #tpu.memory_space<vmem>>, vector<1x96x64xbf16>
    %96 = vector.shape_cast %95 : vector<1x96x64xbf16> to vector<96x64xbf16>
    %cst_105 = arith.constant dense<0.000000e+00> : vector<256x64xf32>
    %97 = tpu.matmul %94, %96, %cst_105 {dimension_numbers = #tpu.dot_dimension_numbers<[1], [0], [0], [1], [0, 0, 1, 1], [], []>} : vector<256x96xbf16>, vector<96x64xbf16>, vector<256x64xf32> -> vector<256x64xf32>
    %98 = arith.addf %92, %97 : vector<256x64xf32>
    %c1_106 = arith.constant 1 : index
    %c2_107 = arith.constant 2 : index
    %c0_108 = arith.constant 0 : index
    %99 = vector.load %arg9[%c1_106, %c2_107, %c0_108] : memref<18x18x96xbf16, #tpu.memory_space<vmem>>, vector<16x16x96xbf16>
    %100 = vector.shape_cast %99 : vector<16x16x96xbf16> to vector<256x96xbf16>
    %c5_109 = arith.constant 5 : index
    %c0_110 = arith.constant 0 : index
    %c0_111 = arith.constant 0 : index
    %101 = vector.load %arg3[%c5_109, %c0_110, %c0_111] : memref<9x96x64xbf16, #tpu.memory_space<vmem>>, vector<1x96x64xbf16>
    %102 = vector.shape_cast %101 : vector<1x96x64xbf16> to vector<96x64xbf16>
    %cst_112 = arith.constant dense<0.000000e+00> : vector<256x64xf32>
    %103 = tpu.matmul %100, %102, %cst_112 {dimension_numbers = #tpu.dot_dimension_numbers<[1], [0], [0], [1], [0, 0, 1, 1], [], []>} : vector<256x96xbf16>, vector<96x64xbf16>, vector<256x64xf32> -> vector<256x64xf32>
    %104 = arith.addf %98, %103 : vector<256x64xf32>
    %c2_113 = arith.constant 2 : index
    %c0_114 = arith.constant 0 : index
    %c0_115 = arith.constant 0 : index
    %105 = vector.load %arg9[%c2_113, %c0_114, %c0_115] : memref<18x18x96xbf16, #tpu.memory_space<vmem>>, vector<16x16x96xbf16>
    %106 = vector.shape_cast %105 : vector<16x16x96xbf16> to vector<256x96xbf16>
    %c6_116 = arith.constant 6 : index
    %c0_117 = arith.constant 0 : index
    %c0_118 = arith.constant 0 : index
    %107 = vector.load %arg3[%c6_116, %c0_117, %c0_118] : memref<9x96x64xbf16, #tpu.memory_space<vmem>>, vector<1x96x64xbf16>
    %108 = vector.shape_cast %107 : vector<1x96x64xbf16> to vector<96x64xbf16>
    %cst_119 = arith.constant dense<0.000000e+00> : vector<256x64xf32>
    %109 = tpu.matmul %106, %108, %cst_119 {dimension_numbers = #tpu.dot_dimension_numbers<[1], [0], [0], [1], [0, 0, 1, 1], [], []>} : vector<256x96xbf16>, vector<96x64xbf16>, vector<256x64xf32> -> vector<256x64xf32>
    %110 = arith.addf %104, %109 : vector<256x64xf32>
    %c2_120 = arith.constant 2 : index
    %c1_121 = arith.constant 1 : index
    %c0_122 = arith.constant 0 : index
    %111 = vector.load %arg9[%c2_120, %c1_121, %c0_122] : memref<18x18x96xbf16, #tpu.memory_space<vmem>>, vector<16x16x96xbf16>
    %112 = vector.shape_cast %111 : vector<16x16x96xbf16> to vector<256x96xbf16>
    %c7_123 = arith.constant 7 : index
    %c0_124 = arith.constant 0 : index
    %c0_125 = arith.constant 0 : index
    %113 = vector.load %arg3[%c7_123, %c0_124, %c0_125] : memref<9x96x64xbf16, #tpu.memory_space<vmem>>, vector<1x96x64xbf16>
    %114 = vector.shape_cast %113 : vector<1x96x64xbf16> to vector<96x64xbf16>
    %cst_126 = arith.constant dense<0.000000e+00> : vector<256x64xf32>
    %115 = tpu.matmul %112, %114, %cst_126 {dimension_numbers = #tpu.dot_dimension_numbers<[1], [0], [0], [1], [0, 0, 1, 1], [], []>} : vector<256x96xbf16>, vector<96x64xbf16>, vector<256x64xf32> -> vector<256x64xf32>
    %116 = arith.addf %110, %115 : vector<256x64xf32>
    %c2_127 = arith.constant 2 : index
    %c2_128 = arith.constant 2 : index
    %c0_129 = arith.constant 0 : index
    %117 = vector.load %arg9[%c2_127, %c2_128, %c0_129] : memref<18x18x96xbf16, #tpu.memory_space<vmem>>, vector<16x16x96xbf16>
    %118 = vector.shape_cast %117 : vector<16x16x96xbf16> to vector<256x96xbf16>
    %c8_130 = arith.constant 8 : index
    %c0_131 = arith.constant 0 : index
    %c0_132 = arith.constant 0 : index
    %119 = vector.load %arg3[%c8_130, %c0_131, %c0_132] : memref<9x96x64xbf16, #tpu.memory_space<vmem>>, vector<1x96x64xbf16>
    %120 = vector.shape_cast %119 : vector<1x96x64xbf16> to vector<96x64xbf16>
    %cst_133 = arith.constant dense<0.000000e+00> : vector<256x64xf32>
    %121 = tpu.matmul %118, %120, %cst_133 {dimension_numbers = #tpu.dot_dimension_numbers<[1], [0], [0], [1], [0, 0, 1, 1], [], []>} : vector<256x96xbf16>, vector<96x64xbf16>, vector<256x64xf32> -> vector<256x64xf32>
    %122 = arith.addf %116, %121 : vector<256x64xf32>
    %c0_134 = arith.constant 0 : index
    %c0_135 = arith.constant 0 : index
    %123 = vector.load %arg6[%c0_134, %c0_135] : memref<1x64xf32, #tpu.memory_space<vmem>>, vector<1x64xf32>
    %124 = vector.broadcast %123 : vector<1x64xf32> to vector<256x64xf32>
    %125 = arith.addf %122, %124 : vector<256x64xf32>
    %126 = arith.truncf %125 : vector<256x64xf32> to vector<256x64xbf16>
    %127 = vector.shape_cast %126 : vector<256x64xbf16> to vector<16x16x64xbf16>
    %c1_136 = arith.constant 1 : index
    %c1_137 = arith.constant 1 : index
    %c0_138 = arith.constant 0 : index
    %128 = vector.load %arg9[%c1_136, %c1_137, %c0_138] : memref<18x18x96xbf16, #tpu.memory_space<vmem>>, vector<16x16x64xbf16>
    tpu.vector_store %arg9[%c1_136, %c1_137, %c0_138], %127 {strides = array<i32>} : memref<18x18x96xbf16, #tpu.memory_space<vmem>>, vector<16x16x64xbf16>,
    %c0_139 = arith.constant 0 : index
    %c0_140 = arith.constant 0 : index
    %c0_141 = arith.constant 0 : index
    %129 = vector.load %arg9[%c0_139, %c0_140, %c0_141] : memref<18x18x96xbf16, #tpu.memory_space<vmem>>, vector<16x16x96xbf16>
    %130 = vector.shape_cast %129 : vector<16x16x96xbf16> to vector<256x96xbf16>
    %c0_142 = arith.constant 0 : index
    %c0_143 = arith.constant 0 : index
    %c0_144 = arith.constant 0 : index
    %131 = vector.load %arg4[%c0_142, %c0_143, %c0_144] : memref<9x96x32xbf16, #tpu.memory_space<vmem>>, vector<1x96x32xbf16>
    %132 = vector.shape_cast %131 : vector<1x96x32xbf16> to vector<96x32xbf16>
    %cst_145 = arith.constant dense<0.000000e+00> : vector<256x32xf32>
    %133 = tpu.matmul %130, %132, %cst_145 {dimension_numbers = #tpu.dot_dimension_numbers<[1], [0], [0], [1], [0, 0, 1, 1], [], []>} : vector<256x96xbf16>, vector<96x32xbf16>, vector<256x32xf32> -> vector<256x32xf32>
    %c0_146 = arith.constant 0 : index
    %c1_147 = arith.constant 1 : index
    %c0_148 = arith.constant 0 : index
    %134 = vector.load %arg9[%c0_146, %c1_147, %c0_148] : memref<18x18x96xbf16, #tpu.memory_space<vmem>>, vector<16x16x96xbf16>
    %135 = vector.shape_cast %134 : vector<16x16x96xbf16> to vector<256x96xbf16>
    %c1_149 = arith.constant 1 : index
    %c0_150 = arith.constant 0 : index
    %c0_151 = arith.constant 0 : index
    %136 = vector.load %arg4[%c1_149, %c0_150, %c0_151] : memref<9x96x32xbf16, #tpu.memory_space<vmem>>, vector<1x96x32xbf16>
    %137 = vector.shape_cast %136 : vector<1x96x32xbf16> to vector<96x32xbf16>
    %cst_152 = arith.constant dense<0.000000e+00> : vector<256x32xf32>
    %138 = tpu.matmul %135, %137, %cst_152 {dimension_numbers = #tpu.dot_dimension_numbers<[1], [0], [0], [1], [0, 0, 1, 1], [], []>} : vector<256x96xbf16>, vector<96x32xbf16>, vector<256x32xf32> -> vector<256x32xf32>
    %139 = arith.addf %133, %138 : vector<256x32xf32>
    %c0_153 = arith.constant 0 : index
    %c2_154 = arith.constant 2 : index
    %c0_155 = arith.constant 0 : index
    %140 = vector.load %arg9[%c0_153, %c2_154, %c0_155] : memref<18x18x96xbf16, #tpu.memory_space<vmem>>, vector<16x16x96xbf16>
    %141 = vector.shape_cast %140 : vector<16x16x96xbf16> to vector<256x96xbf16>
    %c2_156 = arith.constant 2 : index
    %c0_157 = arith.constant 0 : index
    %c0_158 = arith.constant 0 : index
    %142 = vector.load %arg4[%c2_156, %c0_157, %c0_158] : memref<9x96x32xbf16, #tpu.memory_space<vmem>>, vector<1x96x32xbf16>
    %143 = vector.shape_cast %142 : vector<1x96x32xbf16> to vector<96x32xbf16>
    %cst_159 = arith.constant dense<0.000000e+00> : vector<256x32xf32>
    %144 = tpu.matmul %141, %143, %cst_159 {dimension_numbers = #tpu.dot_dimension_numbers<[1], [0], [0], [1], [0, 0, 1, 1], [], []>} : vector<256x96xbf16>, vector<96x32xbf16>, vector<256x32xf32> -> vector<256x32xf32>
    %145 = arith.addf %139, %144 : vector<256x32xf32>
    %c1_160 = arith.constant 1 : index
    %c0_161 = arith.constant 0 : index
    %c0_162 = arith.constant 0 : index
    %146 = vector.load %arg9[%c1_160, %c0_161, %c0_162] : memref<18x18x96xbf16, #tpu.memory_space<vmem>>, vector<16x16x96xbf16>
    %147 = vector.shape_cast %146 : vector<16x16x96xbf16> to vector<256x96xbf16>
    %c3_163 = arith.constant 3 : index
    %c0_164 = arith.constant 0 : index
    %c0_165 = arith.constant 0 : index
    %148 = vector.load %arg4[%c3_163, %c0_164, %c0_165] : memref<9x96x32xbf16, #tpu.memory_space<vmem>>, vector<1x96x32xbf16>
    %149 = vector.shape_cast %148 : vector<1x96x32xbf16> to vector<96x32xbf16>
    %cst_166 = arith.constant dense<0.000000e+00> : vector<256x32xf32>
    %150 = tpu.matmul %147, %149, %cst_166 {dimension_numbers = #tpu.dot_dimension_numbers<[1], [0], [0], [1], [0, 0, 1, 1], [], []>} : vector<256x96xbf16>, vector<96x32xbf16>, vector<256x32xf32> -> vector<256x32xf32>
    %151 = arith.addf %145, %150 : vector<256x32xf32>
    %c1_167 = arith.constant 1 : index
    %c1_168 = arith.constant 1 : index
    %c0_169 = arith.constant 0 : index
    %152 = vector.load %arg9[%c1_167, %c1_168, %c0_169] : memref<18x18x96xbf16, #tpu.memory_space<vmem>>, vector<16x16x96xbf16>
    %153 = vector.shape_cast %152 : vector<16x16x96xbf16> to vector<256x96xbf16>
    %c4_170 = arith.constant 4 : index
    %c0_171 = arith.constant 0 : index
    %c0_172 = arith.constant 0 : index
    %154 = vector.load %arg4[%c4_170, %c0_171, %c0_172] : memref<9x96x32xbf16, #tpu.memory_space<vmem>>, vector<1x96x32xbf16>
    %155 = vector.shape_cast %154 : vector<1x96x32xbf16> to vector<96x32xbf16>
    %cst_173 = arith.constant dense<0.000000e+00> : vector<256x32xf32>
    %156 = tpu.matmul %153, %155, %cst_173 {dimension_numbers = #tpu.dot_dimension_numbers<[1], [0], [0], [1], [0, 0, 1, 1], [], []>} : vector<256x96xbf16>, vector<96x32xbf16>, vector<256x32xf32> -> vector<256x32xf32>
    %157 = arith.addf %151, %156 : vector<256x32xf32>
    %c1_174 = arith.constant 1 : index
    %c2_175 = arith.constant 2 : index
    %c0_176 = arith.constant 0 : index
    %158 = vector.load %arg9[%c1_174, %c2_175, %c0_176] : memref<18x18x96xbf16, #tpu.memory_space<vmem>>, vector<16x16x96xbf16>
    %159 = vector.shape_cast %158 : vector<16x16x96xbf16> to vector<256x96xbf16>
    %c5_177 = arith.constant 5 : index
    %c0_178 = arith.constant 0 : index
    %c0_179 = arith.constant 0 : index
    %160 = vector.load %arg4[%c5_177, %c0_178, %c0_179] : memref<9x96x32xbf16, #tpu.memory_space<vmem>>, vector<1x96x32xbf16>
    %161 = vector.shape_cast %160 : vector<1x96x32xbf16> to vector<96x32xbf16>
    %cst_180 = arith.constant dense<0.000000e+00> : vector<256x32xf32>
    %162 = tpu.matmul %159, %161, %cst_180 {dimension_numbers = #tpu.dot_dimension_numbers<[1], [0], [0], [1], [0, 0, 1, 1], [], []>} : vector<256x96xbf16>, vector<96x32xbf16>, vector<256x32xf32> -> vector<256x32xf32>
    %163 = arith.addf %157, %162 : vector<256x32xf32>
    %c2_181 = arith.constant 2 : index
    %c0_182 = arith.constant 0 : index
    %c0_183 = arith.constant 0 : index
    %164 = vector.load %arg9[%c2_181, %c0_182, %c0_183] : memref<18x18x96xbf16, #tpu.memory_space<vmem>>, vector<16x16x96xbf16>
    %165 = vector.shape_cast %164 : vector<16x16x96xbf16> to vector<256x96xbf16>
    %c6_184 = arith.constant 6 : index
    %c0_185 = arith.constant 0 : index
    %c0_186 = arith.constant 0 : index
    %166 = vector.load %arg4[%c6_184, %c0_185, %c0_186] : memref<9x96x32xbf16, #tpu.memory_space<vmem>>, vector<1x96x32xbf16>
    %167 = vector.shape_cast %166 : vector<1x96x32xbf16> to vector<96x32xbf16>
    %cst_187 = arith.constant dense<0.000000e+00> : vector<256x32xf32>
    %168 = tpu.matmul %165, %167, %cst_187 {dimension_numbers = #tpu.dot_dimension_numbers<[1], [0], [0], [1], [0, 0, 1, 1], [], []>} : vector<256x96xbf16>, vector<96x32xbf16>, vector<256x32xf32> -> vector<256x32xf32>
    %169 = arith.addf %163, %168 : vector<256x32xf32>
    %c2_188 = arith.constant 2 : index
    %c1_189 = arith.constant 1 : index
    %c0_190 = arith.constant 0 : index
    %170 = vector.load %arg9[%c2_188, %c1_189, %c0_190] : memref<18x18x96xbf16, #tpu.memory_space<vmem>>, vector<16x16x96xbf16>
    %171 = vector.shape_cast %170 : vector<16x16x96xbf16> to vector<256x96xbf16>
    %c7_191 = arith.constant 7 : index
    %c0_192 = arith.constant 0 : index
    %c0_193 = arith.constant 0 : index
    %172 = vector.load %arg4[%c7_191, %c0_192, %c0_193] : memref<9x96x32xbf16, #tpu.memory_space<vmem>>, vector<1x96x32xbf16>
    %173 = vector.shape_cast %172 : vector<1x96x32xbf16> to vector<96x32xbf16>
    %cst_194 = arith.constant dense<0.000000e+00> : vector<256x32xf32>
    %174 = tpu.matmul %171, %173, %cst_194 {dimension_numbers = #tpu.dot_dimension_numbers<[1], [0], [0], [1], [0, 0, 1, 1], [], []>} : vector<256x96xbf16>, vector<96x32xbf16>, vector<256x32xf32> -> vector<256x32xf32>
    %175 = arith.addf %169, %174 : vector<256x32xf32>
    %c2_195 = arith.constant 2 : index
    %c2_196 = arith.constant 2 : index
    %c0_197 = arith.constant 0 : index
    %176 = vector.load %arg9[%c2_195, %c2_196, %c0_197] : memref<18x18x96xbf16, #tpu.memory_space<vmem>>, vector<16x16x96xbf16>
    %177 = vector.shape_cast %176 : vector<16x16x96xbf16> to vector<256x96xbf16>
    %c8_198 = arith.constant 8 : index
    %c0_199 = arith.constant 0 : index
    %c0_200 = arith.constant 0 : index
    %178 = vector.load %arg4[%c8_198, %c0_199, %c0_200] : memref<9x96x32xbf16, #tpu.memory_space<vmem>>, vector<1x96x32xbf16>
    %179 = vector.shape_cast %178 : vector<1x96x32xbf16> to vector<96x32xbf16>
    %cst_201 = arith.constant dense<0.000000e+00> : vector<256x32xf32>
    %180 = tpu.matmul %177, %179, %cst_201 {dimension_numbers = #tpu.dot_dimension_numbers<[1], [0], [0], [1], [0, 0, 1, 1], [], []>} : vector<256x96xbf16>, vector<96x32xbf16>, vector<256x32xf32> -> vector<256x32xf32>
    %181 = arith.addf %175, %180 : vector<256x32xf32>
    %c0_202 = arith.constant 0 : index
    %c0_203 = arith.constant 0 : index
    %182 = vector.load %arg7[%c0_202, %c0_203] : memref<1x32xf32, #tpu.memory_space<vmem>>, vector<1x32xf32>
    %183 = vector.broadcast %182 : vector<1x32xf32> to vector<256x32xf32>
    %184 = arith.addf %181, %183 : vector<256x32xf32>
    %c0_204 = arith.constant 0 : index
    %c0_205 = arith.constant 0 : index
    %185 = vector.load %arg10[%c0_204, %c0_205] : memref<256x32xf32, #tpu.memory_space<vmem>>, vector<256x32xf32>
    tpu.vector_store %arg10[%c0_204, %c0_205], %184 {strides = array<i32>} : memref<256x32xf32, #tpu.memory_space<vmem>>, vector<256x32xf32>,
    %c0_206 = arith.constant 0 : index
    %c0_207 = arith.constant 0 : index
    %186 = tpu.strided_load %arg10[%c0_206, %c0_207] {strides = array<i32: 2, 1>} : memref<256x32xf32, #tpu.memory_space<vmem>>, vector<128x32xf32>
    %c1_208 = arith.constant 1 : index
    %c0_209 = arith.constant 0 : index
    %187 = tpu.strided_load %arg10[%c1_208, %c0_209] {strides = array<i32: 2, 1>} : memref<256x32xf32, #tpu.memory_space<vmem>>, vector<128x32xf32>
    %188 = arith.maximumf %186, %187 : vector<128x32xf32>
    %189 = vector.shape_cast %188 : vector<128x32xf32> to vector<8x2x8x32xf32>
    %cst_210 = arith.constant dense<0xFF800000> : vector<8x8x32xf32>
    %190 = vector.multi_reduction <maximumf>, %189, %cst_210 [1] : vector<8x2x8x32xf32> to vector<8x8x32xf32>
    %c0_211 = arith.constant 0 : index
    %c0_212 = arith.constant 0 : index
    %c0_213 = arith.constant 0 : index
    %c0_214 = arith.constant 0 : index
    %191 = vector.load %arg8[%c0_211, %c0_212, %c0_213, %c0_214] : memref<1x8x8x32xf32, #tpu.memory_space<vmem>>, vector<1x8x8x32xf32>
    %192 = vector.shape_cast %191 : vector<1x8x8x32xf32> to vector<8x8x32xf32>
    %193 = vector.shape_cast %190 : vector<8x8x32xf32> to vector<1x8x8x32xf32>
    tpu.vector_store %arg8[%c0_211, %c0_212, %c0_213, %c0_214], %193 {strides = array<i32>} : memref<1x8x8x32xf32, #tpu.memory_space<vmem>>, vector<1x8x8x32xf32>,
    return
  }
  func.func @transform_0(%arg0: i32) -> (i32, i32, i32, i32) {
    %c0_i32 = arith.constant 0 : i32
    %c0_i32_0 = arith.constant 0 : i32
    %c0_i32_1 = arith.constant 0 : i32
    %c0_i32_2 = arith.constant 0 : i32
    return %arg0, %c0_i32, %c0_i32_0, %c0_i32_1 : i32, i32, i32, i32
  }
  func.func @transform_1(%arg0: i32) -> (i32, i32, i32) {
    %c0_i32 = arith.constant 0 : i32
    %c0_i32_0 = arith.constant 0 : i32
    %c0_i32_1 = arith.constant 0 : i32
    %c0_i32_2 = arith.constant 0 : i32
    return %c0_i32, %c0_i32_0, %c0_i32_1 : i32, i32, i32
  }
  func.func @transform_2(%arg0: i32) -> (i32, i32, i32) {
    %c0_i32 = arith.constant 0 : i32
    %c0_i32_0 = arith.constant 0 : i32
    %c0_i32_1 = arith.constant 0 : i32
    %c0_i32_2 = arith.constant 0 : i32
    return %c0_i32, %c0_i32_0, %c0_i32_1 : i32, i32, i32
  }
  func.func @transform_3(%arg0: i32) -> (i32, i32, i32) {
    %c0_i32 = arith.constant 0 : i32
    %c0_i32_0 = arith.constant 0 : i32
    %c0_i32_1 = arith.constant 0 : i32
    %c0_i32_2 = arith.constant 0 : i32
    return %c0_i32, %c0_i32_0, %c0_i32_1 : i32, i32, i32
  }
  func.func @transform_4(%arg0: i32) -> (i32, i32) {
    %c0_i32 = arith.constant 0 : i32
    %c0_i32_0 = arith.constant 0 : i32
    %c0_i32_1 = arith.constant 0 : i32
    return %c0_i32, %c0_i32_0 : i32, i32
  }
  func.func @transform_5(%arg0: i32) -> (i32, i32) {
    %c0_i32 = arith.constant 0 : i32
    %c0_i32_0 = arith.constant 0 : i32
    %c0_i32_1 = arith.constant 0 : i32
    return %c0_i32, %c0_i32_0 : i32, i32
  }
  func.func @transform_6(%arg0: i32) -> (i32, i32) {
    %c0_i32 = arith.constant 0 : i32
    %c0_i32_0 = arith.constant 0 : i32
    %c0_i32_1 = arith.constant 0 : i32
    return %c0_i32, %c0_i32_0 : i32, i32
  }
  func.func @transform_7(%arg0: i32) -> (i32, i32, i32, i32) {
    %c0_i32 = arith.constant 0 : i32
    %c0_i32_0 = arith.constant 0 : i32
    %c0_i32_1 = arith.constant 0 : i32
    %c0_i32_2 = arith.constant 0 : i32
    return %arg0, %c0_i32, %c0_i32_0, %c0_i32_1 : i32, i32, i32, i32
  }
}

</mosaic_0001>

<bundles_post_ra>
// kernel: hierarchy_conv_forward.1
= control target key start
LH: loop header
LB: loop body
LE: loop exit
PB: predicated region body
PF: predicated region fallthrough
CT: control target
= control target key end

     0   :  { %12 = vsyncpa [#allocation5], 0  ;;  %s27576_s0 = inlined_call_operand.vmem [shape: bf16[2,18,18,116], index: 0, kind: input, shape index: {}]   ;;  %s27577_s1 = inlined_call_operand.vmem [shape: bf16[9,116,96], index: 1, kind: input, shape index: {}]   ;;  %s27578_s2 = inlined_call_operand.vmem [shape: bf16[9,96,64], index: 2, kind: input, shape index: {}]   ;;  %s27579_s3 = inlined_call_operand.vmem [shape: bf16[9,96,32], index: 3, kind: input, shape index: {}]   ;;  %s27580_s4 = inlined_call_operand.vmem [shape: f32[1,96], index: 4, kind: input, shape index: {}]   ;;  %s27581_s5 = inlined_call_operand.vmem [shape: f32[1,64], index: 5, kind: input, shape index: {}]   ;;  %s27582_s6 = inlined_call_operand.vmem [shape: f32[1,32], index: 6, kind: input, shape index: {}]   ;;  %s27583_s7 = inlined_call_operand.hbm [shape: f32[2,8,8,32], index: 7, kind: output, shape index: {}]  }
   0x1   :  { %14 = vsyncpa [#allocation5 + $0x1], 0  ;;  %s21762_s24 = smov 0   ;;  %s21764_s25 = smov 0  }
   0x2   :  { %s21766_s26 = smov 0   ;;  %s21768_s27 = smov 0  }
   0x3 LB: > { %s21783_s28 = sadd.s32 4294967295, %s21716_s27   ;;  %s16722_s29 = sadd.s32 4294967294, %s21716_s27   ;;  %s21716_s27 = sphi %s21768_s27, %s28073_s27   ;;  %s21712_s26 = sphi %s21766_s26, %s28072_s26   ;;  %s21708_s25 = sphi %s21764_s25, %s28071_s25   ;;  %s21704_s24 = sphi %s21762_s24, %s28070_s24  }
   0x4   : > { %s21787_s30 = sadd.s32 1, %s21716_s27   ;;  %s179_s8 = sadd.s32 1, %s21712_s26 }
   0x5   : > { %s176_s9 = ssub.s32 %s21716_s27, %s21787_s30  ;;  %p189_p0 = scmp.ne.s32.totalorder %s21712_s26, %s21708_s25 }
   0x6   : > { %p177_p1 = scmp.eq.s32.totalorder %s176_s9, 0  ;;  %p190_p2 = scmp.eq.s32.totalorder %s21783_s28, 1 }
   0x7   : > { %p195_p3 = scmp.ne.s32.totalorder %s21708_s25, %s21704_s24  ;;  %p196_p4 = scmp.eq.s32.totalorder %s16722_s29, 1 }
   0x8   : > { %s21798_s10 = scalar_select %p177_p1, %s21712_s26, %s179_s8  }
   0x9   : > { %p21800_p5 = por %p190_p2, %p189_p0  ;;  %p21804_p6 = por %p196_p4, %p195_p3 }
   0xa   : > { %p16725_p7 = scmp.ge.s32.totalorder %s21716_s27, 1  ;;  %p240_p8 = scmp.lt.s32.totalorder %s21716_s27, 3 }
   0xc   : > { %p241_p9 = pnand %p16725_p7, %p240_p8 }
   0xe   : > { %244 = sbr.rel (%p241_p9) target bundleno = 2283 (0x8eb), region = 48 }
  0x15   : > { %v21225_v0 = vld [vmem:[%s27577_s1 + $0x3c] sm:$0xff]   ;;  %v21226_v1 = vld [vmem:[%s27577_s1 + $0x44] sm:$0xff]   ;;  %p272_p10 = scmp.lt.s32.totalorder %s21783_s28, 1  ;;  %v21227_v2 = vld [vmem:[%s27577_s1 + $0x4c] sm:$0xff]   ;;  %vm886_vm0 = vcmask 1041408   ;;  %vm837_vm3 = vcmask 949248  }
  0x16   : > { %19169 = vmatprep.subr.bf16.mxu0 %v21225_v0  ;;  %v21228_v3 = vld [vmem:[%s27577_s1 + $0x54] sm:$0xff]   ;;  %vm341_vm1 = vsmask.f32 3328  ;;  %vm342_vm2 = vsmask.f32 7440  ;;  %v21229_v17 = vld [vmem:[%s27577_s1 + $0x5c] sm:$0xff]  }
  0x17   : > { %19170 = vmatpush3.bf16.msra.mxu0 %v21225_v0  ;;  %s273_s17 = scalar_select %p272_p10, %s21783_s28, 1  ;;  %v21840_v8 = vld [vmem:[%s27577_s1 + $0x74] ss:$0 sps:$4 sm:$0x33]   ;;  %vm21867_vm4 = vmor %vm341_vm1, %vm342_vm2  ;;  %v27719_v30 = vmov 0  ;;  %v21230_v36 = vld [vmem:[%s27577_s1 + $0x64] sm:$0xff]  }
  0x18   : > { %19171 = vmatprep.subr.bf16.mxu0 %v21226_v1  ;;  %v27720_v30 = vsel %vm21867_vm4, 4294967295, %v27719_v30  ;;  %v21879_v37 = vsel %vm886_vm0, %v21840_v8, 0  ;;  %v21231_v51 = vld [vmem:[%s27577_s1 + $0x6c] sm:$0xff]   ;;  %vm1436_vm5 = vcmask 1042432   ;;  %vm1437_vm6 = vcmask 1046532   ;;  %s269_s22 = sand.u32 1, %s21708_s25  }
  0x19   : > { %s21182_s20 = smul.u32 216, %s273_s17  ;;  %27721 = vst [vmem:[#allocation7_spill] sm:$0xff] %v27720_v30  ;;  %vm22224_vm7 = vmor %vm1436_vm5, %vm1437_vm6  ;;  %vm5407_vm8 = vcmask 781312   ;;  %vm5410_vm9 = vcmask 778240   ;;  %vm6541_vm10 = vcmask 785408   ;;  %vm11402_vm1 = vcmask 519168  }
  0x1a   : > { %vm5884_vm11 = vsmask.f32 7938  ;;  %vm5559_vm12 = vsmask.f32 256  ;;  %vm5560_vm13 = vsmask.f32 4368 }
  0x1b   : > { %19172 = vmatpush3.bf16.msra.mxu0 %v21226_v1  ;;  %s21827_s8 = scalar_lea.vmem %s27576_s0, %s21182_s20  ;;  %vm24024_vm14 = vmand %vm5407_vm8, %vm5884_vm11  ;;  %vm11408_vm2 = vcmask 516096   ;;  %s16726_s23 = sshll.u32 %s269_s22, 6 }
  0x1c   : > { %19173 = vmatprep.subr.bf16.mxu0 %v21227_v2  ;;  %v21830_v4 = vld [vmem:[%s21827_s8] sm:$0xf]  ;;  %v21833_v5 = vld [vmem:[%s21827_s8 + $0x4] sm:$0xf]  ;;  %v325_v6 = vld [vmem:[%s21827_s8 + $0x8] sm:$0x1] }
  0x1d   : > { %v345_v7 = vshrl.u32 %v21830_v4, 16  ;;  %v348_v9 = vshll.u32 %v21830_v4, 16  ;;  %v354_v10 = vshll.u32 %v21833_v5, 16  ;;  %v358_v11 = vshrl.u32 %v21833_v5, 16  ;;  %v21846_v13 = vld [vmem:[%s21827_s8 + $0xc] sm:$0xf]  ;;  %vm24030_vm15 = vmor %vm5559_vm12, %vm5560_vm13 }
  0x1e   : > { %v364_v12 = vshll.u32 %v325_v6, 16  ;;  %v21849_v15 = vld [vmem:[%s21827_s8 + $0x10] sm:$0xf]  ;;  %v21852_v16 = vld [vmem:[%s21827_s8 + $0x14] sm:$0x1]  ;;  %v369_v21 = vshrl.u32 %v21846_v13, 16  ;;  %vm25557_vm5 = vmand %vm11408_vm2, %vm5559_vm12 }
  0x1f   : > { %19174 = vmatpush3.bf16.msra.mxu0 %v21227_v2  ;;  %v347_v14 = vrot.slane %v345_v7, 4  ;;  %v350_v18 = vrot.slane %v348_v9, 5  ;;  %v356_v19 = vrot.slane %v354_v10, 5  ;;  %v360_v20 = vrot.slane %v358_v11, 4  ;;  %v21863_v29 = vld [vmem:[%s21827_s8 + $0x18] sm:$0xf] }
  0x20   : > { %19175 = vmatprep.subr.bf16.mxu0 %v21228_v3  ;;  %v372_v22 = vshll.u32 %v21846_v13, 16  ;;  %v378_v23 = vshll.u32 %v21849_v15, 16  ;;  %v382_v24 = vshrl.u32 %v21849_v15, 16  ;;  %v366_v27 = vrot.slane %v364_v12, 5  ;;  %v21872_v35 = vld [vmem:[%s21827_s8 + $0x1c] sm:$0xf] }
  0x21   : > { %v351_v25 = vor.u32 %v350_v18, %v347_v14  ;;  %v361_v26 = vor.u32 %v360_v20, %v356_v19  ;;  %v388_v28 = vshll.u32 %v21852_v16, 16  ;;  %v371_v31 = vrot.slane %v369_v21, 4  ;;  %v327_v43 = vld [vmem:[%s21827_s8 + $0x20] sm:$0x1]  ;;  %v21885_v46 = vld [vmem:[%s21827_s8 + $0x24] sm:$0xf] }
  0x22   : > { %v374_v32 = vrot.slane %v372_v22, 5  ;;  %v380_v33 = vrot.slane %v378_v23, 5  ;;  %v384_v34 = vrot.slane %v382_v24, 4  ;;  %v393_v44 = vshrl.u32 %v21863_v29, 16  ;;  %v21897_v60 = vld [vmem:[%s21827_s8 + $0x28] sm:$0xf] }
  0x23   : > { %19176 = vmatpush3.bf16.msra.mxu0 %v21228_v3  ;;  %v352_v38 = vrot.slane %v351_v25, 4  ;;  %v362_v39 = vrot.slane %v361_v26, 4  ;;  %v390_v40 = vrot.slane %v388_v28, 5  ;;  %v396_v45 = vshll.u32 %v21863_v29, 16  ;;  %v21905_v63 = vld [vmem:[%s21827_s8 + $0x2c] sm:$0x1] }
  0x24   : > { %19177 = vmatprep.subr.bf16.mxu0 %v21229_v17  ;;  %v375_v41 = vor.u32 %v374_v32, %v371_v31  ;;  %v385_v42 = vor.u32 %v384_v34, %v380_v33  ;;  %v402_v49 = vshll.u32 %v21872_v35, 16  ;;  %v406_v50 = vshrl.u32 %v21872_v35, 16  ;;  %v21910_v2 = vld [vmem:[%s21827_s8 + $0x30] sm:$0xf]  ;;  %v21920_v18 = vld [vmem:[%s21827_s8 + $0x38] sm:$0x1] }
  0x25   : > { %v357_v47 = vsel %vm21867_vm4, %v352_v38, %v356_v19  ;;  %v367_v48 = vsel %vm21867_vm4, %v362_v39, %v366_v27  ;;  %v395_v55 = vrot.slane %v393_v44, 4  ;;  %v398_v56 = vrot.slane %v396_v45, 5  ;;  %v21926_v27 = vld [vmem:[%s21827_s8 + $0x3c] sm:$0xf]  ;;  %v21233_v34 = vld [vmem:[%s27577_s1] sm:$0xff]   ;;  %s18556_s29 = sshll.u32 %s21783_s28, 10 }
  0x26   : > { %v16743_v52 = vcombine.low %v357_v47, %v367_v48  ;;  %v376_v53 = vrot.slane %v375_v41, 4  ;;  %v386_v54 = vrot.slane %v385_v42, 4  ;;  %v404_v57 = vrot.slane %v402_v49, 5  ;;  %v21936_v41 = vld [vmem:[%s21827_s8 + $0x40] sm:$0xf]  ;;  %s27527_s15 = scalar_lea.hbm %s27583_s7, %s18556_s29  ;;  %s27535_s28 = scalar_lea.sflag [#allocation5], %s269_s22 }
  0x27   : > { %19178 = vmatpush3.bf16.msra.mxu0 %v21229_v17  ;;  %v408_v58 = vrot.slane %v406_v50, 4  ;;  %v412_v59 = vshll.u32 %v327_v43, 16  ;;  %v417_v0 = vshrl.u32 %v21885_v46, 16  ;;  %v420_v1 = vshll.u32 %v21885_v46, 16  ;;  %v21917_v17 = vld [vmem:[%s21827_s8 + $0x34] sm:$0xf] }
  0x28   : > { %19179 = vmatprep.subr.bf16.mxu0 %v21230_v36  ;;  %19185 = vmatprep.mubr.msk.bf16.mxu0 %vm837_vm3, %v16743_v52  ;;  %v381_v61 = vsel %vm21867_vm4, %v376_v53, %v380_v33  ;;  %v391_v62 = vsel %vm21867_vm4, %v386_v54, %v390_v40  ;;  %v399_v6 = vor.u32 %v398_v56, %v395_v55  ;;  %v426_v12 = vshll.u32 %v21897_v60, 16  ;;  %v21944_v45 = vld [vmem:[%s21827_s8 + $0x44] sm:$0x1]  ;;  %v21951_v55 = vld [vmem:[%s21827_s8 + $0x48] sm:$0xf]  ;;  %s21719_s17 = smov [#allocation4]  }
  0x29   : > { %v21912_v3 = vcombine.low %v381_v61, %v391_v62  ;;  %v409_v7 = vor.u32 %v408_v58, %v404_v57  ;;  %v414_v9 = vrot.slane %v412_v59, 5  ;;  %v419_v10 = vrot.slane %v417_v0, 4  ;;  %v21234_v62 = vld [vmem:[%s27577_s1 + $0x8] sm:$0xff]   ;;  %s21658_s18 = sshll.u32 %s21719_s17, 4  ;;  %s21659_s18 = int_to_ptr.vmem [resolvable:$false] %s21658_s18 }
  0x2a   : > { %v422_v11 = vrot.slane %v420_v1, 5  ;;  %v430_v14 = vshrl.u32 %v21897_v60, 16  ;;  %v400_v19 = vrot.slane %v399_v6, 4  ;;  %v436_v21 = vshll.u32 %v21905_v63, 16  ;;  %s21660_s19 = scalar_lea.vmem %s21659_s18, 2048 }
  0x2b   : > { %19180 = vmatpush3.bf16.msra.mxu0 %v21230_v36  ;;  %v410_v20 = vrot.slane %v409_v7, 4  ;;  %v441_v22 = vshrl.u32 %v21910_v2, 16  ;;  %v428_v24 = vrot.slane %v426_v12, 5  ;;  %v444_v26 = vshll.u32 %v21910_v2, 16 }
  0x2c   : > { %19181 = vmatprep.subr.bf16.mxu0 %v21231_v51  ;;  %v423_v23 = vor.u32 %v422_v11, %v419_v10  ;;  %v432_v25 = vrot.slane %v430_v14, 4  ;;  %v405_v28 = vsel %vm21867_vm4, %v400_v19, %v404_v57  ;;  %v438_v32 = vrot.slane %v436_v21, 5  ;;  %v21968_v11 = vld [vmem:[%s21827_s8 + $0x50] sm:$0x1]  ;;  %v21972_v14 = vld [vmem:[%s21827_s8 + $0x54] sm:$0xf] }
  0x2d   : > { %v415_v31 = vsel %vm21867_vm4, %v410_v20, %v414_v9  ;;  %v443_v33 = vrot.slane %v441_v22, 4  ;;  %v446_v40 = vrot.slane %v444_v26, 5  ;;  %v450_v42 = vshll.u32 %v21917_v17, 16 }
  0x2e   : > { %v16745_v36 = vcombine.low %v405_v28, %v415_v31  ;;  %v424_v38 = vrot.slane %v423_v23, 4  ;;  %v433_v39 = vor.u32 %v432_v25, %v428_v24  ;;  %v454_v43 = vshrl.u32 %v21917_v17, 16  ;;  %v21235_v31 = vld [vmem:[%s27577_s1 + $0x10] sm:$0xff]  }
  0x2f   : > { %19182 = vmatpush3.bf16.msra.mxu0 %v21231_v51  ;;  %v460_v44 = vshll.u32 %v21920_v18, 16  ;;  %v465_v47 = vshrl.u32 %v21926_v27, 16  ;;  %v447_v50 = vor.u32 %v446_v40, %v443_v33  ;;  %v468_v51 = vshll.u32 %v21926_v27, 16 }
  0x30   : > { %21173 = vmatprep.subr.msk.bf16.mxu0 %vm886_vm0, %v21840_v8  ;;  %v429_v48 = vsel %vm21867_vm4, %v424_v38, %v428_v24  ;;  %v434_v49 = vrot.slane %v433_v39, 4  ;;  %v452_v52 = vrot.slane %v450_v42, 5  ;;  %v456_v8 = vrot.slane %v454_v43, 4  ;;  %v21992_v42 = vld [vmem:[%s21827_s8 + $0x5c] sm:$0x1] }
  0x31   : > { %v462_v53 = vrot.slane %v460_v44, 5  ;;  %v467_v54 = vrot.slane %v465_v47, 4  ;;  %v448_v57 = vrot.slane %v447_v50, 4  ;;  %v470_v58 = vrot.slane %v468_v51, 5 }
  0x32   : > { %v439_v56 = vsel %vm21867_vm4, %v434_v49, %v438_v32  ;;  %v474_v59 = vshll.u32 %v21936_v41, 16  ;;  %v457_v0 = vor.u32 %v456_v8, %v452_v52  ;;  %v478_v1 = vshrl.u32 %v21936_v41, 16  ;;  %v21996_v49 = vld [vmem:[%s21827_s8 + $0x60] sm:$0xf] }
  0x33   : > { %19184 = vmatpush3.bf16.msra.mxu0 %v21879_v37  ;;  %v16746_v61 = vcombine.low %v429_v48, %v439_v56  ;;  %v484_v6 = vshll.u32 %v21944_v45, 16  ;;  %v21963_v37 = vld [vmem:[%s21827_s8 + $0x4c] sm:$0xf]  ;;  %v453_v7 = vsel %vm21867_vm4, %v448_v57, %v452_v52  ;;  %v471_v9 = vor.u32 %v470_v58, %v467_v54 }
  0x34   : > { %19217 = vmatprep.subr.bf16.mxu0 %v21233_v34  ;;  %v476_v10 = vrot.slane %v474_v59, 5  ;;  %v489_v12 = vshrl.u32 %v21951_v55, 16  ;;  %v458_v19 = vrot.slane %v457_v0, 4  ;;  %v480_v20 = vrot.slane %v478_v1, 4  ;;  %v21236_v59 = vld [vmem:[%s27577_s1 + $0x18] sm:$0xff]  }
  0x35   : > { %v486_v21 = vrot.slane %v484_v6, 5  ;;  %v492_v22 = vshll.u32 %v21951_v55, 16  ;;  %v472_v23 = vrot.slane %v471_v9, 4  ;;  %v498_v25 = vshll.u32 %v21963_v37, 16 }
  0x36   : > { %19186 = vmatmul.mubr.msk.bf16.vlgmr.msra.gmra.mrb[0].mxu0 %vm837_vm3, %v21912_v3  ;;  %v491_v24 = vrot.slane %v489_v12, 4  ;;  %v502_v26 = vshrl.u32 %v21963_v37, 16  ;;  %v463_v3 = vsel %vm21867_vm4, %v458_v19, %v462_v53  ;;  %v481_v28 = vor.u32 %v480_v20, %v476_v10  ;;  %v22002_v53 = vld [vmem:[%s21827_s8 + $0x64] sm:$0xf]  ;;  %v22014_v12 = vld [vmem:[%s21827_s8 + $0x68] sm:$0x1] }
  0x37   : > { %19218 = vmatpush3.bf16.msra.mxu0 %v21233_v34  ;;  %19189 = vmatprep.mubr.msk.bf16.mxu0 %vm837_vm3, %v16745_v36  ;;  %v494_v32 = vrot.slane %v492_v22, 5  ;;  %v508_v33 = vshll.u32 %v21968_v11, 16  ;;  %v21987_v34 = vld [vmem:[%s21827_s8 + $0x58] sm:$0xf]  ;;  %v16747_v36 = vcombine.low %v453_v7, %v463_v3  ;;  %v477_v38 = vsel %vm21867_vm4, %v472_v23, %v476_v10  ;;  %27722 = vst [vmem:[#allocation8_spill] sm:$0xff] %v22014_v12 }
  0x38   : > { %19219 = vmatprep.subr.bf16.mxu0 %v21234_v62  ;;  %v500_v39 = vrot.slane %v498_v25, 5  ;;  %v504_v40 = vrot.slane %v502_v26, 4  ;;  %v482_v43 = vrot.slane %v481_v28, 4  ;;  %v513_v48 = vshrl.u32 %v21972_v14, 16  ;;  %v22023_v23 = vld [vmem:[%s21827_s8 + $0x6c] sm:$0xf] }
  0x39   : > { %v495_v44 = vor.u32 %v494_v32, %v491_v24  ;;  %v510_v47 = vrot.slane %v508_v33, 5  ;;  %v516_v51 = vshll.u32 %v21972_v14, 16  ;;  %v522_v52 = vshll.u32 %v21987_v34, 16  ;;  %v22027_v28 = vld [vmem:[%s21827_s8 + $0x70] sm:$0xf] }
  0x3a   : > { %v505_v50 = vor.u32 %v504_v40, %v500_v39  ;;  %v526_v8 = vshrl.u32 %v21987_v34, 16  ;;  %v487_v54 = vsel %vm21867_vm4, %v482_v43, %v486_v21  ;;  %v515_v57 = vrot.slane %v513_v48, 4 }
  0x3b   : > { %19220 = vmatpush3.bf16.msra.mxu0 %v21234_v62  ;;  %v496_v56 = vrot.slane %v495_v44, 4  ;;  %v532_v58 = vshll.u32 %v21992_v42, 16  ;;  %v16748_v62 = vcombine.low %v477_v38, %v487_v54  ;;  %v518_v1 = vrot.slane %v516_v51, 5 }
  0x3c   : > { %19221 = vmatprep.subr.bf16.mxu0 %v21235_v31  ;;  %v506_v0 = vrot.slane %v505_v50, 4  ;;  %v524_v6 = vrot.slane %v522_v52, 5  ;;  %v528_v9 = vrot.slane %v526_v8, 4  ;;  %v537_v19 = vshrl.u32 %v21996_v49, 16  ;;  %v22042_v8 = vld [vmem:[%s21827_s8 + $0x78] sm:$0xf] }
  0x3d   : > { %v501_v7 = vsel %vm21867_vm4, %v496_v56, %v500_v39  ;;  %v534_v10 = vrot.slane %v532_v58, 5  ;;  %v519_v21 = vor.u32 %v518_v1, %v515_v57  ;;  %v546_v22 = vshll.u32 %v22002_v53, 16  ;;  %v22034_v39 = vld [vmem:[%s21827_s8 + $0x74] sm:$0x1] }
  0x3e   : > { %19190 = vmatmul.mubr.msk.bf16.gmra.mrb[4].mxu0 %vm837_vm3, %v16746_v61  ;;  %v511_v20 = vsel %vm21867_vm4, %v506_v0, %v510_v47  ;;  %v540_v61 = vshll.u32 %v21996_v49, 16  ;;  %v529_v25 = vor.u32 %v528_v9, %v524_v6  ;;  %v539_v26 = vrot.slane %v537_v19, 4  ;;  %27723 = vst [vmem:[#allocation9_spill] sm:$0xff] %v22034_v39  ;;  %v22047_v0 = vld [vmem:[%s21827_s8 + $0x7c] sm:$0xf] }
  0x3f   : > { %19193 = vmatprep.mubr.msk.bf16.mxu0 %vm837_vm3, %v16747_v36  ;;  %19222 = vmatpush3.bf16.msra.mxu0 %v21235_v31  ;;  %v16749_v24 = vcombine.low %v501_v7, %v511_v20  ;;  %v550_v3 = vshrl.u32 %v22002_v53, 16  ;;  %v21237_v31 = vld [vmem:[%s27577_s1 + $0x20] sm:$0xff]   ;;  %v520_v32 = vrot.slane %v519_v21, 4  ;;  %v548_v36 = vrot.slane %v546_v22, 5 }
  0x40   : > { %19223 = vmatprep.subr.bf16.mxu0 %v21236_v59  ;;  %v542_v33 = vrot.slane %v540_v61, 5  ;;  %v556_v38 = vshll.u32 %v22014_v12, 16  ;;  %v530_v40 = vrot.slane %v529_v25, 4  ;;  %v561_v44 = vshrl.u32 %v22023_v23, 16  ;;  %v22054_v19 = vld [vmem:[%s21827_s8 + $0x80] sm:$0x1] }
  0x41   : > { %v552_v43 = vrot.slane %v550_v3, 4  ;;  %v564_v47 = vshll.u32 %v22023_v23, 16  ;;  %v525_v48 = vsel %vm21867_vm4, %v520_v32, %v524_v6  ;;  %v570_v52 = vshll.u32 %v22027_v28, 16  ;;  %27724 = vst [vmem:[#allocation10_spill] sm:$0xff] %v22054_v19  ;;  %v22060_v22 = vld [vmem:[%s21827_s8 + $0x84] sm:$0xf] }
  0x42   : > { %v543_v50 = vor.u32 %v542_v33, %v539_v26  ;;  %v558_v51 = vrot.slane %v556_v38, 5  ;;  %v535_v54 = vsel %vm21867_vm4, %v530_v40, %v534_v10  ;;  %v563_v57 = vrot.slane %v561_v44, 4  ;;  %v22068_v32 = vld [vmem:[%s21827_s8 + $0x88] sm:$0xf]  ;;  %v22164_v12 = vld [vmem:[%s21827_s8 + $0xbc] sm:$0x1] }
  0x43   : > { %19224 = vmatpush3.bf16.msra.mxu0 %v21236_v59  ;;  %v553_v56 = vor.u32 %v552_v43, %v548_v36  ;;  %v566_v58 = vrot.slane %v564_v47, 5  ;;  %v21238_v59 = vld [vmem:[%s27577_s1 + $0x28] sm:$0xff]   ;;  %v16750_v1 = vcombine.low %v525_v48, %v535_v54  ;;  %v572_v7 = vrot.slane %v570_v52, 5  ;;  %27729 = vst [vmem:[#allocation15_spill] sm:$0xff] %v22164_v12 }
  0x44   : > { %19225 = vmatprep.subr.bf16.mxu0 %v21237_v31  ;;  %v544_v6 = vrot.slane %v543_v50, 4  ;;  %v574_v9 = vshrl.u32 %v22027_v28, 16  ;;  %v580_v21 = vshll.u32 %v22034_v39, 16  ;;  %v585_v61 = vshrl.u32 %v22042_v8, 16  ;;  %v22076_v48 = vld [vmem:[%s21827_s8 + $0x8c] sm:$0x1] }
  0x45   : > { %v554_v10 = vrot.slane %v553_v56, 4  ;;  %v567_v20 = vor.u32 %v566_v58, %v563_v57  ;;  %v588_v3 = vshll.u32 %v22042_v8, 16  ;;  %27725 = vst [vmem:[#allocation11_spill] sm:$0xff] %v22076_v48  ;;  %v604_v52 = vshll.u32 %v22054_v19, 16  ;;  %v22084_v56 = vld [vmem:[%s21827_s8 + $0x90] sm:$0xf] }
  0x46   : > { %19194 = vmatmul.mubr.msk.bf16.gmra.mrb[8].mxu0 %vm837_vm3, %v16748_v62  ;;  %v549_v25 = vsel %vm21867_vm4, %v544_v6, %v548_v36  ;;  %v576_v26 = vrot.slane %v574_v9, 4  ;;  %v594_v62 = vshll.u32 %v22047_v0, 16  ;;  %v582_v40 = vrot.slane %v580_v21, 5  ;;  %v22089_v57 = vld [vmem:[%s27577_s1 + $0x38] ss:$0 sps:$4 sm:$0x33]  }
  0x47   : > { %19197 = vmatprep.mubr.msk.bf16.mxu0 %vm837_vm3, %v16749_v24  ;;  %19226 = vmatpush3.bf16.msra.mxu0 %v21237_v31  ;;  %v559_v33 = vsel %vm21867_vm4, %v554_v10, %v558_v51  ;;  %v568_v38 = vrot.slane %v567_v20, 4  ;;  %v587_v43 = vrot.slane %v585_v61, 4  ;;  %v21239_v24 = vld [vmem:[%s27577_s1 + $0x30] sm:$0xff]   ;;  %v590_v44 = vrot.slane %v588_v3, 5  ;;  %v22157_v39 = vld [vmem:[%s21827_s8 + $0xb8] sm:$0xf] }
  0x48   : > { %19227 = vmatprep.subr.bf16.mxu0 %v21238_v59  ;;  %v16751_v36 = vcombine.low %v549_v25, %v559_v33  ;;  %v577_v31 = vor.u32 %v576_v26, %v572_v7  ;;  %v596_v47 = vrot.slane %v594_v62, 5  ;;  %v598_v51 = vshrl.u32 %v22047_v0, 16  ;;  %v22094_v10 = vld [vmem:[%s21827_s8 + $0x94] sm:$0xf] }
  0x49   : > { %v573_v50 = vsel %vm21867_vm4, %v568_v38, %v572_v7  ;;  %v609_v54 = vshrl.u32 %v22060_v22, 16  ;;  %v591_v6 = vor.u32 %v590_v44, %v587_v43  ;;  %v612_v9 = vshll.u32 %v22060_v22, 16  ;;  %v22100_v38 = vld [vmem:[%s21827_s8 + $0x98] sm:$0x1] }
  0x4a   : > { %v578_v58 = vrot.slane %v577_v31, 4  ;;  %v618_v7 = vshll.u32 %v22068_v32, 16  ;;  %v600_v20 = vrot.slane %v598_v51, 4  ;;  %v606_v21 = vrot.slane %v604_v52, 5  ;;  %27726 = vst [vmem:[#allocation12_spill] sm:$0xff] %v22100_v38 }
  0x4b   : > { %19228 = vmatpush3.bf16.msra.mxu0 %v21238_v59  ;;  %v611_v61 = vrot.slane %v609_v54, 4  ;;  %v622_v25 = vshrl.u32 %v22068_v32, 16  ;;  %v592_v3 = vrot.slane %v591_v6, 4  ;;  %v614_v62 = vrot.slane %v612_v9, 5 }
  0x4c   : > { %19229 = vmatprep.subr.bf16.mxu0 %v21239_v24  ;;  %v583_v26 = vsel %vm21867_vm4, %v578_v58, %v582_v40  ;;  %v620_v33 = vrot.slane %v618_v7, 5  ;;  %v601_v43 = vor.u32 %v600_v20, %v596_v47  ;;  %v628_v44 = vshll.u32 %v22076_v48, 16  ;;  %v22110_v58 = vld [vmem:[%s21827_s8 + $0x9c] sm:$0xf]  ;;  %v22114_v7 = vld [vmem:[%s21827_s8 + $0xa0] sm:$0xf] }
  0x4d   : > { %v16752_v59 = vcombine.low %v573_v50, %v583_v26  ;;  %v624_v31 = vrot.slane %v622_v25, 4  ;;  %v597_v51 = vsel %vm21867_vm4, %v592_v3, %v596_v47  ;;  %v615_v40 = vor.u32 %v614_v62, %v611_v61  ;;  %v22120_v25 = vld [vmem:[%s21827_s8 + $0xa4] sm:$0x1] }
  0x4e   : > { %19198 = vmatmul.mubr.msk.bf16.gmra.mrb[12].mxu0 %vm837_vm3, %v16750_v1  ;;  %v633_v52 = vshrl.u32 %v22084_v56, 16  ;;  %v636_v54 = vshll.u32 %v22084_v56, 16  ;;  %v602_v1 = vrot.slane %v601_v43, 4  ;;  %v630_v6 = vrot.slane %v628_v44, 5  ;;  %27727 = vst [vmem:[#allocation13_spill] sm:$0xff] %v22120_v25 }
  0x4f   : > { %19201 = vmatprep.mubr.msk.bf16.mxu0 %vm837_vm3, %v16751_v36  ;;  %19230 = vmatpush3.bf16.msra.mxu0 %v21239_v24  ;;  %v625_v50 = vor.u32 %v624_v31, %v620_v33  ;;  %v642_v9 = vshll.u32 %v22094_v10, 16  ;;  %v616_v36 = vrot.slane %v615_v40, 4  ;;  %v646_v61 = vshrl.u32 %v22094_v10, 16  ;;  %v22126_v43 = vld [vmem:[%s21827_s8 + $0xa8] sm:$0xf] }
  0x50   : > { %21174 = vmatprep.subr.msk.bf16.mxu0 %vm886_vm0, %v22089_v57  ;;  %v635_v47 = vrot.slane %v633_v52, 4  ;;  %v638_v20 = vrot.slane %v636_v54, 5  ;;  %v607_v24 = vsel %vm21867_vm4, %v602_v1, %v606_v21  ;;  %v652_v62 = vshll.u32 %v22100_v38, 16 }
  0x51   : > { %v626_v26 = vrot.slane %v625_v50, 4  ;;  %v644_v3 = vrot.slane %v642_v9, 5  ;;  %v16753_v31 = vcombine.low %v597_v51, %v607_v24  ;;  %v621_v44 = vsel %vm21867_vm4, %v616_v36, %v620_v33  ;;  %v22136_v24 = vld [vmem:[%s21827_s8 + $0xac] sm:$0xf] }
  0x52   : > { %v639_v40 = vor.u32 %v638_v20, %v635_v47  ;;  %v648_v52 = vrot.slane %v646_v61, 4  ;;  %v654_v48 = vrot.slane %v652_v62, 5  ;;  %v657_v21 = vshrl.u32 %v22110_v58, 16  ;;  %v22142_v20 = vld [vmem:[%s21827_s8 + $0xb0] sm:$0x1] }
  0x53   : > { %v631_v54 = vsel %vm21867_vm4, %v626_v26, %v630_v6  ;;  %v660_v1 = vshll.u32 %v22110_v58, 16  ;;  %v666_v51 = vshll.u32 %v22114_v7, 16  ;;  %v670_v47 = vshrl.u32 %v22114_v7, 16  ;;  %27728 = vst [vmem:[#allocation14_spill] sm:$0xff] %v22142_v20 }
  0x54   : > { %v16754_v50 = vcombine.low %v621_v44, %v631_v54  ;;  %v640_v9 = vrot.slane %v639_v40, 4  ;;  %v649_v38 = vor.u32 %v648_v52, %v644_v3  ;;  %v659_v33 = vrot.slane %v657_v21, 4  ;;  %v22149_v40 = vld [vmem:[%s21827_s8 + $0xb4] sm:$0xf] }
  0x55   : > { %v662_v36 = vrot.slane %v660_v1, 5  ;;  %v676_v6 = vshll.u32 %v22120_v25, 16  ;;  %v668_v62 = vrot.slane %v666_v51, 5  ;;  %v681_v44 = vshrl.u32 %v22126_v43, 16 }
  0x56   : > { %19202 = vmatmul.mubr.msk.bf16.gmra.mrb[16].mxu0 %vm837_vm3, %v16752_v59  ;;  %v645_v61 = vsel %vm21867_vm4, %v640_v9, %v644_v3  ;;  %v650_v26 = vrot.slane %v649_v38, 4  ;;  %v672_v52 = vrot.slane %v670_v47, 4  ;;  %v684_v21 = vshll.u32 %v22126_v43, 16 }
  0x57   : > { %19205 = vmatprep.mubr.msk.bf16.mxu0 %vm837_vm3, %v16753_v31  ;;  %v663_v59 = vor.u32 %v662_v36, %v659_v33  ;;  %v678_v54 = vrot.slane %v676_v6, 5  ;;  %v683_v31 = vrot.slane %v681_v44, 4  ;;  %v690_v25 = vshll.u32 %v22136_v24, 16 }
  0x58   : > { %v655_v1 = vsel %vm21867_vm4, %v650_v26, %v654_v48  ;;  %v694_v38 = vshrl.u32 %v22136_v24, 16  ;;  %v673_v51 = vor.u32 %v672_v52, %v668_v62  ;;  %v686_v19 = vrot.slane %v684_v21, 5 }
  0x59   : > { %v16755_v3 = vcombine.low %v645_v61, %v655_v1  ;;  %v664_v9 = vrot.slane %v663_v59, 4  ;;  %v692_v33 = vrot.slane %v690_v25, 5  ;;  %v700_v47 = vshll.u32 %v22142_v20, 16 }
  0x5a   : > { %v696_v36 = vrot.slane %v694_v38, 4  ;;  %v705_v6 = vshrl.u32 %v22149_v40, 16  ;;  %v674_v26 = vrot.slane %v673_v51, 4  ;;  %v687_v44 = vor.u32 %v686_v19, %v683_v31  ;;  %v22175_v19 = vld [vmem:[%s27577_s1 + $0x78] sm:$0xff]  }
  0x5b   : > { %v669_v48 = vsel %vm21867_vm4, %v664_v9, %v668_v62  ;;  %v708_v61 = vshll.u32 %v22149_v40, 16  ;;  %v702_v52 = vrot.slane %v700_v47, 5  ;;  %v714_v1 = vshll.u32 %v22157_v39, 16 }
  0x5c   : > { %v697_v59 = vor.u32 %v696_v36, %v692_v33  ;;  %v707_v21 = vrot.slane %v705_v6, 4  ;;  %v679_v25 = vsel %vm21867_vm4, %v674_v26, %v678_v54  ;;  %v688_v38 = vrot.slane %v687_v44, 4 }
  0x5d   : > { %v710_v20 = vrot.slane %v708_v61, 5  ;;  %v718_v62 = vshrl.u32 %v22157_v39, 16  ;;  %v1448_v31 = vrot.slane %v21849_v15, 5  ;;  %v716_v51 = vrot.slane %v714_v1, 5 }
  0x5e   : > { %19206 = vmatmul.mubr.msk.bf16.gmra.mrb[20].mxu0 %vm837_vm3, %v16754_v50  ;;  %v698_v9 = vrot.slane %v697_v59, 4  ;;  %v724_v50 = vshll.u32 %v22164_v12, 16  ;;  %v693_v54 = vsel %vm21867_vm4, %v688_v38, %v692_v33  ;;  %v1225_v6 = vsel %vm886_vm0, %v22089_v57, 0  ;;  %v1398_v38 = vld [vmem:[%s21827_s8 + $0x78] sm:$0xe] }
  0x5f   : > { %19209 = vmatprep.mubr.msk.bf16.mxu0 %vm837_vm3, %v16755_v3  ;;  %v711_v36 = vor.u32 %v710_v20, %v707_v21  ;;  %v720_v47 = vrot.slane %v718_v62, 4  ;;  %v16756_v26 = vcombine.low %v669_v48, %v679_v25  ;;  %19232 = vmatpush3.bf16.msra.mxu0 %v1225_v6  ;;  %v16784_v3 = vcombine.low %v21846_v13, %v21849_v15  ;;  %v1391_v6 = vld [vmem:[%s21827_s8 + $0x24] sm:$0xe]  ;;  %v1402_v57 = vld [vmem:[%s21827_s8 + $0xa8] sm:$0xe] }
  0x60   : > { %v703_v44 = vsel %vm21867_vm4, %v698_v9, %v702_v52  ;;  %v726_v61 = vrot.slane %v724_v50, 5  ;;  %19265 = vmatprep.subr.bf16.mxu0 %v22175_v19  ;;  %v1451_v21 = vrot.slane %v21852_v16, 5  ;;  %v1389_v16 = vld [vmem:[%s21827_s8 + $0xc] sm:$0xe]  ;;  %v1462_v50 = vrot.slane %v21897_v60, 5 }
  0x61   : > { %v16757_v59 = vcombine.low %v693_v54, %v703_v44  ;;  %v712_v1 = vrot.slane %v711_v36, 4  ;;  %v721_v12 = vor.u32 %v720_v47, %v716_v51  ;;  %v1450_v54 = vrot.slane %v1448_v31, 4  ;;  %v1392_v9 = vld [vmem:[%s21827_s8 + $0x30] sm:$0xe]  ;;  %v1399_v62 = vld [vmem:[%s21827_s8 + $0x84] sm:$0xe] }
  0x62   : > { %v16826_v47 = vrot.slane %v1391_v6, 9  ;;  %v1394_v6 = vld [vmem:[%s21827_s8 + $0x48] sm:$0xe]  ;;  %v1504_v48 = vrot.slane %v22027_v28, 5  ;;  %v1403_v20 = vld [vmem:[%s21827_s8 + $0xb4] sm:$0xe] }
  0x63   : > { %v722_v25 = vrot.slane %v721_v12, 4  ;;  %v717_v44 = vsel %vm21867_vm4, %v712_v1, %v716_v51  ;;  %v16824_v12 = vrot.slane %v1389_v16, 9  ;;  %v1393_v1 = vld [vmem:[%s21827_s8 + $0x3c] sm:$0xe]  ;;  %v1395_v16 = vld [vmem:[%s21827_s8 + $0x54] sm:$0xe] }
  0x64   : > { %v1506_v15 = vrot.slane %v1504_v48, 4 }
  0x65   : > { %v727_v36 = vsel %vm21867_vm4, %v722_v25, %v726_v61  ;;  %v22232_v51 = vsel %vm22224_vm7, %v16824_v12, %v1448_v31  ;;  %v22236_v61 = vsel %vm22224_vm7, %v1450_v54, %v1451_v21  ;;  %v16783_v25 = vcombine.low %v21830_v4, %v21833_v5 }
  0x66   : > { %19210 = vmatmul.mubr.msk.bf16.gmra.mrb[24].mxu0 %vm837_vm3, %v16756_v26  ;;  %v1465_v31 = vrot.slane %v21905_v63, 5  ;;  %v16827_v12 = vrot.slane %v1392_v9, 9  ;;  %v1469_v21 = vrot.slane %v21917_v17, 5  ;;  %v1472_v54 = vrot.slane %v21920_v18, 5 }
  0x67   : > { %19213 = vmatprep.mubr.msk.bf16.mxu0 %vm837_vm3, %v16757_v59  ;;  %v16758_v59 = vcombine.low %v717_v44, %v727_v36  ;;  %v22246_v36 = vsel %vm22224_vm7, %v16826_v47, %v1462_v50  ;;  %v1464_v44 = vrot.slane %v1462_v50, 4  ;;  %v16785_v4 = vcombine.low %v21863_v29, %v21872_v35  ;;  %v1396_v35 = vld [vmem:[%s21827_s8 + $0x60] sm:$0xe] }
  0x68   : > { %v16828_v47 = vrot.slane %v1393_v1, 9  ;;  %v1476_v50 = vrot.slane %v21936_v41, 5  ;;  %v22265_v18 = vsel %vm22224_vm7, %v16827_v12, %v1469_v21  ;;  %v1471_v9 = vrot.slane %v1469_v21, 4 }
  0x69   : > { %v22256_v5 = vsel %vm22224_vm7, %v1464_v44, %v1465_v31  ;;  %v1479_v29 = vrot.slane %v21944_v45, 5  ;;  %v16829_v44 = vrot.slane %v1394_v6, 9  ;;  %v1397_v31 = vld [vmem:[%s21827_s8 + $0x6c] sm:$0xe]  ;;  %v1486_v12 = vrot.slane %v21968_v11, 5 }
  0x6a   : > { %v1478_v1 = vrot.slane %v1476_v50, 4  ;;  %v22277_v63 = vsel %vm22224_vm7, %v1471_v9, %v1472_v54  ;;  %v16830_v21 = vrot.slane %v1395_v16, 9  ;;  %v1490_v45 = vrot.slane %v21987_v34, 5  ;;  %v27732_v54 = vld [vmem:[#allocation8_spill] sm:$0xff] }
  0x6b   : > { %v1493_v9 = vrot.slane %v21992_v42, 5  ;;  %v1500_v52 = vrot.slane %v27732_v54, 5  ;;  %v27733_v54 = vld [vmem:[#allocation9_spill] sm:$0xff] }
  0x6c   : > { %v22296_v11 = vsel %vm22224_vm7, %v16830_v21, %v1490_v45  ;;  %v1492_v16 = vrot.slane %v1490_v45, 4  ;;  %v16832_v45 = vrot.slane %v1397_v31, 9  ;;  %v1507_v21 = vrot.slane %v27733_v54, 5 }
  0x6d   : > { %v1511_v31 = vrot.slane %v22047_v0, 5  ;;  %v16834_v54 = vrot.slane %v1399_v62, 9 }
  0x6e   : > { %19214 = vmatmul.mubr.msk.bf16.gmra.mrb[28].mxu0 %vm837_vm3, %v16758_v59  ;;  %v22271_v59 = vsel %vm22224_vm7, %v16828_v47, %v1476_v50  ;;  %v22285_v47 = vsel %vm22224_vm7, %v1478_v1, %v1479_v29  ;;  %v21246_v29 = vld [vmem:[%s27577_s1 + $0x80] sm:$0xff]   ;;  %v22313_v42 = vsel %vm22224_vm7, %v1492_v16, %v1493_v9  ;;  %v1400_v16 = vld [vmem:[%s21827_s8 + $0x90] sm:$0xe]  ;;  %v22332_v13 = vsel %vm22224_vm7, %v16832_v45, %v1504_v48  ;;  %v1401_v9 = vld [vmem:[%s21827_s8 + $0x9c] sm:$0xe] }
  0x6f   : > { %19233 = vmatprep.mubr.msk.bf16.mxu0 %vm837_vm3, %v16783_v25  ;;  %v1483_v25 = vrot.slane %v21963_v37, 5  ;;  %v1518_v45 = vrot.slane %v22068_v32, 5  ;;  %v1513_v33 = vrot.slane %v1511_v31, 4 }
  0x71   : > { %v22289_v6 = vsel %vm22224_vm7, %v16829_v44, %v1483_v25  ;;  %v1485_v50 = vrot.slane %v1483_v25, 4  ;;  %v16831_v44 = vrot.slane %v1396_v35, 9  ;;  %v1497_v25 = vrot.slane %v22002_v53, 5 }
  0x72   : > { %v22360_v62 = vsel %vm22224_vm7, %v16834_v54, %v1518_v45  ;;  %v27739_v54 = vcombine.low %v21885_v46, %v21897_v60  ;;  %v27741_v46 = vld [vmem:[#allocation14_spill] sm:$0xff] }
  0x73   : > { %v22305_v1 = vsel %vm22224_vm7, %v1485_v50, %v1486_v12  ;;  %v22324_v12 = vsel %vm22224_vm7, %v16831_v44, %v1497_v25  ;;  %v1499_v50 = vrot.slane %v1497_v25, 4  ;;  %v21249_v44 = vld [vmem:[%s27577_s1 + $0x88] sm:$0xff]   ;;  %v1542_v60 = vrot.slane %v27741_v46, 5 }
  0x76   : > { %19234 = vmatmul.mubr.msk.bf16.vlgmr.msra.gmra.mrb[0].mxu0 %vm837_vm3, %v16784_v3  ;;  %v16833_v3 = vrot.slane %v1398_v38, 9  ;;  %v22349_v38 = vsel %vm22224_vm7, %v1506_v15, %v1507_v21  ;;  %v21252_v21 = vld [vmem:[%s27577_s1 + $0x90] sm:$0xff]  }
  0x77   : > { %19266 = vmatpush3.bf16.msra.mxu0 %v22175_v19  ;;  %19237 = vmatprep.mubr.msk.bf16.mxu0 %vm837_vm3, %v16785_v4  ;;  %v22341_v19 = vsel %vm22224_vm7, %v1499_v50, %v1500_v52  ;;  %v27734_v4 = vld [vmem:[#allocation10_spill] sm:$0xff]  ;;  %27735 = vst [vmem:[#allocation8_spill] sm:$0xff] %v22349_v38  ;;  %v1520_v50 = vrot.slane %v1518_v45, 4  ;;  %v27737_v52 = vld [vmem:[#allocation12_spill] sm:$0xff]  ;;  %v16836_v45 = vrot.slane %v1401_v9, 9 }
  0x78   : > { %19267 = vmatprep.subr.bf16.mxu0 %v21246_v29  ;;  %v1514_v25 = vrot.slane %v27734_v4, 5  ;;  %v22353_v35 = vsel %vm22224_vm7, %v16833_v3, %v1511_v31  ;;  %v27736_v4 = vld [vmem:[#allocation11_spill] sm:$0xff]  ;;  %v16835_v3 = vrot.slane %v1400_v16, 9  ;;  %v1525_v31 = vrot.slane %v22094_v10, 5 }
  0x79   : > { %v1521_v48 = vrot.slane %v27736_v4, 5  ;;  %v1528_v30 = vrot.slane %v27737_v52, 5  ;;  %v1532_v4 = vrot.slane %v22114_v7, 5  ;;  %v27738_v52 = vld [vmem:[#allocation13_spill] sm:$0xff] }
  0x7a   : > { %v22369_v15 = vsel %vm22224_vm7, %v1513_v33, %v1514_v25  ;;  %v22384_v16 = vsel %vm22224_vm7, %v16835_v3, %v1525_v31  ;;  %v1527_v25 = vrot.slane %v1525_v31, 4  ;;  %v1535_v38 = vrot.slane %v27738_v52, 5  ;;  %v27742_v52 = vld [vmem:[#allocation15_spill] sm:$0xff] }
  0x7b   : > { %19268 = vmatpush3.bf16.msra.mxu0 %v21246_v29  ;;  %v22377_v29 = vsel %vm22224_vm7, %v1520_v50, %v1521_v48  ;;  %v22393_v9 = vsel %vm22224_vm7, %v16836_v45, %v1532_v4  ;;  %v1534_v48 = vrot.slane %v1532_v4, 4  ;;  %v16837_v50 = vrot.slane %v1402_v57, 9  ;;  %v21255_v57 = vld [vmem:[%s27577_s1 + $0x98] sm:$0xff]  }
  0x7c   : > { %19269 = vmatprep.subr.bf16.mxu0 %v21249_v44  ;;  %v1539_v33 = vrot.slane %v22136_v24, 5  ;;  %v27740_v3 = vcombine.low %v21910_v2, %v21917_v17  ;;  %v22402_v31 = vsel %vm22224_vm7, %v1527_v25, %v1528_v30  ;;  %v1546_v45 = vrot.slane %v22157_v39, 5 }
  0x7d   : > { %v16866_v2 = vcombine.low %v22384_v16, %v22402_v31  ;;  %v22413_v17 = vsel %vm22224_vm7, %v1534_v48, %v1535_v38  ;;  %v21258_v38 = vld [vmem:[%s27577_s1 + $0xa0] sm:$0xff]  }
  0x7e   : > { %19238 = vmatmul.mubr.msk.bf16.gmra.mrb[4].mxu0 %vm837_vm3, %v27739_v54  ;;  %v16838_v54 = vrot.slane %v1403_v20, 9  ;;  %v22417_v30 = vsel %vm22224_vm7, %v16837_v50, %v1539_v33  ;;  %v16867_v20 = vcombine.low %v22393_v9, %v22413_v17  ;;  %v1548_v25 = vrot.slane %v1546_v45, 4 }
  0x7f   : > { %19241 = vmatprep.mubr.msk.bf16.mxu0 %vm837_vm3, %v27740_v3  ;;  %19270 = vmatpush3.bf16.msra.mxu0 %v21249_v44  ;;  %v1541_v44 = vrot.slane %v1539_v33, 4  ;;  %v1549_v3 = vrot.slane %v27742_v52, 5  ;;  %v27749_v52 = vcombine.low %v22060_v22, %v22068_v32  ;;  %v21536_v22 = vld [vmem:[%s21827_s8 + $0x1c] sm:$0xf] }
  0x80   : > { %19271 = vmatprep.subr.bf16.mxu0 %v21252_v21  ;;  %v22423_v4 = vsel %vm22224_vm7, %v16838_v54, %v1546_v45  ;;  %v27743_v54 = vcombine.low %v21926_v27, %v21936_v41  ;;  %v21264_v45 = vld [vmem:[%s27577_s1 + $0xb0] ss:$0 sps:$4 sm:$0x33]   ;;  %v27745_v27 = vcombine.low %v21972_v14, %v21987_v34  ;;  %v27746_v41 = vcombine.low %v21996_v49, %v22002_v53  ;;  %v21534_v49 = vld [vmem:[%s21827_s8 + $0x4] sm:$0xf] }
  0x81   : > { %v22431_v48 = vsel %vm22224_vm7, %v1541_v44, %v1542_v60  ;;  %v22437_v50 = vsel %vm22224_vm7, %v1548_v25, %v1549_v3  ;;  %v27744_v60 = vcombine.low %v21951_v55, %v21963_v37  ;;  %v1709_v55 = vsel %vm886_vm0, %v21264_v45, 0  ;;  %v21265_v37 = vld [vmem:[%s27577_s1 + $0xb4] sm:$0xff]   ;;  %v21535_v44 = vld [vmem:[%s21827_s8 + $0x8] sm:$0x1] }
  0x82   : > { %v16868_v33 = vcombine.low %v22417_v30, %v22431_v48  ;;  %v16869_v46 = vcombine.low %v22423_v4, %v22437_v50  ;;  %v27747_v14 = vcombine.low %v22023_v23, %v22027_v28  ;;  %v27748_v34 = vcombine.low %v22042_v8, %v22047_v0 }
  0x83   : > { %19272 = vmatpush3.bf16.msra.mxu0 %v21252_v21  ;;  %v21261_v21 = vld [vmem:[%s27577_s1 + $0xa8] sm:$0xff]   ;;  %v1441_v53 = vrot.slane %v21534_v49, 5  ;;  %v1444_v25 = vrot.slane %v21535_v44, 5  ;;  %v27750_v23 = vcombine.low %v22084_v56, %v22094_v10  ;;  %v27751_v0 = vcombine.low %v22110_v58, %v22114_v7  ;;  %v1390_v10 = vld [vmem:[%s21827_s8 + $0x18] sm:$0xe] }
  0x84   : > { %19273 = vmatprep.subr.bf16.mxu0 %v21255_v57  ;;  %v27752_v3 = vcombine.low %v22126_v43, %v22136_v24  ;;  %v1455_v32 = vrot.slane %v21536_v22, 5  ;;  %v21537_v58 = vld [vmem:[%s21827_s8 + $0x20] sm:$0x1]  ;;  %v16985_v49 = vld [vmem:[%s21827_s8 + $0x1c] sm:$0xf] }
  0x85   : > { %v1443_v8 = vrot.slane %v1441_v53, 4  ;;  %v1458_v7 = vrot.slane %v21537_v58, 5  ;;  %v16987_v58 = vld [vmem:[%s21827_s8 + $0x24] sm:$0xf] }
  0x86   : > { %19242 = vmatmul.mubr.msk.bf16.gmra.mrb[8].mxu0 %vm837_vm3, %v27743_v54 }
  0x87   : > { %19245 = vmatprep.mubr.msk.bf16.mxu0 %vm837_vm3, %v27744_v60  ;;  %19274 = vmatpush3.bf16.msra.mxu0 %v21255_v57  ;;  %v1388_v57 = vld [vmem:[%s21827_s8] sm:$0xe]  ;;  %v1445_v56 = vsel %vm22224_vm7, %v1443_v8, %v1444_v25  ;;  %v16825_v60 = vrot.slane %v1390_v10, 9  ;;  %v2404_v8 = vshll.u32 %v16985_v49, 16 }
  0x88   : > { %19275 = vmatprep.subr.bf16.mxu0 %v21258_v38  ;;  %v16823_v28 = vrot.slane %v1388_v57, 9 }
  0x89   : > { %v1456_v43 = vsel %vm22224_vm7, %v16825_v60, %v1455_v32  ;;  %v22589_v10 = vrot.slane %v2404_v8, 5  ;;  %v27764_v60 = vcombine.low %v22360_v62, %v22377_v29 }
  0x8b   : > { %19276 = vmatpush3.bf16.msra.mxu0 %v21258_v38  ;;  %v1442_v38 = vsel %vm22224_vm7, %v16823_v28, %v1441_v53  ;;  %v27763_v53 = vcombine.low %v22353_v35, %v22369_v15  ;;  %v16983_v35 = vld [vmem:[%s21827_s8 + $0x14] sm:$0x1] }
  0x8c   : > { %19277 = vmatprep.subr.bf16.mxu0 %v21261_v21  ;;  %v16854_v54 = vcombine.low %v1442_v38, %v1445_v56  ;;  %v22587_v56 = vld [vmem:[%s27577_s1 + $0x128] ss:$0 sps:$4 sm:$0x33]  }
  0x8e   : > { %19246 = vmatmul.mubr.msk.bf16.gmra.mrb[12].mxu0 %vm837_vm3, %v27745_v27 }
  0x8f   : > { %19249 = vmatprep.mubr.msk.bf16.mxu0 %vm837_vm3, %v27746_v41  ;;  %19278 = vmatpush3.bf16.msra.mxu0 %v21261_v21  ;;  %v1457_v21 = vrot.slane %v1455_v32, 4  ;;  %v21266_v41 = vld [vmem:[%s27577_s1 + $0xbc] sm:$0xff]  }
  0x90   : > { %21175 = vmatprep.subr.msk.bf16.mxu0 %vm886_vm0, %v21264_v45  ;;  %v27753_v45 = vcombine.low %v22149_v40, %v22157_v39  ;;  %v21267_v39 = vld [vmem:[%s27577_s1 + $0xc4] sm:$0xff]   ;;  %v21268_v40 = vld [vmem:[%s27577_s1 + $0xcc] sm:$0xff]  }
  0x91   : > { %v1459_v24 = vsel %vm22224_vm7, %v1457_v21, %v1458_v7  ;;  %v16986_v21 = vld [vmem:[%s21827_s8 + $0x20] sm:$0x1]  ;;  %v16988_v7 = vld [vmem:[%s21827_s8 + $0x28] sm:$0xf] }
  0x92   : > { %v16856_v27 = vcombine.low %v1456_v43, %v1459_v24  ;;  %v2390_v24 = vshll.u32 %v16983_v35, 16  ;;  %v2414_v29 = vshll.u32 %v16986_v21, 16  ;;  %v2428_v16 = vshll.u32 %v16988_v7, 16 }
  0x93   : > { %19280 = vmatpush3.bf16.msra.mxu0 %v1709_v55  ;;  %v27754_v55 = vcombine.low %v22232_v51, %v22236_v61  ;;  %v27756_v51 = vcombine.low %v22265_v18, %v22277_v63  ;;  %v21269_v61 = vld [vmem:[%s27577_s1 + $0xd4] sm:$0xff]   ;;  %v21271_v63 = vld [vmem:[%s27577_s1 + $0xe4] sm:$0xff]   ;;  %v21272_v18 = vld [vmem:[%s27577_s1 + $0xec] ss:$0 sps:$4 sm:$0x33]   ;;  %v2432_v31 = vshrl.u32 %v16988_v7, 16 }
  0x94   : > { %19313 = vmatprep.subr.bf16.mxu0 %v21265_v37  ;;  %v22655_v7 = vld [vmem:[%s21827_s8 + $0x50] sm:$0x1] }
  0x96   : > { %19250 = vmatmul.mubr.msk.bf16.gmra.mrb[16].mxu0 %vm837_vm3, %v27747_v14  ;;  %v27755_v14 = vcombine.low %v22246_v36, %v22256_v5  ;;  %v27757_v36 = vcombine.low %v22271_v59, %v22285_v47  ;;  %v27758_v5 = vcombine.low %v22289_v6, %v22305_v1  ;;  %v27759_v59 = vcombine.low %v22296_v11, %v22313_v42  ;;  %v22566_v1 = vld [vmem:[%s27577_s1 + $0xf0] sm:$0xff]   ;;  %v16981_v11 = vld [vmem:[%s21827_s8 + $0xc] sm:$0xf] }
  0x97   : > { %19253 = vmatprep.mubr.msk.bf16.mxu0 %vm837_vm3, %v27748_v34  ;;  %v27760_v47 = vcombine.low %v22324_v12, %v22341_v19  ;;  %v2127_v6 = vsel %vm886_vm0, %v21272_v18, 0  ;;  %v16982_v42 = vld [vmem:[%s21827_s8 + $0x10] sm:$0xf]  ;;  %v16984_v34 = vld [vmem:[%s21827_s8 + $0x18] sm:$0xf]  ;;  %v27761_v12 = vld [vmem:[#allocation8_spill] sm:$0xff] }
  0x98   : > { %v27762_v19 = vcombine.low %v22332_v13, %v27761_v12  ;;  %v2371_v57 = vshrl.u32 %v16981_v11, 16  ;;  %v2374_v44 = vshll.u32 %v16981_v11, 16  ;;  %v2380_v25 = vshll.u32 %v16982_v42, 16 }
  0x99   : > { %v2398_v28 = vshll.u32 %v16984_v34, 16  ;;  %v2408_v13 = vshrl.u32 %v16985_v49, 16  ;;  %v22627_v11 = vrot.slane %v2428_v16, 5  ;;  %v2510_v16 = vshll.u32 %v22655_v7, 16 }
  0x9a   : > { %v22581_v22 = vrot.slane %v2380_v25, 5  ;;  %v21273_v25 = vld [vmem:[%s21827_s8 + $0xc] sm:$0xff]  }
  0x9b   : > { %v2400_v38 = vrot.slane %v2398_v28, 5 }
  0x9e   : > { %19254 = vmatmul.mubr.msk.bf16.gmra.mrb[20].mxu0 %vm837_vm3, %v27749_v52  ;;  %v2384_v52 = vshrl.u32 %v16982_v42, 16  ;;  %v2434_v42 = vrot.slane %v2432_v31, 4 }
  0x9f   : > { %19257 = vmatprep.mubr.msk.bf16.mxu0 %vm837_vm3, %v27750_v23  ;;  %v2395_v23 = vshrl.u32 %v16984_v34, 16 }
  0xa0   : > { %v2386_v32 = vrot.slane %v2384_v52, 4  ;;  %v16996_v52 = vld [vmem:[%s21827_s8 + $0x48] sm:$0xf]  ;;  %v2435_v17 = vor.u32 %v2434_v42, %v22627_v11 }
  0xa1   : > { %v2397_v15 = vrot.slane %v2395_v23, 4 }
  0xa2   : > { %v2387_v43 = vor.u32 %v2386_v32, %v22581_v22  ;;  %v22658_v4 = vrot.slane %v2435_v17, 4 }
  0xa6   : > { %19258 = vmatmul.mubr.msk.bf16.gmra.mrb[24].mxu0 %vm837_vm3, %v27751_v0  ;;  %v2373_v0 = vrot.slane %v2371_v57, 4  ;;  %v16993_v57 = vld [vmem:[%s21827_s8 + $0x3c] sm:$0xf] }
  0xa7   : > { %19261 = vmatprep.mubr.msk.bf16.mxu0 %vm837_vm3, %v27752_v3  ;;  %v2376_v3 = vrot.slane %v2374_v44, 5  ;;  %v16994_v44 = vld [vmem:[%s21827_s8 + $0x40] sm:$0xf]  ;;  %v2467_v28 = vshrl.u32 %v16993_v57, 16  ;;  %v2470_v8 = vshll.u32 %v16993_v57, 16 }
  0xa8   : > { %v2476_v30 = vshll.u32 %v16994_v44, 16  ;;  %v2480_v48 = vshrl.u32 %v16994_v44, 16  ;;  %v21279_v44 = vld [vmem:[%s21827_s8 + $0x3c] sm:$0xff]  }
  0xaa   : > { %v22652_v21 = vrot.slane %v2476_v30, 5  ;;  %v21287_v30 = vld [vmem:[%s27577_s1 + $0x110] sm:$0xff]  }
  0xae   : > { %19262 = vmatmul.mubr.msk.bf16.gmra.mrb[28].mxu0 %vm837_vm3, %v27753_v45  ;;  %v2377_v45 = vor.u32 %v2376_v3, %v2373_v0  ;;  %v2491_v0 = vshrl.u32 %v16996_v52, 16  ;;  %v2494_v3 = vshll.u32 %v16996_v52, 16 }
  0xaf   : > { %19281 = vmatprep.mubr.msk.bf16.mxu0 %vm837_vm3, %v16854_v54  ;;  %v2410_v54 = vrot.slane %v2408_v13, 4 }
  0xb1   : > { %v2411_v62 = vor.u32 %v2410_v54, %v22589_v10  ;;  %v2469_v54 = vrot.slane %v2467_v28, 4  ;;  %v17002_v28 = vld [vmem:[%s21827_s8 + $0x60] sm:$0xf] }
  0xb6   : > { %19282 = vmatmul.mubr.msk.bf16.vlgmr.msra.gmra.mrb[0].mxu0 %vm837_vm3, %v27754_v55  ;;  %v2419_v55 = vshrl.u32 %v16987_v58, 16 }
  0xb7   : > { %19314 = vmatpush3.bf16.msra.mxu0 %v21265_v37  ;;  %19285 = vmatprep.mubr.msk.bf16.mxu0 %vm837_vm3, %v16856_v27  ;;  %v21270_v37 = vld [vmem:[%s27577_s1 + $0xdc] sm:$0xff]   ;;  %v2401_v27 = vor.u32 %v2400_v38, %v2397_v15  ;;  %v16995_v15 = vld [vmem:[%s21827_s8 + $0x44] sm:$0x1]  ;;  %v22649_v38 = vld [vmem:[%s21827_s8 + $0x4c] sm:$0xf] }
  0xb8   : > { %19315 = vmatprep.subr.bf16.mxu0 %v21266_v41 }
  0xbb   : > { %19316 = vmatpush3.bf16.msra.mxu0 %v21266_v41  ;;  %v16990_v41 = vld [vmem:[%s21827_s8 + $0x30] sm:$0xf] }
  0xbc   : > { %19317 = vmatprep.subr.bf16.mxu0 %v21267_v39 }
  0xbe   : > { %19286 = vmatmul.mubr.msk.bf16.gmra.mrb[4].mxu0 %vm837_vm3, %v27755_v14  ;;  %v16989_v14 = vld [vmem:[%s21827_s8 + $0x2c] sm:$0x1] }
  0xbf   : > { %19289 = vmatprep.mubr.msk.bf16.mxu0 %vm837_vm3, %v27756_v51  ;;  %19318 = vmatpush3.bf16.msra.mxu0 %v21267_v39  ;;  %v2422_v39 = vshll.u32 %v16987_v58, 16  ;;  %v2443_v51 = vshrl.u32 %v16990_v41, 16  ;;  %v2438_v34 = vshll.u32 %v16989_v14, 16  ;;  %v2482_v58 = vrot.slane %v2480_v48, 4 }
  0xc0   : > { %19319 = vmatprep.subr.bf16.mxu0 %v21268_v40 }
  0xc1   : > { %v2445_v49 = vrot.slane %v2443_v51, 4  ;;  %v22660_v50 = vrot.slane %v2438_v34, 5  ;;  %v16999_v51 = vld [vmem:[%s21827_s8 + $0x54] sm:$0xf] }
  0xc2   : > { %v2518_v57 = vshll.u32 %v16999_v51, 16 }
  0xc3   : > { %19320 = vmatpush3.bf16.msra.mxu0 %v21268_v40  ;;  %v22607_v40 = vsel %vm886_vm0, %v22587_v56, 0 }
  0xc4   : > { %19321 = vmatprep.subr.bf16.mxu0 %v21269_v61 }
  0xc6   : > { %19290 = vmatmul.mubr.msk.bf16.gmra.mrb[8].mxu0 %vm837_vm3, %v27757_v36  ;;  %v22613_v36 = vrot.slane %v2387_v43, 4 }
  0xc7   : > { %19293 = vmatprep.mubr.msk.bf16.mxu0 %vm837_vm3, %v27758_v5  ;;  %19322 = vmatpush3.bf16.msra.mxu0 %v21269_v61  ;;  %v2446_v61 = vshll.u32 %v16990_v41, 16  ;;  %v22615_v5 = vrot.slane %v2390_v24, 5  ;;  %v21276_v24 = vld [vmem:[%s21827_s8 + $0x24] sm:$0xff]   ;;  %v2493_v41 = vrot.slane %v2491_v0, 4 }
  0xc8   : > { %19323 = vmatprep.subr.bf16.mxu0 %v21270_v37 }
  0xcb   : > { %19324 = vmatpush3.bf16.msra.mxu0 %v21270_v37  ;;  %v22611_v37 = vrot.slane %v2377_v45, 4  ;;  %v21274_v45 = vld [vmem:[%s21827_s8 + $0x18] sm:$0xff]  }
  0xcc   : > { %19325 = vmatprep.subr.bf16.mxu0 %v21271_v63 }
  0xce   : > { %19294 = vmatmul.mubr.msk.bf16.gmra.mrb[12].mxu0 %vm837_vm3, %v27759_v59  ;;  %v22621_v59 = vrot.slane %v2414_v29, 5  ;;  %v2500_v29 = vshll.u32 %v22649_v38, 16 }
  0xcf   : > { %19297 = vmatprep.mubr.msk.bf16.mxu0 %vm837_vm3, %v27760_v47  ;;  %19326 = vmatpush3.bf16.msra.mxu0 %v21271_v63  ;;  %v22617_v63 = vrot.slane %v2401_v27, 4  ;;  %v2421_v47 = vrot.slane %v2419_v55, 4  ;;  %v2486_v27 = vshll.u32 %v16995_v15, 16  ;;  %v21278_v55 = vld [vmem:[%s27577_s1 + $0xf8] sm:$0xff]   ;;  %v17089_v15 = vld [vmem:[%s21827_s8 + $0x48] sm:$0xe] }
  0xd0   : > { %21176 = vmatprep.subr.msk.bf16.mxu0 %vm886_vm0, %v21272_v18  ;;  %v22619_v18 = vrot.slane %v2411_v62, 4  ;;  %v2496_v62 = vrot.slane %v2494_v3, 5 }
  0xd2   : > { %v2497_v17 = vor.u32 %v2496_v62, %v2493_v41 }
  0xd3   : > { %19328 = vmatpush3.bf16.msra.mxu0 %v2127_v6  ;;  %v2424_v6 = vrot.slane %v2422_v39, 5  ;;  %v2504_v39 = vshrl.u32 %v22649_v38, 16 }
  0xd4   : > { %19361 = vmatprep.subr.bf16.mxu0 %v22566_v1  ;;  %v22707_v48 = vrot.slane %v2497_v17, 4 }
  0xd5   : > { %v2425_v9 = vor.u32 %v2424_v6, %v2421_v47  ;;  %v21281_v47 = vld [vmem:[%s27577_s1 + $0x100] sm:$0xff]  }
  0xd6   : > { %19298 = vmatmul.mubr.msk.bf16.gmra.mrb[16].mxu0 %vm837_vm3, %v27762_v19  ;;  %v16992_v19 = vld [vmem:[%s21827_s8 + $0x38] sm:$0x1] }
  0xd7   : > { %19301 = vmatprep.mubr.msk.bf16.mxu0 %vm837_vm3, %v27763_v53  ;;  %v2448_v53 = vrot.slane %v2446_v61, 5  ;;  %v2462_v13 = vshll.u32 %v16992_v19, 16  ;;  %v22645_v32 = vrot.slane %v2425_v9, 4  ;;  %v17000_v61 = vld [vmem:[%s21827_s8 + $0x58] sm:$0xf]  ;;  %v21277_v19 = vld [vmem:[%s21827_s8 + $0x30] sm:$0xff]  }
  0xd8   : > { %v2524_v52 = vshll.u32 %v17000_v61, 16  ;;  %v21284_v9 = vld [vmem:[%s27577_s1 + $0x108] sm:$0xff]   ;;  %v2528_v0 = vshrl.u32 %v17000_v61, 16 }
  0xd9   : > { %v22664_v43 = vrot.slane %v2462_v13, 5  ;;  %v2520_v13 = vrot.slane %v2518_v57, 5  ;;  %v17004_v61 = vld [vmem:[%s21827_s8 + $0x68] sm:$0x1] }
  0xda   : > { %v22710_v3 = vrot.slane %v2524_v52, 5  ;;  %v21283_v52 = vld [vmem:[%s21827_s8 + $0x60] sm:$0xff]  }
  0xde   : > { %19302 = vmatmul.mubr.msk.bf16.gmra.mrb[20].mxu0 %vm837_vm3, %v27764_v60  ;;  %v2472_v60 = vrot.slane %v2470_v8, 5 }
  0xdf   : > { %19305 = vmatprep.mubr.msk.bf16.mxu0 %vm837_vm3, %v16866_v2  ;;  %v16991_v2 = vld [vmem:[%s21827_s8 + $0x34] sm:$0xf] }
  0xe0   : > { %v2452_v12 = vshll.u32 %v16991_v2, 16  ;;  %v2456_v23 = vshrl.u32 %v16991_v2, 16  ;;  %v2473_v14 = vor.u32 %v2472_v60, %v2469_v54  ;;  %v2483_v2 = vor.u32 %v2482_v58, %v22652_v21  ;;  %v21280_v58 = vld [vmem:[%s21827_s8 + $0x48] sm:$0xff]  }
  0xe1   : > { %v3208_v54 = vrot.slane %v22649_v38, 5  ;;  %v3211_v60 = vrot.slane %v22655_v7, 5 }
  0xe2   : > { %v2458_v35 = vrot.slane %v2456_v23, 4  ;;  %v22685_v42 = vrot.slane %v2473_v14, 4  ;;  %v22687_v34 = vrot.slane %v2483_v2, 4  ;;  %v17001_v23 = vld [vmem:[%s21827_s8 + $0x5c] sm:$0x1]  ;;  %v2530_v2 = vrot.slane %v2528_v0, 4 }
  0xe3   : > { %v3210_v62 = vrot.slane %v3208_v54, 4 }
  0xe5   : > { %v22729_v7 = vsel %vm22224_vm7, %v3210_v62, %v3211_v60  ;;  %v17093_v62 = vld [vmem:[%s21827_s8 + $0x78] sm:$0xe] }
  0xe6   : > { %19306 = vmatmul.mubr.msk.bf16.gmra.mrb[24].mxu0 %vm837_vm3, %v16867_v20  ;;  %v22639_v20 = vrot.slane %v2452_v12, 5  ;;  %v22689_v12 = vrot.slane %v2486_v27, 5  ;;  %v21282_v27 = vld [vmem:[%s21827_s8 + $0x54] sm:$0xff]   ;;  %27766 = vst [vmem:[#allocation10_spill] sm:$0xff] %v22729_v7 }
  0xe7   : > { %19309 = vmatprep.mubr.msk.bf16.mxu0 %vm837_vm3, %v16868_v33  ;;  %v2449_v33 = vor.u32 %v2448_v53, %v2445_v49  ;;  %v22692_v49 = vrot.slane %v2500_v29, 5  ;;  %v2515_v53 = vshrl.u32 %v16999_v51, 16  ;;  %v21290_v29 = vld [vmem:[%s27577_s1 + $0x118] sm:$0xff]  }
  0xe8   : > { %v2459_v31 = vor.u32 %v2458_v35, %v22639_v20  ;;  %v2534_v35 = vshll.u32 %v17001_v23, 16  ;;  %v21285_v23 = vld [vmem:[%s21827_s8 + $0x6c] sm:$0xff]   ;;  %v22892_v7 = vld [vmem:[%s21827_s8 + $0xb8] sm:$0xf] }
  0xe9   : > { %27779 = vst [vmem:[#allocation22_spill] sm:$0xff] %v22892_v7 }
  0xea   : > { %v22683_v6 = vrot.slane %v2459_v31, 4  ;;  %v21293_v31 = vld [vmem:[%s27577_s1 + $0x120] sm:$0xff]   ;;  %v22739_v51 = vrot.slane %v2534_v35, 5 }
  0xeb   : > { %v21291_v35 = vld [vmem:[%s21827_s8 + $0x9c] sm:$0xff]  }
  0xee   : > { %19310 = vmatmul.mubr.msk.bf16.gmra.mrb[28].mxu0 %vm837_vm3, %v16869_v46  ;;  %v22662_v46 = vrot.slane %v2449_v33, 4  ;;  %v2517_v33 = vrot.slane %v2515_v53, 4  ;;  %v17091_v53 = vld [vmem:[%s21827_s8 + $0x60] sm:$0xe] }
  0xef   : > { %19329 = vmatprep.mubr.msk.bf16.mxu0 %vm837_vm3, %v21273_v25  ;;  %v22695_v25 = vrot.slane %v2510_v16, 5  ;;  %v17107_v17 = vrot.slane %v17091_v53, 9 }
  0xf6   : > { %19330 = vmatmul.mubr.msk.bf16.vlgmr.msra.gmra.mrb[0].mxu0 %vm837_vm3, %v21274_v45  ;;  %v2539_v45 = vshrl.u32 %v17002_v28, 16 }
  0xf7   : > { %19362 = vmatpush3.bf16.msra.mxu0 %v22566_v1  ;;  %19333 = vmatprep.mubr.msk.bf16.mxu0 %vm837_vm3, %v21276_v24  ;;  %v2506_v1 = vrot.slane %v2504_v39, 4  ;;  %v17105_v24 = vrot.slane %v17089_v15, 9  ;;  %v17003_v39 = vld [vmem:[%s21827_s8 + $0x64] sm:$0xf]  ;;  %v22766_v15 = vld [vmem:[%s27577_s1 + $0x12c] sm:$0xff]  }
  0xf8   : > { %19363 = vmatprep.subr.bf16.mxu0 %v21278_v55  ;;  %v3222_v57 = vrot.slane %v17003_v39, 5 }
  0xf9   : > { %v2507_v8 = vor.u32 %v2506_v1, %v22692_v49  ;;  %v22725_v38 = vsel %vm22224_vm7, %v17105_v24, %v3208_v54  ;;  %v2548_v1 = vshll.u32 %v17003_v39, 16 }
  0xfa   : > { %27765 = vst [vmem:[#allocation9_spill] sm:$0xff] %v22725_v38 }
  0xfb   : > { %19364 = vmatpush3.bf16.msra.mxu0 %v21278_v55  ;;  %v22717_v41 = vrot.slane %v2507_v8, 4  ;;  %v2521_v55 = vor.u32 %v2520_v13, %v2517_v33  ;;  %v2558_v8 = vshll.u32 %v17004_v61, 16  ;;  %v3224_v33 = vrot.slane %v3222_v57, 4  ;;  %v22754_v13 = vld [vmem:[%s21827_s8 + $0x6c] sm:$0xf] }
  0xfc   : > { %19365 = vmatprep.subr.bf16.mxu0 %v21281_v47  ;;  %v22770_v60 = vrot.slane %v2548_v1, 5 }
  0xfd   : > { %v22737_v14 = vrot.slane %v2521_v55, 4 }
  0xfe   : > { %19334 = vmatmul.mubr.msk.bf16.gmra.mrb[4].mxu0 %vm837_vm3, %v21277_v19  ;;  %v22743_v19 = vrot.slane %v2539_v45, 4  ;;  %v22776_v45 = vld [vmem:[%s21827_s8 + $0x80] sm:$0x1] }
  0xff   : > { %19337 = vmatprep.mubr.msk.bf16.mxu0 %vm837_vm3, %v21279_v44  ;;  %19366 = vmatpush3.bf16.msra.mxu0 %v21281_v47  ;;  %v2542_v47 = vshll.u32 %v17002_v28, 16  ;;  %v3225_v44 = vrot.slane %v17004_v61, 5  ;;  %v22750_v28 = vsel %vm22224_vm7, %v17107_v17, %v3222_v57  ;;  %v3239_v55 = vrot.slane %v22776_v45, 5  ;;  %v21288_v61 = vld [vmem:[%s21827_s8 + $0x84] sm:$0xff]   ;;  %v22819_v17 = vld [vmem:[%s21827_s8 + $0x98] sm:$0x1] }
 0x100   : > { %19367 = vmatprep.subr.bf16.mxu0 %v21284_v9  ;;  %27767 = vst [vmem:[#allocation11_spill] sm:$0xff] %v22750_v28  ;;  %v22799_v57 = vld [vmem:[%s21827_s8 + $0x88] sm:$0xf] }
 0x101   : > { %v22758_v0 = vsel %vm22224_vm7, %v3224_v33, %v3225_v44  ;;  %v22768_v54 = vrot.slane %v2542_v47, 5  ;;  %v22791_v47 = vrot.slane %v2558_v8, 5  ;;  %v22802_v44 = vld [vmem:[%s21827_s8 + $0x8c] sm:$0x1]  ;;  %v3243_v8 = vrot.slane %v22799_v57, 5 }
 0x102   : > { %27768 = vst [vmem:[#allocation12_spill] sm:$0xff] %v22758_v0  ;;  %v3246_v33 = vrot.slane %v22802_v44, 5 }
 0x103   : > { %19368 = vmatpush3.bf16.msra.mxu0 %v21284_v9  ;;  %v2552_v9 = vshrl.u32 %v17003_v39, 16  ;;  %v21286_v39 = vld [vmem:[%s21827_s8 + $0x78] sm:$0xff]  }
 0x104   : > { %19369 = vmatprep.subr.bf16.mxu0 %v21287_v30 }
 0x106   : > { %19338 = vmatmul.mubr.msk.bf16.gmra.mrb[8].mxu0 %vm837_vm3, %v21280_v58  ;;  %v22773_v58 = vld [vmem:[%s21827_s8 + $0x7c] sm:$0xf] }
 0x107   : > { %19341 = vmatprep.mubr.msk.bf16.mxu0 %vm837_vm3, %v21282_v27  ;;  %19370 = vmatpush3.bf16.msra.mxu0 %v21287_v30  ;;  %v2531_v30 = vor.u32 %v2530_v2, %v22710_v3  ;;  %v22781_v27 = vrot.slane %v2552_v9, 4  ;;  %v22813_v9 = vld [vmem:[%s21827_s8 + $0x94] sm:$0xf] }
 0x108   : > { %19371 = vmatprep.subr.bf16.mxu0 %v21290_v29 }
 0x109   : > { %v22779_v24 = vrot.slane %v2531_v30, 4 }
 0x10b   : > { %19372 = vmatpush3.bf16.msra.mxu0 %v21290_v29  ;;  %v3236_v29 = vrot.slane %v22773_v58, 5 }
 0x10c   : > { %19373 = vmatprep.subr.bf16.mxu0 %v21293_v31 }
 0x10d   : > { %v3238_v1 = vrot.slane %v3236_v29, 4 }
 0x10e   : > { %19342 = vmatmul.mubr.msk.bf16.gmra.mrb[12].mxu0 %vm837_vm3, %v21283_v52  ;;  %v22810_v52 = vld [vmem:[%s21827_s8 + $0x70] sm:$0xf] }
 0x10f   : > { %19345 = vmatprep.mubr.msk.bf16.mxu0 %vm837_vm3, %v21285_v23  ;;  %19374 = vmatpush3.bf16.msra.mxu0 %v21293_v31  ;;  %v17109_v31 = vrot.slane %v17093_v62, 9  ;;  %v17094_v23 = vld [vmem:[%s21827_s8 + $0x84] sm:$0xe] }
 0x110   : > { %21177 = vmatprep.subr.msk.bf16.mxu0 %vm886_vm0, %v22587_v56  ;;  %v22806_v56 = vsel %vm22224_vm7, %v3238_v1, %v3239_v55  ;;  %v17110_v62 = vrot.slane %v17094_v23, 9  ;;  %v3250_v55 = vrot.slane %v22813_v9, 5  ;;  %v3245_v1 = vrot.slane %v3243_v8, 4 }
 0x111   : > { %v22795_v53 = vsel %vm22224_vm7, %v17109_v31, %v3236_v29  ;;  %27770 = vst [vmem:[#allocation14_spill] sm:$0xff] %v22806_v56  ;;  %v17095_v29 = vld [vmem:[%s21827_s8 + $0x90] sm:$0xe]  ;;  %v22845_v56 = vld [vmem:[%s21827_s8 + $0xa0] sm:$0xf] }
 0x112   : > { %27769 = vst [vmem:[#allocation13_spill] sm:$0xff] %v22795_v53  ;;  %v21289_v31 = vld [vmem:[%s21827_s8 + $0x90] sm:$0xff]   ;;  %v3252_v30 = vrot.slane %v3250_v55, 4  ;;  %v22838_v23 = vsel %vm22224_vm7, %v3245_v1, %v3246_v33  ;;  %v17096_v1 = vld [vmem:[%s21827_s8 + $0x9c] sm:$0xe]  ;;  %v3257_v16 = vrot.slane %v22845_v56, 5 }
 0x113   : > { %19376 = vmatpush3.bf16.msra.mxu0 %v22607_v40  ;;  %v17111_v40 = vrot.slane %v17095_v29, 9  ;;  %27772 = vst [vmem:[#allocation8_spill] sm:$0xff] %v22838_v23  ;;  %v22848_v29 = vld [vmem:[%s21827_s8 + $0xa4] sm:$0x1]  ;;  %v17097_v33 = vld [vmem:[%s21827_s8 + $0xa8] sm:$0xe] }
 0x114   : > { %19409 = vmatprep.subr.bf16.mxu0 %v22766_v15  ;;  %v3260_v23 = vrot.slane %v22848_v29, 5 }
 0x115   : > { %v22842_v2 = vsel %vm22224_vm7, %v17111_v40, %v3250_v55  ;;  %v2545_v40 = vor.u32 %v22768_v54, %v22743_v19  ;;  %v22865_v55 = vld [vmem:[%s21827_s8 + $0xb0] sm:$0x1] }
 0x116   : > { %19346 = vmatmul.mubr.msk.bf16.gmra.mrb[16].mxu0 %vm837_vm3, %v21286_v39  ;;  %v3253_v39 = vrot.slane %v22819_v17, 5  ;;  %27773 = vst [vmem:[#allocation16_spill] sm:$0xff] %v22842_v2  ;;  %27775 = vst [vmem:[#allocation18_spill] sm:$0xff] %v22865_v55  ;;  %v3267_v54 = vrot.slane %v22865_v55, 5  ;;  %v17113_v2 = vrot.slane %v17097_v33, 9 }
 0x117   : > { %19349 = vmatprep.mubr.msk.bf16.mxu0 %vm837_vm3, %v21288_v61  ;;  %v22834_v61 = vsel %vm22224_vm7, %v17110_v62, %v3243_v8  ;;  %v22857_v62 = vld [vmem:[%s21827_s8 + $0xac] sm:$0xf]  ;;  %v22877_v53 = vrot.slane %v2545_v40, 4  ;;  %v22895_v33 = vld [vmem:[%s21827_s8 + $0xbc] sm:$0x1] }
 0x118   : > { %27771 = vst [vmem:[#allocation15_spill] sm:$0xff] %v22834_v61  ;;  %v22854_v8 = vsel %vm22224_vm7, %v3252_v30, %v3253_v39  ;;  %v2576_v30 = vshrl.u32 %v22810_v52, 16  ;;  %v17112_v39 = vrot.slane %v17096_v1, 9  ;;  %v3264_v19 = vrot.slane %v22857_v62, 5  ;;  %v21294_v61 = vld [vmem:[%s21827_s8 + $0xb4] sm:$0xff]   ;;  %27780 = vst [vmem:[#allocation23_spill] sm:$0xff] %v22895_v33 }
 0x119   : > { %27774 = vst [vmem:[#allocation17_spill] sm:$0xff] %v22854_v8  ;;  %v3259_v8 = vrot.slane %v3257_v16, 4  ;;  %v3274_v38 = vrot.slane %v22895_v33, 5  ;;  %v22933_v55 = vld [vmem:[%s21827_s8 + $0x74] sm:$0x1] }
 0x11a   : > { %v3266_v0 = vrot.slane %v3264_v19, 4  ;;  %v22889_v28 = vsel %vm22224_vm7, %v17113_v2, %v3264_v19  ;;  %v22910_v2 = vld [vmem:[%s21827_s8 + $0xc8] sm:$0x1]  ;;  %v3271_v19 = vrot.slane %v22892_v7, 5 }
 0x11b   : > { %v22885_v1 = vsel %vm22224_vm7, %v3259_v8, %v3260_v23  ;;  %27778 = vst [vmem:[#allocation21_spill] sm:$0xff] %v22889_v28  ;;  %27783 = vst [vmem:[#allocation26_spill] sm:$0xff] %v22910_v2  ;;  %v17098_v8 = vld [vmem:[%s21827_s8 + $0xb4] sm:$0xe] }
 0x11c   : > { %27777 = vst [vmem:[#allocation20_spill] sm:$0xff] %v22885_v1  ;;  %v17114_v40 = vrot.slane %v17098_v8, 9  ;;  %v17099_v1 = vld [vmem:[%s21827_s8 + $0xc0] sm:$0xe]  ;;  %v3273_v33 = vrot.slane %v3271_v19, 4  ;;  %v27786_v8 = vshll.u32 %v22754_v13, 16 }
 0x11e   : > { %19350 = vmatmul.mubr.msk.bf16.gmra.mrb[20].mxu0 %vm837_vm3, %v21289_v31  ;;  %v21292_v31 = vld [vmem:[%s21827_s8 + $0xa8] sm:$0xff]  }
 0x11f   : > { %19353 = vmatprep.mubr.msk.bf16.mxu0 %vm837_vm3, %v21291_v35  ;;  %v22881_v35 = vsel %vm22224_vm7, %v17112_v39, %v3257_v16  ;;  %v22901_v16 = vsel %vm22224_vm7, %v3266_v0, %v3267_v54  ;;  %v22904_v39 = vld [vmem:[%s21827_s8 + $0xc4] sm:$0xf]  ;;  %v27784_v0 = vshrl.u32 %v22754_v13, 16 }
 0x120   : > { %27776 = vst [vmem:[#allocation19_spill] sm:$0xff] %v22881_v35  ;;  %27781 = vst [vmem:[#allocation24_spill] sm:$0xff] %v22901_v16  ;;  %v3278_v23 = vrot.slane %v22904_v39, 5  ;;  %v21295_v16 = vld [vmem:[%s21827_s8 + $0xc0] sm:$0xff]   ;;  %v2383_v35 = vsel %vm21867_vm4, %v22611_v37, %v22581_v22  ;;  %v2555_v22 = vor.u32 %v22781_v27, %v22770_v60  ;;  %v17008_v37 = vld [vmem:[%s21827_s8 + $0x78] sm:$0xf] }
 0x121   : > { %27782 = vst [vmem:[#allocation25_spill] sm:$0xff] %v22904_v39  ;;  %v22918_v54 = vrot.slane %v27784_v0, 4  ;;  %v17115_v0 = vrot.slane %v17099_v1, 9  ;;  %v22937_v39 = vrot.slane %v27786_v8, 5  ;;  %v2596_v8 = vshll.u32 %v22773_v58, 16 }
 0x122   : > { %v3280_v7 = vrot.slane %v3278_v23, 4 }
 0x126   : > { %19354 = vmatmul.mubr.msk.bf16.gmra.mrb[24].mxu0 %vm837_vm3, %v21292_v31  ;;  %v3281_v31 = vrot.slane %v22910_v2, 5  ;;  %v22941_v2 = vsel %vm22224_vm7, %v17114_v40, %v3271_v19  ;;  %v2582_v19 = vshll.u32 %v22933_v55, 16 }
 0x127   : > { %19357 = vmatprep.mubr.msk.bf16.mxu0 %vm837_vm3, %v21294_v61  ;;  %v2393_v61 = vsel %vm21867_vm4, %v22613_v36, %v22615_v5  ;;  %v22948_v36 = vsel %vm22224_vm7, %v3273_v33, %v3274_v38  ;;  %v22952_v5 = vsel %vm22224_vm7, %v17115_v0, %v3278_v23  ;;  %v22963_v38 = vrot.slane %v2555_v22, 4 }
 0x128   : > { %v17044_v13 = vcombine.low %v2383_v35, %v2393_v61  ;;  %v17145_v1 = vcombine.low %v22941_v2, %v22948_v36  ;;  %v22958_v40 = vsel %vm22224_vm7, %v3280_v7, %v3281_v31  ;;  %v27787_v33 = vshll.u32 %v22810_v52, 16  ;;  %v21321_v2 = vld [vmem:[%s27577_s1 + $0x1b4] sm:$0xff]   ;;  %v21317_v36 = vld [vmem:[%s21827_s8 + $0x3c] sm:$0xff]  }
 0x129   : > { %v17146_v27 = vcombine.low %v22952_v5, %v22958_v40  ;;  %v2578_v35 = vrot.slane %v2576_v30, 4  ;;  %v2407_v7 = vsel %vm21867_vm4, %v22617_v63, %v22589_v10  ;;  %v2587_v31 = vshrl.u32 %v17008_v37, 16  ;;  %v21319_v5 = vld [vmem:[%s21827_s8 + $0x48] sm:$0xff]   ;;  %v17258_v40 = vld [vmem:[%s21827_s8 + $0x18] sm:$0xf] }
 0x12a   : > { %v22967_v23 = vrot.slane %v27787_v33, 5  ;;  %v2590_v61 = vshll.u32 %v17008_v37, 16  ;;  %v2431_v30 = vsel %vm21867_vm4, %v22645_v32, %v22627_v11  ;;  %v2441_v0 = vsel %vm21867_vm4, %v22658_v4, %v22660_v50  ;;  %v21299_v4 = vld [vmem:[%s27577_s1 + $0x13c] sm:$0xff]  }
 0x12b   : > { %v2600_v10 = vshrl.u32 %v22773_v58, 16  ;;  %v17046_v22 = vcombine.low %v2431_v30, %v2441_v0  ;;  %v2455_v11 = vsel %vm21867_vm4, %v22662_v46, %v22639_v20  ;;  %v2465_v32 = vsel %vm21867_vm4, %v22683_v6, %v22664_v43 }
 0x12c   : > { %v2589_v50 = vrot.slane %v2587_v31, 4  ;;  %v2592_v58 = vrot.slane %v2590_v61, 5  ;;  %v23007_v37 = vrot.slane %v2596_v8, 5  ;;  %v2479_v46 = vsel %vm21867_vm4, %v22685_v42, %v22652_v21 }
 0x12d   : > { %v2489_v43 = vsel %vm21867_vm4, %v22687_v34, %v22689_v12  ;;  %v17047_v6 = vcombine.low %v2455_v11, %v2465_v32  ;;  %v2513_v21 = vsel %vm21867_vm4, %v22717_v41, %v22695_v25  ;;  %v2527_v42 = vsel %vm21867_vm4, %v22737_v14, %v22710_v3  ;;  %v21301_v25 = vld [vmem:[%s27577_s1 + $0x14c] sm:$0xff]  }
 0x12e   : > { %19358 = vmatmul.mubr.msk.bf16.gmra.mrb[28].mxu0 %vm837_vm3, %v21295_v16  ;;  %v2417_v16 = vsel %vm21867_vm4, %v22619_v18, %v22621_v59  ;;  %v21298_v18 = vld [vmem:[%s27577_s1 + $0x134] sm:$0xff]   ;;  %v17011_v59 = vld [vmem:[%s21827_s8 + $0x84] sm:$0xf]  ;;  %v2537_v34 = vsel %vm21867_vm4, %v22779_v24, %v22739_v51  ;;  %v2569_v12 = vor.u32 %v22937_v39, %v22918_v54  ;;  %v17014_v14 = vld [vmem:[%s21827_s8 + $0x90] sm:$0xf]  ;;  %v2620_v51 = vshll.u32 %v22799_v57, 16 }
 0x12f   : > { %19377 = vmatprep.mubr.msk.bf16.mxu0 %vm837_vm3, %v17044_v13  ;;  %v17045_v63 = vcombine.low %v2407_v7, %v2417_v16  ;;  %v2602_v13 = vrot.slane %v2600_v10, 4  ;;  %v2611_v33 = vshrl.u32 %v17011_v59, 16  ;;  %v2614_v20 = vshll.u32 %v17011_v59, 16 }
 0x130   : > { %v17048_v7 = vcombine.low %v2479_v46, %v2489_v43  ;;  %v2503_v16 = vsel %vm21867_vm4, %v22707_v48, %v22692_v49  ;;  %v2579_v49 = vor.u32 %v2578_v35, %v22967_v23  ;;  %v2606_v48 = vshll.u32 %v22776_v45, 16 }
 0x131   : > { %v2613_v41 = vrot.slane %v2611_v33, 4  ;;  %v2616_v3 = vrot.slane %v2614_v20, 5  ;;  %v2624_v24 = vshrl.u32 %v22799_v57, 16  ;;  %v2593_v39 = vor.u32 %v2592_v58, %v2589_v50  ;;  %v17017_v57 = vld [vmem:[%s21827_s8 + $0x9c] sm:$0xf] }
 0x132   : > { %v2603_v54 = vor.u32 %v2602_v13, %v23007_v37  ;;  %v17049_v45 = vcombine.low %v2503_v16, %v2513_v21  ;;  %v17050_v35 = vcombine.low %v2527_v42, %v2537_v34  ;;  %v2551_v31 = vsel %vm21867_vm4, %v22877_v53, %v22770_v60  ;;  %v21302_v53 = vld [vmem:[%s27577_s1 + $0x154] sm:$0xff]  }
 0x133   : > { %v2561_v61 = vsel %vm21867_vm4, %v22963_v38, %v22791_v47  ;;  %v2570_v30 = vrot.slane %v2569_v12, 4  ;;  %v2580_v0 = vrot.slane %v2579_v49, 4  ;;  %v2584_v8 = vrot.slane %v2582_v19, 5  ;;  %v17020_v49 = vld [vmem:[%s21827_s8 + $0xa8] sm:$0xf] }
 0x134   : > { %v23058_v10 = vrot.slane %v2620_v51, 5  ;;  %v2638_v59 = vshll.u32 %v17014_v14, 16  ;;  %v2604_v11 = vrot.slane %v2603_v54, 4  ;;  %v2608_v32 = vrot.slane %v2606_v48, 5 }
 0x135   : > { %v2617_v60 = vor.u32 %v2616_v3, %v2613_v41  ;;  %v2644_v47 = vshll.u32 %v22813_v9, 16  ;;  %v2648_v38 = vshrl.u32 %v22813_v9, 16  ;;  %v2659_v19 = vshrl.u32 %v17017_v57, 16 }
 0x136   : > { %19378 = vmatmul.mubr.msk.bf16.vlgmr.msra.gmra.mrb[0].mxu0 %vm837_vm3, %v17045_v63  ;;  %v2626_v63 = vrot.slane %v2624_v24, 4  ;;  %v2575_v50 = vsel %vm21867_vm4, %v2570_v30, %v22967_v23  ;;  %v2585_v58 = vsel %vm21867_vm4, %v2580_v0, %v2584_v8  ;;  %v2668_v13 = vshll.u32 %v22845_v56, 16  ;;  %v17023_v24 = vld [vmem:[%s21827_s8 + $0xb4] sm:$0xf] }
 0x137   : > { %19410 = vmatpush3.bf16.msra.mxu0 %v22766_v15  ;;  %19381 = vmatprep.mubr.msk.bf16.mxu0 %vm837_vm3, %v17046_v22  ;;  %v21300_v15 = vld [vmem:[%s27577_s1 + $0x144] sm:$0xff]   ;;  %v2594_v22 = vrot.slane %v2593_v39, 4  ;;  %v2672_v33 = vshrl.u32 %v22845_v56, 16  ;;  %v2630_v20 = vshll.u32 %v22802_v44, 16  ;;  %v2640_v43 = vrot.slane %v2638_v59, 5  ;;  %v21303_v56 = vld [vmem:[%s27577_s1 + $0x15c] sm:$0xff]  }
 0x138   : > { %19411 = vmatprep.subr.bf16.mxu0 %v21298_v18  ;;  %v2627_v9 = vor.u32 %v2626_v63, %v23058_v10  ;;  %v2650_v16 = vrot.slane %v2648_v38, 4  ;;  %v2661_v44 = vrot.slane %v2659_v19, 4  ;;  %v17051_v42 = vcombine.low %v2551_v31, %v2561_v61  ;;  %v21304_v39 = vld [vmem:[%s27577_s1 + $0x164] ss:$0 sps:$4 sm:$0x33]  }
 0x139   : > { %v2599_v23 = vsel %vm21867_vm4, %v2594_v22, %v23007_v37  ;;  %v17052_v34 = vcombine.low %v2575_v50, %v2585_v58  ;;  %v23086_v12 = vrot.slane %v2668_v13, 5  ;;  %v2674_v37 = vrot.slane %v2672_v33, 4 }
 0x13a   : > { %v2628_v48 = vrot.slane %v2627_v9, 4  ;;  %v2654_v3 = vshll.u32 %v22819_v17, 16  ;;  %v2683_v31 = vshrl.u32 %v17020_v49, 16  ;;  %v2686_v61 = vshll.u32 %v17020_v49, 16 }
 0x13b   : > { %19412 = vmatpush3.bf16.msra.mxu0 %v21298_v18  ;;  %v2635_v18 = vshrl.u32 %v17014_v14, 16  ;;  %v2675_v17 = vor.u32 %v2674_v37, %v23086_v12  ;;  %v2692_v30 = vshll.u32 %v22857_v62, 16  ;;  %v2696_v0 = vshrl.u32 %v22857_v62, 16  ;;  %v23113_v62 = vld [vmem:[%s27577_s1 + $0x168] sm:$0xff]  }
 0x13c   : > { %19413 = vmatprep.subr.bf16.mxu0 %v21299_v4  ;;  %v2707_v63 = vshrl.u32 %v17023_v24, 16  ;;  %v2688_v19 = vrot.slane %v2686_v61, 5 }
 0x13d   : > { %v2637_v46 = vrot.slane %v2635_v18, 4  ;;  %v27788_v18 = vld [vmem:[#allocation22_spill] sm:$0xff]  ;;  %v2676_v38 = vrot.slane %v2675_v17, 4  ;;  %v2698_v50 = vrot.slane %v2696_v0, 4 }
 0x13e   : > { %19382 = vmatmul.mubr.msk.bf16.gmra.mrb[4].mxu0 %vm837_vm3, %v17047_v6  ;;  %v2609_v6 = vsel %vm21867_vm4, %v2604_v11, %v2608_v32  ;;  %v2716_v59 = vshll.u32 %v27788_v18, 16  ;;  %v2720_v22 = vshrl.u32 %v27788_v18, 16  ;;  %v3441_v11 = vsel %vm886_vm0, %v21304_v39, 0 }
 0x13f   : > { %19385 = vmatprep.mubr.msk.bf16.mxu0 %vm837_vm3, %v17048_v7  ;;  %19414 = vmatpush3.bf16.msra.mxu0 %v21299_v4  ;;  %v2662_v4 = vshll.u32 %v17017_v57, 16  ;;  %v23084_v7 = vrot.slane %v2644_v47, 5  ;;  %v2641_v41 = vor.u32 %v2640_v43, %v2637_v46  ;;  %v17053_v14 = vcombine.low %v2599_v23, %v2609_v6  ;;  %v17026_v46 = vld [vmem:[%s21827_s8 + $0xc0] sm:$0xf]  ;;  %v27789_v6 = vld [vmem:[#allocation18_spill] sm:$0xff] }
 0x140   : > { %19415 = vmatprep.subr.bf16.mxu0 %v21300_v15  ;;  %v2685_v47 = vrot.slane %v2683_v31, 4  ;;  %v2709_v13 = vrot.slane %v2707_v63, 4  ;;  %v2718_v9 = vrot.slane %v2716_v59, 5  ;;  %v27792_v63 = vld [vmem:[#allocation26_spill] sm:$0xff] }
 0x141   : > { %v2664_v21 = vrot.slane %v2662_v4, 5  ;;  %v2651_v54 = vor.u32 %v2650_v16, %v23084_v7  ;;  %v2642_v57 = vrot.slane %v2641_v41, 4  ;;  %v2694_v4 = vrot.slane %v2692_v30, 5  ;;  %v27791_v41 = vld [vmem:[#allocation23_spill] sm:$0xff] }
 0x143   : > { %19416 = vmatpush3.bf16.msra.mxu0 %v21300_v15  ;;  %v2618_v15 = vrot.slane %v2617_v60, 4  ;;  %v2652_v32 = vrot.slane %v2651_v54, 4  ;;  %v2647_v43 = vsel %vm21867_vm4, %v2642_v57, %v23084_v7  ;;  %v2734_v7 = vshll.u32 %v17026_v46, 16 }
 0x144   : > { %19417 = vmatprep.subr.bf16.mxu0 %v21301_v25 }
 0x145   : > { %v2623_v51 = vsel %vm21867_vm4, %v2618_v15, %v23058_v10  ;;  %v2656_v10 = vrot.slane %v2654_v3, 5  ;;  %v2702_v15 = vshll.u32 %v27789_v6, 16  ;;  %v2726_v3 = vshll.u32 %v27791_v41, 16  ;;  %v17085_v6 = vld [vmem:[%s21827_s8 + $0x18] sm:$0xe] }
 0x146   : > { %19386 = vmatmul.mubr.msk.bf16.gmra.mrb[8].mxu0 %vm837_vm3, %v17049_v45  ;;  %v2665_v45 = vor.u32 %v2664_v21, %v2661_v44  ;;  %v2689_v44 = vor.u32 %v2688_v19, %v2685_v47  ;;  %v2699_v21 = vor.u32 %v2698_v50, %v2694_v4 }
 0x147   : > { %19389 = vmatprep.mubr.msk.bf16.mxu0 %vm837_vm3, %v17050_v35  ;;  %19418 = vmatpush3.bf16.msra.mxu0 %v21301_v25  ;;  %v2632_v25 = vrot.slane %v2630_v20, 5  ;;  %v2678_v35 = vshll.u32 %v22848_v29, 16  ;;  %v2710_v29 = vshll.u32 %v17023_v24, 16  ;;  %v2722_v20 = vrot.slane %v2720_v22, 4  ;;  %v21538_v22 = vld [vmem:[%s21827_s8 + $0x10] sm:$0xf] }
 0x148   : > { %19419 = vmatprep.subr.bf16.mxu0 %v21302_v53  ;;  %v2666_v60 = vrot.slane %v2665_v45, 4  ;;  %v2657_v23 = vsel %vm21867_vm4, %v2652_v32, %v2656_v10  ;;  %v2700_v24 = vrot.slane %v2699_v21, 4  ;;  %v2736_v45 = vrot.slane %v2734_v7, 5  ;;  %v17084_v32 = vld [vmem:[%s21827_s8 + $0xc] sm:$0xe] }
 0x149   : > { %v2633_v8 = vsel %vm21867_vm4, %v2628_v48, %v2632_v25  ;;  %v2712_v33 = vrot.slane %v2710_v29, 5  ;;  %v2723_v25 = vor.u32 %v2722_v20, %v2718_v9  ;;  %v2728_v30 = vrot.slane %v2726_v3, 5  ;;  %v21540_v20 = vld [vmem:[%s21827_s8 + $0x1c] sm:$0xf] }
 0x14a   : > { %v17054_v58 = vcombine.low %v2623_v51, %v2633_v8  ;;  %v2750_v29 = vshll.u32 %v27792_v63, 16 }
 0x14b   : > { %19420 = vmatpush3.bf16.msra.mxu0 %v21302_v53  ;;  %v2680_v53 = vrot.slane %v2678_v35, 5  ;;  %v2713_v48 = vor.u32 %v2712_v33, %v2709_v13  ;;  %v2724_v61 = vrot.slane %v2723_v25, 4  ;;  %v21543_v25 = vld [vmem:[%s21827_s8 + $0x2c] sm:$0x1] }
 0x14c   : > { %19421 = vmatprep.subr.bf16.mxu0 %v21303_v56  ;;  %v2752_v19 = vrot.slane %v2750_v29, 5  ;;  %v3190_v41 = vrot.slane %v21543_v25, 5  ;;  %v27796_v25 = vld [vmem:[#allocation11_spill] sm:$0xff] }
 0x14d   : > { %v2681_v16 = vsel %vm21867_vm4, %v2676_v38, %v2680_v53  ;;  %v2714_v17 = vrot.slane %v2713_v48, 4  ;;  %v2729_v59 = vsel %vm21867_vm4, %v2724_v61, %v2728_v30 }
 0x14e   : > { %19390 = vmatmul.mubr.msk.bf16.gmra.mrb[12].mxu0 %vm837_vm3, %v17051_v42  ;;  %v2731_v42 = vshrl.u32 %v17026_v46, 16  ;;  %v3180_v46 = vrot.slane %v21540_v20, 5 }
 0x14f   : > { %19393 = vmatprep.mubr.msk.bf16.mxu0 %vm837_vm3, %v17052_v34  ;;  %19422 = vmatpush3.bf16.msra.mxu0 %v21303_v56  ;;  %v2671_v56 = vsel %vm21867_vm4, %v2666_v60, %v23086_v12  ;;  %v27790_v34 = vld [vmem:[#allocation25_spill] sm:$0xff]  ;;  %v2690_v12 = vrot.slane %v2689_v44, 4  ;;  %v2719_v18 = vsel %vm21867_vm4, %v2714_v17, %v2718_v9 }
 0x150   : > { %21178 = vmatprep.subr.msk.bf16.mxu0 %vm886_vm0, %v21304_v39  ;;  %v2740_v37 = vshll.u32 %v27790_v34, 16  ;;  %v2744_v49 = vshrl.u32 %v27790_v34, 16  ;;  %v17056_v51 = vcombine.low %v2671_v56, %v2681_v16  ;;  %v2704_v39 = vrot.slane %v2702_v15, 5  ;;  %v21541_v15 = vld [vmem:[%s21827_s8 + $0x28] sm:$0xf] }
 0x151   : > { %v2733_v54 = vrot.slane %v2731_v42, 4  ;;  %v2695_v0 = vsel %vm21867_vm4, %v2690_v12, %v2694_v4  ;;  %v17058_v53 = vcombine.low %v2719_v18, %v2729_v59  ;;  %v17100_v4 = vrot.slane %v17084_v32, 9  ;;  %v17086_v16 = vld [vmem:[%s21827_s8 + $0x24] sm:$0xe]  ;;  %v21542_v34 = vld [vmem:[%s21827_s8 + $0x20] sm:$0x1] }
 0x152   : > { %v2742_v35 = vrot.slane %v2740_v37, 5  ;;  %v2746_v31 = vrot.slane %v2744_v49, 4  ;;  %v2705_v8 = vsel %vm21867_vm4, %v2700_v24, %v2704_v39  ;;  %v3187_v56 = vrot.slane %v21541_v15, 5  ;;  %v21547_v18 = vld [vmem:[%s21827_s8 + $0x44] sm:$0x1] }
 0x153   : > { %19424 = vmatpush3.bf16.msra.mxu0 %v3441_v11  ;;  %v2737_v57 = vor.u32 %v2736_v45, %v2733_v54  ;;  %v3173_v11 = vrot.slane %v21538_v22, 5  ;;  %v17057_v60 = vcombine.low %v2695_v0, %v2705_v8  ;;  %v17101_v42 = vrot.slane %v17085_v6, 9  ;;  %v17087_v54 = vld [vmem:[%s21827_s8 + $0x30] sm:$0xe]  ;;  %v21545_v45 = vld [vmem:[%s21827_s8 + $0x40] sm:$0xf] }
 0x154   : > { %19457 = vmatprep.subr.bf16.mxu0 %v23113_v62  ;;  %v2747_v10 = vor.u32 %v2746_v31, %v2742_v35  ;;  %v3182_v7 = vrot.slane %v3180_v46, 4  ;;  %v3183_v37 = vrot.slane %v21542_v34, 5  ;;  %v17102_v49 = vrot.slane %v17086_v16, 9  ;;  %v17088_v31 = vld [vmem:[%s21827_s8 + $0x3c] sm:$0xe] }
 0x155   : > { %v2738_v47 = vrot.slane %v2737_v57, 4  ;;  %v3175_v50 = vrot.slane %v3173_v11, 4  ;;  %v3189_v48 = vrot.slane %v3187_v56, 4  ;;  %v3181_v3 = vsel %vm22224_vm7, %v17101_v42, %v3180_v46  ;;  %v21546_v8 = vld [vmem:[%s21827_s8 + $0x38] sm:$0x1]  ;;  %v27793_v42 = vld [vmem:[#allocation9_spill] sm:$0xff] }
 0x156   : > { %19394 = vmatmul.mubr.msk.bf16.gmra.mrb[16].mxu0 %vm837_vm3, %v17053_v14  ;;  %v17055_v14 = vcombine.low %v2647_v43, %v2657_v23  ;;  %v2748_v38 = vrot.slane %v2747_v10, 4  ;;  %v3174_v43 = vsel %vm22224_vm7, %v17100_v4, %v3173_v11  ;;  %v3188_v24 = vsel %vm22224_vm7, %v17102_v49, %v3187_v56  ;;  %v21306_v10 = vld [vmem:[%s27577_s1 + $0x170] sm:$0xff]   ;;  %v17092_v6 = vld [vmem:[%s21827_s8 + $0x6c] sm:$0xe] }
 0x157   : > { %19397 = vmatprep.mubr.msk.bf16.mxu0 %vm837_vm3, %v17054_v58  ;;  %v21539_v58 = vld [vmem:[%s21827_s8 + $0x14] sm:$0x1]  ;;  %v2743_v33 = vsel %vm21867_vm4, %v2738_v47, %v2742_v35  ;;  %v3191_v39 = vsel %vm22224_vm7, %v3189_v48, %v3190_v41  ;;  %v3201_v35 = vrot.slane %v21545_v45, 5  ;;  %v17103_v30 = vrot.slane %v17087_v54, 9  ;;  %v27797_v41 = vld [vmem:[#allocation12_spill] sm:$0xff]  ;;  %v27802_v54 = vld [vmem:[#allocation15_spill] sm:$0xff] }
 0x158   : > { %v3176_v13 = vrot.slane %v21539_v58, 5  ;;  %v2753_v9 = vsel %vm21867_vm4, %v2748_v38, %v2752_v19  ;;  %v17133_v61 = vcombine.low %v3188_v24, %v3191_v39  ;;  %v3197_v57 = vrot.slane %v21546_v8, 5  ;;  %v17090_v38 = vld [vmem:[%s21827_s8 + $0x54] sm:$0xe]  ;;  %v27803_v45 = vld [vmem:[#allocation8_spill] sm:$0xff] }
 0x159   : > { %v17059_v44 = vcombine.low %v2743_v33, %v2753_v9  ;;  %v17104_v63 = vrot.slane %v17088_v31, 9  ;;  %v3203_v29 = vrot.slane %v3201_v35, 4  ;;  %v3204_v59 = vrot.slane %v21547_v18, 5  ;;  %v21308_v9 = vld [vmem:[%s27577_s1 + $0x180] sm:$0xff]   ;;  %v27800_v24 = vld [vmem:[#allocation14_spill] sm:$0xff] }
 0x15a   : > { %v3177_v23 = vsel %vm22224_vm7, %v3175_v50, %v3176_v13  ;;  %v17106_v50 = vrot.slane %v17090_v38, 9  ;;  %v21549_v13 = vld [vmem:[%s21827_s8 + $0x5c] sm:$0x1]  ;;  %v17108_v56 = vrot.slane %v17092_v6, 9  ;;  %v27805_v31 = vld [vmem:[#allocation16_spill] sm:$0xff]  ;;  %v21330_v6 = vld [vmem:[%s27577_s1 + $0x1cc] sm:$0xff]  }
 0x15b   : > { %v17131_v21 = vcombine.low %v3174_v43, %v3177_v23  ;;  %v3202_v32 = vsel %vm22224_vm7, %v17104_v63, %v3201_v35  ;;  %v3218_v33 = vrot.slane %v21549_v13, 5  ;;  %v3229_v43 = vrot.slane %v22810_v52, 5  ;;  %v21309_v23 = vld [vmem:[%s27577_s1 + $0x188] sm:$0xff]   ;;  %v21312_v48 = vld [vmem:[%s27577_s1 + $0x1a0] ss:$0 sps:$4 sm:$0x33]  }
 0x15c   : > { %v27804_v35 = vcombine.low %v27802_v54, %v27803_v45  ;;  %v21314_v18 = vld [vmem:[%s21827_s8 + $0x24] sm:$0xff]  }
 0x15d   : > { %v3231_v16 = vrot.slane %v3229_v43, 4  ;;  %v3230_v52 = vsel %vm22224_vm7, %v17108_v56, %v3229_v43  ;;  %v17261_v13 = vld [vmem:[%s21827_s8 + $0x24] sm:$0xf]  ;;  %v23315_v43 = vld [vmem:[%s21827_s8 + $0x28] sm:$0xf] }
 0x15e   : > { %19398 = vmatmul.mubr.msk.bf16.gmra.mrb[20].mxu0 %vm837_vm3, %v17055_v14  ;;  %v3184_v14 = vsel %vm22224_vm7, %v3182_v7, %v3183_v37  ;;  %v27794_v7 = vld [vmem:[#allocation10_spill] sm:$0xff] }
 0x15f   : > { %19401 = vmatprep.mubr.msk.bf16.mxu0 %vm837_vm3, %v17056_v51  ;;  %v21544_v51 = vld [vmem:[%s21827_s8 + $0x34] sm:$0xf]  ;;  %v17132_v17 = vcombine.low %v3181_v3, %v3184_v14  ;;  %v27795_v34 = vcombine.low %v27793_v42, %v27794_v7  ;;  %v27798_v3 = vcombine.low %v27796_v25, %v27797_v41  ;;  %v3859_v14 = vsel %vm886_vm0, %v21312_v48, 0  ;;  %v21323_v41 = vld [vmem:[%s21827_s8 + $0x6c] sm:$0xff]  }
 0x160   : > { %v3194_v12 = vrot.slane %v21544_v51, 5  ;;  %v21315_v51 = vld [vmem:[%s27577_s1 + $0x1a4] sm:$0xff]   ;;  %v4136_v42 = vshll.u32 %v23315_v43, 16  ;;  %v4140_v7 = vshrl.u32 %v23315_v43, 16 }
 0x162   : > { %v3196_v0 = vrot.slane %v3194_v12, 4  ;;  %v3195_v22 = vsel %vm22224_vm7, %v17103_v30, %v3194_v12  ;;  %v27799_v12 = vld [vmem:[#allocation13_spill] sm:$0xff]  ;;  %v27808_v30 = vld [vmem:[#allocation19_spill] sm:$0xff] }
 0x163   : > { %v27801_v39 = vcombine.low %v27799_v12, %v27800_v24  ;;  %v21336_v12 = vld [vmem:[%s27577_s1 + $0x1dc] ss:$0 sps:$4 sm:$0x33]  }
 0x164   : > { %v3198_v11 = vsel %vm22224_vm7, %v3196_v0, %v3197_v57  ;;  %v27809_v0 = vld [vmem:[#allocation20_spill] sm:$0xff]  ;;  %v27811_v57 = vld [vmem:[#allocation21_spill] sm:$0xff] }
 0x165   : > { %v17134_v19 = vcombine.low %v3195_v22, %v3198_v11  ;;  %v27810_v8 = vcombine.low %v27808_v30, %v27809_v0  ;;  %v21318_v22 = vld [vmem:[%s27577_s1 + $0x1ac] sm:$0xff]   ;;  %v23293_v11 = vld [vmem:[%s21827_s8 + $0x5c] sm:$0x1] }
 0x166   : > { %19402 = vmatmul.mubr.msk.bf16.gmra.mrb[24].mxu0 %vm837_vm3, %v17057_v60  ;;  %v3205_v60 = vsel %vm22224_vm7, %v3203_v29, %v3204_v59  ;;  %v21313_v29 = vld [vmem:[%s21827_s8 + $0x18] sm:$0xff]   ;;  %v21316_v59 = vld [vmem:[%s21827_s8 + $0x30] sm:$0xff]  }
 0x167   : > { %19405 = vmatprep.mubr.msk.bf16.mxu0 %vm837_vm3, %v17058_v53  ;;  %v21548_v53 = vld [vmem:[%s21827_s8 + $0x58] sm:$0xf]  ;;  %v17135_v4 = vcombine.low %v3202_v32, %v3205_v60  ;;  %v17366_v32 = vld [vmem:[%s21827_s8 + $0x54] sm:$0xe] }
 0x168   : > { %v3215_v47 = vrot.slane %v21548_v53, 5  ;;  %v21327_v53 = vld [vmem:[%s27577_s1 + $0x1c4] sm:$0xff]   ;;  %v17382_v38 = vrot.slane %v17366_v32, 9  ;;  %v21325_v0 = vld [vmem:[%s21827_s8 + $0x78] sm:$0xff]  }
 0x169   : > { %v23381_v32 = vld [vmem:[%s21827_s8 + $0x88] sm:$0xf] }
 0x16a   : > { %v3217_v58 = vrot.slane %v3215_v47, 4  ;;  %v3216_v20 = vsel %vm22224_vm7, %v17106_v50, %v3215_v47  ;;  %v23303_v47 = vld [vmem:[%s21827_s8 + $0x1c] sm:$0xf] }
 0x16c   : > { %v3219_v46 = vsel %vm22224_vm7, %v3217_v58, %v3218_v33  ;;  %v21320_v58 = vld [vmem:[%s21827_s8 + $0x54] sm:$0xff]  }
 0x16d   : > { %v17137_v15 = vcombine.low %v3216_v20, %v3219_v46  ;;  %v4112_v20 = vshll.u32 %v23303_v47, 16  ;;  %v4116_v46 = vshrl.u32 %v23303_v47, 16 }
 0x16e   : > { %19406 = vmatmul.mubr.msk.bf16.gmra.mrb[28].mxu0 %vm837_vm3, %v17059_v44  ;;  %v3232_v44 = vrot.slane %v22933_v55, 5  ;;  %v21311_v55 = vld [vmem:[%s27577_s1 + $0x198] sm:$0xff]  }
 0x16f   : > { %19425 = vmatprep.mubr.msk.bf16.mxu0 %vm837_vm3, %v17131_v21  ;;  %v21310_v21 = vld [vmem:[%s27577_s1 + $0x190] sm:$0xff]  }
 0x170   : > { %v3233_v37 = vsel %vm22224_vm7, %v3231_v16, %v3232_v44  ;;  %v4127_v44 = vshrl.u32 %v17261_v13, 16 }
 0x171   : > { %v17139_v49 = vcombine.low %v3230_v52, %v3233_v37  ;;  %v23333_v52 = vld [vmem:[%s21827_s8 + $0x74] sm:$0x1]  ;;  %v23336_v37 = vrot.slane %v4112_v20, 5 }
 0x172   : > { %v4957_v25 = vrot.slane %v23333_v52, 5  ;;  %v4129_v24 = vrot.slane %v4127_v44, 4 }
 0x176   : > { %19426 = vmatmul.mubr.msk.bf16.vlgmr.msra.gmra.mrb[0].mxu0 %vm837_vm3, %v17132_v17  ;;  %v27806_v17 = vld [vmem:[#allocation17_spill] sm:$0xff] }
 0x177   : > { %19458 = vmatpush3.bf16.msra.mxu0 %v23113_v62  ;;  %19429 = vmatprep.mubr.msk.bf16.mxu0 %vm837_vm3, %v17133_v61  ;;  %v21307_v62 = vld [vmem:[%s27577_s1 + $0x178] sm:$0xff]   ;;  %v27807_v61 = vcombine.low %v27805_v31, %v27806_v17  ;;  %v23354_v31 = vrot.slane %v4136_v42, 5  ;;  %v4142_v17 = vrot.slane %v4140_v7, 4 }
 0x178   : > { %19459 = vmatprep.subr.bf16.mxu0 %v21306_v10 }
 0x17b   : > { %19460 = vmatpush3.bf16.msra.mxu0 %v21306_v10  ;;  %v27812_v10 = vld [vmem:[#allocation24_spill] sm:$0xff] }
 0x17c   : > { %19461 = vmatprep.subr.bf16.mxu0 %v21307_v62  ;;  %v27813_v63 = vcombine.low %v27811_v57, %v27812_v10  ;;  %v23368_v10 = vld [vmem:[%s21827_s8 + $0x34] sm:$0xf] }
 0x17e   : > { %19430 = vmatmul.mubr.msk.bf16.gmra.mrb[4].mxu0 %vm837_vm3, %v17134_v19  ;;  %v4103_v19 = vshrl.u32 %v17258_v40, 16 }
 0x17f   : > { %19433 = vmatprep.mubr.msk.bf16.mxu0 %vm837_vm3, %v17135_v4  ;;  %19462 = vmatpush3.bf16.msra.mxu0 %v21307_v62  ;;  %v4943_v62 = vrot.slane %v23293_v11, 5  ;;  %v4106_v4 = vshll.u32 %v17258_v40, 16  ;;  %v4143_v40 = vor.u32 %v4142_v17, %v23354_v31  ;;  %v23434_v17 = vld [vmem:[%s21827_s8 + $0x94] sm:$0xf] }
 0x180   : > { %19463 = vmatprep.subr.bf16.mxu0 %v21308_v9  ;;  %v4105_v56 = vrot.slane %v4103_v19, 4  ;;  %v4968_v19 = vrot.slane %v23381_v32, 5 }
 0x181   : > { %v4108_v16 = vrot.slane %v4106_v4, 5  ;;  %v23411_v7 = vrot.slane %v4143_v40, 4 }
 0x182   : > { %v4970_v44 = vrot.slane %v4968_v19, 4 }
 0x183   : > { %19464 = vmatpush3.bf16.msra.mxu0 %v21308_v9  ;;  %v21322_v9 = vld [vmem:[%s21827_s8 + $0x60] sm:$0xff]   ;;  %v4109_v45 = vor.u32 %v4108_v16, %v4105_v56 }
 0x184   : > { %19465 = vmatprep.subr.bf16.mxu0 %v21309_v23 }
 0x186   : > { %19434 = vmatmul.mubr.msk.bf16.gmra.mrb[8].mxu0 %vm837_vm3, %v27795_v34  ;;  %v23330_v34 = vld [vmem:[%s21827_s8 + $0x70] sm:$0xf] }
 0x187   : > { %19437 = vmatprep.mubr.msk.bf16.mxu0 %vm837_vm3, %v17137_v15  ;;  %19466 = vmatpush3.bf16.msra.mxu0 %v21309_v23 }
 0x188   : > { %19467 = vmatprep.subr.bf16.mxu0 %v21310_v21 }
 0x18b   : > { %19468 = vmatpush3.bf16.msra.mxu0 %v21310_v21  ;;  %v4130_v21 = vshll.u32 %v17261_v13, 16  ;;  %v23401_v13 = vld [vmem:[%s21827_s8 + $0x40] sm:$0xf] }
 0x18c   : > { %19469 = vmatprep.subr.bf16.mxu0 %v21311_v55  ;;  %27818 = vst [vmem:[#allocation23_spill] sm:$0xff] %v23401_v13 }
 0x18e   : > { %19438 = vmatmul.mubr.msk.bf16.gmra.mrb[12].mxu0 %vm837_vm3, %v27798_v3  ;;  %v21333_v3 = vld [vmem:[%s27577_s1 + $0x1d4] sm:$0xff]  }
 0x18f   : > { %19441 = vmatprep.mubr.msk.bf16.mxu0 %vm837_vm3, %v17139_v49  ;;  %19470 = vmatpush3.bf16.msra.mxu0 %v21311_v55  ;;  %v4118_v55 = vrot.slane %v4116_v46, 4  ;;  %v17368_v49 = vld [vmem:[%s21827_s8 + $0x6c] sm:$0xe] }
 0x190   : > { %21179 = vmatprep.subr.msk.bf16.mxu0 %vm886_vm0, %v21312_v48  ;;  %v4954_v48 = vrot.slane %v23330_v34, 5 }
 0x192   : > { %v4956_v54 = vrot.slane %v4954_v48, 4 }
 0x193   : > { %19472 = vmatpush3.bf16.msra.mxu0 %v3859_v14  ;;  %v23346_v14 = vld [vmem:[%s21827_s8 + $0x20] sm:$0x1] }
 0x194   : > { %19505 = vmatprep.subr.bf16.mxu0 %v21315_v51  ;;  %v23365_v57 = vsel %vm22224_vm7, %v4956_v54, %v4957_v25  ;;  %v23499_v54 = vld [vmem:[%s21827_s8 + $0xb0] sm:$0x1] }
 0x195   : > { %27817 = vst [vmem:[#allocation25_spill] sm:$0xff] %v23365_v57 }
 0x196   : > { %19442 = vmatmul.mubr.msk.bf16.gmra.mrb[16].mxu0 %vm837_vm3, %v27801_v39  ;;  %v4132_v39 = vrot.slane %v4130_v21, 5  ;;  %v21326_v21 = vld [vmem:[%s21827_s8 + $0x84] sm:$0xff]  }
 0x197   : > { %19445 = vmatprep.mubr.msk.bf16.mxu0 %vm837_vm3, %v27804_v35  ;;  %v23352_v35 = vld [vmem:[%s21827_s8 + $0x2c] sm:$0x1] }
 0x19e   : > { %19446 = vmatmul.mubr.msk.bf16.gmra.mrb[20].mxu0 %vm837_vm3, %v27807_v61  ;;  %v17264_v61 = vld [vmem:[%s21827_s8 + $0x30] sm:$0xf] }
 0x19f   : > { %19449 = vmatprep.mubr.msk.bf16.mxu0 %vm837_vm3, %v27810_v8  ;;  %v4119_v8 = vor.u32 %v4118_v55, %v23336_v37 }
 0x1a6   : > { %19450 = vmatmul.mubr.msk.bf16.gmra.mrb[24].mxu0 %vm837_vm3, %v27813_v63  ;;  %v23502_v63 = vld [vmem:[%s21827_s8 + $0xb8] sm:$0xf] }
 0x1a7   : > { %19453 = vmatprep.mubr.msk.bf16.mxu0 %vm837_vm3, %v17145_v1  ;;  %v21324_v1 = vld [vmem:[%s27577_s1 + $0x1bc] sm:$0xff]   ;;  %v4996_v15 = vrot.slane %v23502_v63, 5 }
 0x1ae   : > { %19454 = vmatmul.mubr.msk.bf16.gmra.mrb[28].mxu0 %vm837_vm3, %v17146_v27  ;;  %v23290_v27 = vld [vmem:[%s21827_s8 + $0x58] sm:$0xf] }
 0x1af   : > { %19473 = vmatprep.mubr.msk.bf16.mxu0 %vm837_vm3, %v21313_v29  ;;  %v4940_v60 = vrot.slane %v23290_v27, 5  ;;  %v4122_v29 = vshll.u32 %v23346_v14, 16 }
 0x1b1   : > { %v4942_v50 = vrot.slane %v4940_v60, 4  ;;  %v23309_v33 = vsel %vm22224_vm7, %v17382_v38, %v4940_v60  ;;  %v23384_v60 = vld [vmem:[%s21827_s8 + $0x8c] sm:$0x1]  ;;  %v17370_v38 = vld [vmem:[%s21827_s8 + $0x84] sm:$0xe]  ;;  %v23403_v46 = vrot.slane %v4122_v29, 5 }
 0x1b2   : > { %27814 = vst [vmem:[#allocation7_spill] sm:$0xff] %v23309_v33  ;;  %v4971_v4 = vrot.slane %v23384_v60, 5  ;;  %v17386_v20 = vrot.slane %v17370_v38, 9  ;;  %v17371_v29 = vld [vmem:[%s21827_s8 + $0x90] sm:$0xe] }
 0x1b3   : > { %v23319_v23 = vsel %vm22224_vm7, %v4942_v50, %v4943_v62  ;;  %v23387_v62 = vrot.slane %v4119_v8, 4  ;;  %v23397_v50 = vld [vmem:[%s27577_s1 + $0x1e0] sm:$0xff]  }
 0x1b4   : > { %27815 = vst [vmem:[#allocation22_spill] sm:$0xff] %v23319_v23  ;;  %v23444_v8 = vld [vmem:[%s21827_s8 + $0xa4] sm:$0x1]  ;;  %v17276_v33 = vld [vmem:[%s21827_s8 + $0x60] sm:$0xf] }
 0x1b5   : > { %v4985_v40 = vrot.slane %v23444_v8, 5 }
 0x1b6   : > { %19474 = vmatmul.mubr.msk.bf16.vlgmr.msra.gmra.mrb[0].mxu0 %vm837_vm3, %v21314_v18  ;;  %v4146_v18 = vshll.u32 %v23352_v35, 16 }
 0x1b7   : > { %19506 = vmatpush3.bf16.msra.mxu0 %v21315_v51  ;;  %19477 = vmatprep.mubr.msk.bf16.mxu0 %vm837_vm3, %v21316_v59  ;;  %v17384_v51 = vrot.slane %v17368_v49, 9  ;;  %v4151_v59 = vshrl.u32 %v17264_v61, 16  ;;  %v23417_v49 = vsel %vm22224_vm7, %v17386_v20, %v4968_v19  ;;  %v17270_v20 = vld [vmem:[%s21827_s8 + $0x48] sm:$0xf] }
 0x1b8   : > { %19507 = vmatprep.subr.bf16.mxu0 %v21318_v22  ;;  %v23413_v55 = vrot.slane %v4146_v18, 5  ;;  %27819 = vst [vmem:[#allocation26_spill] sm:$0xff] %v23417_v49  ;;  %v4975_v18 = vrot.slane %v23434_v17, 5 }
 0x1b9   : > { %v23359_v30 = vsel %vm22224_vm7, %v17384_v51, %v4954_v48  ;;  %v4153_v56 = vrot.slane %v4151_v59, 4  ;;  %v21328_v48 = vld [vmem:[%s21827_s8 + $0x90] sm:$0xff]   ;;  %v23425_v51 = vsel %vm22224_vm7, %v4970_v44, %v4971_v4 }
 0x1ba   : > { %27816 = vst [vmem:[#allocation18_spill] sm:$0xff] %v23359_v30  ;;  %27820 = vst [vmem:[#allocation9_spill] sm:$0xff] %v23425_v51  ;;  %v4977_v4 = vrot.slane %v4975_v18, 4  ;;  %v23534_v51 = vld [vmem:[%s21827_s8 + $0x54] sm:$0xf]  ;;  %v4149_v23 = vsel %vm21867_vm4, %v23411_v7, %v23413_v55 }
 0x1bb   : > { %19508 = vmatpush3.bf16.msra.mxu0 %v21318_v22  ;;  %v4154_v22 = vshll.u32 %v17264_v61, 16  ;;  %v23437_v61 = vld [vmem:[%s21827_s8 + $0x98] sm:$0x1] }
 0x1bc   : > { %19509 = vmatprep.subr.bf16.mxu0 %v21321_v2  ;;  %v4978_v59 = vrot.slane %v23437_v61, 5 }
 0x1bd   : > { %v4156_v16 = vrot.slane %v4154_v22, 5  ;;  %v4188_v22 = vshrl.u32 %v23401_v13, 16 }
 0x1be   : > { %19478 = vmatmul.mubr.msk.bf16.gmra.mrb[4].mxu0 %vm837_vm3, %v21317_v36  ;;  %v4644_v36 = vsel %vm886_vm0, %v21336_v12, 0 }
 0x1bf   : > { %19481 = vmatprep.mubr.msk.bf16.mxu0 %vm837_vm3, %v21319_v5  ;;  %19510 = vmatpush3.bf16.msra.mxu0 %v21321_v2  ;;  %v17267_v2 = vld [vmem:[%s21827_s8 + $0x3c] sm:$0xf]  ;;  %v23377_v5 = vrot.slane %v4109_v45, 4  ;;  %v4157_v45 = vor.u32 %v4156_v16, %v4153_v56  ;;  %v23463_v56 = vld [vmem:[%s21827_s8 + $0x4c] sm:$0xf] }
 0x1c0   : > { %19511 = vmatprep.subr.bf16.mxu0 %v21324_v1  ;;  %27822 = vst [vmem:[#allocation11_spill] sm:$0xff] %v23463_v56 }
 0x1c3   : > { %19512 = vmatpush3.bf16.msra.mxu0 %v21324_v1  ;;  %v4133_v1 = vor.u32 %v4132_v39, %v4129_v24 }
 0x1c4   : > { %19513 = vmatprep.subr.bf16.mxu0 %v21327_v53 }
 0x1c5   : > { %v23409_v42 = vrot.slane %v4133_v1, 4 }
 0x1c6   : > { %19482 = vmatmul.mubr.msk.bf16.gmra.mrb[8].mxu0 %vm837_vm3, %v21320_v58  ;;  %v4164_v58 = vshrl.u32 %v23368_v10, 16 }
 0x1c7   : > { %19485 = vmatprep.mubr.msk.bf16.mxu0 %vm837_vm3, %v21322_v9  ;;  %19514 = vmatpush3.bf16.msra.mxu0 %v21327_v53  ;;  %v4160_v53 = vshll.u32 %v23368_v10, 16  ;;  %v4175_v9 = vshrl.u32 %v17267_v2, 16 }
 0x1c8   : > { %19515 = vmatprep.subr.bf16.mxu0 %v21330_v6 }
 0x1c9   : > { %v23420_v25 = vrot.slane %v4160_v53, 5  ;;  %v23429_v39 = vrot.slane %v4175_v9, 4  ;;  %v23455_v53 = vld [vmem:[%s21827_s8 + $0x44] sm:$0x1]  ;;  %v23459_v9 = vrot.slane %v4157_v45, 4 }
 0x1ca   : > { %27821 = vst [vmem:[#allocation10_spill] sm:$0xff] %v23455_v53 }
 0x1cb   : > { %19516 = vmatpush3.bf16.msra.mxu0 %v21330_v6  ;;  %v23406_v6 = vld [vmem:[%s21827_s8 + $0x38] sm:$0x1] }
 0x1cc   : > { %19517 = vmatprep.subr.bf16.mxu0 %v21333_v3  ;;  %v4170_v24 = vshll.u32 %v23406_v6, 16 }
 0x1ce   : > { %19486 = vmatmul.mubr.msk.bf16.gmra.mrb[12].mxu0 %vm837_vm3, %v21323_v41  ;;  %v4178_v41 = vshll.u32 %v17267_v2, 16  ;;  %v17387_v2 = vrot.slane %v17371_v29, 9  ;;  %v21331_v29 = vld [vmem:[%s21827_s8 + $0xa8] sm:$0xff]  }
 0x1cf   : > { %19489 = vmatprep.mubr.msk.bf16.mxu0 %vm837_vm3, %v21325_v0  ;;  %19518 = vmatpush3.bf16.msra.mxu0 %v21333_v3  ;;  %v4184_v3 = vshll.u32 %v23401_v13, 16  ;;  %v23440_v0 = vld [vmem:[%s21827_s8 + $0xa0] sm:$0xf] }
 0x1d0   : > { %21180 = vmatprep.subr.msk.bf16.mxu0 %vm886_vm0, %v21336_v12  ;;  %v4166_v12 = vrot.slane %v4164_v58, 4  ;;  %v4982_v1 = vrot.slane %v23440_v0, 5  ;;  %v4180_v38 = vrot.slane %v4178_v41, 5  ;;  %v23467_v16 = vsel %vm22224_vm7, %v17387_v2, %v4975_v18 }
 0x1d1   : > { %v23457_v19 = vrot.slane %v4184_v3, 5  ;;  %27823 = vst [vmem:[#allocation12_spill] sm:$0xff] %v23467_v16  ;;  %v23471_v41 = vrot.slane %v4170_v24, 5  ;;  %v23475_v3 = vsel %vm22224_vm7, %v4977_v4, %v4978_v59  ;;  %v23482_v18 = vrot.slane %v4188_v22, 4 }
 0x1d2   : > { %v4984_v44 = vrot.slane %v4982_v1, 4  ;;  %27824 = vst [vmem:[#allocation13_spill] sm:$0xff] %v23475_v3  ;;  %v4194_v2 = vshll.u32 %v23455_v53, 16  ;;  %v4199_v59 = vshrl.u32 %v17270_v20, 16  ;;  %v4181_v22 = vor.u32 %v4180_v38, %v23429_v39  ;;  %v21335_v53 = vld [vmem:[%s21827_s8 + $0xcc] sm:$0xff]  }
 0x1d3   : > { %19520 = vmatpush3.bf16.msra.mxu0 %v4644_v36  ;;  %v17372_v36 = vld [vmem:[%s21827_s8 + $0x9c] sm:$0xe]  ;;  %v4992_v38 = vrot.slane %v23499_v54, 5  ;;  %v4212_v4 = vshrl.u32 %v23463_v56, 16 }
 0x1d4   : > { %19553 = vmatprep.subr.bf16.mxu0 %v23397_v50  ;;  %v17388_v58 = vrot.slane %v17372_v36, 9  ;;  %v23489_v24 = vsel %vm22224_vm7, %v4984_v44, %v4985_v40  ;;  %v4202_v36 = vshll.u32 %v17270_v20, 16  ;;  %v4115_v40 = vsel %vm21867_vm4, %v23377_v5, %v23336_v37  ;;  %v23510_v20 = vld [vmem:[%s21827_s8 + $0xbc] sm:$0x1]  ;;  %v17373_v44 = vld [vmem:[%s21827_s8 + $0xa8] sm:$0xe] }
 0x1d5   : > { %27826 = vst [vmem:[#allocation15_spill] sm:$0xff] %v23489_v24  ;;  %v4999_v37 = vrot.slane %v23510_v20, 5  ;;  %v23522_v24 = vrot.slane %v4194_v2, 5  ;;  %v23528_v16 = vrot.slane %v4181_v22, 4  ;;  %v21332_v2 = vld [vmem:[%s21827_s8 + $0xb4] sm:$0xff]   ;;  %v21334_v22 = vld [vmem:[%s21827_s8 + $0xc0] sm:$0xff]  }
 0x1d6   : > { %19490 = vmatmul.mubr.msk.bf16.gmra.mrb[16].mxu0 %vm837_vm3, %v21326_v21  ;;  %v21329_v21 = vld [vmem:[%s21827_s8 + $0x9c] sm:$0xff]   ;;  %v23479_v45 = vsel %vm22224_vm7, %v17388_v58, %v4982_v1  ;;  %v4208_v1 = vshll.u32 %v23463_v56, 16  ;;  %v23496_v58 = vld [vmem:[%s21827_s8 + $0xac] sm:$0xf]  ;;  %v4204_v57 = vrot.slane %v4202_v36, 5  ;;  %v4250_v56 = vshll.u32 %v17276_v33, 16 }
 0x1d7   : > { %19493 = vmatprep.mubr.msk.bf16.mxu0 %vm837_vm3, %v21328_v48  ;;  %v4167_v48 = vor.u32 %v4166_v12, %v23420_v25  ;;  %27825 = vst [vmem:[#allocation14_spill] sm:$0xff] %v23479_v45  ;;  %v4989_v39 = vrot.slane %v23496_v58, 5  ;;  %v17374_v12 = vld [vmem:[%s21827_s8 + $0xb4] sm:$0xe] }
 0x1d8   : > { %v17390_v3 = vrot.slane %v17374_v12, 9  ;;  %v4201_v12 = vrot.slane %v4199_v59, 4  ;;  %v23550_v30 = vrot.slane %v4208_v1, 5 }
 0x1d9   : > { %v23520_v5 = vrot.slane %v4167_v48, 4  ;;  %v4991_v45 = vrot.slane %v4989_v39, 4  ;;  %v4998_v48 = vrot.slane %v4996_v15, 4 }
 0x1db   : > { %v23556_v59 = vsel %vm22224_vm7, %v4998_v48, %v4999_v37  ;;  %v4205_v37 = vor.u32 %v4204_v57, %v4201_v12  ;;  %v23579_v48 = vld [vmem:[%s21827_s8 + $0xd4] sm:$0x1] }
 0x1dc   : > { %27831 = vst [vmem:[#allocation20_spill] sm:$0xff] %v23556_v59  ;;  %v17376_v59 = vld [vmem:[%s21827_s8 + $0xcc] sm:$0xe] }
 0x1de   : > { %19494 = vmatmul.mubr.msk.bf16.gmra.mrb[20].mxu0 %vm837_vm3, %v21329_v21  ;;  %v17389_v21 = vrot.slane %v17373_v44, 9  ;;  %v23531_v44 = vld [vmem:[%s21827_s8 + $0x50] sm:$0x1] }
 0x1df   : > { %19497 = vmatprep.mubr.msk.bf16.mxu0 %vm837_vm3, %v21331_v29  ;;  %v4125_v29 = vsel %vm21867_vm4, %v23387_v62, %v23403_v46  ;;  %27827 = vst [vmem:[#allocation8_spill] sm:$0xff] %v23531_v44  ;;  %v23543_v62 = vsel %vm22224_vm7, %v4991_v45, %v4992_v38  ;;  %v23547_v46 = vsel %vm22224_vm7, %v17390_v3, %v4996_v15  ;;  %v4218_v36 = vshll.u32 %v23531_v44, 16  ;;  %v23568_v38 = vld [vmem:[%s21827_s8 + $0xc8] sm:$0x1]  ;;  %v23596_v44 = vld [vmem:[%s21827_s8 + $0x64] sm:$0xf] }
 0x1e0   : > { %v23538_v49 = vsel %vm22224_vm7, %v17389_v21, %v4989_v39  ;;  %27829 = vst [vmem:[#allocation17_spill] sm:$0xff] %v23543_v62  ;;  %27830 = vst [vmem:[#allocation19_spill] sm:$0xff] %v23547_v46  ;;  %v4214_v39 = vrot.slane %v4212_v4, 4  ;;  %v4191_v45 = vor.u32 %v23482_v18, %v23457_v19  ;;  %v4223_v15 = vshrl.u32 %v23534_v51, 16  ;;  %v23565_v4 = vld [vmem:[%s21827_s8 + $0xc4] sm:$0xf] }
 0x1e1   : > { %27828 = vst [vmem:[#allocation16_spill] sm:$0xff] %v23538_v49  ;;  %v17321_v1 = vcombine.low %v4115_v40, %v4125_v29  ;;  %v23571_v21 = vld [vmem:[%s21827_s8 + $0xd0] sm:$0xf]  ;;  %v4139_v18 = vsel %vm21867_vm4, %v23409_v42, %v23354_v31  ;;  %v17375_v62 = vld [vmem:[%s21827_s8 + $0xc0] sm:$0xe]  ;;  %v5003_v40 = vrot.slane %v23565_v4, 5 }
 0x1e2   : > { %v5006_v29 = vrot.slane %v23568_v38, 5  ;;  %v17391_v3 = vrot.slane %v17375_v62, 9  ;;  %v5010_v46 = vrot.slane %v23571_v21, 5  ;;  %v5013_v31 = vrot.slane %v23579_v48, 5 }
 0x1e3   : > { %v4192_v57 = vrot.slane %v4191_v45, 4  ;;  %v4226_v42 = vshll.u32 %v23534_v51, 16  ;;  %v5005_v12 = vrot.slane %v5003_v40, 4  ;;  %v17392_v49 = vrot.slane %v17376_v59, 9 }
 0x1e4   : > { %v23600_v62 = vsel %vm22224_vm7, %v17391_v3, %v5003_v40  ;;  %v4206_v45 = vrot.slane %v4205_v37, 4  ;;  %v4232_v51 = vshll.u32 %v23290_v27, 16  ;;  %v4247_v40 = vshrl.u32 %v17276_v33, 16 }
 0x1e5   : > { %v23606_v59 = vsel %vm22224_vm7, %v5005_v12, %v5006_v29  ;;  %v23610_v7 = vsel %vm22224_vm7, %v17392_v49, %v5010_v46  ;;  %v4256_v13 = vshll.u32 %v23596_v44, 16  ;;  %v4163_v49 = vsel %vm21867_vm4, %v23459_v9, %v23420_v25 }
 0x1e6   : > { %19498 = vmatmul.mubr.msk.bf16.gmra.mrb[24].mxu0 %vm837_vm3, %v21332_v2  ;;  %v4215_v2 = vor.u32 %v4214_v39, %v23550_v30  ;;  %v5012_v39 = vrot.slane %v5010_v46, 4  ;;  %v4187_v33 = vsel %vm21867_vm4, %v23528_v16, %v23457_v19  ;;  %v4260_v46 = vshrl.u32 %v23596_v44, 16 }
 0x1e7   : > { %19501 = vmatprep.mubr.msk.bf16.mxu0 %vm837_vm3, %v21334_v22  ;;  %v4220_v22 = vrot.slane %v4218_v36, 5  ;;  %v4236_v36 = vshrl.u32 %v23290_v27, 16  ;;  %v4173_v27 = vsel %vm21867_vm4, %v23520_v5, %v23471_v41  ;;  %v4197_v25 = vsel %vm21867_vm4, %v4192_v57, %v23522_v24 }
 0x1e8   : > { %v4216_v55 = vrot.slane %v4215_v2, 4  ;;  %v23617_v37 = vsel %vm22224_vm7, %v5012_v39, %v5013_v31  ;;  %v17279_v2 = vld [vmem:[%s21827_s8 + $0x6c] sm:$0xf]  ;;  %v4225_v9 = vrot.slane %v4223_v15, 4  ;;  %v4228_v31 = vrot.slane %v4226_v42, 5 }
 0x1e9   : > { %27832 = vst [vmem:[#allocation21_spill] sm:$0xff] %v23617_v37  ;;  %v4242_v12 = vshll.u32 %v23293_v11, 16  ;;  %v4211_v19 = vsel %vm21867_vm4, %v4206_v45, %v23550_v30  ;;  %v23647_v41 = vrot.slane %v4232_v51, 5  ;;  %v4249_v5 = vrot.slane %v4247_v40, 4  ;;  %v23652_v11 = vld [vmem:[%s21827_s8 + $0x68] sm:$0x1] }
 0x1ea   : > { %v4221_v16 = vsel %vm21867_vm4, %v4216_v55, %v4220_v22  ;;  %v4252_v24 = vrot.slane %v4250_v56, 5  ;;  %v23649_v15 = vrot.slane %v4256_v13, 5  ;;  %v4271_v57 = vshrl.u32 %v17279_v2, 16  ;;  %v17282_v13 = vld [vmem:[%s21827_s8 + $0x78] sm:$0xf] }
 0x1eb   : > { %v4274_v42 = vshll.u32 %v17279_v2, 16  ;;  %v4280_v30 = vshll.u32 %v23330_v34, 16  ;;  %v4284_v39 = vshrl.u32 %v23330_v34, 16  ;;  %v17322_v22 = vcombine.low %v4139_v18, %v4149_v23  ;;  %v23661_v56 = vld [vmem:[%s21827_s8 + $0x7c] sm:$0xf] }
 0x1ec   : > { %v17323_v45 = vcombine.low %v4163_v49, %v4173_v27  ;;  %v17324_v51 = vcombine.low %v4187_v33, %v4197_v25  ;;  %v4229_v55 = vor.u32 %v4228_v31, %v4225_v9  ;;  %v23657_v40 = vrot.slane %v4242_v12, 5  ;;  %v17285_v23 = vld [vmem:[%s21827_s8 + $0x84] sm:$0xf] }
 0x1ed   : > { %v17325_v2 = vcombine.low %v4211_v19, %v4221_v16  ;;  %v4253_v29 = vor.u32 %v4252_v24, %v4249_v5  ;;  %v4266_v3 = vshll.u32 %v23652_v11, 16  ;;  %v4273_v34 = vrot.slane %v4271_v57, 4  ;;  %v21339_v24 = vld [vmem:[%s27577_s1 + $0x1f0] sm:$0xff]  }
 0x1ee   : > { %19502 = vmatmul.mubr.msk.bf16.gmra.mrb[28].mxu0 %vm837_vm3, %v21335_v53  ;;  %v4238_v53 = vrot.slane %v4236_v36, 4  ;;  %v4276_v49 = vrot.slane %v4274_v42, 5  ;;  %v23669_v27 = vrot.slane %v4280_v30, 5  ;;  %v4286_v33 = vrot.slane %v4284_v39, 4 }
 0x1ef   : > { %19521 = vmatprep.mubr.msk.bf16.mxu0 %vm837_vm3, %v17321_v1  ;;  %v4262_v1 = vrot.slane %v4260_v46, 4  ;;  %v21338_v46 = vld [vmem:[%s27577_s1 + $0x1e8] sm:$0xff]   ;;  %v4295_v25 = vshrl.u32 %v17282_v13, 16  ;;  %v4298_v9 = vshll.u32 %v17282_v13, 16  ;;  %v4304_v31 = vshll.u32 %v23661_v56, 16 }
 0x1f0   : > { %v4239_v36 = vor.u32 %v4238_v53, %v23647_v41  ;;  %v4308_v12 = vshrl.u32 %v23661_v56, 16  ;;  %v4230_v19 = vrot.slane %v4229_v55, 4  ;;  %v4319_v53 = vshrl.u32 %v17285_v23, 16  ;;  %v17288_v55 = vld [vmem:[%s21827_s8 + $0x90] sm:$0xf] }
 0x1f1   : > { %v4263_v18 = vor.u32 %v4262_v1, %v23649_v15  ;;  %v4322_v5 = vshll.u32 %v17285_v23, 16  ;;  %v4254_v57 = vrot.slane %v4253_v29, 4  ;;  %v4268_v1 = vrot.slane %v4266_v3, 5  ;;  %v23693_v29 = vld [vmem:[%s21827_s8 + $0x80] sm:$0x1] }
 0x1f2   : > { %v4240_v16 = vrot.slane %v4239_v36, 4  ;;  %v4328_v42 = vshll.u32 %v23381_v32, 16  ;;  %v4332_v30 = vshrl.u32 %v23381_v32, 16  ;;  %v4277_v39 = vor.u32 %v4276_v49, %v4273_v34 }
 0x1f3   : > { %v4297_v36 = vrot.slane %v4295_v25, 4  ;;  %v4300_v13 = vrot.slane %v4298_v9, 5  ;;  %v23684_v23 = vrot.slane %v4304_v31, 5  ;;  %v4310_v37 = vrot.slane %v4308_v12, 4 }
 0x1f4   : > { %v4235_v3 = vsel %vm21867_vm4, %v4230_v19, %v23647_v41  ;;  %v4245_v32 = vsel %vm21867_vm4, %v4240_v16, %v23657_v40  ;;  %v4321_v34 = vrot.slane %v4319_v53, 4  ;;  %v23698_v49 = vrot.slane %v4328_v42, 5 }
 0x1f5   : > { %v4346_v25 = vshll.u32 %v17288_v55, 16  ;;  %v4259_v41 = vsel %vm21867_vm4, %v4254_v57, %v23649_v15  ;;  %v23705_v9 = vrot.slane %v4277_v39, 4  ;;  %v4301_v19 = vor.u32 %v4300_v13, %v4297_v36 }
 0x1f6   : > { %19522 = vmatmul.mubr.msk.bf16.vlgmr.msra.gmra.mrb[0].mxu0 %vm837_vm3, %v17322_v22  ;;  %v4287_v22 = vor.u32 %v4286_v33, %v23669_v27  ;;  %v4343_v33 = vshrl.u32 %v17288_v55, 16  ;;  %v4311_v16 = vor.u32 %v4310_v37, %v23684_v23  ;;  %v4314_v53 = vshll.u32 %v23693_v29, 16  ;;  %v21341_v37 = vld [vmem:[%s27577_s1 + $0x200] sm:$0xff]   ;;  %v17294_v55 = vld [vmem:[%s21827_s8 + $0xa8] sm:$0xf] }
 0x1f7   : > { %19554 = vmatpush3.bf16.msra.mxu0 %v23397_v50  ;;  %19525 = vmatprep.mubr.msk.bf16.mxu0 %vm837_vm3, %v17323_v45  ;;  %v4264_v50 = vrot.slane %v4263_v18, 4  ;;  %v4290_v45 = vshll.u32 %v23333_v52, 16  ;;  %v4324_v18 = vrot.slane %v4322_v5, 5  ;;  %v21340_v52 = vld [vmem:[%s27577_s1 + $0x1f8] sm:$0xff]   ;;  %v4338_v15 = vshll.u32 %v23384_v60, 16 }
 0x1f8   : > { %19555 = vmatprep.subr.bf16.mxu0 %v21338_v46  ;;  %v4288_v12 = vrot.slane %v4287_v22, 4  ;;  %v4352_v5 = vshll.u32 %v23434_v17, 16  ;;  %v4356_v57 = vshrl.u32 %v23434_v17, 16  ;;  %v4345_v42 = vrot.slane %v4343_v33, 4 }
 0x1f9   : > { %v4269_v40 = vsel %vm21867_vm4, %v4264_v50, %v4268_v1  ;;  %v4292_v31 = vrot.slane %v4290_v45, 5  ;;  %v4325_v1 = vor.u32 %v4324_v18, %v4321_v34  ;;  %v17291_v50 = vld [vmem:[%s21827_s8 + $0x9c] sm:$0xf]  ;;  %v4283_v60 = vsel %vm21867_vm4, %v23705_v9, %v23669_v27  ;;  %v21342_v27 = vld [vmem:[%s27577_s1 + $0x208] sm:$0xff]  }
 0x1fa   : > { %v4302_v39 = vrot.slane %v4301_v19, 4  ;;  %v4312_v22 = vrot.slane %v4311_v16, 4  ;;  %v4316_v45 = vrot.slane %v4314_v53, 5  ;;  %v23726_v36 = vrot.slane %v4352_v5, 5 }
 0x1fb   : > { %19556 = vmatpush3.bf16.msra.mxu0 %v21338_v46  ;;  %v4334_v46 = vrot.slane %v4332_v30, 4  ;;  %v4348_v30 = vrot.slane %v4346_v25, 5  ;;  %v4293_v17 = vsel %vm21867_vm4, %v4288_v12, %v4292_v31  ;;  %v4358_v13 = vrot.slane %v4356_v57, 4 }
 0x1fc   : > { %19557 = vmatprep.subr.bf16.mxu0 %v21339_v24  ;;  %v4367_v34 = vshrl.u32 %v17291_v50, 16  ;;  %v4370_v18 = vshll.u32 %v17291_v50, 16  ;;  %v4376_v25 = vshll.u32 %v23440_v0, 16  ;;  %v4307_v9 = vsel %vm21867_vm4, %v4302_v39, %v23684_v23 }
 0x1fd   : > { %v4349_v33 = vor.u32 %v4348_v30, %v4345_v42  ;;  %v4317_v31 = vsel %vm21867_vm4, %v4312_v22, %v4316_v45  ;;  %v4400_v12 = vshll.u32 %v23496_v58, 16  ;;  %v4404_v19 = vshrl.u32 %v23496_v58, 16  ;;  %v21343_v58 = vld [vmem:[%s27577_s1 + $0x210] sm:$0xff]  }
 0x1fe   : > { %19526 = vmatmul.mubr.msk.bf16.gmra.mrb[4].mxu0 %vm837_vm3, %v17324_v51  ;;  %v4335_v51 = vor.u32 %v4334_v46, %v23698_v49  ;;  %v4340_v46 = vrot.slane %v4338_v15, 5  ;;  %v4362_v16 = vshll.u32 %v23437_v61, 16  ;;  %v4369_v53 = vrot.slane %v4367_v34, 4  ;;  %v17300_v34 = vld [vmem:[%s21827_s8 + $0xc0] sm:$0xf] }
 0x1ff   : > { %19529 = vmatprep.mubr.msk.bf16.mxu0 %vm837_vm3, %v17325_v2  ;;  %19558 = vmatpush3.bf16.msra.mxu0 %v21339_v24  ;;  %v17326_v2 = vcombine.low %v4235_v3, %v4245_v32  ;;  %v17327_v24 = vcombine.low %v4259_v41, %v4269_v40  ;;  %v4326_v3 = vrot.slane %v4325_v1, 4  ;;  %v4380_v41 = vshrl.u32 %v23440_v0, 16 }
 0x200   : > { %19559 = vmatprep.subr.bf16.mxu0 %v21340_v52  ;;  %v4336_v32 = vrot.slane %v4335_v51, 4  ;;  %v4391_v40 = vshrl.u32 %v17294_v55, 16  ;;  %v4359_v0 = vor.u32 %v4358_v13, %v23726_v36  ;;  %v4372_v15 = vrot.slane %v4370_v18, 5 }
 0x201   : > { %v4331_v23 = vsel %vm21867_vm4, %v4326_v3, %v23698_v49  ;;  %v4350_v57 = vrot.slane %v4349_v33, 4  ;;  %v23752_v1 = vrot.slane %v4376_v25, 5  ;;  %v4382_v51 = vrot.slane %v4380_v41, 4 }
 0x202   : > { %v4341_v5 = vsel %vm21867_vm4, %v4336_v32, %v4340_v46  ;;  %v4393_v61 = vrot.slane %v4391_v40, 4  ;;  %v17328_v42 = vcombine.low %v4283_v60, %v4293_v17  ;;  %v17329_v30 = vcombine.low %v4307_v9, %v4317_v31  ;;  %v21344_v60 = vld [vmem:[%s27577_s1 + $0x218] ss:$0 sps:$4 sm:$0x33]  }
 0x203   : > { %19560 = vmatpush3.bf16.msra.mxu0 %v21340_v52  ;;  %v4394_v52 = vshll.u32 %v17294_v55, 16  ;;  %v23754_v50 = vrot.slane %v4400_v12, 5  ;;  %v4406_v49 = vrot.slane %v4404_v19, 4  ;;  %v4364_v39 = vrot.slane %v4362_v16, 5 }
 0x204   : > { %19561 = vmatprep.subr.bf16.mxu0 %v21341_v37  ;;  %v4373_v22 = vor.u32 %v4372_v15, %v4369_v53  ;;  %v4386_v45 = vshll.u32 %v23444_v8, 16  ;;  %v17330_v55 = vcombine.low %v4331_v23, %v4341_v5  ;;  %v4355_v13 = vsel %vm21867_vm4, %v4350_v57, %v23726_v36 }
 0x205   : > { %v4383_v17 = vor.u32 %v4382_v51, %v23752_v1  ;;  %v4410_v3 = vshll.u32 %v23499_v54, 16  ;;  %v4407_v8 = vor.u32 %v4406_v49, %v23754_v50  ;;  %v4424_v33 = vshll.u32 %v23502_v63, 16 }
 0x206   : > { %19530 = vmatmul.mubr.msk.bf16.gmra.mrb[8].mxu0 %vm837_vm3, %v17326_v2  ;;  %v17297_v2 = vld [vmem:[%s21827_s8 + $0xb4] sm:$0xf]  ;;  %v4428_v36 = vshrl.u32 %v23502_v63, 16  ;;  %v4374_v25 = vrot.slane %v4373_v22, 4  ;;  %v4388_v41 = vrot.slane %v4386_v45, 5  ;;  %v4439_v40 = vshrl.u32 %v17300_v34, 16 }
 0x207   : > { %19533 = vmatprep.mubr.msk.bf16.mxu0 %vm837_vm3, %v17327_v24  ;;  %19562 = vmatpush3.bf16.msra.mxu0 %v21341_v37  ;;  %v4396_v37 = vrot.slane %v4394_v52, 5  ;;  %v4360_v24 = vrot.slane %v4359_v0, 4  ;;  %v4415_v32 = vshrl.u32 %v17297_v2, 16  ;;  %v4418_v46 = vshll.u32 %v17297_v2, 16  ;;  %v23781_v63 = vld [vmem:[%s27578_s2 + $0x30] sm:$0xff]  }
 0x208   : > { %19563 = vmatprep.subr.bf16.mxu0 %v21342_v27  ;;  %v4442_v54 = vshll.u32 %v17300_v34, 16  ;;  %v4448_v52 = vshll.u32 %v23565_v4, 16  ;;  %v4452_v9 = vshrl.u32 %v23565_v4, 16  ;;  %v5173_v31 = vsel %vm886_vm0, %v21344_v60, 0 }
 0x209   : > { %v4397_v18 = vor.u32 %v4396_v37, %v4393_v61  ;;  %v4384_v12 = vrot.slane %v4383_v17, 4  ;;  %v4412_v0 = vrot.slane %v4410_v3, 5  ;;  %v4417_v16 = vrot.slane %v4415_v32, 4  ;;  %v17303_v37 = vld [vmem:[%s21827_s8 + $0xcc] sm:$0xf] }
 0x20a   : > { %v4408_v53 = vrot.slane %v4407_v8, 4  ;;  %v4420_v15 = vrot.slane %v4418_v46, 5  ;;  %v4426_v23 = vrot.slane %v4424_v33, 5  ;;  %v4430_v5 = vrot.slane %v4428_v36, 4 }
 0x20b   : > { %19564 = vmatpush3.bf16.msra.mxu0 %v21342_v27  ;;  %v4365_v27 = vsel %vm21867_vm4, %v4360_v24, %v4364_v39  ;;  %v4398_v19 = vrot.slane %v4397_v18, 4  ;;  %v4441_v4 = vrot.slane %v4439_v40, 4  ;;  %v4450_v51 = vrot.slane %v4448_v52, 5 }
 0x20c   : > { %19565 = vmatprep.subr.bf16.mxu0 %v21343_v58  ;;  %v17331_v57 = vcombine.low %v4355_v13, %v4365_v27  ;;  %v4454_v61 = vrot.slane %v4452_v9, 4  ;;  %v4434_v49 = vshll.u32 %v23510_v20, 16  ;;  %v4413_v24 = vsel %vm21867_vm4, %v4408_v53, %v4412_v0 }
 0x20d   : > { %v4403_v2 = vsel %vm21867_vm4, %v4398_v19, %v23754_v50  ;;  %v4421_v39 = vor.u32 %v4420_v15, %v4417_v16  ;;  %v4431_v22 = vor.u32 %v4430_v5, %v4426_v23  ;;  %v4463_v45 = vshrl.u32 %v17303_v37, 16  ;;  %v17361_v19 = vld [vmem:[%s21827_s8 + $0x18] sm:$0xe] }
 0x20e   : > { %19534 = vmatmul.mubr.msk.bf16.gmra.mrb[12].mxu0 %vm837_vm3, %v17328_v42  ;;  %v4379_v42 = vsel %vm21867_vm4, %v4374_v25, %v23752_v1  ;;  %v4466_v1 = vshll.u32 %v17303_v37, 16  ;;  %v4472_v13 = vshll.u32 %v23571_v21, 16  ;;  %v4476_v34 = vshrl.u32 %v23571_v21, 16  ;;  %v17362_v37 = vld [vmem:[%s21827_s8 + $0x24] sm:$0xe] }
 0x20f   : > { %19537 = vmatprep.mubr.msk.bf16.mxu0 %vm837_vm3, %v17329_v30  ;;  %19566 = vmatpush3.bf16.msra.mxu0 %v21343_v58  ;;  %v4444_v58 = vrot.slane %v4442_v54, 5  ;;  %v4389_v30 = vsel %vm21867_vm4, %v4384_v12, %v4388_v41  ;;  %v17333_v18 = vcombine.low %v4403_v2, %v4413_v24  ;;  %v4422_v50 = vrot.slane %v4421_v39, 4 }
 0x210   : > { %21181 = vmatprep.subr.msk.bf16.mxu0 %vm886_vm0, %v21344_v60  ;;  %v4455_v60 = vor.u32 %v4454_v61, %v4450_v51  ;;  %v17332_v17 = vcombine.low %v4379_v42, %v4389_v30  ;;  %v4432_v3 = vrot.slane %v4431_v22, 4  ;;  %v4436_v32 = vrot.slane %v4434_v49, 5  ;;  %v17363_v42 = vld [vmem:[%s21827_s8 + $0x30] sm:$0xe]  ;;  %vm24037_vm0 = vmand %vm5410_vm9, %vm5559_vm12 }
 0x211   : > { %v4445_v20 = vor.u32 %v4444_v58, %v4441_v4  ;;  %v4465_v8 = vrot.slane %v4463_v45, 4  ;;  %v4468_v46 = vrot.slane %v4466_v1, 5  ;;  %v4474_v33 = vrot.slane %v4472_v13, 5  ;;  %v27833_v13 = vld [vmem:[#allocation23_spill] sm:$0xff] }
 0x212   : > { %v4478_v36 = vrot.slane %v4476_v34, 4  ;;  %v4456_v25 = vrot.slane %v4455_v60, 4  ;;  %v4427_v21 = vsel %vm21867_vm4, %v4422_v50, %v4426_v23  ;;  %v4482_v52 = vshll.u32 %v23579_v48, 16  ;;  %v17364_v60 = vld [vmem:[%s21827_s8 + $0x3c] sm:$0xe] }
 0x213   : > { %19568 = vmatpush3.bf16.msra.mxu0 %v5173_v31  ;;  %v4446_v27 = vrot.slane %v4445_v20, 4  ;;  %v4469_v40 = vor.u32 %v4468_v46, %v4465_v8  ;;  %v4905_v12 = vrot.slane %v23303_v47, 5  ;;  %v17377_v5 = vrot.slane %v17361_v19, 9  ;;  %v27835_v8 = vld [vmem:[#allocation10_spill] sm:$0xff] }
 0x214   : > { %19601 = vmatprep.subr.bf16.mxu0 %v23781_v63  ;;  %v4479_v54 = vor.u32 %v4478_v36, %v4474_v33  ;;  %v4484_v23 = vrot.slane %v4482_v52, 5  ;;  %v4908_v48 = vrot.slane %v23346_v14, 5  ;;  %v4912_v58 = vrot.slane %v23315_v43, 5 }
 0x215   : > { %v4451_v9 = vsel %vm21867_vm4, %v4446_v27, %v4450_v51  ;;  %v4470_v53 = vrot.slane %v4469_v40, 4  ;;  %v4906_v51 = vsel %vm22224_vm7, %v17377_v5, %v4905_v12  ;;  %v4919_v14 = vrot.slane %v23368_v10, 5  ;;  %v27836_v27 = vld [vmem:[#allocation8_spill] sm:$0xff] }
 0x216   : > { %19538 = vmatmul.mubr.msk.bf16.gmra.mrb[16].mxu0 %vm837_vm3, %v17330_v55  ;;  %v4458_v55 = vshll.u32 %v23568_v38, 16  ;;  %v4437_v38 = vsel %vm21867_vm4, %v4432_v3, %v4436_v32  ;;  %v4480_v15 = vrot.slane %v4479_v54, 4  ;;  %v17378_v2 = vrot.slane %v17362_v37, 9  ;;  %v27840_v37 = vld [vmem:[#allocation18_spill] sm:$0xff] }
 0x217   : > { %19541 = vmatprep.mubr.msk.bf16.mxu0 %vm837_vm3, %v17331_v57  ;;  %v17334_v0 = vcombine.low %v4427_v21, %v4437_v38  ;;  %v4907_v57 = vrot.slane %v4905_v12, 4  ;;  %v4475_v4 = vsel %vm21867_vm4, %v4470_v53, %v4474_v33  ;;  %v4914_v24 = vrot.slane %v4912_v58, 4 }
 0x218   : > { %v4460_v41 = vrot.slane %v4458_v55, 5  ;;  %v4485_v47 = vsel %vm21867_vm4, %v4480_v15, %v4484_v23  ;;  %v4915_v39 = vrot.slane %v23352_v35, 5  ;;  %v17379_v22 = vrot.slane %v17363_v42, 9  ;;  %v17369_v23 = vld [vmem:[%s21827_s8 + $0x78] sm:$0xe] }
 0x219   : > { %v4909_v61 = vsel %vm22224_vm7, %v4907_v57, %v4908_v48  ;;  %v17336_v30 = vcombine.low %v4475_v4, %v4485_v47  ;;  %v4921_v43 = vrot.slane %v4919_v14, 4  ;;  %v4922_v45 = vrot.slane %v23406_v6, 5  ;;  %v27834_v6 = vld [vmem:[#allocation11_spill] sm:$0xff]  ;;  %v27838_v47 = vld [vmem:[#allocation22_spill] sm:$0xff] }
 0x21a   : > { %v4461_v31 = vsel %vm21867_vm4, %v4456_v25, %v4460_v41  ;;  %v17408_v49 = vcombine.low %v4906_v51, %v4909_v61  ;;  %v4913_v10 = vsel %vm22224_vm7, %v17378_v2, %v4912_v58  ;;  %v4916_v1 = vsel %vm22224_vm7, %v4914_v24, %v4915_v39  ;;  %v21346_v41 = vld [vmem:[%s27578_s2 + $0x38] sm:$0xff]   ;;  %v27846_v2 = vld [vmem:[#allocation12_spill] sm:$0xff]  ;;  %v27847_v24 = vld [vmem:[#allocation13_spill] sm:$0xff] }
 0x21b   : > { %v17335_v16 = vcombine.low %v4451_v9, %v4461_v31  ;;  %v4926_v34 = vrot.slane %v27833_v13, 5  ;;  %v4920_v20 = vsel %vm22224_vm7, %v17379_v22, %v4919_v14  ;;  %v4923_v35 = vsel %vm22224_vm7, %v4921_v43, %v4922_v45  ;;  %v21347_v9 = vld [vmem:[%s27578_s2 + $0x40] sm:$0xff]   ;;  %v27837_v4 = vld [vmem:[#allocation7_spill] sm:$0xff]  ;;  %v27841_v14 = vld [vmem:[#allocation25_spill] sm:$0xff] }
 0x21c   : > { %v4933_v55 = vrot.slane %v27834_v6, 5  ;;  %v17410_v50 = vcombine.low %v4920_v20, %v4923_v35  ;;  %v17380_v3 = vrot.slane %v17364_v60, 9  ;;  %v4929_v46 = vrot.slane %v27835_v8, 5  ;;  %v17367_v31 = vld [vmem:[%s21827_s8 + $0x60] sm:$0xe]  ;;  %v27849_v22 = vld [vmem:[#allocation14_spill] sm:$0xff] }
 0x21d   : > { %v4928_v32 = vrot.slane %v4926_v34, 4  ;;  %v4936_v25 = vrot.slane %v27836_v27, 5  ;;  %v4947_v52 = vrot.slane %v23596_v44, 5  ;;  %v4961_v15 = vrot.slane %v23661_v56, 5  ;;  %v27850_v43 = vld [vmem:[#allocation15_spill] sm:$0xff]  ;;  %v27856_v20 = vld [vmem:[#allocation20_spill] sm:$0xff] }
 0x21e   : > { %19542 = vmatmul.mubr.msk.bf16.gmra.mrb[20].mxu0 %vm837_vm3, %v17332_v17  ;;  %v17365_v17 = vld [vmem:[%s21827_s8 + $0x48] sm:$0xe]  ;;  %v4935_v36 = vrot.slane %v4933_v55, 4  ;;  %v4927_v21 = vsel %vm22224_vm7, %v17380_v3, %v4926_v34  ;;  %v17385_v57 = vrot.slane %v17369_v23, 9  ;;  %v27839_v58 = vcombine.low %v27837_v4, %v27838_v47  ;;  %v27855_v34 = vld [vmem:[#allocation19_spill] sm:$0xff]  ;;  %s27448_s8 = scalar_lea.vmem [#allocation4], %s16726_s23 }
 0x21f   : > { %19545 = vmatprep.mubr.msk.bf16.mxu0 %vm837_vm3, %v17333_v18  ;;  %v17409_v18 = vcombine.low %v4913_v10, %v4916_v1  ;;  %v17381_v33 = vrot.slane %v17365_v17, 9  ;;  %v4930_v38 = vsel %vm22224_vm7, %v4928_v32, %v4929_v46  ;;  %v4963_v48 = vrot.slane %v4961_v15, 4  ;;  %v27852_v10 = vld [vmem:[#allocation16_spill] sm:$0xff]  ;;  %v27853_v1 = vld [vmem:[#allocation17_spill] sm:$0xff]  ;;  %s16660_s9 = sshll.u32 %s27448_s8, 4  ;;  %s27529_s9 = int_to_ptr.vmem [resolvable:$true] %s16660_s9 }
 0x220   : > { %v4937_v54 = vsel %vm22224_vm7, %v4935_v36, %v4936_v25  ;;  %v17411_v12 = vcombine.low %v4927_v21, %v4930_v38  ;;  %v4962_v51 = vsel %vm22224_vm7, %v17385_v57, %v4961_v15  ;;  %v27842_v42 = vcombine.low %v27840_v37, %v27841_v14  ;;  %v27859_v6 = vld [vmem:[#allocation21_spill] sm:$0xff]  ;;  %v21357_v15 = vld [vmem:[%s27578_s2 + $0xe0] sm:$0xff]   ;;  %s21654_s16 = scalar_lea.vmem %s27529_s9, 1024  ;;  %p21661_p0 = scmp.lt.s32.totalorder %s27529_s9, %s21659_s18 }
 0x221   : > { %v4934_v40 = vsel %vm22224_vm7, %v17381_v33, %v4933_v55  ;;  %v27848_v39 = vcombine.low %v27846_v2, %v27847_v24  ;;  %v27851_v45 = vcombine.low %v27849_v22, %v27850_v43  ;;  %v27854_v13 = vcombine.low %v27852_v10, %v27853_v1  ;;  %v21358_v23 = vld [vmem:[%s27578_s2 + $0xe8] sm:$0xff]   ;;  %v24016_v57 = vld [vmem:[%s27580_s4] ss:$0 sm:$0xff]  ;;  %p21655_p11 = scmp.ne.s32.totalorder %s27529_s9, %s21654_s16  ;;  %p21662_p1 = scmp.lt.s32.totalorder %s21660_s19, %s21654_s16 }
 0x222   : > { %v17412_v19 = vcombine.low %v4934_v40, %v4937_v54  ;;  %v27857_v35 = vcombine.low %v27855_v34, %v27856_v20  ;;  %v27858_v60 = vcombine.low %v23600_v62, %v23606_v59  ;;  %v27860_v55 = vcombine.low %v23610_v7, %v27859_v6  ;;  %v21348_v62 = vld [vmem:[%s27578_s2 + $0x48] sm:$0xff]   ;;  %v21349_v59 = vld [vmem:[%s27578_s2 + $0x50] sm:$0xff]  }
 0x223   : > { %v21718_v17 = vmov 0   ;;  %p21656_p12 = pnand %p21655_p11, %p21800_p5  ;;  %p21663_p2 = por %p21662_p1, %p21661_p0 }
 0x224   : > { %5415 = vst.msk [vmem:[#allocation2 + $0x18] sm:$0xf] %vm5407_vm8, %v21718_v17  ;;  %5408 = vst.msk [vmem:[#allocation2] sm:$0xf] %vm5407_vm8, %v21718_v17 }
 0x225   : > { %5409 = vst.msk [vmem:[#allocation2 + $0x4] sm:$0xf] %vm5407_vm8, %v21718_v17  ;;  %5412 = vst.msk [vmem:[#allocation2 + $0xc] sm:$0xf] %vm5407_vm8, %v21718_v17  ;;  %p21657_p13 = pneg %p21656_p12 }
 0x226   : > { %19546 = vmatmul.mubr.msk.bf16.gmra.mrb[24].mxu0 %vm837_vm3, %v17334_v0  ;;  %v17383_v0 = vrot.slane %v17367_v31, 9  ;;  %5413 = vst.msk [vmem:[#allocation2 + $0x10] sm:$0xf] %vm5407_vm8, %v21718_v17  ;;  %5416 = vst.msk [vmem:[#allocation2 + $0x1c] sm:$0xf] %vm5407_vm8, %v21718_v17 }
 0x227   : > { %19549 = vmatprep.mubr.msk.bf16.mxu0 %vm837_vm3, %v17335_v16  ;;  %v4950_v16 = vrot.slane %v23652_v11, 5  ;;  %v4964_v11 = vrot.slane %v23693_v29, 5  ;;  %v27843_v29 = vld [vmem:[#allocation26_spill] sm:$0xff]  ;;  %5418 = vst.msk [vmem:[#allocation2 + $0x24] sm:$0xf] %vm5407_vm8, %v21718_v17  ;;  %p21664_p3 = pnand %p21663_p2, %p21657_p13 }
 0x228   : > { %v4948_v44 = vsel %vm22224_vm7, %v17383_v0, %v4947_v52  ;;  %5419 = vst.msk [vmem:[#allocation2 + $0x28] sm:$0xf] %vm5407_vm8, %v21718_v17  ;;  %5421 = vst.msk [vmem:[#allocation2 + $0x30] sm:$0xf] %vm5407_vm8, %v21718_v17  ;;  %v23989_v0 = vld [vmem:[%s27578_s2] sm:$0xff]  }
 0x229   : > { %v4965_v61 = vsel %vm22224_vm7, %v4963_v48, %v4964_v11  ;;  %5422 = vst.msk [vmem:[#allocation2 + $0x34] sm:$0xf] %vm5407_vm8, %v21718_v17  ;;  %5424 = vst.msk [vmem:[#allocation2 + $0x3c] sm:$0xf] %vm5407_vm8, %v21718_v17 }
 0x22a   : > { %v17416_v56 = vcombine.low %v4962_v51, %v4965_v61  ;;  %5425 = vst.msk [vmem:[#allocation2 + $0x40] sm:$0xf] %vm5407_vm8, %v21718_v17  ;;  %5427 = vst.msk [vmem:[#allocation2 + $0x48] sm:$0xf] %vm5407_vm8, %v21718_v17 }
 0x22b   : > { %5428 = vst.msk [vmem:[#allocation2 + $0x4c] sm:$0xf] %vm5407_vm8, %v21718_v17  ;;  %5430 = vst.msk [vmem:[#allocation2 + $0x54] sm:$0xf] %vm5407_vm8, %v21718_v17  ;;  %v6000_v7 = vld [vmem:[#allocation2] sm:$0xf] }
 0x22c   : > { %5431 = vst.msk [vmem:[#allocation2 + $0x58] sm:$0xf] %vm5407_vm8, %v21718_v17  ;;  %5433 = vst.msk [vmem:[#allocation2 + $0x60] sm:$0xf] %vm5407_vm8, %v21718_v17  ;;  %v6064_v3 = vshll.u32 %v6000_v7, 16 }
 0x22d   : > { %5434 = vst.msk [vmem:[#allocation2 + $0x64] sm:$0xf] %vm5407_vm8, %v21718_v17  ;;  %5436 = vst.msk [vmem:[#allocation2 + $0x6c] sm:$0xf] %vm5407_vm8, %v21718_v17  ;;  %v5886_v6 = vld [vmem:[#allocation2 + $0xc] sm:$0xf] }
 0x22e   : > { %19550 = vmatmul.mubr.msk.bf16.gmra.mrb[28].mxu0 %vm837_vm3, %v17336_v30  ;;  %v27844_v30 = vld [vmem:[#allocation9_spill] sm:$0xff]  ;;  %5437 = vst.msk [vmem:[#allocation2 + $0x70] sm:$0xf] %vm5407_vm8, %v21718_v17  ;;  %5439 = vst.msk [vmem:[#allocation2 + $0x78] sm:$0xf] %vm5407_vm8, %v21718_v17  ;;  %v6066_v33 = vrot.slane %v6064_v3, 5 }
 0x22f   : > { %19569 = vmatprep.mubr.msk.bf16.mxu0 %vm837_vm3, %v17408_v49  ;;  %v27845_v49 = vcombine.low %v27843_v29, %v27844_v30  ;;  %5440 = vst.msk [vmem:[#allocation2 + $0x7c] sm:$0xf] %vm5407_vm8, %v21718_v17  ;;  %5442 = vst.msk [vmem:[#allocation2 + $0x84] sm:$0xf] %vm5407_vm8, %v21718_v17 }
 0x230   : > { %5443 = vst.msk [vmem:[#allocation2 + $0x88] sm:$0xf] %vm5407_vm8, %v21718_v17  ;;  %5445 = vst.msk [vmem:[#allocation2 + $0x90] sm:$0xf] %vm5407_vm8, %v21718_v17 }
 0x231   : > { %5446 = vst.msk [vmem:[#allocation2 + $0x94] sm:$0xf] %vm5407_vm8, %v21718_v17  ;;  %5448 = vst.msk [vmem:[#allocation2 + $0x9c] sm:$0xf] %vm5407_vm8, %v21718_v17 }
 0x232   : > { %5449 = vst.msk [vmem:[#allocation2 + $0xa0] sm:$0xf] %vm5407_vm8, %v21718_v17  ;;  %5451 = vst.msk [vmem:[#allocation2 + $0xa8] sm:$0xf] %vm5407_vm8, %v21718_v17 }
 0x233   : > { %5452 = vst.msk [vmem:[#allocation2 + $0xac] sm:$0xf] %vm5407_vm8, %v21718_v17  ;;  %5454 = vst.msk [vmem:[#allocation2 + $0xb4] sm:$0xf] %vm5407_vm8, %v21718_v17 }
 0x234   : > { %5455 = vst.msk [vmem:[#allocation2 + $0xb8] sm:$0xf] %vm5407_vm8, %v21718_v17  ;;  %5457 = vst.msk [vmem:[#allocation2 + $0xc0] sm:$0xf] %vm5407_vm8, %v21718_v17 }
 0x235   : > { %5458 = vst.msk [vmem:[#allocation2 + $0xc4] sm:$0xf] %vm5407_vm8, %v21718_v17  ;;  %5460 = vst.msk [vmem:[#allocation2 + $0xcc] sm:$0xf] %vm5407_vm8, %v21718_v17 }
 0x236   : > { %19570 = vmatmul.mubr.msk.bf16.vlgmr.msra.gmra.mrb[0].mxu0 %vm837_vm3, %v17409_v18  ;;  %5461 = vst.msk [vmem:[#allocation2 + $0xd0] sm:$0xf] %vm5407_vm8, %v21718_v17  ;;  %v6001_v18 = vld [vmem:[#allocation2 + $0x4] sm:$0xf] }
 0x237   : > { %19573 = vmatprep.mubr.msk.bf16.mxu0 %vm837_vm3, %v17410_v50  ;;  %19602 = vmatpush3.bf16.msra.mxu0 %v23781_v63  ;;  %v4949_v63 = vrot.slane %v4947_v52, 4  ;;  %5417 = vst.msk [vmem:[#allocation2 + $0x20] sm:$0x1] %vm5410_vm9, %v21718_v17  ;;  %5411 = vst.msk [vmem:[#allocation2 + $0x8] sm:$0x1] %vm5410_vm9, %v21718_v17  ;;  %v6061_v50 = vshrl.u32 %v6000_v7, 16 }
 0x238   : > { %19603 = vmatprep.subr.bf16.mxu0 %v21346_v41  ;;  %5414 = vst.msk [vmem:[#allocation2 + $0x14] sm:$0x1] %vm5410_vm9, %v21718_v17  ;;  %5420 = vst.msk [vmem:[#allocation2 + $0x2c] sm:$0x1] %vm5410_vm9, %v21718_v17  ;;  %v6070_v32 = vshll.u32 %v6001_v18, 16  ;;  %v6074_v8 = vshrl.u32 %v6001_v18, 16 }
 0x239   : > { %v4951_v53 = vsel %vm22224_vm7, %v4949_v63, %v4950_v16  ;;  %5423 = vst.msk [vmem:[#allocation2 + $0x38] sm:$0x1] %vm5410_vm9, %v21718_v17  ;;  %5426 = vst.msk [vmem:[#allocation2 + $0x44] sm:$0x1] %vm5410_vm9, %v21718_v17  ;;  %v6063_v46 = vrot.slane %v6061_v50, 4  ;;  %v21352_v63 = vld [vmem:[%s27578_s2 + $0xc0] sm:$0xff]  }
 0x23a   : > { %v17414_v5 = vcombine.low %v4948_v44, %v4951_v53  ;;  %5429 = vst.msk [vmem:[#allocation2 + $0x50] sm:$0x1] %vm5410_vm9, %v21718_v17  ;;  %5432 = vst.msk [vmem:[#allocation2 + $0x5c] sm:$0x1] %vm5410_vm9, %v21718_v17  ;;  %v6072_v36 = vrot.slane %v6070_v32, 5  ;;  %v6076_v27 = vrot.slane %v6074_v8, 4  ;;  %20393 = vmatprep.subr.bf16.mxu1 %v21352_v63 }
 0x23b   : > { %19604 = vmatpush3.bf16.msra.mxu0 %v21346_v41  ;;  %5435 = vst.msk [vmem:[#allocation2 + $0x68] sm:$0x1] %vm5410_vm9, %v21718_v17  ;;  %5438 = vst.msk [vmem:[#allocation2 + $0x74] sm:$0x1] %vm5410_vm9, %v21718_v17  ;;  %v21350_v41 = vld [vmem:[%s27578_s2 + $0x58] sm:$0xff]   ;;  %v6067_v21 = vor.u32 %v6066_v33, %v6063_v46  ;;  %v21353_v16 = vld [vmem:[%s27578_s2 + $0xc8] sm:$0xff]   ;;  %20399 = vmatpush3.bf16.msra.mxu1 %v21352_v63 }
 0x23c   : > { %19605 = vmatprep.subr.bf16.mxu0 %v21347_v9  ;;  %5441 = vst.msk [vmem:[#allocation2 + $0x80] sm:$0x1] %vm5410_vm9, %v21718_v17  ;;  %5444 = vst.msk [vmem:[#allocation2 + $0x8c] sm:$0x1] %vm5410_vm9, %v21718_v17  ;;  %v6077_v38 = vor.u32 %v6076_v27, %v6072_v36  ;;  %20394 = vmatprep.subr.bf16.mxu1 %v21353_v16  ;;  %v21354_v44 = vld [vmem:[%s27578_s2 + $0xd0] sm:$0xff]   ;;  %v21356_v53 = vld [vmem:[%s27578_s2 + $0xd8] sm:$0xff]  }
 0x23d   : > { %5447 = vst.msk [vmem:[#allocation2 + $0x98] sm:$0x1] %vm5410_vm9, %v21718_v17  ;;  %5450 = vst.msk [vmem:[#allocation2 + $0xa4] sm:$0x1] %vm5410_vm9, %v21718_v17  ;;  %v6068_v54 = vrot.slane %v6067_v21, 4 }
 0x23e   : > { %19574 = vmatmul.mubr.msk.bf16.gmra.mrb[4].mxu0 %vm837_vm3, %v17411_v12  ;;  %5453 = vst.msk [vmem:[#allocation2 + $0xb0] sm:$0x1] %vm5410_vm9, %v21718_v17  ;;  %5456 = vst.msk [vmem:[#allocation2 + $0xbc] sm:$0x1] %vm5410_vm9, %v21718_v17  ;;  %v6044_v25 = vld [vmem:[#allocation2 + $0x8] sm:$0x1] }
 0x23f   : > { %19577 = vmatprep.mubr.msk.bf16.mxu0 %vm837_vm3, %v17412_v19  ;;  %19606 = vmatpush3.bf16.msra.mxu0 %v21347_v9  ;;  %5459 = vst.msk [vmem:[#allocation2 + $0xc8] sm:$0x1] %vm5410_vm9, %v21718_v17  ;;  %5462 = vst.msk [vmem:[#allocation2 + $0xd4] sm:$0x1] %vm5410_vm9, %v21718_v17  ;;  %v6080_v40 = vshll.u32 %v6044_v25, 16  ;;  %v6078_v52 = vrot.slane %v6077_v38, 4  ;;  %v6073_v31 = vsel %vm21867_vm4, %v6068_v54, %v6072_v36 }
 0x240   : > { %19607 = vmatprep.subr.bf16.mxu0 %v21348_v62  ;;  %20400 = vmatpush3.bf16.msra.mxu1 %v21353_v16  ;;  %v5899_v3 = vld [vmem:[#allocation2 + $0x20] sm:$0x1]  ;;  %v5892_v25 = vld [vmem:[#allocation2 + $0x14] sm:$0x1] }
 0x241   : > { %v6082_v9 = vrot.slane %v6080_v40, 5  ;;  %20395 = vmatprep.subr.bf16.mxu1 %v21354_v44 }
 0x243   : > { %19608 = vmatpush3.bf16.msra.mxu0 %v21348_v62  ;;  %v6083_v12 = vsel %vm21867_vm4, %v6078_v52, %v6082_v9 }
 0x244   : > { %19609 = vmatprep.subr.bf16.mxu0 %v21349_v59  ;;  %v17493_v19 = vcombine.low %v6073_v31, %v6083_v12  ;;  %20401 = vmatpush3.bf16.msra.mxu1 %v21354_v44 }
 0x245   : > { %20396 = vmatprep.subr.bf16.mxu1 %v21356_v53 }
 0x246   : > { %19578 = vmatmul.mubr.msk.bf16.gmra.mrb[8].mxu0 %vm837_vm3, %v27839_v58 }
 0x247   : > { %19581 = vmatprep.mubr.msk.bf16.mxu0 %vm837_vm3, %v17414_v5  ;;  %19610 = vmatpush3.bf16.msra.mxu0 %v21349_v59  ;;  %v21360_v5 = vld [vmem:[%s27578_s2 + $0xf0] sm:$0xff]  }
 0x248   : > { %19611 = vmatprep.subr.bf16.mxu0 %v21350_v41  ;;  %20402 = vmatpush3.bf16.msra.mxu1 %v21356_v53 }
 0x249   : > { %20397 = vmatprep.subr.bf16.mxu1 %v21357_v15 }
 0x24b   : > { %19612 = vmatpush3.bf16.msra.mxu0 %v21350_v41 }
 0x24c   : > { %19645 = vmatprep.subr.bf16.mxu0 %v23989_v0  ;;  %20403 = vmatpush3.bf16.msra.mxu1 %v21357_v15 }
 0x24d   : > { %20398 = vmatprep.subr.bf16.mxu1 %v21358_v23 }
 0x24e   : > { %19582 = vmatmul.mubr.msk.bf16.gmra.mrb[12].mxu0 %vm837_vm3, %v27842_v42 }
 0x24f   : > { %19585 = vmatprep.mubr.msk.bf16.mxu0 %vm837_vm3, %v17416_v56 }
 0x250   : > { %20404 = vmatpush3.bf16.msra.mxu1 %v21358_v23 }
 0x251   : > { %19821 = vmatprep.subr.bf16.mxu1 %v21360_v5  ;;  %v5909_v5 = vld [vmem:[#allocation2 + $0x30] sm:$0xf] }
 0x256   : > { %19586 = vmatmul.mubr.msk.bf16.gmra.mrb[16].mxu0 %vm837_vm3, %v27845_v49 }
 0x257   : > { %19589 = vmatprep.mubr.msk.bf16.mxu0 %vm837_vm3, %v27848_v39  ;;  %v5895_v39 = vld [vmem:[#allocation2 + $0x18] sm:$0xf] }
 0x25e   : > { %19590 = vmatmul.mubr.msk.bf16.gmra.mrb[20].mxu0 %vm837_vm3, %v27851_v45 }
 0x25f   : > { %19593 = vmatprep.mubr.msk.bf16.mxu0 %vm837_vm3, %v27854_v13 }
 0x266   : > { %19594 = vmatmul.mubr.msk.bf16.gmra.mrb[24].mxu0 %vm837_vm3, %v27857_v35 }
 0x267   : > { %19597 = vmatprep.mubr.msk.bf16.mxu0 %vm837_vm3, %v27858_v60 }
 0x26e   : > { %19598 = vmatmul.mubr.msk.bf16.gmra.mrb[28].mxu0 %vm837_vm3, %v27860_v55  ;;  %v27863_v55 = vmov 0  ;;  %vm25550_vm3 = vmand %vm11402_vm1, %vm5884_vm11 }
 0x26f   : > { %19613 = vmatprep.mubr.msk.bf16.mxu0 %vm6541_vm10, %v17493_v19  ;;  %v27864_v55 = vsel %vm24030_vm15, 4294967295, %v27863_v55 }
 0x270   : > { %27865 = vst [vmem:[#allocation24_spill] sm:$0xff] %v27864_v55 }
 0x309   : > { %v19571_v48 = vpop.f32.mrb[0].mxu0 }
 0x30a   : > { %v5377_v11 = vadd.f32 %v19571_v48, %v24016_v57  ;;  %v5209_v4 = vpop.f32.mrb[1].mxu0 }
 0x30b   : > { %v5375_v47 = vadd.f32 %v24016_v57, %v5209_v4  ;;  %v19572_v58 = vpop.f32.mrb[2].mxu0 }
 0x30c   : > { %v18494_v51 = vpack.c.bf16 %v5377_v11, %v5377_v11  ;;  %v5378_v61 = vadd.f32 %v19572_v58, %v24016_v57  ;;  %v5212_v56 = vpop.f32.mrb[3].mxu0 }
 0x30d   : > { %v18492_v37 = vpack.c.bf16 %v5375_v47, %v5375_v47  ;;  %v5376_v14 = vadd.f32 %v24016_v57, %v5212_v56 }
 0x30e   : > { %v5580_v42 = vshrl.u32 %v18494_v51, 16  ;;  %v18495_v29 = vpack.c.bf16 %v5378_v61, %v5378_v61  ;;  %v5583_v24 = vshll.u32 %v18494_v51, 16  ;;  %v5902_v51 = vld [vmem:[#allocation2 + $0x24] sm:$0xf] }
 0x30f   : > { %v5563_v30 = vshrl.u32 %v18492_v37, 16  ;;  %v18493_v49 = vpack.c.bf16 %v5376_v14, %v5376_v14  ;;  %v5566_v22 = vshll.u32 %v18492_v37, 16 }
 0x310   : > { %v5582_v2 = vrot.slane %v5580_v42, 7  ;;  %v5588_v43 = vshrl.u32 %v18495_v29, 16  ;;  %v5591_v1 = vshll.u32 %v18495_v29, 16 }
 0x311   : > { %v5565_v10 = vrot.slane %v5563_v30, 7  ;;  %v5571_v13 = vshrl.u32 %v18493_v49, 16  ;;  %v5574_v34 = vshll.u32 %v18493_v49, 16  ;;  %v19575_v20 = vpop.f32.mrb[4].mxu0 }
 0x312   : > { %v5585_v35 = vor.u32 %v5583_v24, %v5582_v2  ;;  %v5586_v60 = vrot.slane %v5582_v2, 4  ;;  %v5590_v17 = vrot.slane %v5588_v43, 7  ;;  %v5381_v62 = vadd.f32 %v19575_v20, %v24016_v57  ;;  %v5225_v59 = vpop.f32.mrb[5].mxu0 }
 0x313   : > { %v5568_v7 = vor.u32 %v5566_v22, %v5565_v10  ;;  %v5569_v18 = vrot.slane %v5565_v10, 4  ;;  %v5573_v32 = vrot.slane %v5571_v13, 7  ;;  %v5379_v8 = vadd.f32 %v24016_v57, %v5225_v59  ;;  %v19576_v46 = vpop.f32.mrb[6].mxu0 }
 0x314   : > { %v5896_v33 = vsel %vm24024_vm14, %v5585_v35, %v5895_v39  ;;  %v5593_v36 = vor.u32 %v5591_v1, %v5590_v17  ;;  %v5595_v27 = vrot.slane %v5590_v17, 4  ;;  %v18498_v41 = vpack.c.bf16 %v5381_v62, %v5381_v62  ;;  %v5228_v21 = vpop.f32.mrb[7].mxu0  ;;  %v5913_v35 = vld [vmem:[#allocation2 + $0x38] sm:$0x1]  ;;  %v5906_v62 = vld [vmem:[#allocation2 + $0x2c] sm:$0x1] }
 0x315   : > { %5897 = vst [vmem:[#allocation2 + $0x18] sm:$0xf] %v5896_v33  ;;  %v5887_v38 = vsel %vm24024_vm14, %v5568_v7, %v5886_v6  ;;  %v5576_v40 = vor.u32 %v5574_v34, %v5573_v32  ;;  %v5578_v54 = vrot.slane %v5573_v32, 4  ;;  %v18496_v52 = vpack.c.bf16 %v5379_v8, %v5379_v8 }
 0x316   : > { %5888 = vst [vmem:[#allocation2 + $0xc] sm:$0xf] %v5887_v38  ;;  %v5594_v9 = vsel %vm24030_vm15, %v5586_v60, %v5593_v36  ;;  %v5900_v31 = vsel %vm24037_vm0, %v5595_v27, %v5899_v3  ;;  %v5614_v12 = vshrl.u32 %v18498_v41, 16  ;;  %v5617_v53 = vshll.u32 %v18498_v41, 16  ;;  %v5923_v36 = vld [vmem:[#allocation2 + $0x48] sm:$0xf] }
 0x317   : > { %5898 = vst.msk [vmem:[#allocation2 + $0x1c] sm:$0xf] %vm5407_vm8, %v5594_v9  ;;  %5901 = vst [vmem:[#allocation2 + $0x20] sm:$0x1] %v5900_v31  ;;  %v5577_v19 = vsel %vm24030_vm15, %v5569_v18, %v5576_v40  ;;  %v5893_v63 = vsel %vm24037_vm0, %v5578_v54, %v5892_v25  ;;  %v5597_v16 = vshrl.u32 %v18496_v52, 16  ;;  %v5382_v15 = vadd.f32 %v19576_v46, %v24016_v57 }
 0x318   : > { %5889 = vst.msk [vmem:[#allocation2 + $0x10] sm:$0xf] %vm5407_vm8, %v5577_v19  ;;  %5894 = vst [vmem:[#allocation2 + $0x14] sm:$0x1] %v5893_v63  ;;  %v5616_v44 = vrot.slane %v5614_v12, 7  ;;  %v5380_v23 = vadd.f32 %v24016_v57, %v5228_v21  ;;  %v5600_v11 = vshll.u32 %v18496_v52, 16 }
 0x319   : > { %v5599_v48 = vrot.slane %v5597_v16, 7  ;;  %v19579_v4 = vpop.f32.mrb[8].mxu0  ;;  %v18499_v61 = vpack.c.bf16 %v5382_v15, %v5382_v15  ;;  %v5916_v41 = vld [vmem:[#allocation2 + $0x3c] sm:$0xf] }
 0x31a   : > { %v5619_v47 = vor.u32 %v5617_v53, %v5616_v44  ;;  %v5620_v58 = vrot.slane %v5616_v44, 4  ;;  %v18497_v56 = vpack.c.bf16 %v5380_v23, %v5380_v23  ;;  %v5241_v37 = vpop.f32.mrb[9].mxu0  ;;  %v5385_v29 = vadd.f32 %v19579_v4, %v24016_v57 }
 0x31b   : > { %v5602_v14 = vor.u32 %v5600_v11, %v5599_v48  ;;  %v5603_v42 = vrot.slane %v5599_v48, 4  ;;  %v5383_v30 = vadd.f32 %v24016_v57, %v5241_v37  ;;  %v19580_v49 = vpop.f32.mrb[10].mxu0  ;;  %v5622_v24 = vshrl.u32 %v18499_v61, 16 }
 0x31c   : > { %v5910_v2 = vsel %vm24024_vm14, %v5619_v47, %v5909_v5  ;;  %v5625_v39 = vshll.u32 %v18499_v61, 16  ;;  %v5605_v22 = vshrl.u32 %v18497_v56, 16  ;;  %v5244_v43 = vpop.f32.mrb[11].mxu0  ;;  %v5608_v1 = vshll.u32 %v18497_v56, 16 }
 0x31d   : > { %5911 = vst [vmem:[#allocation2 + $0x30] sm:$0xf] %v5910_v2  ;;  %v5903_v10 = vsel %vm24024_vm14, %v5602_v14, %v5902_v51  ;;  %v18502_v13 = vpack.c.bf16 %v5385_v29, %v5385_v29  ;;  %v18500_v34 = vpack.c.bf16 %v5383_v30, %v5383_v30  ;;  %v5624_v20 = vrot.slane %v5622_v24, 7  ;;  %v24074_v19 = vld [vmem:[#allocation2 + $0xc] sm:$0xf] }
 0x31e   : > { %5904 = vst [vmem:[#allocation2 + $0x24] sm:$0xf] %v5903_v10  ;;  %v5607_v60 = vrot.slane %v5605_v22, 7  ;;  %v5386_v6 = vadd.f32 %v19580_v49, %v24016_v57  ;;  %v5384_v17 = vadd.f32 %v24016_v57, %v5244_v43  ;;  %v5927_v51 = vld [vmem:[#allocation2 + $0x50] sm:$0x1]  ;;  %v6085_v24 = vshrl.u32 %v24074_v19, 16 }
 0x31f   : > { %v5648_v59 = vshrl.u32 %v18502_v13, 16  ;;  %v5651_v7 = vshll.u32 %v18502_v13, 16  ;;  %v5631_v18 = vshrl.u32 %v18500_v34, 16  ;;  %v5634_v3 = vshll.u32 %v18500_v34, 16 }
 0x320   : > { %v5627_v32 = vor.u32 %v5625_v39, %v5624_v20  ;;  %v5629_v8 = vrot.slane %v5624_v20, 4  ;;  %v5610_v46 = vor.u32 %v5608_v1, %v5607_v60  ;;  %v5612_v33 = vrot.slane %v5607_v60, 4 }
 0x321   : > { %v5650_v27 = vrot.slane %v5648_v59, 7  ;;  %v5633_v25 = vrot.slane %v5631_v18, 7  ;;  %v18503_v21 = vpack.c.bf16 %v5386_v6, %v5386_v6  ;;  %v18501_v38 = vpack.c.bf16 %v5384_v17, %v5384_v17  ;;  %v19583_v40 = vpop.f32.mrb[12].mxu0 }
 0x322   : > { %v5628_v54 = vsel %vm24030_vm15, %v5620_v58, %v5627_v32  ;;  %v5914_v52 = vsel %vm24037_vm0, %v5629_v8, %v5913_v35  ;;  %v5611_v9 = vsel %vm24030_vm15, %v5603_v42, %v5610_v46  ;;  %v5907_v31 = vsel %vm24037_vm0, %v5612_v33, %v5906_v62  ;;  %v5257_v12 = vpop.f32.mrb[13].mxu0  ;;  %v5920_v42 = vld [vmem:[#allocation2 + $0x44] sm:$0x1] }
 0x323   : > { %5912 = vst.msk [vmem:[#allocation2 + $0x34] sm:$0xf] %vm5407_vm8, %v5628_v54  ;;  %5915 = vst [vmem:[#allocation2 + $0x38] sm:$0x1] %v5914_v52  ;;  %v5653_v63 = vor.u32 %v5651_v7, %v5650_v27  ;;  %v5654_v16 = vrot.slane %v5650_v27, 4  ;;  %v5636_v44 = vor.u32 %v5634_v3, %v5633_v25  ;;  %v5637_v53 = vrot.slane %v5633_v25, 4 }
 0x324   : > { %5905 = vst.msk [vmem:[#allocation2 + $0x28] sm:$0xf] %vm5407_vm8, %v5611_v9  ;;  %5908 = vst [vmem:[#allocation2 + $0x2c] sm:$0x1] %v5907_v31  ;;  %v19584_v15 = vpop.f32.mrb[14].mxu0  ;;  %v5656_v23 = vshrl.u32 %v18503_v21, 16  ;;  %v5389_v61 = vadd.f32 %v19583_v40, %v24016_v57  ;;  %v5387_v56 = vadd.f32 %v24016_v57, %v5257_v12 }
 0x325   : > { %v5659_v5 = vshll.u32 %v18503_v21, 16  ;;  %v5639_v48 = vshrl.u32 %v18501_v38, 16  ;;  %v5642_v11 = vshll.u32 %v18501_v38, 16  ;;  %v5260_v4 = vpop.f32.mrb[15].mxu0  ;;  %v5924_v47 = vsel %vm24024_vm14, %v5653_v63, %v5923_v36  ;;  %v5937_v3 = vld [vmem:[#allocation2 + $0x60] sm:$0xf] }
 0x326   : > { %v5917_v58 = vsel %vm24024_vm14, %v5636_v44, %v5916_v41  ;;  %5925 = vst [vmem:[#allocation2 + $0x48] sm:$0xf] %v5924_v47  ;;  %v5658_v37 = vrot.slane %v5656_v23, 7  ;;  %v5390_v29 = vadd.f32 %v19584_v15, %v24016_v57  ;;  %v5388_v30 = vadd.f32 %v24016_v57, %v5260_v4  ;;  %v5930_v36 = vld [vmem:[#allocation2 + $0x54] sm:$0xf] }
 0x327   : > { %5918 = vst [vmem:[#allocation2 + $0x3c] sm:$0xf] %v5917_v58  ;;  %v5641_v14 = vrot.slane %v5639_v48, 7  ;;  %v18506_v49 = vpack.c.bf16 %v5389_v61, %v5389_v61  ;;  %v18504_v2 = vpack.c.bf16 %v5387_v56, %v5387_v56  ;;  %v6088_v39 = vshll.u32 %v24074_v19, 16  ;;  %v5934_v15 = vld [vmem:[#allocation2 + $0x5c] sm:$0x1] }
 0x328   : > { %v5661_v22 = vor.u32 %v5659_v5, %v5658_v37  ;;  %v5663_v43 = vrot.slane %v5658_v37, 4  ;;  %v18507_v8 = vpack.c.bf16 %v5390_v29, %v5390_v29  ;;  %v18505_v46 = vpack.c.bf16 %v5388_v30, %v5388_v30 }
 0x329   : > { %v5644_v10 = vor.u32 %v5642_v11, %v5641_v14  ;;  %v5646_v1 = vrot.slane %v5641_v14, 4  ;;  %v5682_v13 = vshrl.u32 %v18506_v49, 16  ;;  %v5685_v34 = vshll.u32 %v18506_v49, 16  ;;  %v19587_v60 = vpop.f32.mrb[16].mxu0  ;;  %v5951_v49 = vld [vmem:[#allocation2 + $0x78] sm:$0xf] }
 0x32a   : > { %v5665_v20 = vshrl.u32 %v18504_v2, 16  ;;  %v5668_v35 = vshll.u32 %v18504_v2, 16  ;;  %v5662_v6 = vsel %vm24030_vm15, %v5654_v16, %v5661_v22  ;;  %v5928_v17 = vsel %vm24037_vm0, %v5663_v43, %v5927_v51  ;;  %v5273_v7 = vpop.f32.mrb[17].mxu0  ;;  %v6003_v2 = vld [vmem:[#allocation2 + $0x10] sm:$0xf] }
 0x32b   : > { %v5645_v62 = vsel %vm24030_vm15, %v5637_v53, %v5644_v10  ;;  %v5921_v59 = vsel %vm24037_vm0, %v5646_v1, %v5920_v42  ;;  %5926 = vst.msk [vmem:[#allocation2 + $0x4c] sm:$0xf] %vm5407_vm8, %v5662_v6  ;;  %5929 = vst [vmem:[#allocation2 + $0x50] sm:$0x1] %v5928_v17  ;;  %v5684_v18 = vrot.slane %v5682_v13, 7  ;;  %v19588_v33 = vpop.f32.mrb[18].mxu0  ;;  %v5393_v27 = vadd.f32 %v19587_v60, %v24016_v57 }
 0x32c   : > { %5919 = vst.msk [vmem:[#allocation2 + $0x40] sm:$0xf] %vm5407_vm8, %v5645_v62  ;;  %5922 = vst [vmem:[#allocation2 + $0x44] sm:$0x1] %v5921_v59  ;;  %v5667_v32 = vrot.slane %v5665_v20, 7  ;;  %v5391_v25 = vadd.f32 %v24016_v57, %v5273_v7  ;;  %v5394_v41 = vadd.f32 %v19588_v33, %v24016_v57  ;;  %v24101_v21 = vrot.slane %v6085_v24, 4 }
 0x32d   : > { %v5276_v38 = vpop.f32.mrb[19].mxu0  ;;  %v5687_v40 = vor.u32 %v5685_v34, %v5684_v18  ;;  %v5688_v54 = vrot.slane %v5684_v18, 4  ;;  %v5690_v31 = vshrl.u32 %v18507_v8, 16  ;;  %v5693_v12 = vshll.u32 %v18507_v8, 16  ;;  %v5941_v53 = vld [vmem:[#allocation2 + $0x68] sm:$0x1] }
 0x32e   : > { %v5670_v52 = vor.u32 %v5668_v35, %v5667_v32  ;;  %v5671_v9 = vrot.slane %v5667_v32, 4  ;;  %v5673_v19 = vshrl.u32 %v18505_v46, 16  ;;  %v5676_v63 = vshll.u32 %v18505_v46, 16  ;;  %v5944_v60 = vld [vmem:[#allocation2 + $0x6c] sm:$0xf] }
 0x32f   : > { %v5938_v16 = vsel %vm24024_vm14, %v5687_v40, %v5937_v3  ;;  %v18510_v23 = vpack.c.bf16 %v5393_v27, %v5393_v27  ;;  %v18508_v5 = vpack.c.bf16 %v5391_v25, %v5391_v25  ;;  %v5692_v48 = vrot.slane %v5690_v31, 7  ;;  %v6045_v6 = vld [vmem:[#allocation2 + $0x14] sm:$0x1]  ;;  %v6004_v3 = vld [vmem:[#allocation2 + $0x18] sm:$0xf] }
 0x330   : > { %v5931_v44 = vsel %vm24024_vm14, %v5670_v52, %v5930_v36  ;;  %5939 = vst [vmem:[#allocation2 + $0x60] sm:$0xf] %v5938_v16  ;;  %v5675_v11 = vrot.slane %v5673_v19, 7  ;;  %v18511_v4 = vpack.c.bf16 %v5394_v41, %v5394_v41  ;;  %v6090_v47 = vrot.slane %v6088_v39, 5  ;;  %v5955_v25 = vld [vmem:[#allocation2 + $0x80] sm:$0x1] }
 0x331   : > { %5932 = vst [vmem:[#allocation2 + $0x54] sm:$0xf] %v5931_v44  ;;  %v5716_v58 = vshrl.u32 %v18510_v23, 16  ;;  %v5719_v51 = vshll.u32 %v18510_v23, 16  ;;  %v5699_v61 = vshrl.u32 %v18508_v5, 16  ;;  %v5702_v56 = vshll.u32 %v18508_v5, 16 }
 0x332   : > { %v24107_v37 = vpop.f32.mrb[20].mxu0  ;;  %v5695_v14 = vor.u32 %v5693_v12, %v5692_v48  ;;  %v5697_v42 = vrot.slane %v5692_v48, 4  ;;  %v5678_v29 = vor.u32 %v5676_v63, %v5675_v11  ;;  %v5680_v30 = vrot.slane %v5675_v11, 4  ;;  %v6005_v12 = vld [vmem:[#allocation2 + $0x1c] sm:$0xf] }
 0x333   : > { %v24109_v24 = vpop.f32.mrb[21].mxu0  ;;  %v5718_v22 = vrot.slane %v5716_v58, 7  ;;  %v24111_v43 = vrot.slane %v5699_v61, 7  ;;  %v5724_v10 = vshrl.u32 %v18511_v4, 16  ;;  %v5727_v1 = vshll.u32 %v18511_v4, 16 }
 0x334   : > { %v24113_v39 = vpop.f32.mrb[22].mxu0  ;;  %v5696_v13 = vsel %vm24030_vm15, %v5688_v54, %v5695_v14  ;;  %v5942_v34 = vsel %vm24037_vm0, %v5697_v42, %v5941_v53  ;;  %v5679_v20 = vsel %vm24030_vm15, %v5671_v9, %v5678_v29  ;;  %v5935_v35 = vsel %vm24037_vm0, %v5680_v30, %v5934_v15  ;;  %v6046_v16 = vld [vmem:[#allocation2 + $0x20] sm:$0x1] }
 0x335   : > { %v24123_v17 = vpop.f32.mrb[23].mxu0  ;;  %5940 = vst.msk [vmem:[#allocation2 + $0x64] sm:$0xf] %vm5407_vm8, %v5696_v13  ;;  %5943 = vst [vmem:[#allocation2 + $0x68] sm:$0x1] %v5942_v34  ;;  %v5721_v62 = vor.u32 %v5719_v51, %v5718_v22  ;;  %v5722_v59 = vrot.slane %v5718_v22, 4  ;;  %v5704_v7 = vor.u32 %v5702_v56, %v24111_v43  ;;  %v6091_v8 = vor.u32 %v6090_v47, %v24101_v21 }
 0x336   : > { %5933 = vst.msk [vmem:[#allocation2 + $0x58] sm:$0xf] %vm5407_vm8, %v5679_v20  ;;  %5936 = vst [vmem:[#allocation2 + $0x5c] sm:$0x1] %v5935_v35  ;;  %v5705_v18 = vrot.slane %v24111_v43, 4  ;;  %v5726_v32 = vrot.slane %v5724_v10, 7  ;;  %v5392_v40 = vadd.f32 %v24016_v57, %v5276_v38  ;;  %v5395_v22 = vadd.f32 %v24016_v57, %v24109_v24 }
 0x337   : > { %v6094_v46 = vshll.u32 %v6003_v2, 16  ;;  %v6098_v33 = vshrl.u32 %v6003_v2, 16  ;;  %v5952_v36 = vsel %vm24024_vm14, %v5721_v62, %v5951_v49  ;;  %v5945_v27 = vsel %vm24024_vm14, %v5704_v7, %v5944_v60  ;;  %v5948_v43 = vld [vmem:[#allocation2 + $0x74] sm:$0x1] }
 0x338   : > { %v6104_v41 = vshll.u32 %v6045_v6, 16  ;;  %5953 = vst [vmem:[#allocation2 + $0x78] sm:$0xf] %v5952_v36  ;;  %5946 = vst [vmem:[#allocation2 + $0x6c] sm:$0xf] %v5945_v27  ;;  %v5729_v54 = vor.u32 %v5727_v1, %v5726_v32  ;;  %v5731_v52 = vrot.slane %v5726_v32, 4  ;;  %v18509_v63 = vpack.c.bf16 %v5392_v40, %v5392_v40 }
 0x339   : > { %v6092_v9 = vrot.slane %v6091_v8, 4  ;;  %v6096_v31 = vrot.slane %v6094_v46, 5  ;;  %v6100_v21 = vrot.slane %v6098_v33, 4  ;;  %v6109_v44 = vshrl.u32 %v6004_v3, 16  ;;  %v24135_v53 = vpop.f32.mrb[24].mxu0 }
 0x33a   : > { %v6106_v19 = vrot.slane %v6104_v41, 5  ;;  %v5730_v15 = vsel %vm24030_vm15, %v5722_v59, %v5729_v54  ;;  %v5956_v38 = vsel %vm24037_vm0, %v5731_v52, %v5955_v25  ;;  %v6112_v5 = vshll.u32 %v6004_v3, 16  ;;  %v24143_v48 = vpop.f32.mrb[25].mxu0  ;;  %v6006_v32 = vld [vmem:[#allocation2 + $0x24] sm:$0xf] }
 0x33b   : > { %v6097_v23 = vsel %vm21867_vm4, %v6092_v9, %v6096_v31  ;;  %5954 = vst.msk [vmem:[#allocation2 + $0x7c] sm:$0xf] %vm5407_vm8, %v5730_v15  ;;  %5957 = vst [vmem:[#allocation2 + $0x80] sm:$0x1] %v5956_v38  ;;  %v6101_v11 = vor.u32 %v6100_v21, %v6096_v31  ;;  %v5707_v4 = vshrl.u32 %v18509_v63, 16  ;;  %v5710_v47 = vshll.u32 %v18509_v63, 16 }
 0x33c   : > { %v6111_v58 = vrot.slane %v6109_v44, 4  ;;  %v24146_v51 = vpop.f32.mrb[26].mxu0  ;;  %v6114_v61 = vrot.slane %v6112_v5, 5  ;;  %v6118_v56 = vshll.u32 %v6005_v12, 16  ;;  %v6122_v14 = vshrl.u32 %v6005_v12, 16 }
 0x33d   : > { %v6128_v42 = vshll.u32 %v6046_v16, 16  ;;  %v24148_v29 = vpop.f32.mrb[27].mxu0  ;;  %v6102_v30 = vrot.slane %v6101_v11, 4  ;;  %v5709_v49 = vrot.slane %v5707_v4, 7  ;;  %v5397_v2 = vadd.f32 %v24107_v37, %v24016_v57  ;;  %v21355_v37 = vld [vmem:[%s27578_s2 + $0x8] sm:$0xff]  }
 0x33e   : > { %v6115_v10 = vor.u32 %v6114_v61, %v6111_v58  ;;  %v6120_v1 = vrot.slane %v6118_v56, 5  ;;  %v6124_v13 = vrot.slane %v6122_v14, 4  ;;  %v18512_v3 = vpack.c.bf16 %v5395_v22, %v5395_v22  ;;  %v6007_v36 = vld [vmem:[#allocation2 + $0x28] sm:$0xf]  ;;  %v5965_v9 = vld [vmem:[#allocation2 + $0x90] sm:$0xf] }
 0x33f   : > { %v6130_v34 = vrot.slane %v6128_v42, 5  ;;  %v6107_v20 = vsel %vm21867_vm4, %v6102_v30, %v6106_v19  ;;  %v5712_v35 = vor.u32 %v5710_v47, %v5709_v49  ;;  %v5714_v60 = vrot.slane %v5709_v49, 4  ;;  %v5958_v11 = vld [vmem:[#allocation2 + $0x84] sm:$0xf]  ;;  %v6047_v47 = vld [vmem:[#allocation2 + $0x2c] sm:$0x1] }
 0x340   : > { %v18514_v6 = vpack.c.bf16 %v5397_v2, %v5397_v2  ;;  %v17494_v62 = vcombine.low %v6097_v23, %v6107_v20  ;;  %v6116_v59 = vrot.slane %v6115_v10, 4  ;;  %v6125_v7 = vor.u32 %v6124_v13, %v6120_v1  ;;  %v6008_v42 = vld [vmem:[#allocation2 + $0x30] sm:$0xf]  ;;  %v21362_v20 = vld [vmem:[%s27578_s2 + $0x18] sm:$0xff]  }
 0x341   : > { %v5713_v24 = vsel %vm24030_vm15, %v5705_v18, %v5712_v35  ;;  %v5949_v8 = vsel %vm24037_vm0, %v5714_v60, %v5948_v43  ;;  %v24163_v27 = vpop.f32.mrb[28].mxu0  ;;  %v5733_v40 = vshrl.u32 %v18512_v3, 16  ;;  %v5736_v54 = vshll.u32 %v18512_v3, 16  ;;  %v6009_v43 = vld [vmem:[#allocation2 + $0x34] sm:$0xf] }
 0x342   : > { %v5750_v46 = vshrl.u32 %v18514_v6, 16  ;;  %v5753_v33 = vshll.u32 %v18514_v6, 16  ;;  %19614 = vmatmul.mubr.msk.bf16.vlgmr.msra.gmra.mrb[32].mxu0 %vm6541_vm10, %v17494_v62  ;;  %5947 = vst.msk [vmem:[#allocation2 + $0x70] sm:$0xf] %vm5407_vm8, %v5713_v24  ;;  %5950 = vst [vmem:[#allocation2 + $0x74] sm:$0x1] %v5949_v8  ;;  %v6121_v25 = vsel %vm21867_vm4, %v6116_v59, %v6120_v1  ;;  %v5398_v31 = vadd.f32 %v24113_v39, %v24016_v57 }
 0x343   : > { %v6126_v41 = vrot.slane %v6125_v7, 4  ;;  %v24169_v18 = vpop.f32.mrb[29].mxu0  ;;  %19646 = vmatpush3.bf16.msra.mxu0 %v23989_v0  ;;  %v6133_v12 = vshrl.u32 %v6006_v32, 16  ;;  %v6136_v21 = vshll.u32 %v6006_v32, 16  ;;  %v24178_v16 = vrot.slane %v5733_v40, 7  ;;  %v21359_v0 = vld [vmem:[%s27578_s2 + $0x10] sm:$0xff]  }
 0x344   : > { %v5752_v52 = vrot.slane %v5750_v46, 7  ;;  %v24174_v19 = vpop.f32.mrb[30].mxu0  ;;  %v6142_v44 = vshll.u32 %v6007_v36, 16  ;;  %v6146_v15 = vshrl.u32 %v6007_v36, 16  ;;  %19647 = vmatprep.subr.bf16.mxu0 %v21355_v37  ;;  %v18515_v4 = vpack.c.bf16 %v5398_v31, %v5398_v31  ;;  %v5969_v59 = vld [vmem:[#allocation2 + $0x98] sm:$0x1] }
 0x345   : > { %v6131_v63 = vsel %vm21867_vm4, %v6126_v41, %v6130_v34  ;;  %v24183_v38 = vpop.f32.mrb[31].mxu0  ;;  %v5738_v58 = vor.u32 %v5736_v54, %v24178_v16  ;;  %v5739_v61 = vrot.slane %v24178_v16, 4  ;;  %v6135_v56 = vrot.slane %v6133_v12, 4  ;;  %v21369_v16 = vld [vmem:[%s27578_s2 + $0x60] sm:$0xff]  }
 0x346   : > { %v17495_v23 = vcombine.low %v6121_v25, %v6131_v63  ;;  %v5755_v39 = vor.u32 %v5753_v33, %v5752_v52  ;;  %v5756_v5 = vrot.slane %v5752_v52, 4  ;;  %v6138_v14 = vrot.slane %v6136_v21, 5  ;;  %v6048_v33 = vld [vmem:[#allocation2 + $0x38] sm:$0x1] }
 0x347   : > { %v5758_v49 = vshrl.u32 %v18515_v4, 16  ;;  %v5761_v2 = vshll.u32 %v18515_v4, 16  ;;  %v6144_v22 = vrot.slane %v6142_v44, 5  ;;  %19648 = vmatpush3.bf16.msra.mxu0 %v21355_v37  ;;  %v5959_v10 = vsel %vm24024_vm14, %v5738_v58, %v5958_v11  ;;  %v6010_v11 = vld [vmem:[#allocation2 + $0x3c] sm:$0xf] }
 0x348   : > { %19617 = vmatprep.mubr.msk.bf16.mxu0 %vm6541_vm10, %v17495_v23  ;;  %v5966_v30 = vsel %vm24024_vm14, %v5755_v39, %v5965_v9  ;;  %v6139_v1 = vor.u32 %v6138_v14, %v6135_v56  ;;  %v6148_v13 = vrot.slane %v6146_v15, 4  ;;  %v6152_v34 = vshll.u32 %v6047_v47, 16  ;;  %19649 = vmatprep.subr.bf16.mxu0 %v21359_v0  ;;  %5960 = vst [vmem:[#allocation2 + $0x84] sm:$0xf] %v5959_v10  ;;  %v5962_v4 = vld [vmem:[#allocation2 + $0x8c] sm:$0x1] }
 0x349   : > { %5967 = vst [vmem:[#allocation2 + $0x90] sm:$0xf] %v5966_v30  ;;  %v5760_v35 = vrot.slane %v5758_v49, 7  ;;  %v5396_v60 = vadd.f32 %v24016_v57, %v24123_v17  ;;  %v6157_v6 = vshrl.u32 %v6008_v42, 16  ;;  %v6160_v62 = vshll.u32 %v6008_v42, 16  ;;  %v21364_v17 = vld [vmem:[%s27578_s2 + $0x20] sm:$0xff]  }
 0x34a   : > { %v6140_v7 = vrot.slane %v6139_v1, 4  ;;  %v6149_v3 = vor.u32 %v6148_v13, %v6144_v22  ;;  %v6154_v32 = vrot.slane %v6152_v34, 5  ;;  %v6166_v37 = vshll.u32 %v6009_v43, 16  ;;  %v21367_v42 = vld [vmem:[%s27578_s2 + $0x28] sm:$0xff]  }
 0x34b   : > { %v5763_v24 = vor.u32 %v5761_v2, %v5760_v35  ;;  %v5765_v8 = vrot.slane %v5760_v35, 4  ;;  %v18513_v46 = vpack.c.bf16 %v5396_v60, %v5396_v60  ;;  %v6159_v36 = vrot.slane %v6157_v6, 4  ;;  %19650 = vmatpush3.bf16.msra.mxu0 %v21359_v0 }
 0x34c   : > { %v6145_v25 = vsel %vm21867_vm4, %v6140_v7, %v6144_v22  ;;  %v6150_v41 = vrot.slane %v6149_v3, 4  ;;  %v6162_v40 = vrot.slane %v6160_v62, 5  ;;  %v6168_v54 = vrot.slane %v6166_v37, 5  ;;  %19651 = vmatprep.subr.bf16.mxu0 %v21362_v20 }
 0x34d   : > { %v5764_v52 = vsel %vm24030_vm15, %v5756_v5, %v5763_v24  ;;  %v5970_v9 = vsel %vm24037_vm0, %v5765_v8, %v5969_v59  ;;  %v5741_v31 = vshrl.u32 %v18513_v46, 16  ;;  %v5744_v12 = vshll.u32 %v18513_v46, 16  ;;  %v5979_v59 = vld [vmem:[#allocation2 + $0xa8] sm:$0xf]  ;;  %v5972_v8 = vld [vmem:[#allocation2 + $0x9c] sm:$0xf] }
 0x34e   : > { %5968 = vst.msk [vmem:[#allocation2 + $0x94] sm:$0xf] %vm5407_vm8, %v5764_v52  ;;  %5971 = vst [vmem:[#allocation2 + $0x98] sm:$0x1] %v5970_v9  ;;  %v6155_v21 = vsel %vm21867_vm4, %v6150_v41, %v6154_v32  ;;  %v6163_v63 = vor.u32 %v6162_v40, %v6159_v36  ;;  %v6170_v44 = vshrl.u32 %v6009_v43, 16  ;;  %v6176_v15 = vshll.u32 %v6048_v33, 16 }
 0x34f   : > { %v17496_v0 = vcombine.low %v6145_v25, %v6155_v21  ;;  %v5743_v23 = vrot.slane %v5741_v31, 7  ;;  %v5401_v39 = vadd.f32 %v24135_v53, %v24016_v57  ;;  %v5399_v5 = vadd.f32 %v24016_v57, %v24143_v48  ;;  %19652 = vmatpush3.bf16.msra.mxu0 %v21362_v20  ;;  %v6011_v20 = vld [vmem:[#allocation2 + $0x40] sm:$0xf]  ;;  %v5983_v40 = vld [vmem:[#allocation2 + $0xb0] sm:$0x1] }
 0x350   : > { %v6164_v47 = vrot.slane %v6163_v63, 4  ;;  %v6172_v58 = vrot.slane %v6170_v44, 4  ;;  %v6178_v56 = vrot.slane %v6176_v15, 5  ;;  %v5402_v14 = vadd.f32 %v24146_v51, %v24016_v57  ;;  %19653 = vmatprep.subr.bf16.mxu0 %v21364_v17  ;;  %v6012_v21 = vld [vmem:[#allocation2 + $0x48] sm:$0xf] }
 0x351   : > { %19618 = vmatmul.mubr.msk.bf16.gmra.mrb[36].mxu0 %vm6541_vm10, %v17496_v0  ;;  %v5746_v53 = vor.u32 %v5744_v12, %v5743_v23  ;;  %v5748_v30 = vrot.slane %v5743_v23, 4  ;;  %v18518_v49 = vpack.c.bf16 %v5401_v39, %v5401_v39  ;;  %v18516_v48 = vpack.c.bf16 %v5399_v5, %v5399_v5  ;;  %v6013_v23 = vld [vmem:[#allocation2 + $0x4c] sm:$0xf] }
 0x352   : > { %v6169_v2 = vsel %vm21867_vm4, %v6164_v47, %v6168_v54  ;;  %v6173_v22 = vor.u32 %v6172_v58, %v6168_v54  ;;  %v18519_v43 = vpack.c.bf16 %v5402_v14, %v5402_v14  ;;  %v6181_v10 = vshrl.u32 %v6010_v11, 16  ;;  %v6049_v54 = vld [vmem:[#allocation2 + $0x44] sm:$0x1]  ;;  %v6050_v14 = vld [vmem:[#allocation2 + $0x50] sm:$0x1] }
 0x353   : > { %v5747_v51 = vsel %vm24030_vm15, %v5739_v61, %v5746_v53  ;;  %v5963_v1 = vsel %vm24037_vm0, %v5748_v30, %v5962_v4  ;;  %v5784_v13 = vshrl.u32 %v18518_v49, 16  ;;  %v5787_v34 = vshll.u32 %v18518_v49, 16  ;;  %19654 = vmatpush3.bf16.msra.mxu0 %v21364_v17 }
 0x354   : > { %5961 = vst.msk [vmem:[#allocation2 + $0x88] sm:$0xf] %vm5407_vm8, %v5747_v51  ;;  %5964 = vst [vmem:[#allocation2 + $0x8c] sm:$0x1] %v5963_v1  ;;  %v6174_v35 = vrot.slane %v6173_v22, 4  ;;  %v5767_v60 = vshrl.u32 %v18516_v48, 16  ;;  %19655 = vmatprep.subr.bf16.mxu0 %v21367_v42 }
 0x355   : > { %v5770_v6 = vshll.u32 %v18516_v48, 16  ;;  %v5792_v62 = vshrl.u32 %v18519_v43, 16  ;;  %v5786_v61 = vrot.slane %v5784_v13, 7  ;;  %v5795_v7 = vshll.u32 %v18519_v43, 16 }
 0x356   : > { %v6183_v3 = vrot.slane %v6181_v10, 4  ;;  %v6184_v32 = vshll.u32 %v6010_v11, 16  ;;  %v6179_v37 = vsel %vm21867_vm4, %v6174_v35, %v6178_v56  ;;  %v24233_v24 = vrot.slane %v5767_v60, 7 }
 0x357   : > { %v5794_v46 = vrot.slane %v5792_v62, 7  ;;  %v6190_v33 = vshll.u32 %v6011_v20, 16  ;;  %v17497_v36 = vcombine.low %v6169_v2, %v6179_v37  ;;  %v5789_v25 = vor.u32 %v5787_v34, %v5786_v61  ;;  %19656 = vmatpush3.bf16.msra.mxu0 %v21367_v42 }
 0x358   : > { %v5790_v41 = vrot.slane %v5786_v61, 4  ;;  %v6186_v17 = vrot.slane %v6184_v32, 5  ;;  %v5772_v52 = vor.u32 %v5770_v6, %v24233_v24  ;;  %v5773_v9 = vrot.slane %v24233_v24, 4  ;;  %19689 = vmatprep.subr.bf16.mxu0 %v21369_v16 }
 0x359   : > { %v5797_v31 = vor.u32 %v5795_v7, %v5794_v46  ;;  %v5799_v12 = vrot.slane %v5794_v46, 4  ;;  %19621 = vmatprep.mubr.msk.bf16.mxu0 %vm6541_vm10, %v17497_v36  ;;  %v5980_v63 = vsel %vm24024_vm14, %v5789_v25, %v5979_v59  ;;  %v6192_v15 = vrot.slane %v6190_v33, 5 }
 0x35a   : > { %v6187_v44 = vor.u32 %v6186_v17, %v6183_v3  ;;  %v6194_v0 = vshrl.u32 %v6011_v20, 16  ;;  %5981 = vst [vmem:[#allocation2 + $0xa8] sm:$0xf] %v5980_v63  ;;  %v5973_v39 = vsel %vm24024_vm14, %v5772_v52, %v5972_v8  ;;  %v6200_v4 = vshll.u32 %v6049_v54, 16  ;;  %v5976_v8 = vld [vmem:[#allocation2 + $0xa4] sm:$0x1] }
 0x35b   : > { %v5798_v5 = vsel %vm24030_vm15, %v5790_v41, %v5797_v31  ;;  %v5984_v11 = vsel %vm24037_vm0, %v5799_v12, %v5983_v40  ;;  %5974 = vst [vmem:[#allocation2 + $0x9c] sm:$0xf] %v5973_v39  ;;  %v5400_v56 = vadd.f32 %v24016_v57, %v24148_v29  ;;  %v6205_v42 = vshrl.u32 %v6012_v21, 16  ;;  %v6014_v54 = vld [vmem:[#allocation2 + $0x54] sm:$0xf] }
 0x35c   : > { %5982 = vst.msk [vmem:[#allocation2 + $0xac] sm:$0xf] %vm5407_vm8, %v5798_v5  ;;  %5985 = vst [vmem:[#allocation2 + $0xb0] sm:$0x1] %v5984_v11  ;;  %v6188_v47 = vrot.slane %v6187_v44, 4  ;;  %v6196_v58 = vrot.slane %v6194_v0, 4  ;;  %v5405_v29 = vadd.f32 %v24163_v27, %v24016_v57  ;;  %v5403_v61 = vadd.f32 %v24016_v57, %v24169_v18 }
 0x35d   : > { %v6202_v53 = vrot.slane %v6200_v4, 5  ;;  %v6208_v30 = vshll.u32 %v6012_v21, 16  ;;  %v6214_v49 = vshll.u32 %v6013_v23, 16  ;;  %v6218_v48 = vshrl.u32 %v6013_v23, 16  ;;  %v5993_v44 = vld [vmem:[#allocation2 + $0xc0] sm:$0xf] }
 0x35e   : > { %v6193_v2 = vsel %vm21867_vm4, %v6188_v47, %v6192_v15  ;;  %v6197_v22 = vor.u32 %v6196_v58, %v6192_v15  ;;  %v18517_v43 = vpack.c.bf16 %v5400_v56, %v5400_v56  ;;  %v6207_v10 = vrot.slane %v6205_v42, 4  ;;  %v5986_v0 = vld [vmem:[#allocation2 + $0xb4] sm:$0xf]  ;;  %v6051_v11 = vld [vmem:[#allocation2 + $0x5c] sm:$0x1] }
 0x35f   : > { %v6210_v51 = vrot.slane %v6208_v30, 5  ;;  %v6216_v1 = vrot.slane %v6214_v49, 5  ;;  %v6220_v13 = vrot.slane %v6218_v48, 4  ;;  %v6224_v34 = vshll.u32 %v6050_v14, 16  ;;  %v7994_v47 = vld [vmem:[#allocation2 + $0x54] sm:$0xf] }
 0x360   : > { %v6198_v20 = vrot.slane %v6197_v22, 4  ;;  %v5775_v35 = vshrl.u32 %v18517_v43, 16  ;;  %v5778_v60 = vshll.u32 %v18517_v43, 16  ;;  %v18522_v3 = vpack.c.bf16 %v5405_v29, %v5405_v29  ;;  %v5997_v49 = vld [vmem:[#allocation2 + $0xc8] sm:$0x1] }
 0x361   : > { %v6211_v6 = vor.u32 %v6210_v51, %v6207_v10  ;;  %v6221_v62 = vor.u32 %v6220_v13, %v6216_v1  ;;  %v6226_v16 = vrot.slane %v6224_v34, 5  ;;  %v5406_v32 = vadd.f32 %v24174_v19, %v24016_v57  ;;  %v6015_v19 = vld [vmem:[#allocation2 + $0x58] sm:$0xf]  ;;  %v7996_v13 = vld [vmem:[#allocation2 + $0x5c] sm:$0x1] }
 0x362   : > { %v6203_v59 = vsel %vm21867_vm4, %v6198_v20, %v6202_v53  ;;  %v5777_v7 = vrot.slane %v5775_v35, 7  ;;  %v18520_v36 = vpack.c.bf16 %v5403_v61, %v5403_v61  ;;  %v5818_v41 = vshrl.u32 %v18522_v3, 16  ;;  %v7995_v53 = vld [vmem:[#allocation2 + $0x58] sm:$0xf] }
 0x363   : > { %v17498_v37 = vcombine.low %v6193_v2, %v6203_v59  ;;  %v6212_v46 = vrot.slane %v6211_v6, 4  ;;  %v6222_v33 = vrot.slane %v6221_v62, 4  ;;  %v5821_v40 = vshll.u32 %v18522_v3, 16 }
 0x364   : > { %v5780_v27 = vor.u32 %v5778_v60, %v5777_v7  ;;  %v5782_v25 = vrot.slane %v5777_v7, 4  ;;  %v5801_v52 = vshrl.u32 %v18520_v36, 16  ;;  %v5804_v57 = vshll.u32 %v18520_v36, 16 }
 0x365   : > { %19622 = vmatmul.mubr.msk.bf16.gmra.mrb[40].mxu0 %vm6541_vm10, %v17498_v37  ;;  %v6217_v18 = vsel %vm21867_vm4, %v6212_v46, %v6216_v1  ;;  %v6227_v17 = vsel %vm21867_vm4, %v6222_v33, %v6226_v16  ;;  %v5820_v63 = vrot.slane %v5818_v41, 7  ;;  %v18523_v23 = vpack.c.bf16 %v5406_v32, %v5406_v32  ;;  %v6016_v32 = vld [vmem:[#allocation2 + $0x60] sm:$0xf]  ;;  %v6017_v41 = vld [vmem:[#allocation2 + $0x64] sm:$0xf] }
 0x366   : > { %v5781_v31 = vsel %vm24030_vm15, %v5773_v9, %v5780_v27  ;;  %v5977_v12 = vsel %vm24037_vm0, %v5782_v25, %v5976_v8  ;;  %v17499_v21 = vcombine.low %v6217_v18, %v6227_v17  ;;  %v24271_v15 = vrot.slane %v5801_v52, 7  ;;  %v21550_v18 = vld [vmem:[%s27580_s4] ss:$0 sm:$0xff]  ;;  %v6052_v52 = vld [vmem:[#allocation2 + $0x68] sm:$0x1] }
 0x367   : > { %5975 = vst.msk [vmem:[#allocation2 + $0xa0] sm:$0xf] %vm5407_vm8, %v5781_v31  ;;  %5978 = vst [vmem:[#allocation2 + $0xa4] sm:$0x1] %v5977_v12  ;;  %v6229_v39 = vshrl.u32 %v6014_v54, 16  ;;  %v6232_v5 = vshll.u32 %v6014_v54, 16  ;;  %v5823_v24 = vor.u32 %v5821_v40, %v5820_v63  ;;  %v5404_v17 = vadd.f32 %v21550_v18, %v24183_v38 }
 0x368   : > { %19625 = vmatprep.mubr.msk.bf16.mxu0 %vm6541_vm10, %v17499_v21  ;;  %v6238_v9 = vshll.u32 %v6015_v19, 16  ;;  %v6242_v4 = vshrl.u32 %v6015_v19, 16  ;;  %v5824_v58 = vrot.slane %v5820_v63, 4  ;;  %v5806_v56 = vor.u32 %v5804_v57, %v24271_v15  ;;  %v7998_v38 = vld [vmem:[#allocation2 + $0x64] sm:$0xf] }
 0x369   : > { %v5826_v14 = vshrl.u32 %v18523_v23, 16  ;;  %v5829_v42 = vshll.u32 %v18523_v23, 16  ;;  %v5994_v30 = vsel %vm24024_vm14, %v5823_v24, %v5993_v44  ;;  %v6231_v48 = vrot.slane %v6229_v39, 4  ;;  %v7997_v23 = vld [vmem:[#allocation2 + $0x60] sm:$0xf] }
 0x36a   : > { %v6234_v2 = vrot.slane %v6232_v5, 5  ;;  %v6240_v22 = vrot.slane %v6238_v9, 5  ;;  %5995 = vst [vmem:[#allocation2 + $0xc0] sm:$0xf] %v5994_v30  ;;  %v5987_v43 = vsel %vm24024_vm14, %v5806_v56, %v5986_v0  ;;  %v6244_v51 = vrot.slane %v6242_v4, 4 }
 0x36b   : > { %v5828_v10 = vrot.slane %v5826_v14, 7  ;;  %v6248_v1 = vshll.u32 %v6051_v11, 16  ;;  %5988 = vst [vmem:[#allocation2 + $0xb4] sm:$0xf] %v5987_v43  ;;  %v8169_v20 = vshrl.u32 %v7994_v47, 16  ;;  %v8172_v35 = vshll.u32 %v7994_v47, 16 }
 0x36c   : > { %v6235_v34 = vor.u32 %v6234_v2, %v6231_v48  ;;  %v8178_v60 = vshll.u32 %v7995_v53, 16  ;;  %v6245_v62 = vor.u32 %v6244_v51, %v6240_v22  ;;  %v8182_v46 = vshrl.u32 %v7995_v53, 16  ;;  %v7999_v48 = vld [vmem:[#allocation2 + $0x68] sm:$0x1] }
 0x36d   : > { %v5831_v29 = vor.u32 %v5829_v42, %v5828_v10  ;;  %v5833_v6 = vrot.slane %v5828_v10, 4  ;;  %v6250_v16 = vrot.slane %v6248_v1, 5  ;;  %v8171_v59 = vrot.slane %v8169_v20, 4  ;;  %v5990_v10 = vld [vmem:[#allocation2 + $0xbc] sm:$0x1] }
 0x36e   : > { %v6236_v61 = vrot.slane %v6235_v34, 4  ;;  %v8174_v7 = vrot.slane %v8172_v35, 5  ;;  %v8180_v3 = vrot.slane %v8178_v60, 5  ;;  %v6246_v8 = vrot.slane %v6245_v62, 4  ;;  %v6018_v34 = vld [vmem:[#allocation2 + $0x6c] sm:$0xf] }
 0x36f   : > { %v5832_v45 = vsel %vm24030_vm15, %v5824_v58, %v5831_v29  ;;  %v5998_v37 = vsel %vm24037_vm0, %v5833_v6, %v5997_v49  ;;  %v5807_v33 = vrot.slane %v24271_v15, 4  ;;  %v8188_v25 = vshll.u32 %v7996_v13, 16 }
 0x370   : > { %5996 = vst.msk [vmem:[#allocation2 + $0xc4] sm:$0xf] %vm5407_vm8, %v5832_v45  ;;  %5999 = vst [vmem:[#allocation2 + $0xc8] sm:$0x1] %v5998_v37  ;;  %v6241_v36 = vsel %vm21867_vm4, %v6236_v61, %v6240_v22  ;;  %v8175_v27 = vor.u32 %v8174_v7, %v8171_v59  ;;  %v6251_v40 = vsel %vm21867_vm4, %v6246_v8, %v6250_v16  ;;  %v8184_v54 = vrot.slane %v8182_v46, 4 }
 0x371   : > { %v6253_v57 = vshrl.u32 %v6016_v32, 16  ;;  %v17500_v19 = vcombine.low %v6241_v36, %v6251_v40  ;;  %v8190_v12 = vrot.slane %v8188_v25, 5  ;;  %v6256_v21 = vshll.u32 %v6016_v32, 16  ;;  %v6019_v59 = vld [vmem:[#allocation2 + $0x70] sm:$0xf] }
 0x372   : > { %v8176_v31 = vrot.slane %v8175_v27, 4  ;;  %v8185_v63 = vor.u32 %v8184_v54, %v8180_v3  ;;  %v18521_v44 = vpack.c.bf16 %v5404_v17, %v5404_v17  ;;  %v6262_v0 = vshll.u32 %v6017_v41, 16  ;;  %v6053_v45 = vld [vmem:[#allocation2 + $0x74] sm:$0x1]  ;;  %v8000_v25 = vld [vmem:[#allocation2 + $0x6c] sm:$0xf] }
 0x373   : > { %v6255_v15 = vrot.slane %v6253_v57, 4  ;;  %19626 = vmatmul.mubr.msk.bf16.gmra.mrb[44].mxu0 %vm6541_vm10, %v17500_v19  ;;  %v6258_v5 = vrot.slane %v6256_v21, 5  ;;  %v6266_v24 = vshrl.u32 %v6017_v41, 16  ;;  %v6272_v11 = vshll.u32 %v6052_v52, 16  ;;  %v24308_v57 = vld [vmem:[#allocation2 + $0x70] sm:$0xf] }
 0x374   : > { %v8181_v39 = vsel %vm21867_vm4, %v8176_v31, %v8180_v3  ;;  %v8186_v9 = vrot.slane %v8185_v63, 4  ;;  %v5809_v4 = vshrl.u32 %v18521_v44, 16  ;;  %v5812_v47 = vshll.u32 %v18521_v44, 16  ;;  %v24315_v44 = vld [vmem:[#allocation2 + $0x78] sm:$0xf] }
 0x375   : > { %v6264_v58 = vrot.slane %v6262_v0, 5  ;;  %v6259_v56 = vor.u32 %v6258_v5, %v6255_v15  ;;  %v6268_v14 = vrot.slane %v6266_v24, 4  ;;  %v6274_v42 = vrot.slane %v6272_v11, 5 }
 0x376   : > { %v8193_v53 = vshrl.u32 %v7997_v23, 16  ;;  %v8191_v30 = vsel %vm21867_vm4, %v8186_v9, %v8190_v12  ;;  %v5811_v49 = vrot.slane %v5809_v4, 7  ;;  %v8196_v2 = vshll.u32 %v7997_v23, 16  ;;  %v24313_v12 = vld [vmem:[#allocation2 + $0x74] sm:$0x1] }
 0x377   : > { %v8202_v22 = vshll.u32 %v7998_v38, 16  ;;  %v17703_v43 = vcombine.low %v8181_v39, %v8191_v30  ;;  %v6260_v51 = vrot.slane %v6259_v56, 4  ;;  %v6269_v1 = vor.u32 %v6268_v14, %v6264_v58  ;;  %v24319_v9 = vld [vmem:[#allocation2 + $0x7c] sm:$0xf] }
 0x378   : > { %v8195_v13 = vrot.slane %v8193_v53, 4  ;;  %v5814_v20 = vor.u32 %v5812_v47, %v5811_v49  ;;  %v5816_v35 = vrot.slane %v5811_v49, 4  ;;  %v8198_v60 = vrot.slane %v8196_v2, 5  ;;  %v21361_v49 = vld [vmem:[%s27578_s2 + $0xf8] sm:$0xff]  }
 0x379   : > { %v8204_v29 = vrot.slane %v8202_v22, 5  ;;  %19801 = vmatprep.mubr.msk.bf16.mxu1 %vm6541_vm10, %v17703_v43  ;;  %v6265_v6 = vsel %vm21867_vm4, %v6260_v51, %v6264_v58  ;;  %v6270_v62 = vrot.slane %v6269_v1, 4  ;;  %v8206_v16 = vshrl.u32 %v7998_v38, 16 }
 0x37a   : > { %v8212_v61 = vshll.u32 %v7999_v48, 16  ;;  %v5815_v7 = vsel %vm24030_vm15, %v5807_v33, %v5814_v20  ;;  %v5991_v3 = vsel %vm24037_vm0, %v5816_v35, %v5990_v10  ;;  %v8199_v32 = vor.u32 %v8198_v60, %v8195_v13  ;;  %v6054_v48 = vld [vmem:[#allocation2 + $0x80] sm:$0x1]  ;;  %v8003_v20 = vld [vmem:[#allocation2 + $0x78] sm:$0xf]  ;;  %v21551_v35 = vld [vmem:[%s27578_s2 + $0xf0] sm:$0xff]  }
 0x37b   : > { %v6277_v37 = vshrl.u32 %v6018_v34, 16  ;;  %5989 = vst.msk [vmem:[#allocation2 + $0xb8] sm:$0xf] %vm5407_vm8, %v5815_v7  ;;  %5992 = vst [vmem:[#allocation2 + $0xbc] sm:$0x1] %v5991_v3  ;;  %v6275_v8 = vsel %vm21867_vm4, %v6270_v62, %v6274_v42  ;;  %v8208_v46 = vrot.slane %v8206_v16, 4 }
 0x37c   : > { %v8214_v36 = vrot.slane %v8212_v61, 5  ;;  %v6280_v27 = vshll.u32 %v6018_v34, 16  ;;  %v17501_v41 = vcombine.low %v6265_v6, %v6275_v8  ;;  %v8200_v40 = vrot.slane %v8199_v32, 4  ;;  %v24339_v16 = vld [vmem:[#allocation2 + $0x7c] sm:$0xf] }
 0x37d   : > { %v6279_v54 = vrot.slane %v6277_v37, 4  ;;  %v6286_v33 = vshll.u32 %v6019_v59, 16  ;;  %v8209_v18 = vor.u32 %v8208_v46, %v8204_v29  ;;  %v6290_v17 = vshrl.u32 %v6019_v59, 16  ;;  %v24343_v32 = vld [vmem:[#allocation2 + $0x80] sm:$0x1] }
 0x37e   : > { %v6282_v50 = vrot.slane %v6280_v27, 5  ;;  %v6296_v52 = vshll.u32 %v6053_v45, 16  ;;  %19629 = vmatprep.mubr.msk.bf16.mxu0 %vm6541_vm10, %v17501_v41  ;;  %v8205_v19 = vsel %vm21867_vm4, %v8200_v40, %v8204_v29  ;;  %v8217_v21 = vshrl.u32 %v8000_v25, 16  ;;  %v21363_v45 = vld [vmem:[%s27578_s2 + $0x100] sm:$0xff]  }
 0x37f   : > { %v6288_v31 = vrot.slane %v6286_v33, 5  ;;  %v8220_v63 = vshll.u32 %v8000_v25, 16  ;;  %v8210_v15 = vrot.slane %v8209_v18, 4  ;;  %v6292_v23 = vrot.slane %v6290_v17, 4  ;;  %v24348_v27 = vld [vmem:[#allocation2 + $0x84] sm:$0xf] }
 0x380   : > { %v6283_v0 = vor.u32 %v6282_v50, %v6279_v54  ;;  %v6298_v39 = vrot.slane %v6296_v52, 5  ;;  %v8219_v5 = vrot.slane %v8217_v21, 4  ;;  %v8226_v11 = vshll.u32 %v24308_v57, 16  ;;  %v24354_v33 = vld [vmem:[#allocation2 + $0x88] sm:$0xf] }
 0x381   : > { %v8222_v24 = vrot.slane %v8220_v63, 5  ;;  %v8230_v38 = vshrl.u32 %v24308_v57, 16  ;;  %v8215_v4 = vsel %vm21867_vm4, %v8210_v15, %v8214_v36  ;;  %v6293_v58 = vor.u32 %v6292_v23, %v6288_v31  ;;  %v21365_v18 = vld [vmem:[%s27578_s2 + $0x108] sm:$0xff]   ;;  %v8006_v23 = vld [vmem:[#allocation2 + $0x84] sm:$0xf] }
 0x382   : > { %v6284_v47 = vrot.slane %v6283_v0, 4  ;;  %v8236_v56 = vshll.u32 %v24313_v12, 16  ;;  %v17704_v14 = vcombine.low %v8205_v19, %v8215_v4  ;;  %v8228_v53 = vrot.slane %v8226_v11, 5  ;;  %v6055_v0 = vld [vmem:[#allocation2 + $0x8c] sm:$0x1] }
 0x383   : > { %v8223_v42 = vor.u32 %v8222_v24, %v8219_v5  ;;  %v8232_v30 = vrot.slane %v8230_v38, 4  ;;  %v6294_v22 = vrot.slane %v6293_v58, 4  ;;  %v6301_v10 = vshrl.u32 %v24315_v44, 16 }
 0x384   : > { %v6289_v2 = vsel %vm21867_vm4, %v6284_v47, %v6288_v31  ;;  %v8238_v43 = vrot.slane %v8236_v56, 5  ;;  %19802 = vmatmul.mubr.msk.bf16.vlgmr.msra.gmra.mrb[0].mxu1 %vm6541_vm10, %v17704_v14  ;;  %v6304_v13 = vshll.u32 %v24315_v44, 16  ;;  %v6310_v34 = vshll.u32 %v24319_v9, 16 }
 0x385   : > { %v8224_v51 = vrot.slane %v8223_v42, 4  ;;  %v8233_v1 = vor.u32 %v8232_v30, %v8228_v53  ;;  %19822 = vmatpush3.bf16.msra.mxu1 %v21551_v35  ;;  %v6299_v60 = vsel %vm21867_vm4, %v6294_v22, %v6298_v39  ;;  %v6303_v29 = vrot.slane %v6301_v10, 4  ;;  %v24369_v30 = vld [vmem:[#allocation2 + $0x88] sm:$0xf] }
 0x386   : > { %v6314_v6 = vshrl.u32 %v24319_v9, 16  ;;  %v6320_v62 = vshll.u32 %v6054_v48, 16  ;;  %v17502_v61 = vcombine.low %v6289_v2, %v6299_v60  ;;  %19823 = vmatprep.subr.bf16.mxu1 %v21361_v49  ;;  %v6306_v3 = vrot.slane %v6304_v13, 5  ;;  %v24380_v60 = vld [vmem:[#allocation2 + $0x8c] sm:$0x1] }
 0x387   : > { %v8229_v59 = vsel %vm21867_vm4, %v8224_v51, %v8228_v53  ;;  %v8234_v7 = vrot.slane %v8233_v1, 4  ;;  %v6312_v37 = vrot.slane %v6310_v34, 5  ;;  %v8241_v36 = vshrl.u32 %v8003_v20, 16  ;;  %v24375_v34 = vld [vmem:[#allocation2 + $0x90] sm:$0xf] }
 0x388   : > { %v6316_v8 = vrot.slane %v6314_v6, 4  ;;  %v6322_v46 = vrot.slane %v6320_v62, 5  ;;  %19630 = vmatmul.mubr.msk.bf16.gmra.mrb[48].mxu0 %vm6541_vm10, %v17502_v61  ;;  %v6307_v41 = vor.u32 %v6306_v3, %v6303_v29  ;;  %v8244_v40 = vshll.u32 %v8003_v20, 16  ;;  %v24385_v3 = vld [vmem:[#allocation2 + $0x94] sm:$0xf] }
 0x389   : > { %v8239_v25 = vsel %vm21867_vm4, %v8234_v7, %v8238_v43  ;;  %v8250_v54 = vshll.u32 %v24339_v16, 16  ;;  %v8243_v52 = vrot.slane %v8241_v36, 4  ;;  %v8254_v19 = vshrl.u32 %v24339_v16, 16  ;;  %19824 = vmatpush3.bf16.msra.mxu1 %v21361_v49  ;;  %v21366_v43 = vld [vmem:[%s27578_s2 + $0x110] sm:$0xff]   ;;  %v21368_v36 = vld [vmem:[%s27578_s2 + $0x118] sm:$0xff]  }
 0x38a   : > { %v17705_v50 = vcombine.low %v8229_v59, %v8239_v25  ;;  %v6317_v17 = vor.u32 %v6316_v8, %v6312_v37  ;;  %v6308_v31 = vrot.slane %v6307_v41, 4  ;;  %v8246_v21 = vrot.slane %v8244_v40, 5  ;;  %19825 = vmatprep.subr.bf16.mxu1 %v21363_v45 }
 0x38b   : > { %v8252_v63 = vrot.slane %v8250_v54, 5  ;;  %v8260_v15 = vshll.u32 %v24343_v32, 16  ;;  %v8256_v5 = vrot.slane %v8254_v19, 4  ;;  %v6325_v24 = vshrl.u32 %v24348_v27, 16 }
 0x38c   : > { %19805 = vmatprep.mubr.msk.bf16.mxu1 %vm6541_vm10, %v17705_v50  ;;  %v6318_v39 = vrot.slane %v6317_v17, 4  ;;  %v6328_v11 = vshll.u32 %v24348_v27, 16  ;;  %v6313_v38 = vsel %vm21867_vm4, %v6308_v31, %v6312_v37  ;;  %v8247_v4 = vor.u32 %v8246_v21, %v8243_v52  ;;  %v6056_v17 = vld [vmem:[#allocation2 + $0x98] sm:$0x1] }
 0x38d   : > { %v8262_v47 = vrot.slane %v8260_v15, 5  ;;  %v6334_v58 = vshll.u32 %v24354_v33, 16  ;;  %v8257_v14 = vor.u32 %v8256_v5, %v8252_v63  ;;  %v6327_v42 = vrot.slane %v6325_v24, 4  ;;  %19826 = vmatpush3.bf16.msra.mxu1 %v21363_v45 }
 0x38e   : > { %v6323_v56 = vsel %vm21867_vm4, %v6318_v39, %v6322_v46  ;;  %v6330_v53 = vrot.slane %v6328_v11, 5  ;;  %v8248_v48 = vrot.slane %v8247_v4, 4  ;;  %v6338_v22 = vshrl.u32 %v24354_v33, 16  ;;  %19827 = vmatprep.subr.bf16.mxu1 %v21365_v18  ;;  %v24401_v11 = vld [vmem:[#allocation2 + $0x94] sm:$0xf] }
 0x38f   : > { %v17503_v49 = vcombine.low %v6313_v38, %v6323_v56  ;;  %v6336_v2 = vrot.slane %v6334_v58, 5  ;;  %v8258_v10 = vrot.slane %v8257_v14, 4  ;;  %v6344_v1 = vshll.u32 %v6055_v0, 16  ;;  %v8009_v0 = vld [vmem:[#allocation2 + $0x90] sm:$0xf]  ;;  %v24406_v38 = vld [vmem:[%s27578_s2 + $0x120] sm:$0xff]  }
 0x390   : > { %v6331_v51 = vor.u32 %v6330_v53, %v6327_v42  ;;  %v8265_v13 = vshrl.u32 %v8006_v23, 16  ;;  %v8253_v20 = vsel %vm21867_vm4, %v8248_v48, %v8252_v63  ;;  %v6340_v35 = vrot.slane %v6338_v22, 4  ;;  %v24410_v53 = vld [vmem:[#allocation2 + $0x98] sm:$0x1] }
 0x391   : > { %19633 = vmatprep.mubr.msk.bf16.mxu0 %vm6541_vm10, %v17503_v49  ;;  %v8268_v29 = vshll.u32 %v8006_v23, 16  ;;  %v8274_v6 = vshll.u32 %v24369_v30, 16  ;;  %v8263_v62 = vsel %vm21867_vm4, %v8258_v10, %v8262_v47  ;;  %v6346_v59 = vrot.slane %v6344_v1, 5  ;;  %19828 = vmatpush3.bf16.msra.mxu1 %v21365_v18  ;;  %v24416_v1 = vld [vmem:[#allocation2 + $0xa0] sm:$0xf] }
 0x392   : > { %v6332_v61 = vrot.slane %v6331_v51, 4  ;;  %v8267_v7 = vrot.slane %v8265_v13, 4  ;;  %v17706_v45 = vcombine.low %v8253_v20, %v8263_v62  ;;  %v6341_v37 = vor.u32 %v6340_v35, %v6336_v2  ;;  %19829 = vmatprep.subr.bf16.mxu1 %v21366_v43 }
 0x393   : > { %v8270_v8 = vrot.slane %v8268_v29, 5  ;;  %v8276_v46 = vrot.slane %v8274_v6, 5  ;;  %v8278_v41 = vshrl.u32 %v24369_v30, 16  ;;  %v8284_v40 = vshll.u32 %v24380_v60, 16 }
 0x394   : > { %v6337_v25 = vsel %vm21867_vm4, %v6332_v61, %v6336_v2  ;;  %v6349_v54 = vshrl.u32 %v24375_v34, 16  ;;  %19806 = vmatmul.mubr.msk.bf16.gmra.mrb[4].mxu1 %vm6541_vm10, %v17706_v45  ;;  %v6342_v18 = vrot.slane %v6341_v37, 4  ;;  %v6352_v52 = vshll.u32 %v24375_v34, 16  ;;  %v24412_v2 = vld [vmem:[#allocation2 + $0x9c] sm:$0xf] }
 0x395   : > { %v8271_v50 = vor.u32 %v8270_v8, %v8267_v7  ;;  %v6358_v19 = vshll.u32 %v24385_v3, 16  ;;  %v8280_v31 = vrot.slane %v8278_v41, 4  ;;  %v8286_v21 = vrot.slane %v8284_v40, 5  ;;  %19830 = vmatpush3.bf16.msra.mxu1 %v21366_v43  ;;  %v6057_v7 = vld [vmem:[#allocation2 + $0xa4] sm:$0x1] }
 0x396   : > { %v6351_v63 = vrot.slane %v6349_v54, 4  ;;  %v6362_v15 = vshrl.u32 %v24385_v3, 16  ;;  %v6347_v23 = vsel %vm21867_vm4, %v6342_v18, %v6346_v59  ;;  %v6354_v5 = vrot.slane %v6352_v52, 5  ;;  %19831 = vmatprep.subr.bf16.mxu1 %v21368_v36  ;;  %v8012_v54 = vld [vmem:[#allocation2 + $0x9c] sm:$0xf] }
 0x397   : > { %v8272_v39 = vrot.slane %v8271_v50, 4  ;;  %v6360_v24 = vrot.slane %v6358_v19, 5  ;;  %v17504_v4 = vcombine.low %v6337_v25, %v6347_v23  ;;  %v8281_v47 = vor.u32 %v8280_v31, %v8276_v46 }
 0x398   : > { %v6364_v58 = vrot.slane %v6362_v15, 4  ;;  %v6368_v56 = vshll.u32 %v6056_v17, 16  ;;  %v6355_v42 = vor.u32 %v6354_v5, %v6351_v63  ;;  %v8289_v49 = vshrl.u32 %v8009_v0, 16  ;;  %v24432_v15 = vld [vmem:[#allocation2 + $0xa0] sm:$0xf] }
 0x399   : > { %v8277_v14 = vsel %vm21867_vm4, %v8272_v39, %v8276_v46  ;;  %v8292_v48 = vshll.u32 %v8009_v0, 16  ;;  %19634 = vmatmul.mubr.msk.bf16.gmra.mrb[52].mxu0 %vm6541_vm10, %v17504_v4  ;;  %v8282_v22 = vrot.slane %v8281_v47, 4  ;;  %v8298_v51 = vshll.u32 %v24401_v11, 16  ;;  %19832 = vmatpush3.bf16.msra.mxu1 %v21368_v36 }
 0x39a   : > { %v6365_v43 = vor.u32 %v6364_v58, %v6360_v24  ;;  %v6370_v10 = vrot.slane %v6368_v56, 5  ;;  %v6356_v13 = vrot.slane %v6355_v42, 4  ;;  %v8291_v20 = vrot.slane %v8289_v49, 4  ;;  %19865 = vmatprep.subr.bf16.mxu1 %v24406_v38  ;;  %v24439_v56 = vld [vmem:[#allocation2 + $0xa4] sm:$0x1] }
 0x39b   : > { %v8294_v35 = vrot.slane %v8292_v48, 5  ;;  %v8302_v29 = vshrl.u32 %v24401_v11, 16  ;;  %v8287_v6 = vsel %vm21867_vm4, %v8282_v22, %v8286_v21  ;;  %v8300_v61 = vrot.slane %v8298_v51, 5 }
 0x39c   : > { %v6366_v62 = vrot.slane %v6365_v43, 4  ;;  %v8308_v59 = vshll.u32 %v24410_v53, 16  ;;  %v17707_v45 = vcombine.low %v8277_v14, %v8287_v6  ;;  %v6361_v37 = vsel %vm21867_vm4, %v6356_v13, %v6360_v24  ;;  %v24437_v24 = vld [vmem:[#allocation2 + $0xa8] sm:$0xf] }
 0x39d   : > { %v8295_v8 = vor.u32 %v8294_v35, %v8291_v20  ;;  %v8304_v46 = vrot.slane %v8302_v29, 4  ;;  %v6373_v41 = vshrl.u32 %v24412_v2, 16  ;;  %v6376_v40 = vshll.u32 %v24412_v2, 16  ;;  %v24445_v20 = vld [vmem:[#allocation2 + $0xac] sm:$0xf] }
 0x39e   : > { %v6371_v36 = vsel %vm21867_vm4, %v6366_v62, %v6370_v10  ;;  %v8310_v25 = vrot.slane %v8308_v59, 5  ;;  %19809 = vmatprep.mubr.msk.bf16.mxu1 %vm6541_vm10, %v17707_v45  ;;  %v6382_v52 = vshll.u32 %v24416_v1, 16  ;;  %v6386_v21 = vshrl.u32 %v24416_v1, 16  ;;  %v6058_v45 = vld [vmem:[#allocation2 + $0xb0] sm:$0x1] }
 0x39f   : > { %v17505_v18 = vcombine.low %v6361_v37, %v6371_v36  ;;  %v8296_v50 = vrot.slane %v8295_v8, 4  ;;  %v8305_v17 = vor.u32 %v8304_v46, %v8300_v61  ;;  %v6375_v19 = vrot.slane %v6373_v41, 4  ;;  %v8015_v41 = vld [vmem:[#allocation2 + $0xa8] sm:$0xf] }
 0x3a0   : > { %v6378_v31 = vrot.slane %v6376_v40, 5  ;;  %v6392_v63 = vshll.u32 %v6057_v7, 16  ;;  %v6384_v39 = vrot.slane %v6382_v52, 5  ;;  %v8313_v5 = vshrl.u32 %v8012_v54, 16 }
 0x3a1   : > { %19637 = vmatprep.mubr.msk.bf16.mxu0 %vm6541_vm10, %v17505_v18  ;;  %v8301_v0 = vsel %vm21867_vm4, %v8296_v50, %v8300_v61  ;;  %v8306_v23 = vrot.slane %v8305_v17, 4  ;;  %v6388_v47 = vrot.slane %v6386_v21, 4  ;;  %v8316_v14 = vshll.u32 %v8012_v54, 16  ;;  %v24457_v17 = vld [vmem:[#allocation2 + $0xac] sm:$0xf] }
 0x3a2   : > { %v6379_v4 = vor.u32 %v6378_v31, %v6375_v19  ;;  %v6394_v58 = vrot.slane %v6392_v63, 5  ;;  %v8315_v49 = vrot.slane %v8313_v5, 4  ;;  %v8322_v48 = vshll.u32 %v24432_v15, 16  ;;  %v24459_v63 = vld [vmem:[#allocation2 + $0xb0] sm:$0x1] }
 0x3a3   : > { %v8311_v42 = vsel %vm21867_vm4, %v8306_v23, %v8310_v25  ;;  %v8326_v22 = vshrl.u32 %v24432_v15, 16  ;;  %v6389_v51 = vor.u32 %v6388_v47, %v6384_v39  ;;  %v8318_v13 = vrot.slane %v8316_v14, 5  ;;  %v24465_v47 = vld [vmem:[#allocation2 + $0xb8] sm:$0xf] }
 0x3a4   : > { %v17708_v43 = vcombine.low %v8301_v0, %v8311_v42  ;;  %v6380_v10 = vrot.slane %v6379_v4, 4  ;;  %v8324_v35 = vrot.slane %v8322_v48, 5  ;;  %v8332_v6 = vshll.u32 %v24439_v56, 16  ;;  %v24463_v4 = vld [vmem:[#allocation2 + $0xb4] sm:$0xf] }
 0x3a5   : > { %v8328_v29 = vrot.slane %v8326_v22, 4  ;;  %v6397_v62 = vshrl.u32 %v24437_v24, 16  ;;  %v6390_v59 = vrot.slane %v6389_v51, 4  ;;  %v8319_v7 = vor.u32 %v8318_v13, %v8315_v49 }
 0x3a6   : > { %19810 = vmatmul.mubr.msk.bf16.gmra.mrb[8].mxu1 %vm6541_vm10, %v17708_v43  ;;  %v6385_v61 = vsel %vm21867_vm4, %v6380_v10, %v6384_v39  ;;  %v6400_v37 = vshll.u32 %v24437_v24, 16  ;;  %v8334_v46 = vrot.slane %v8332_v6, 5  ;;  %v6406_v25 = vshll.u32 %v24445_v20, 16 }
 0x3a7   : > { %v8329_v8 = vor.u32 %v8328_v29, %v8324_v35  ;;  %v6399_v36 = vrot.slane %v6397_v62, 4  ;;  %v6395_v40 = vsel %vm21867_vm4, %v6390_v59, %v6394_v58  ;;  %v8320_v54 = vrot.slane %v8319_v7, 4  ;;  %v8018_v7 = vld [vmem:[#allocation2 + $0xb4] sm:$0xf] }
 0x3a8   : > { %v6402_v18 = vrot.slane %v6400_v37, 5  ;;  %v6410_v50 = vshrl.u32 %v24445_v20, 16  ;;  %v17506_v52 = vcombine.low %v6385_v61, %v6395_v40  ;;  %v6408_v31 = vrot.slane %v6406_v25, 5 }
 0x3a9   : > { %v8330_v19 = vrot.slane %v8329_v8, 4  ;;  %v6416_v21 = vshll.u32 %v6058_v45, 16  ;;  %v8325_v0 = vsel %vm21867_vm4, %v8320_v54, %v8324_v35  ;;  %v8337_v5 = vshrl.u32 %v8015_v41, 16 }
 0x3aa   : > { %v6403_v23 = vor.u32 %v6402_v18, %v6399_v36  ;;  %v6412_v39 = vrot.slane %v6410_v50, 4  ;;  %19638 = vmatmul.mubr.msk.bf16.gmra.mrb[56].mxu0 %vm6541_vm10, %v17506_v52  ;;  %v8340_v42 = vshll.u32 %v8015_v41, 16  ;;  %v8346_v49 = vshll.u32 %v24457_v17, 16  ;;  %v24484_v18 = vld [vmem:[#allocation2 + $0xb8] sm:$0xf] }
 0x3ab   : > { %v8335_v58 = vsel %vm21867_vm4, %v8330_v19, %v8334_v46  ;;  %v6418_v14 = vrot.slane %v6416_v21, 5  ;;  %v8339_v10 = vrot.slane %v8337_v5, 4  ;;  %v8350_v35 = vshrl.u32 %v24457_v17, 16  ;;  %v24478_v46 = vld [vmem:[#allocation2 + $0xbc] sm:$0x1] }
 0x3ac   : > { %v17709_v48 = vcombine.low %v8325_v0, %v8335_v58  ;;  %v6404_v22 = vrot.slane %v6403_v23, 4  ;;  %v6413_v43 = vor.u32 %v6412_v39, %v6408_v31  ;;  %v8342_v51 = vrot.slane %v8340_v42, 5  ;;  %v24487_v39 = vld [vmem:[#allocation2 + $0xbc] sm:$0x1]  ;;  %v8021_v58 = vld [vmem:[#allocation2 + $0xc0] sm:$0xf] }
 0x3ad   : > { %v8348_v13 = vrot.slane %v8346_v49, 5  ;;  %v8356_v29 = vshll.u32 %v24459_v63, 16  ;;  %v6421_v61 = vshrl.u32 %v24463_v4, 16  ;;  %v6424_v59 = vshll.u32 %v24463_v4, 16 }
 0x3ae   : > { %19813 = vmatprep.mubr.msk.bf16.mxu1 %vm6541_vm10, %v17709_v48  ;;  %v6409_v6 = vsel %vm21867_vm4, %v6404_v22, %v6408_v31  ;;  %v6414_v62 = vrot.slane %v6413_v43, 4  ;;  %v8343_v45 = vor.u32 %v8342_v51, %v8339_v10  ;;  %v8352_v37 = vrot.slane %v8350_v35, 4  ;;  %v24493_v35 = vld [vmem:[#allocation2 + $0xc4] sm:$0xf] }
 0x3af   : > { %v8358_v8 = vrot.slane %v8356_v29, 5  ;;  %v6430_v36 = vshll.u32 %v24465_v47, 16  ;;  %v6423_v41 = vrot.slane %v6421_v61, 4  ;;  %v6426_v40 = vrot.slane %v6424_v59, 5 }
 0x3b0   : > { %v6419_v25 = vsel %vm21867_vm4, %v6414_v62, %v6418_v14  ;;  %v6434_v54 = vshrl.u32 %v24465_v47, 16  ;;  %v8344_v52 = vrot.slane %v8343_v45, 4  ;;  %v8353_v19 = vor.u32 %v8352_v37, %v8348_v13 }
 0x3b1   : > { %v17507_v50 = vcombine.low %v6409_v6, %v6419_v25  ;;  %v6432_v31 = vrot.slane %v6430_v36, 5  ;;  %v6427_v21 = vor.u32 %v6426_v40, %v6423_v41  ;;  %v6440_v23 = vshll.u32 %v24478_v46, 16  ;;  %v24499_v36 = vld [vmem:[#allocation2 + $0xc8] sm:$0x1] }
 0x3b2   : > { %v6436_v0 = vrot.slane %v6434_v54, 4  ;;  %v8361_v5 = vshrl.u32 %v8018_v7, 16  ;;  %v8349_v14 = vsel %vm21867_vm4, %v8344_v52, %v8348_v13  ;;  %v8354_v42 = vrot.slane %v8353_v19, 4  ;;  %v7977_v52 = vld [vmem:[#allocation2 + $0x10] sm:$0xf] }
 0x3b3   : > { %19641 = vmatprep.mubr.msk.bf16.mxu0 %vm6541_vm10, %v17507_v50  ;;  %v8364_v49 = vshll.u32 %v8018_v7, 16  ;;  %v8370_v48 = vshll.u32 %v24484_v18, 16  ;;  %v6428_v22 = vrot.slane %v6427_v21, 4  ;;  %v6442_v10 = vrot.slane %v6440_v23, 5 }
 0x3b4   : > { %v6437_v43 = vor.u32 %v6436_v0, %v6432_v31  ;;  %v8363_v51 = vrot.slane %v8361_v5, 4  ;;  %v8359_v29 = vsel %vm21867_vm4, %v8354_v42, %v8358_v8  ;;  %v8374_v61 = vshrl.u32 %v24484_v18, 16 }
 0x3b5   : > { %v8366_v6 = vrot.slane %v8364_v49, 5  ;;  %v8372_v62 = vrot.slane %v8370_v48, 5  ;;  %v17710_v59 = vcombine.low %v8349_v14, %v8359_v29  ;;  %v8380_v13 = vshll.u32 %v24487_v39, 16  ;;  %v7978_v49 = vld [vmem:[#allocation2 + $0x14] sm:$0x1] }
 0x3b6   : > { %v6438_v45 = vrot.slane %v6437_v43, 4  ;;  %v8376_v37 = vrot.slane %v8374_v61, 4  ;;  %v8385_v25 = vshrl.u32 %v8021_v58, 16  ;;  %v8388_v41 = vshll.u32 %v8021_v58, 16  ;;  %v7980_v61 = vld [vmem:[#allocation2 + $0x1c] sm:$0xf] }
 0x3b7   : > { %v8367_v7 = vor.u32 %v8366_v6, %v8363_v51  ;;  %19814 = vmatmul.mubr.msk.bf16.gmra.mrb[12].mxu1 %vm6541_vm10, %v17710_v59  ;;  %v6433_v40 = vsel %vm21867_vm4, %v6428_v22, %v6432_v31  ;;  %v8394_v54 = vshll.u32 %v24493_v35, 16  ;;  %v8398_v50 = vshrl.u32 %v24493_v35, 16  ;;  %v8746_v6 = vld [vmem:[#allocation2 + $0xc] sm:$0xe] }
 0x3b8   : > { %v6443_v8 = vsel %vm21867_vm4, %v6438_v45, %v6442_v10  ;;  %v8377_v0 = vor.u32 %v8376_v37, %v8372_v62  ;;  %v8387_v23 = vrot.slane %v8385_v25, 4  ;;  %v8390_v5 = vrot.slane %v8388_v41, 5  ;;  %v21552_v37 = vld [vmem:[#allocation2] sm:$0xf]  ;;  %v24514_v25 = vld [vmem:[#allocation2 + $0x4] sm:$0xf] }
 0x3b9   : > { %v17508_v19 = vcombine.low %v6433_v40, %v6443_v8  ;;  %v8368_v21 = vrot.slane %v8367_v7, 4  ;;  %v8396_v14 = vrot.slane %v8394_v54, 5  ;;  %v8400_v58 = vrot.slane %v8398_v50, 4 }
 0x3ba   : > { %v8404_v42 = vshll.u32 %v24499_v36, 16  ;;  %v8378_v31 = vrot.slane %v8377_v0, 4  ;;  %v8382_v48 = vrot.slane %v8380_v13, 5  ;;  %v8812_v22 = vrot.slane %v7977_v52, 5  ;;  %v7983_v52 = vld [vmem:[#allocation2 + $0x28] sm:$0xf] }
 0x3bb   : > { %19642 = vmatmul.mubr.msk.bf16.gmra.mrb[60].mxu0 %vm6541_vm10, %v17508_v19  ;;  %v8373_v43 = vsel %vm21867_vm4, %v8368_v21, %v8372_v62  ;;  %v8391_v10 = vor.u32 %v8390_v5, %v8387_v23  ;;  %v8401_v51 = vor.u32 %v8400_v58, %v8396_v14  ;;  %v8815_v7 = vrot.slane %v7978_v49, 5  ;;  %v21554_v5 = vld [vmem:[#allocation2 + $0xc] sm:$0xf]  ;;  %v24527_v58 = vld [vmem:[#allocation2 + $0x10] sm:$0xf] }
 0x3bc   : > { %v8406_v29 = vrot.slane %v8404_v42, 5  ;;  %v8383_v59 = vsel %vm21867_vm4, %v8378_v31, %v8382_v48  ;;  %v8814_v45 = vrot.slane %v8812_v22, 4  ;;  %v17531_v41 = vcombine.low %v21552_v37, %v24514_v25  ;;  %v7981_v49 = vld [vmem:[#allocation2 + $0x20] sm:$0x1]  ;;  %v8747_v31 = vld [vmem:[#allocation2 + $0x18] sm:$0xe] }
 0x3bd   : > { %v17711_v13 = vcombine.low %v8373_v43, %v8383_v59  ;;  %v8392_v40 = vrot.slane %v8391_v10, 4  ;;  %v8402_v8 = vrot.slane %v8401_v51, 4  ;;  %v17735_v54 = vrot.slane %v8746_v6, 9  ;;  %v7984_v48 = vld [vmem:[#allocation2 + $0x2c] sm:$0x1] }
 0x3be   : > { %v8816_v62 = vsel %vm22224_vm7, %v8814_v45, %v8815_v7  ;;  %19657 = vmatprep.mubr.msk.bf16.mxu0 %vm6541_vm10, %v17531_v41  ;;  %v8819_v50 = vrot.slane %v7980_v61, 5  ;;  %v17532_v42 = vcombine.low %v21554_v5, %v24527_v58  ;;  %v21371_v43 = vld [vmem:[%s27578_s2 + $0x68] sm:$0xff]   ;;  %v21556_v10 = vld [vmem:[#allocation2 + $0x18] sm:$0xf]  ;;  %v24533_v51 = vld [vmem:[#allocation2 + $0x1c] sm:$0xf] }
 0x3bf   : > { %19817 = vmatprep.mubr.msk.bf16.mxu1 %vm6541_vm10, %v17711_v13  ;;  %v8397_v19 = vsel %vm21867_vm4, %v8392_v40, %v8396_v14  ;;  %v8407_v21 = vsel %vm21867_vm4, %v8402_v8, %v8406_v29  ;;  %v8813_v23 = vsel %vm22224_vm7, %v17735_v54, %v8812_v22  ;;  %v17533_v29 = vcombine.low %v21556_v10, %v24533_v51  ;;  %v8748_v61 = vld [vmem:[#allocation2 + $0x24] sm:$0xe]  ;;  %v7986_v59 = vld [vmem:[#allocation2 + $0x34] sm:$0xf]  ;;  %v7989_v37 = vld [vmem:[#allocation2 + $0x40] sm:$0xf] }
 0x3c0   : > { %v17712_v0 = vcombine.low %v8397_v19, %v8407_v21  ;;  %v17763_v14 = vcombine.low %v8813_v23, %v8816_v62  ;;  %v8821_v6 = vrot.slane %v8819_v50, 4  ;;  %v8826_v22 = vrot.slane %v7983_v52, 5  ;;  %v21558_v41 = vld [vmem:[%s27578_s2 + $0x60] sm:$0xff]   ;;  %v21373_v62 = vld [vmem:[%s27578_s2 + $0x70] sm:$0xff]  }
 0x3c1   : > { %v8822_v45 = vrot.slane %v7981_v49, 5  ;;  %v8829_v13 = vrot.slane %v7984_v48, 5  ;;  %v17736_v40 = vrot.slane %v8747_v31, 9  ;;  %v8833_v54 = vrot.slane %v7986_v59, 5  ;;  %v24554_v49 = vld [vmem:[#allocation2 + $0x28] sm:$0xf] }
 0x3c2   : > { %19818 = vmatmul.mubr.msk.bf16.gmra.mrb[16].mxu1 %vm6541_vm10, %v17712_v0  ;;  %v8828_v7 = vrot.slane %v8826_v22, 4  ;;  %v17737_v52 = vrot.slane %v8748_v61, 9  ;;  %v8840_v21 = vrot.slane %v7989_v37, 5  ;;  %v7987_v48 = vld [vmem:[#allocation2 + $0x38] sm:$0x1] }
 0x3c3   : > { %19658 = vmatmul.mubr.msk.bf16.vlgmr.msra.gmra.mrb[32].mxu0 %vm6541_vm10, %v17532_v42  ;;  %19833 = vmatprep.mubr.msk.bf16.mxu1 %vm6541_vm10, %v17763_v14  ;;  %v8823_v8 = vsel %vm22224_vm7, %v8821_v6, %v8822_v45  ;;  %v8820_v0 = vsel %vm22224_vm7, %v17736_v40, %v8819_v50  ;;  %v21559_v42 = vld [vmem:[#allocation2 + $0x24] sm:$0xf]  ;;  %v21372_v14 = vld [vmem:[%s27578_s2 + $0x128] sm:$0xff]   ;;  %v21561_v50 = vld [vmem:[#allocation2 + $0x30] sm:$0xf]  ;;  %v8836_v37 = vrot.slane %v7987_v48, 5 }
 0x3c4   : > { %19661 = vmatprep.mubr.msk.bf16.mxu0 %vm6541_vm10, %v17533_v29  ;;  %19690 = vmatpush3.bf16.msra.mxu0 %v21558_v41  ;;  %v8830_v19 = vsel %vm22224_vm7, %v8828_v7, %v8829_v13  ;;  %v17764_v23 = vcombine.low %v8820_v0, %v8823_v8  ;;  %v8827_v5 = vsel %vm22224_vm7, %v17737_v52, %v8826_v22  ;;  %v8835_v29 = vrot.slane %v8833_v54, 4  ;;  %v7990_v6 = vld [vmem:[#allocation2 + $0x44] sm:$0x1]  ;;  %v24562_v22 = vld [vmem:[#allocation2 + $0x34] sm:$0xf] }
 0x3c5   : > { %19691 = vmatprep.subr.bf16.mxu0 %v21371_v43  ;;  %v17534_v31 = vcombine.low %v21559_v42, %v24554_v49  ;;  %v17765_v10 = vcombine.low %v8827_v5, %v8830_v19  ;;  %v17535_v61 = vcombine.low %v21561_v50, %v24562_v22  ;;  %v8749_v59 = vld [vmem:[#allocation2 + $0x30] sm:$0xe]  ;;  %v8842_v45 = vrot.slane %v8840_v21, 4  ;;  %v7992_v7 = vld [vmem:[#allocation2 + $0x4c] sm:$0xf]  ;;  %v21382_v50 = vld [vmem:[%s27578_s2 + $0x80] sm:$0xff]  }
 0x3c6   : > { %v8750_v41 = vld [vmem:[#allocation2 + $0x3c] sm:$0xe]  ;;  %v8843_v13 = vrot.slane %v7990_v6, 5  ;;  %v21374_v40 = vld [vmem:[%s27578_s2 + $0x130] sm:$0xff]   ;;  %v17738_v8 = vrot.slane %v8749_v59, 9  ;;  %v8837_v52 = vsel %vm22224_vm7, %v8835_v29, %v8836_v37  ;;  %v8847_v19 = vrot.slane %v7992_v7, 5 }
 0x3c7   : > { %v17739_v0 = vrot.slane %v8750_v41, 9  ;;  %v24582_v6 = vld [vmem:[#allocation2 + $0x40] sm:$0xf]  ;;  %v7993_v29 = vld [vmem:[#allocation2 + $0x50] sm:$0x1]  ;;  %v21386_v41 = vld [vmem:[%s27578_s2 + $0x88] sm:$0xff]  }
 0x3c8   : > { %19692 = vmatpush3.bf16.msra.mxu0 %v21371_v43  ;;  %v21378_v43 = vld [vmem:[%s27578_s2 + $0x78] sm:$0xff]   ;;  %v8834_v42 = vsel %vm22224_vm7, %v17738_v8, %v8833_v54  ;;  %v21566_v59 = vld [vmem:[#allocation2 + $0x48] sm:$0xf]  ;;  %v8752_v8 = vld [vmem:[#allocation2 + $0x54] sm:$0xe] }
 0x3c9   : > { %19693 = vmatprep.subr.bf16.mxu0 %v21373_v62  ;;  %v8841_v48 = vsel %vm22224_vm7, %v17739_v0, %v8840_v21  ;;  %v21379_v21 = vld [vmem:[%s27578_s2 + $0x138] sm:$0xff]   ;;  %v8751_v7 = vld [vmem:[#allocation2 + $0x48] sm:$0xe] }
 0x3ca   : > { %19834 = vmatmul.mubr.msk.bf16.vlgmr.msra.gmra.mrb[20].mxu1 %vm6541_vm10, %v17764_v23  ;;  %v21563_v23 = vld [vmem:[#allocation2 + $0x58] sm:$0xf] }
 0x3cb   : > { %19662 = vmatmul.mubr.msk.bf16.gmra.mrb[36].mxu0 %vm6541_vm10, %v17534_v31  ;;  %19837 = vmatprep.mubr.msk.bf16.mxu1 %vm6541_vm10, %v17765_v10  ;;  %v8854_v5 = vrot.slane %v21563_v23, 5  ;;  %v17766_v31 = vcombine.low %v8834_v42, %v8837_v52  ;;  %v21564_v10 = vld [vmem:[#allocation2 + $0x3c] sm:$0xf]  ;;  %v21569_v23 = vld [vmem:[#allocation2 + $0x64] sm:$0xf] }
 0x3cc   : > { %19866 = vmatpush3.bf16.msra.mxu1 %v24406_v38  ;;  %19665 = vmatprep.mubr.msk.bf16.mxu0 %vm6541_vm10, %v17535_v61  ;;  %v8844_v38 = vsel %vm22224_vm7, %v8842_v45, %v8843_v13  ;;  %v24588_v45 = vld [vmem:[#allocation2 + $0x4c] sm:$0xf]  ;;  %v8850_v13 = vrot.slane %v7993_v29, 5  ;;  %v21568_v52 = vld [vmem:[#allocation2 + $0x5c] sm:$0x1]  ;;  %v8861_v42 = vrot.slane %v21569_v23, 5 }
 0x3cd   : > { %19867 = vmatprep.subr.bf16.mxu1 %v21372_v14  ;;  %19694 = vmatpush3.bf16.msra.mxu0 %v21373_v62  ;;  %v17536_v62 = vcombine.low %v21564_v10, %v24582_v6  ;;  %v17767_v61 = vcombine.low %v8841_v48, %v8844_v38  ;;  %v17537_v54 = vcombine.low %v21566_v59, %v24588_v45  ;;  %v8856_v37 = vrot.slane %v8854_v5, 4  ;;  %v21570_v59 = vld [vmem:[#allocation2 + $0x54] sm:$0xf] }
 0x3ce   : > { %19695 = vmatprep.subr.bf16.mxu0 %v21378_v43  ;;  %v8857_v0 = vrot.slane %v21568_v52, 5  ;;  %v17741_v48 = vrot.slane %v8752_v8, 9  ;;  %v21574_v52 = vld [vmem:[#allocation2 + $0x68] sm:$0x1] }
 0x3d0   : > { %19868 = vmatpush3.bf16.msra.mxu1 %v21372_v14  ;;  %v8849_v14 = vrot.slane %v8847_v19, 4  ;;  %v8858_v10 = vsel %vm22224_vm7, %v8856_v37, %v8857_v0  ;;  %v24621_v37 = vld [vmem:[#allocation2 + $0x64] sm:$0xf]  ;;  %v8864_v0 = vrot.slane %v21574_v52, 5 }
 0x3d1   : > { %19869 = vmatprep.subr.bf16.mxu1 %v21374_v40  ;;  %19696 = vmatpush3.bf16.msra.mxu0 %v21378_v43  ;;  %v17740_v43 = vrot.slane %v8751_v7, 9  ;;  %v21572_v7 = vld [vmem:[#allocation2 + $0x60] sm:$0xf] }
 0x3d2   : > { %19838 = vmatmul.mubr.msk.bf16.gmra.mrb[24].mxu1 %vm6541_vm10, %v17766_v31  ;;  %19697 = vmatprep.subr.bf16.mxu0 %v21382_v50  ;;  %v8851_v38 = vsel %vm22224_vm7, %v8849_v14, %v8850_v13  ;;  %v21383_v31 = vld [vmem:[%s27578_s2 + $0x140] sm:$0xff]   ;;  %v8863_v13 = vrot.slane %v8861_v42, 4 }
 0x3d3   : > { %19666 = vmatmul.mubr.msk.bf16.gmra.mrb[40].mxu0 %vm6541_vm10, %v17536_v62  ;;  %19841 = vmatprep.mubr.msk.bf16.mxu1 %vm6541_vm10, %v17767_v61  ;;  %v8868_v62 = vrot.slane %v24308_v57, 5  ;;  %v8855_v61 = vsel %vm22224_vm7, %v17741_v48, %v8854_v5  ;;  %v21387_v5 = vld [vmem:[%s27578_s2 + $0x148] sm:$0xff]   ;;  %v8875_v48 = vrot.slane %v24339_v16, 5 }
 0x3d4   : > { %19669 = vmatprep.mubr.msk.bf16.mxu0 %vm6541_vm10, %v17537_v54  ;;  %19870 = vmatpush3.bf16.msra.mxu1 %v21374_v40  ;;  %v8848_v40 = vsel %vm22224_vm7, %v17740_v43, %v8847_v19  ;;  %v24613_v54 = vld [vmem:[#allocation2 + $0x58] sm:$0xf]  ;;  %v17769_v57 = vcombine.low %v8855_v61, %v8858_v10  ;;  %v17539_v19 = vcombine.low %v21572_v7, %v24621_v37  ;;  %v8754_v43 = vld [vmem:[#allocation2 + $0x6c] sm:$0xe]  ;;  %v24639_v10 = vld [vmem:[%s27578_s2 + $0x150] sm:$0xff]  }
 0x3d5   : > { %19871 = vmatprep.subr.bf16.mxu1 %v21379_v21  ;;  %19698 = vmatpush3.bf16.msra.mxu0 %v21382_v50  ;;  %v17768_v29 = vcombine.low %v8848_v40, %v8851_v38  ;;  %v17538_v14 = vcombine.low %v21570_v59, %v24613_v54  ;;  %v24619_v50 = vld [vmem:[%s27578_s2 + $0x90] sm:$0xff]   ;;  %v8870_v8 = vrot.slane %v8868_v62, 4  ;;  %v8871_v38 = vrot.slane %v24313_v12, 5  ;;  %v21575_v16 = vld [vmem:[#allocation2 + $0x6c] sm:$0xf] }
 0x3d6   : > { %19699 = vmatprep.subr.bf16.mxu0 %v21386_v41  ;;  %v17743_v40 = vrot.slane %v8754_v43, 9  ;;  %v8882_v12 = vrot.slane %v24369_v30, 5  ;;  %v8755_v30 = vld [vmem:[#allocation2 + $0x78] sm:$0xe]  ;;  %v8896_v43 = vrot.slane %v24432_v15, 5 }
 0x3d7   : > { %v8757_v15 = vld [vmem:[#allocation2 + $0x90] sm:$0xe] }
 0x3d8   : > { %19872 = vmatpush3.bf16.msra.mxu1 %v21379_v21  ;;  %v8753_v21 = vld [vmem:[#allocation2 + $0x60] sm:$0xe]  ;;  %v8869_v59 = vsel %vm22224_vm7, %v17743_v40, %v8868_v62  ;;  %v8878_v62 = vrot.slane %v24343_v32, 5 }
 0x3d9   : > { %19873 = vmatprep.subr.bf16.mxu1 %v21383_v31  ;;  %19700 = vmatpush3.bf16.msra.mxu0 %v21386_v41  ;;  %v17742_v23 = vrot.slane %v8753_v21, 9  ;;  %v8865_v41 = vsel %vm22224_vm7, %v8863_v13, %v8864_v0  ;;  %v8877_v13 = vrot.slane %v8875_v48, 4  ;;  %v8885_v21 = vrot.slane %v24380_v60, 5 }
 0x3da   : > { %19842 = vmatmul.mubr.msk.bf16.gmra.mrb[28].mxu1 %vm6541_vm10, %v17768_v29  ;;  %19733 = vmatprep.subr.bf16.mxu0 %v24619_v50  ;;  %v8872_v29 = vsel %vm22224_vm7, %v8870_v8, %v8871_v38  ;;  %v17744_v8 = vrot.slane %v8755_v30, 9  ;;  %v17542_v60 = vcombine.low %v24348_v27, %v24354_v33  ;;  %v8899_v27 = vrot.slane %v24439_v56, 5  ;;  %v21577_v30 = vld [vmem:[#allocation2 + $0x8] sm:$0x1] }
 0x3db   : > { %19670 = vmatmul.mubr.msk.bf16.gmra.mrb[44].mxu0 %vm6541_vm10, %v17538_v14  ;;  %19845 = vmatprep.mubr.msk.bf16.mxu1 %vm6541_vm10, %v17769_v57  ;;  %v24648_v14 = vld [vmem:[#allocation2 + $0x70] sm:$0xf]  ;;  %v17771_v7 = vcombine.low %v8869_v59, %v8872_v29  ;;  %v8758_v29 = vld [vmem:[#allocation2 + $0x9c] sm:$0xe]  ;;  %v7126_v33 = vrot.slane %v24514_v25, 5  ;;  %v17544_v25 = vcombine.low %v24412_v2, %v24416_v1  ;;  %v8906_v2 = vrot.slane %v24459_v63, 5 }
 0x3dc   : > { %19673 = vmatprep.mubr.msk.bf16.mxu0 %vm6541_vm10, %v17539_v19  ;;  %19874 = vmatpush3.bf16.msra.mxu1 %v21383_v31  ;;  %v8862_v31 = vsel %vm22224_vm7, %v17742_v23, %v8861_v42  ;;  %v17540_v57 = vcombine.low %v21575_v16, %v24648_v14  ;;  %v17541_v19 = vcombine.low %v24315_v44, %v24319_v9  ;;  %v8884_v42 = vrot.slane %v8882_v12, 4  ;;  %v7076_v59 = vld [vmem:[#allocation2] sm:$0xe]  ;;  %v8760_v1 = vld [vmem:[#allocation2 + $0xb4] sm:$0xe] }
 0x3dd   : > { %19875 = vmatprep.subr.bf16.mxu1 %v21387_v5  ;;  %v17770_v61 = vcombine.low %v8862_v31, %v8865_v41  ;;  %v8879_v44 = vsel %vm22224_vm7, %v8877_v13, %v8878_v62  ;;  %v8889_v9 = vrot.slane %v24401_v11, 5  ;;  %v8876_v38 = vsel %vm22224_vm7, %v17744_v8, %v8875_v48 }
 0x3de   : > { %v8886_v0 = vsel %vm22224_vm7, %v8884_v42, %v8885_v21  ;;  %v17772_v23 = vcombine.low %v8876_v38, %v8879_v44  ;;  %v17543_v11 = vcombine.low %v24375_v34, %v24385_v3  ;;  %v8898_v31 = vrot.slane %v8896_v43, 4 }
 0x3df   : > { %v8891_v40 = vrot.slane %v8889_v9, 4  ;;  %v8892_v48 = vrot.slane %v24410_v53, 5  ;;  %v17747_v3 = vrot.slane %v8758_v29, 9  ;;  %v7128_v13 = vrot.slane %v7126_v33, 4 }
 0x3e0   : > { %19876 = vmatpush3.bf16.msra.mxu1 %v21387_v5  ;;  %v8756_v5 = vld [vmem:[#allocation2 + $0x84] sm:$0xe]  ;;  %v8900_v16 = vsel %vm22224_vm7, %v8898_v31, %v8899_v27  ;;  %v17545_v62 = vcombine.low %v24437_v24, %v24445_v20  ;;  %v8913_v8 = vrot.slane %v24487_v39, 5  ;;  %v7140_v39 = vrot.slane %v24533_v51, 5  ;;  %v7077_v51 = vld [vmem:[#allocation2 + $0xc] sm:$0xe] }
 0x3e1   : > { %19909 = vmatprep.subr.bf16.mxu1 %v24639_v10  ;;  %v17745_v52 = vrot.slane %v8756_v5, 9  ;;  %v8893_v34 = vsel %vm22224_vm7, %v8891_v40, %v8892_v48  ;;  %v8897_v56 = vsel %vm22224_vm7, %v17747_v3, %v8896_v43  ;;  %v17749_v43 = vrot.slane %v8760_v1, 9  ;;  %v21578_v31 = vld [vmem:[#allocation2 + $0x14] sm:$0x1]  ;;  %v7078_v27 = vld [vmem:[#allocation2 + $0x18] sm:$0xe] }
 0x3e2   : > { %19846 = vmatmul.mubr.msk.bf16.gmra.mrb[0].mxu1 %vm6541_vm10, %v17770_v61  ;;  %v8903_v61 = vrot.slane %v24457_v17, 5  ;;  %v7129_v17 = vrot.slane %v21577_v30, 5  ;;  %v17775_v42 = vcombine.low %v8897_v56, %v8900_v16  ;;  %v8920_v29 = vrot.slane %v24499_v36, 5  ;;  %v21396_v30 = vld [vmem:[%s27578_s2 + $0x98] sm:$0xff]  }
 0x3e3   : > { %19674 = vmatmul.mubr.msk.bf16.gmra.mrb[48].mxu0 %vm6541_vm10, %v17540_v57  ;;  %19849 = vmatprep.mubr.msk.bf16.mxu1 %vm6541_vm10, %v17771_v7  ;;  %v8883_v32 = vsel %vm22224_vm7, %v17745_v52, %v8882_v12  ;;  %v17746_v12 = vrot.slane %v8757_v15, 9  ;;  %v8910_v57 = vrot.slane %v24484_v18, 5  ;;  %v8759_v18 = vld [vmem:[#allocation2 + $0xa8] sm:$0xe]  ;;  %v8917_v52 = vrot.slane %v24493_v35, 5 }
 0x3e4   : > { %19677 = vmatprep.mubr.msk.bf16.mxu0 %vm6541_vm10, %v17541_v19  ;;  %v17773_v41 = vcombine.low %v8883_v32, %v8886_v0  ;;  %v17569_v19 = vrot.slane %v7076_v59, 9  ;;  %v8905_v5 = vrot.slane %v8903_v61, 4  ;;  %v7130_v24 = vsel %vm22224_vm7, %v7128_v13, %v7129_v17  ;;  %v7079_v17 = vld [vmem:[#allocation2 + $0x24] sm:$0xe] }
 0x3e5   : > { %v8890_v53 = vsel %vm22224_vm7, %v17746_v12, %v8889_v9  ;;  %v8912_v21 = vrot.slane %v8910_v57, 4  ;;  %v17748_v20 = vrot.slane %v8759_v18, 9  ;;  %v7133_v0 = vrot.slane %v24527_v58, 5 }
 0x3e6   : > { %v17774_v7 = vcombine.low %v8890_v53, %v8893_v34  ;;  %v7127_v44 = vsel %vm22224_vm7, %v17569_v19, %v7126_v33  ;;  %v8907_v9 = vsel %vm22224_vm7, %v8905_v5, %v8906_v2  ;;  %v8919_v58 = vrot.slane %v8917_v52, 4  ;;  %v21389_v19 = vld [vmem:[#allocation2 + $0x18] sm:$0xff]   ;;  %v7080_v5 = vld [vmem:[#allocation2 + $0x30] sm:$0xe] }
 0x3e7   : > { %v8914_v63 = vsel %vm22224_vm7, %v8912_v21, %v8913_v8  ;;  %v8904_v38 = vsel %vm22224_vm7, %v17748_v20, %v8903_v61  ;;  %v7135_v40 = vrot.slane %v7133_v0, 4  ;;  %v7142_v15 = vrot.slane %v7140_v39, 4  ;;  %v21581_v2 = vld [vmem:[#allocation2 + $0x38] sm:$0x1] }
 0x3e8   : > { %v17776_v32 = vcombine.low %v8904_v38, %v8907_v9  ;;  %v7136_v48 = vrot.slane %v21578_v31, 5  ;;  %v8921_v12 = vsel %vm22224_vm7, %v8919_v58, %v8920_v29  ;;  %v17570_v34 = vrot.slane %v7077_v51, 9  ;;  %v7081_v38 = vld [vmem:[#allocation2 + $0x3c] sm:$0xe] }
 0x3e9   : > { %v7147_v61 = vrot.slane %v24554_v49, 5  ;;  %v17571_v59 = vrot.slane %v7078_v27, 9  ;;  %v7154_v53 = vrot.slane %v24562_v22, 5  ;;  %v21580_v22 = vld [vmem:[#allocation2 + $0x2c] sm:$0x1]  ;;  %v17572_v18 = vrot.slane %v7079_v17, 9 }
 0x3ea   : > { %19850 = vmatmul.mubr.msk.bf16.gmra.mrb[4].mxu1 %vm6541_vm10, %v17772_v23  ;;  %v17597_v23 = vcombine.low %v7127_v44, %v7130_v24  ;;  %v7137_v3 = vsel %vm22224_vm7, %v7135_v40, %v7136_v48  ;;  %v7157_v1 = vrot.slane %v21581_v2, 5  ;;  %v7161_v8 = vrot.slane %v24582_v6, 5  ;;  %v21400_v44 = vld [vmem:[%s27578_s2 + $0xa0] sm:$0xff]   ;;  %v21393_v6 = vld [vmem:[#allocation2 + $0x30] sm:$0xff]  }
 0x3eb   : > { %19678 = vmatmul.mubr.msk.bf16.gmra.mrb[52].mxu0 %vm6541_vm10, %v17542_v60  ;;  %19853 = vmatprep.mubr.msk.bf16.mxu1 %vm6541_vm10, %v17773_v41  ;;  %v8911_v60 = vsel %vm22224_vm7, %v17749_v43, %v8910_v57  ;;  %v17546_v41 = vcombine.low %v24463_v4, %v24465_v47  ;;  %v21579_v47 = vld [vmem:[#allocation2 + $0x20] sm:$0x1]  ;;  %v7134_v57 = vsel %vm22224_vm7, %v17570_v34, %v7133_v0  ;;  %v7149_v49 = vrot.slane %v7147_v61, 4  ;;  %v21397_v43 = vld [vmem:[%s27578_s2 + $0x158] sm:$0xff]  }
 0x3ec   : > { %19681 = vmatprep.mubr.msk.bf16.mxu0 %vm6541_vm10, %v17543_v11  ;;  %v17777_v35 = vcombine.low %v8911_v60, %v8914_v63  ;;  %v8761_v11 = vld [vmem:[#allocation2 + $0xc0] sm:$0xe]  ;;  %v7143_v33 = vrot.slane %v21579_v47, 5  ;;  %v7168_v24 = vrot.slane %v24588_v45, 5  ;;  %v7148_v20 = vsel %vm22224_vm7, %v17572_v18, %v7147_v61  ;;  %v21582_v60 = vld [vmem:[#allocation2 + $0x44] sm:$0x1] }
 0x3ed   : > { %v17750_v4 = vrot.slane %v8761_v11, 9  ;;  %v21583_v11 = vld [vmem:[#allocation2 + $0x50] sm:$0x1]  ;;  %v21401_v40 = vld [vmem:[%s27578_s2 + $0x160] sm:$0xff]   ;;  %v17574_v51 = vrot.slane %v7081_v38, 9  ;;  %v7175_v29 = vrot.slane %v24613_v54, 5 }
 0x3ee   : > { %v7144_v36 = vsel %vm22224_vm7, %v7142_v15, %v7143_v33  ;;  %v7171_v58 = vrot.slane %v21583_v11, 5  ;;  %v7182_v48 = vrot.slane %v24621_v37, 5  ;;  %v21410_v54 = vld [vmem:[%s27578_s2 + $0xb0] sm:$0xff]   ;;  %v21406_v37 = vld [vmem:[%s27578_s2 + $0x168] sm:$0xff]  }
 0x3ef   : > { %v8918_v16 = vsel %vm22224_vm7, %v17750_v4, %v8917_v52  ;;  %v21391_v52 = vld [vmem:[#allocation2 + $0x24] sm:$0xff]   ;;  %v7162_v27 = vsel %vm22224_vm7, %v17574_v51, %v7161_v8  ;;  %v21394_v4 = vld [vmem:[#allocation2 + $0x3c] sm:$0xff]   ;;  %v7083_v61 = vld [vmem:[#allocation2 + $0x54] sm:$0xe] }
 0x3f0   : > { %v17778_v56 = vcombine.low %v8918_v16, %v8921_v12  ;;  %v21395_v12 = vld [vmem:[#allocation2 + $0x48] sm:$0xff]   ;;  %v21414_v16 = vld [vmem:[%s27578_s2 + $0xb8] sm:$0xff]  }
 0x3f1   : > { %v21398_v2 = vld [vmem:[#allocation2 + $0x54] sm:$0xff]   ;;  %v21592_v11 = vld [vmem:[#allocation2 + $0x8c] sm:$0x1] }
 0x3f2   : > { %19854 = vmatmul.mubr.msk.bf16.gmra.mrb[8].mxu1 %vm6541_vm10, %v17774_v7  ;;  %v7141_v7 = vsel %vm22224_vm7, %v17571_v59, %v7140_v39  ;;  %v7163_v39 = vrot.slane %v7161_v8, 4  ;;  %v7184_v59 = vrot.slane %v7182_v48, 4 }
 0x3f3   : > { %19682 = vmatmul.mubr.msk.bf16.gmra.mrb[56].mxu0 %vm6541_vm10, %v17544_v25  ;;  %19857 = vmatprep.mubr.msk.bf16.mxu1 %vm6541_vm10, %v17775_v42  ;;  %v17598_v25 = vcombine.low %v7134_v57, %v7137_v3  ;;  %v17599_v13 = vcombine.low %v7141_v7, %v7144_v36  ;;  %v7150_v42 = vrot.slane %v21580_v22, 5  ;;  %v7177_v3 = vrot.slane %v7175_v29, 4  ;;  %v21584_v57 = vld [vmem:[#allocation2 + $0x5c] sm:$0x1]  ;;  %v21411_v22 = vld [vmem:[%s27578_s2 + $0x170] sm:$0xff]  }
 0x3f4   : > { %19685 = vmatprep.mubr.msk.bf16.mxu0 %vm6541_vm10, %v17545_v62  ;;  %v7156_v62 = vrot.slane %v7154_v53, 4  ;;  %v7189_v36 = vrot.slane %v24648_v14, 5 }
 0x3f5   : > { %v7151_v21 = vsel %vm22224_vm7, %v7149_v49, %v7150_v42  ;;  %v17576_v49 = vrot.slane %v7083_v61, 9 }
 0x3f6   : > { %v7158_v9 = vsel %vm22224_vm7, %v7156_v62, %v7157_v1  ;;  %v17600_v0 = vcombine.low %v7148_v20, %v7151_v21  ;;  %v7085_v21 = vld [vmem:[#allocation2 + $0x6c] sm:$0xe]  ;;  %v7086_v20 = vld [vmem:[#allocation2 + $0x78] sm:$0xe] }
 0x3f7   : > { %v7176_v18 = vsel %vm22224_vm7, %v17576_v49, %v7175_v29  ;;  %v21595_v49 = vld [vmem:[#allocation2 + $0xa4] sm:$0x1] }
 0x3fa   : > { %19858 = vmatmul.mubr.msk.bf16.gmra.mrb[12].mxu1 %vm6541_vm10, %v17776_v32  ;;  %v21404_v32 = vld [vmem:[%s27578_s2 + $0xa8] sm:$0xff]  }
 0x3fb   : > { %19686 = vmatmul.mubr.msk.bf16.gmra.mrb[60].mxu0 %vm6541_vm10, %v17546_v41  ;;  %19861 = vmatprep.mubr.msk.bf16.mxu1 %vm6541_vm10, %v17777_v35  ;;  %v7164_v41 = vrot.slane %v21582_v60, 5  ;;  %v7082_v35 = vld [vmem:[#allocation2 + $0x48] sm:$0xe]  ;;  %v21591_v60 = vld [vmem:[#allocation2 + $0xa0] sm:$0xf] }
 0x3fc   : > { %19701 = vmatprep.mubr.msk.bf16.mxu0 %vm6541_vm10, %v17597_v23  ;;  %v7170_v23 = vrot.slane %v7168_v24, 4 }
 0x3fd   : > { %v7165_v15 = vsel %vm22224_vm7, %v7163_v39, %v7164_v41  ;;  %v21415_v39 = vld [vmem:[%s27578_s2 + $0x178] sm:$0xff]   ;;  %v7217_v41 = vrot.slane %v21591_v60, 5  ;;  %v9669_v60 = vld [vmem:[#allocation2 + $0x30] sm:$0xf] }
 0x3fe   : > { %v7172_v31 = vsel %vm22224_vm7, %v7170_v23, %v7171_v58  ;;  %v17602_v47 = vcombine.low %v7162_v27, %v7165_v15  ;;  %v21590_v23 = vld [vmem:[#allocation2 + $0x80] sm:$0x1]  ;;  %v7206_v58 = vrot.slane %v21592_v11, 5 }
 0x402   : > { %19862 = vmatmul.mubr.msk.bf16.gmra.mrb[16].mxu1 %vm6541_vm10, %v17778_v56  ;;  %v7084_v56 = vld [vmem:[#allocation2 + $0x60] sm:$0xe] }
 0x403   : > { %19702 = vmatmul.mubr.msk.bf16.vlgmr.msra.gmra.mrb[32].mxu0 %vm6541_vm10, %v17598_v25  ;;  %19877 = vmatprep.mubr.msk.bf16.mxu1 %vm6541_vm10, %v21389_v19  ;;  %v21585_v25 = vld [vmem:[#allocation2 + $0x68] sm:$0x1]  ;;  %v21586_v19 = vld [vmem:[#allocation2 + $0x7c] sm:$0xf]  ;;  %v17577_v42 = vrot.slane %v7084_v56, 9 }
 0x404   : > { %19705 = vmatprep.mubr.msk.bf16.mxu0 %vm6541_vm10, %v17599_v13  ;;  %19734 = vmatpush3.bf16.msra.mxu0 %v24619_v50  ;;  %v17573_v50 = vrot.slane %v7080_v5, 9  ;;  %v7185_v7 = vrot.slane %v21585_v25, 5  ;;  %v7196_v13 = vrot.slane %v21586_v19, 5  ;;  %v7191_v5 = vrot.slane %v7189_v36, 4  ;;  %v21402_v25 = vld [vmem:[#allocation2 + $0x6c] sm:$0xff]  }
 0x405   : > { %19735 = vmatprep.subr.bf16.mxu0 %v21396_v30  ;;  %v7183_v8 = vsel %vm22224_vm7, %v17577_v42, %v7182_v48  ;;  %v24825_v48 = vld [vmem:[%s27578_s2 + $0xc0] sm:$0xff]  }
 0x406   : > { %v7155_v63 = vsel %vm22224_vm7, %v17573_v50, %v7154_v53  ;;  %v7178_v53 = vrot.slane %v21584_v57, 5  ;;  %v7186_v62 = vsel %vm22224_vm7, %v7184_v59, %v7185_v7  ;;  %v7198_v50 = vrot.slane %v7196_v13, 4  ;;  %v9663_v57 = vld [vmem:[#allocation2 + $0x18] sm:$0xf] }
 0x407   : > { %v17601_v45 = vcombine.low %v7155_v63, %v7158_v9  ;;  %v21399_v9 = vld [vmem:[#allocation2 + $0x60] sm:$0xff]   ;;  %v7219_v59 = vrot.slane %v7217_v41, 4  ;;  %v21403_v7 = vld [vmem:[#allocation2 + $0x78] sm:$0xff]  }
 0x408   : > { %19736 = vmatpush3.bf16.msra.mxu0 %v21396_v30  ;;  %v7179_v14 = vsel %vm22224_vm7, %v7177_v3, %v7178_v53  ;;  %v21587_v30 = vld [vmem:[#allocation2 + $0x88] sm:$0xf] }
 0x409   : > { %19737 = vmatprep.subr.bf16.mxu0 %v21400_v44  ;;  %v7203_v17 = vrot.slane %v21587_v30, 5  ;;  %v17604_v1 = vcombine.low %v7176_v18, %v7179_v14  ;;  %v7220_v14 = vrot.slane %v21595_v49, 5  ;;  %v21597_v18 = vld [vmem:[#allocation2 + $0xb0] sm:$0x1] }
 0x40a   : > { %19878 = vmatmul.mubr.msk.bf16.vlgmr.msra.gmra.mrb[20].mxu1 %vm6541_vm10, %v21391_v52  ;;  %v17605_v52 = vcombine.low %v7183_v8, %v7186_v62  ;;  %v21596_v62 = vld [vmem:[#allocation2 + $0xac] sm:$0xf] }
 0x40b   : > { %19706 = vmatmul.mubr.msk.bf16.gmra.mrb[36].mxu0 %vm6541_vm10, %v17600_v0  ;;  %19881 = vmatprep.mubr.msk.bf16.mxu1 %vm6541_vm10, %v21393_v6  ;;  %v7087_v0 = vld [vmem:[#allocation2 + $0x84] sm:$0xe]  ;;  %v21589_v6 = vld [vmem:[#allocation2 + $0x94] sm:$0xf]  ;;  %v24864_v8 = vsel %vm22224_vm7, %v7219_v59, %v7220_v14 }
 0x40c   : > { %19910 = vmatpush3.bf16.msra.mxu1 %v24639_v10  ;;  %19709 = vmatprep.mubr.msk.bf16.mxu0 %vm6541_vm10, %v17601_v45  ;;  %v17575_v10 = vrot.slane %v7082_v35, 9  ;;  %v7210_v63 = vrot.slane %v21589_v6, 5  ;;  %v17578_v45 = vrot.slane %v7085_v21, 9  ;;  %v17579_v35 = vrot.slane %v7086_v20, 9 }
 0x40d   : > { %19911 = vmatprep.subr.bf16.mxu1 %v21397_v43  ;;  %19738 = vmatpush3.bf16.msra.mxu0 %v21400_v44  ;;  %v21588_v44 = vld [vmem:[#allocation2 + $0x74] sm:$0x1]  ;;  %v17580_v29 = vrot.slane %v7087_v0, 9  ;;  %v7227_v21 = vrot.slane %v21597_v18, 5  ;;  %v9712_v20 = vshrl.u32 %v9663_v57, 16 }
 0x40e   : > { %19739 = vmatprep.subr.bf16.mxu0 %v21404_v32  ;;  %v7169_v33 = vsel %vm22224_vm7, %v17575_v10, %v7168_v24  ;;  %v7192_v24 = vrot.slane %v21588_v44, 5  ;;  %v7190_v51 = vsel %vm22224_vm7, %v17578_v45, %v7189_v36  ;;  %v7089_v10 = vld [vmem:[#allocation2 + $0x9c] sm:$0xe]  ;;  %v21598_v44 = vld [vmem:[#allocation2 + $0xb8] sm:$0xf] }
 0x40f   : > { %v17603_v34 = vcombine.low %v7169_v33, %v7172_v31  ;;  %v24820_v31 = vld [vmem:[#allocation2 + $0x1c] sm:$0xf]  ;;  %v7212_v33 = vrot.slane %v7210_v63, 4 }
 0x410   : > { %19912 = vmatpush3.bf16.msra.mxu1 %v21397_v43  ;;  %v7205_v43 = vrot.slane %v7203_v17, 4  ;;  %v7193_v38 = vsel %vm22224_vm7, %v7191_v5, %v7192_v24  ;;  %v9721_v53 = vshll.u32 %v24820_v31, 16  ;;  %v9725_v56 = vshrl.u32 %v24820_v31, 16 }
 0x411   : > { %19913 = vmatprep.subr.bf16.mxu1 %v21401_v40  ;;  %19740 = vmatpush3.bf16.msra.mxu0 %v21404_v32  ;;  %v7199_v32 = vrot.slane %v21590_v23, 5  ;;  %v17606_v27 = vcombine.low %v7190_v51, %v7193_v38  ;;  %v7224_v5 = vrot.slane %v21596_v62, 5  ;;  %v7231_v24 = vrot.slane %v21598_v44, 5  ;;  %v9672_v51 = vld [vmem:[#allocation2 + $0x3c] sm:$0xf] }
 0x412   : > { %19882 = vmatmul.mubr.msk.bf16.gmra.mrb[24].mxu1 %vm6541_vm10, %v21394_v4  ;;  %19741 = vmatprep.subr.bf16.mxu0 %v21410_v54  ;;  %v7197_v4 = vsel %vm22224_vm7, %v17579_v35, %v7196_v13  ;;  %v9727_v0 = vrot.slane %v9725_v56, 4  ;;  %v24909_v62 = vld [vmem:[#allocation2 + $0x38] sm:$0x1] }
 0x413   : > { %19710 = vmatmul.mubr.msk.bf16.gmra.mrb[40].mxu0 %vm6541_vm10, %v17602_v47  ;;  %19885 = vmatprep.mubr.msk.bf16.mxu1 %vm6541_vm10, %v21395_v12  ;;  %v7200_v15 = vsel %vm22224_vm7, %v7198_v50, %v7199_v32  ;;  %v24832_v47 = vsel %vm22224_vm7, %v7205_v43, %v7206_v58  ;;  %v24837_v12 = vld [vmem:[%s27578_s2 + $0x180] sm:$0xff]   ;;  %v9715_v50 = vshll.u32 %v9663_v57, 16  ;;  %v7226_v58 = vrot.slane %v7224_v5, 4 }
 0x414   : > { %19713 = vmatprep.mubr.msk.bf16.mxu0 %vm6541_vm10, %v17603_v34  ;;  %19914 = vmatpush3.bf16.msra.mxu1 %v21401_v40  ;;  %v7088_v40 = vld [vmem:[#allocation2 + $0x90] sm:$0xe]  ;;  %v24841_v34 = vsel %vm22224_vm7, %v17580_v29, %v7203_v17  ;;  %v17607_v36 = vcombine.low %v7197_v4, %v7200_v15  ;;  %v9666_v17 = vld [vmem:[#allocation2 + $0x24] sm:$0xf]  ;;  %v7233_v29 = vrot.slane %v7231_v24, 4  ;;  %v9787_v57 = vshll.u32 %v9672_v51, 16 }
 0x415   : > { %19915 = vmatprep.subr.bf16.mxu1 %v21406_v37  ;;  %19742 = vmatpush3.bf16.msra.mxu0 %v21410_v54  ;;  %v7090_v54 = vld [vmem:[#allocation2 + $0xa8] sm:$0xe]  ;;  %v17581_v3 = vrot.slane %v7088_v40, 9  ;;  %v17608_v19 = vcombine.low %v24841_v34, %v24832_v47  ;;  %v9736_v43 = vshrl.u32 %v9666_v17, 16  ;;  %v9739_v6 = vshll.u32 %v9666_v17, 16 }
 0x416   : > { %19743 = vmatprep.subr.bf16.mxu0 %v21414_v16  ;;  %v17583_v30 = vrot.slane %v7090_v54, 9  ;;  %v9717_v40 = vrot.slane %v9715_v50, 5  ;;  %v21405_v15 = vld [vmem:[#allocation2 + $0x84] sm:$0xff]   ;;  %v9760_v34 = vshrl.u32 %v9669_v60, 16 }
 0x417   : > { %v24849_v13 = vsel %vm22224_vm7, %v17581_v3, %v7210_v63  ;;  %v9738_v4 = vrot.slane %v9736_v43, 4  ;;  %v9741_v47 = vrot.slane %v9739_v6, 5  ;;  %v9763_v3 = vshll.u32 %v9669_v60, 16 }
 0x418   : > { %19916 = vmatpush3.bf16.msra.mxu1 %v21406_v37  ;;  %v21594_v37 = vld [vmem:[#allocation2 + $0x98] sm:$0x1]  ;;  %v24878_v32 = vsel %vm22224_vm7, %v17583_v30, %v7224_v5  ;;  %v9675_v30 = vld [vmem:[#allocation2 + $0x48] sm:$0xf]  ;;  %v9762_v5 = vrot.slane %v9760_v34, 4 }
 0x419   : > { %19917 = vmatprep.subr.bf16.mxu1 %v21411_v22  ;;  %19744 = vmatpush3.bf16.msra.mxu0 %v21414_v16  ;;  %v7213_v61 = vrot.slane %v21594_v37, 5  ;;  %v17582_v16 = vrot.slane %v7089_v10, 9  ;;  %v24884_v10 = vld [vmem:[#allocation2 + $0x20] sm:$0x1]  ;;  %v9742_v17 = vor.u32 %v9741_v47, %v9738_v4  ;;  %v9765_v18 = vrot.slane %v9763_v3, 5 }
 0x41a   : > { %19886 = vmatmul.mubr.msk.bf16.gmra.mrb[28].mxu1 %vm6541_vm10, %v21398_v2  ;;  %19777 = vmatprep.subr.bf16.mxu0 %v24825_v48  ;;  %v7091_v2 = vld [vmem:[#allocation2 + $0xb4] sm:$0xe]  ;;  %v9673_v37 = vld [vmem:[#allocation2 + $0x40] sm:$0xf]  ;;  %v9811_v43 = vshll.u32 %v9675_v30, 16 }
 0x41b   : > { %19714 = vmatmul.mubr.msk.bf16.gmra.mrb[44].mxu0 %vm6541_vm10, %v17604_v1  ;;  %19889 = vmatprep.mubr.msk.bf16.mxu1 %vm6541_vm10, %v21399_v9  ;;  %v24855_v42 = vsel %vm22224_vm7, %v17582_v16, %v7217_v41  ;;  %v24857_v1 = vld [vmem:[#allocation2 + $0x28] sm:$0xf]  ;;  %v24866_v9 = vld [vmem:[#allocation2 + $0x34] sm:$0xf]  ;;  %v17584_v63 = vrot.slane %v7091_v2, 9  ;;  %v9784_v16 = vshrl.u32 %v9672_v51, 16 }
 0x41c   : > { %19717 = vmatprep.mubr.msk.bf16.mxu0 %vm6541_vm10, %v17605_v52  ;;  %19918 = vmatpush3.bf16.msra.mxu1 %v21411_v22  ;;  %v7214_v22 = vsel %vm22224_vm7, %v7212_v33, %v7213_v61  ;;  %v24870_v52 = vrot.slane %v9721_v53, 5  ;;  %v9745_v45 = vshll.u32 %v24857_v1, 16  ;;  %v9749_v38 = vshrl.u32 %v24857_v1, 16  ;;  %v21407_v61 = vld [vmem:[#allocation2 + $0x90] sm:$0xff]  }
 0x41d   : > { %19919 = vmatprep.subr.bf16.mxu1 %v21415_v39  ;;  %v17609_v23 = vcombine.low %v24849_v13, %v7214_v22  ;;  %v9769_v41 = vshll.u32 %v24866_v9, 16  ;;  %v9773_v35 = vshrl.u32 %v24866_v9, 16  ;;  %v17610_v11 = vcombine.low %v24855_v42, %v24864_v8  ;;  %v24925_v4 = vld [vmem:[#allocation2 + $0x50] sm:$0x1]  ;;  %v9678_v3 = vld [vmem:[#allocation2 + $0x54] sm:$0xf] }
 0x41e   : > { %v24887_v33 = vrot.slane %v9745_v45, 5  ;;  %v9751_v54 = vrot.slane %v9749_v38, 4  ;;  %v7228_v53 = vsel %vm22224_vm7, %v7226_v58, %v7227_v21  ;;  %v24897_v56 = vsel %vm22224_vm7, %v17584_v63, %v7231_v24  ;;  %v21408_v38 = vld [vmem:[#allocation2 + $0x9c] sm:$0xff]   ;;  %v24917_v58 = vld [vmem:[#allocation2 + $0x4c] sm:$0xf] }
 0x41f   : > { %v24889_v59 = vrot.slane %v9769_v41, 5  ;;  %v9793_v49 = vshll.u32 %v9673_v37, 16  ;;  %v9797_v14 = vshrl.u32 %v9673_v37, 16  ;;  %v9786_v44 = vrot.slane %v9784_v16, 4  ;;  %v24940_v8 = vld [vmem:[#allocation2 + $0x58] sm:$0xf] }
 0x420   : > { %19920 = vmatpush3.bf16.msra.mxu1 %v21415_v39  ;;  %v7234_v39 = vrot.slane %v24478_v46, 5  ;;  %v9714_v46 = vrot.slane %v9712_v20, 4  ;;  %v9752_v22 = vor.u32 %v9751_v54, %v24887_v33  ;;  %v9789_v24 = vrot.slane %v9787_v57, 5 }
 0x421   : > { %19953 = vmatprep.subr.bf16.mxu1 %v24837_v12  ;;  %v9779_v63 = vshll.u32 %v24909_v62, 16  ;;  %v9799_v45 = vrot.slane %v9797_v14, 4  ;;  %v9743_v60 = vrot.slane %v9742_v17, 4  ;;  %v9813_v34 = vrot.slane %v9811_v43, 5 }
 0x422   : > { %19890 = vmatmul.mubr.msk.bf16.gmra.mrb[0].mxu1 %vm6541_vm10, %v21402_v25  ;;  %v9718_v25 = vor.u32 %v9717_v40, %v9714_v46  ;;  %v24905_v13 = vsel %vm22224_vm7, %v7233_v29, %v7234_v39  ;;  %v24914_v39 = vrot.slane %v9793_v49, 5  ;;  %v9753_v41 = vrot.slane %v9752_v22, 4  ;;  %v21409_v46 = vld [vmem:[#allocation2 + $0xa8] sm:$0xff]   ;;  %v24923_v29 = vld [vmem:[#allocation2 + $0x44] sm:$0x1] }
 0x423   : > { %19718 = vmatmul.mubr.msk.bf16.gmra.mrb[48].mxu0 %vm6541_vm10, %v17606_v27  ;;  %19893 = vmatprep.mubr.msk.bf16.mxu1 %vm6541_vm10, %v21403_v7  ;;  %v9728_v27 = vor.u32 %v9727_v0, %v24870_v52  ;;  %v24899_v7 = vld [vmem:[#allocation2 + $0x2c] sm:$0x1]  ;;  %v9808_v0 = vshrl.u32 %v9675_v30, 16  ;;  %v17612_v40 = vcombine.low %v24897_v56, %v24905_v13  ;;  %v9781_v37 = vrot.slane %v9779_v63, 5 }
 0x424   : > { %19721 = vmatprep.mubr.msk.bf16.mxu0 %vm6541_vm10, %v17607_v36  ;;  %v9775_v36 = vrot.slane %v9773_v35, 4  ;;  %v9719_v20 = vrot.slane %v9718_v25, 4  ;;  %v9755_v50 = vshll.u32 %v24899_v7, 16  ;;  %v9766_v35 = vor.u32 %v9765_v18, %v9762_v5 }
 0x425   : > { %v9729_v21 = vrot.slane %v9728_v27, 4  ;;  %v9790_v27 = vor.u32 %v9789_v24, %v9786_v44  ;;  %v9810_v54 = vrot.slane %v9808_v0, 4  ;;  %v9821_v42 = vshrl.u32 %v24917_v58, 16  ;;  %v21413_v44 = vld [vmem:[#allocation2 + $0xc0] sm:$0xff]  }
 0x426   : > { %v9776_v2 = vor.u32 %v9775_v36, %v24889_v59  ;;  %v9757_v47 = vrot.slane %v9755_v50, 5  ;;  %v9817_v36 = vshll.u32 %v24917_v58, 16  ;;  %v9767_v57 = vrot.slane %v9766_v35, 4  ;;  %v9681_v50 = vld [vmem:[#allocation2 + $0x60] sm:$0xf] }
 0x427   : > { %v9791_v56 = vrot.slane %v9790_v27, 4  ;;  %v9803_v25 = vshll.u32 %v24923_v29, 16  ;;  %v9827_v13 = vshll.u32 %v24925_v4, 16  ;;  %v9814_v49 = vor.u32 %v9813_v34, %v9810_v54 }
 0x428   : > { %v9758_v16 = vsel %vm21867_vm4, %v9753_v41, %v9757_v47  ;;  %v9832_v14 = vshrl.u32 %v9678_v3, 16  ;;  %v9835_v30 = vshll.u32 %v9678_v3, 16  ;;  %v9841_v17 = vshll.u32 %v24940_v8, 16 }
 0x429   : > { %v24956_v5 = vrot.slane %v9817_v36, 5  ;;  %v9823_v18 = vrot.slane %v9821_v42, 4  ;;  %v9796_v63 = vsel %vm21867_vm4, %v9791_v56, %v24914_v39  ;;  %v9856_v27 = vshrl.u32 %v9681_v50, 16  ;;  %v9687_v56 = vld [vmem:[#allocation2 + $0x78] sm:$0xf] }
 0x42a   : > { %19894 = vmatmul.mubr.msk.bf16.gmra.mrb[4].mxu1 %vm6541_vm10, %v21405_v15  ;;  %v9777_v15 = vrot.slane %v9776_v2, 4  ;;  %v21412_v2 = vld [vmem:[#allocation2 + $0xb4] sm:$0xff]   ;;  %v24979_v41 = vrot.slane %v9832_v14, 4  ;;  %v24981_v35 = vrot.slane %v9835_v30, 5  ;;  %v9859_v47 = vshll.u32 %v9681_v50, 16 }
 0x42b   : > { %19722 = vmatmul.mubr.msk.bf16.gmra.mrb[52].mxu0 %vm6541_vm10, %v17608_v19  ;;  %19897 = vmatprep.mubr.msk.bf16.mxu1 %vm6541_vm10, %v21407_v61  ;;  %v9731_v19 = vshll.u32 %v24884_v10, 16  ;;  %v9800_v61 = vor.u32 %v9799_v45, %v24914_v39  ;;  %v9805_v45 = vrot.slane %v9803_v25, 5 }
 0x42c   : > { %19725 = vmatprep.mubr.msk.bf16.mxu0 %vm6541_vm10, %v17609_v23  ;;  %v17611_v23 = vcombine.low %v24878_v32, %v7228_v53  ;;  %v9724_v32 = vsel %vm21867_vm4, %v9719_v20, %v24870_v52  ;;  %v9748_v52 = vsel %vm21867_vm4, %v9743_v60, %v24887_v33  ;;  %v9782_v53 = vsel %vm21867_vm4, %v9777_v15, %v9781_v37  ;;  %v21416_v33 = vld [vmem:[#allocation2 + $0xc] sm:$0xff]  }
 0x42d   : > { %v9733_v6 = vrot.slane %v9731_v19, 5  ;;  %v24953_v19 = vld [vmem:[#allocation2 + $0x64] sm:$0xf]  ;;  %v9801_v22 = vrot.slane %v9800_v61, 4  ;;  %v24959_v24 = vcombine.low %v9748_v52, %v9758_v16  ;;  %v9772_v20 = vsel %vm21867_vm4, %v9767_v57, %v24889_v59  ;;  %v9684_v60 = vld [vmem:[#allocation2 + $0x6c] sm:$0xf] }
 0x42e   : > { %v9865_v0 = vshll.u32 %v24953_v19, 16  ;;  %v9869_v43 = vshrl.u32 %v24953_v19, 16  ;;  %v24977_v59 = vrot.slane %v9814_v49, 4  ;;  %v9824_v15 = vor.u32 %v9823_v18, %v24956_v5  ;;  %v24997_v61 = vld [vmem:[#allocation2 + $0x68] sm:$0x1]  ;;  %v21417_v16 = vld [vmem:[#allocation2 + $0xcc] sm:$0xff]  }
 0x42f   : > { %v9734_v51 = vsel %vm21867_vm4, %v9729_v21, %v9733_v6  ;;  %v9845_v21 = vshrl.u32 %v24940_v8, 16  ;;  %v24966_v6 = vcombine.low %v9772_v20, %v9782_v53  ;;  %v9806_v39 = vsel %vm21867_vm4, %v9801_v22, %v9805_v45  ;;  %v21418_v22 = vld [vmem:[#allocation2 + $0x18] sm:$0xff]   ;;  %v21419_v20 = vld [vmem:[#allocation2 + $0x24] sm:$0xff]  }
 0x430   : > { %v24994_v54 = vrot.slane %v9865_v0, 5  ;;  %v9871_v34 = vrot.slane %v9869_v43, 4  ;;  %v9880_v3 = vshrl.u32 %v9684_v60, 16  ;;  %v9883_v36 = vshll.u32 %v9684_v60, 16 }
 0x431   : > { %v25001_v57 = vcombine.low %v9796_v63, %v9806_v39  ;;  %v9820_v53 = vsel %vm21867_vm4, %v24977_v59, %v24956_v5  ;;  %v9825_v49 = vrot.slane %v9824_v15, 4  ;;  %v9838_v14 = vor.u32 %v24981_v35, %v24979_v41 }
 0x432   : > { %19898 = vmatmul.mubr.msk.bf16.gmra.mrb[8].mxu1 %vm6541_vm10, %v21408_v38  ;;  %v24971_v38 = vrot.slane %v9827_v13, 5  ;;  %v9861_v18 = vrot.slane %v9859_v47, 5  ;;  %v9882_v5 = vrot.slane %v9880_v3, 4  ;;  %v9885_v50 = vrot.slane %v9883_v36, 5 }
 0x433   : > { %19726 = vmatmul.mubr.msk.bf16.gmra.mrb[56].mxu0 %vm6541_vm10, %v17610_v11  ;;  %19901 = vmatprep.mubr.msk.bf16.mxu1 %vm6541_vm10, %v21409_v46  ;;  %v24942_v11 = vcombine.low %v9724_v32, %v9734_v51  ;;  %v24983_v46 = vrot.slane %v9841_v17, 5  ;;  %v24985_v51 = vld [vmem:[#allocation2 + $0x70] sm:$0xf]  ;;  %v24992_v32 = vld [vmem:[#allocation2 + $0x7c] sm:$0xf]  ;;  %v9858_v17 = vrot.slane %v9856_v27, 4 }
 0x434   : > { %19729 = vmatprep.mubr.msk.bf16.mxu0 %vm6541_vm10, %v17611_v23  ;;  %v24973_v23 = vld [vmem:[#allocation2 + $0x5c] sm:$0x1]  ;;  %v9889_v42 = vshll.u32 %v24985_v51, 16  ;;  %v9893_v52 = vshrl.u32 %v24985_v51, 16  ;;  %v9913_v25 = vshll.u32 %v24992_v32, 16  ;;  %v9917_v13 = vshrl.u32 %v24992_v32, 16 }
 0x435   : > { %v9851_v37 = vshll.u32 %v24973_v23, 16  ;;  %v9904_v63 = vshrl.u32 %v9687_v56, 16  ;;  %v9907_v60 = vshll.u32 %v9687_v56, 16  ;;  %v9693_v27 = vld [vmem:[#allocation2 + $0x90] sm:$0xf]  ;;  %v9830_v47 = vsel %vm21867_vm4, %v9825_v49, %v24971_v38 }
 0x436   : > { %v25016_v0 = vrot.slane %v9889_v42, 5  ;;  %v9895_v43 = vrot.slane %v9893_v52, 4  ;;  %v25022_v59 = vrot.slane %v9913_v25, 5  ;;  %v9919_v41 = vrot.slane %v9917_v13, 4  ;;  %v25036_v42 = vld [vmem:[#allocation2 + $0x74] sm:$0x1] }
 0x437   : > { %v25020_v45 = vrot.slane %v9851_v37, 5  ;;  %v9862_v3 = vor.u32 %v9861_v18, %v9858_v17  ;;  %v9886_v52 = vor.u32 %v9885_v50, %v9882_v5  ;;  %v9906_v56 = vrot.slane %v9904_v63, 4 }
 0x438   : > { %v9909_v25 = vrot.slane %v9907_v60, 5  ;;  %v9920_v38 = vor.u32 %v9919_v41, %v25022_v59  ;;  %v9952_v13 = vshrl.u32 %v9693_v27, 16  ;;  %v9955_v49 = vshll.u32 %v9693_v27, 16 }
 0x439   : > { %v9839_v5 = vrot.slane %v9838_v14, 4  ;;  %v9899_v50 = vshll.u32 %v25036_v42, 16  ;;  %v9887_v41 = vrot.slane %v9886_v52, 4 }
 0x43a   : > { %19902 = vmatmul.mubr.msk.bf16.gmra.mrb[12].mxu1 %vm6541_vm10, %v21412_v2  ;;  %v9875_v2 = vshll.u32 %v24997_v61, 16  ;;  %v9957_v27 = vrot.slane %v9955_v49, 5 }
 0x43b   : > { %19730 = vmatmul.mubr.msk.bf16.gmra.mrb[60].mxu0 %vm6541_vm10, %v17612_v40  ;;  %19905 = vmatprep.mubr.msk.bf16.mxu1 %vm6541_vm10, %v21413_v44  ;;  %v9847_v40 = vrot.slane %v9845_v21, 4  ;;  %v9872_v21 = vor.u32 %v9871_v34, %v24994_v54  ;;  %v25014_v44 = vld [vmem:[#allocation2 + $0x88] sm:$0xf] }
 0x43c   : > { %19745 = vmatprep.mubr.msk.bf16.mxu0 %vm6541_vm10, %v21416_v33  ;;  %v9690_v33 = vld [vmem:[#allocation2 + $0x84] sm:$0xf]  ;;  %27868 = vst [vmem:[#allocation23_spill] sm:$0xff] %v25014_v44  ;;  %v9937_v15 = vshll.u32 %v25014_v44, 16  ;;  %v9877_v37 = vrot.slane %v9875_v2, 5  ;;  %v21423_v2 = vld [vmem:[%s27578_s2 + $0x188] sm:$0xff]  }
 0x43d   : > { %v9848_v30 = vor.u32 %v9847_v40, %v24983_v46  ;;  %v9928_v35 = vshrl.u32 %v9690_v33, 16  ;;  %v9931_v39 = vshll.u32 %v9690_v33, 16  ;;  %v9941_v40 = vshrl.u32 %v25014_v44, 16 }
 0x43e   : > { %v9873_v36 = vrot.slane %v9872_v21, 4  ;;  %v25044_v21 = vcombine.low %v9820_v53, %v9830_v47  ;;  %v21600_v53 = vld [vmem:[%s27578_s2 + $0xd0] sm:$0xff]   ;;  %v9921_v47 = vrot.slane %v9920_v38, 4  ;;  %v25089_v38 = vld [vmem:[#allocation2 + $0xa0] sm:$0xf] }
 0x43f   : > { %v9849_v34 = vrot.slane %v9848_v30, 4  ;;  %v21421_v30 = vld [vmem:[#allocation2 + $0x30] sm:$0xff]   ;;  %v9930_v17 = vrot.slane %v9928_v35, 4  ;;  %v9933_v33 = vrot.slane %v9931_v39, 5  ;;  %v9943_v18 = vrot.slane %v9941_v40, 4  ;;  %v21422_v35 = vld [vmem:[#allocation2 + $0x3c] sm:$0xff]  }
 0x440   : > { %v9878_v60 = vsel %vm21867_vm4, %v9873_v36, %v9877_v37  ;;  %v9954_v40 = vrot.slane %v9952_v13, 4  ;;  %v9844_v37 = vsel %vm21867_vm4, %v9839_v5, %v24983_v46  ;;  %v25087_v46 = vld [vmem:[#allocation2 + $0x98] sm:$0x1]  ;;  %27873 = vst [vmem:[#allocation22_spill] sm:$0xff] %v25089_v38 }
 0x441   : > { %v9854_v63 = vsel %vm21867_vm4, %v9849_v34, %v25020_v45  ;;  %v25064_v45 = vld [vmem:[#allocation2 + $0x8c] sm:$0x1]  ;;  %v9934_v34 = vor.u32 %v9933_v33, %v9930_v17  ;;  %27872 = vst [vmem:[#allocation7_spill] sm:$0xff] %v25087_v46  ;;  %v9696_v33 = vld [vmem:[#allocation2 + $0x9c] sm:$0xf] }
 0x442   : > { %19906 = vmatmul.mubr.msk.bf16.gmra.mrb[16].mxu1 %vm6541_vm10, %v21417_v16  ;;  %v9896_v16 = vor.u32 %v9895_v43, %v25016_v0  ;;  %v25050_v43 = vld [vmem:[#allocation2 + $0x94] sm:$0xf]  ;;  %27871 = vst [vmem:[#allocation8_spill] sm:$0xff] %v25064_v45  ;;  %v25082_v52 = vcombine.low %v9844_v37, %v9854_v63  ;;  %v9958_v17 = vor.u32 %v9957_v27, %v9954_v40  ;;  %v21424_v63 = vld [vmem:[#allocation2 + $0x48] sm:$0xff]   ;;  %v9976_v40 = vshrl.u32 %v9696_v33, 16 }
 0x443   : > { %19746 = vmatmul.mubr.msk.bf16.vlgmr.msra.gmra.mrb[32].mxu0 %vm6541_vm10, %v21418_v22  ;;  %19921 = vmatprep.mubr.msk.bf16.mxu1 %vm6541_vm10, %v24942_v11  ;;  %v21599_v11 = vld [vmem:[%s27578_s2 + $0xc8] sm:$0xff]   ;;  %v25042_v22 = vrot.slane %v9937_v15, 5  ;;  %27870 = vst [vmem:[#allocation10_spill] sm:$0xff] %v25050_v43  ;;  %v9910_v15 = vor.u32 %v9909_v25, %v9906_v56  ;;  %v9965_v36 = vshrl.u32 %v25050_v43, 16  ;;  %v9947_v25 = vshll.u32 %v25064_v45, 16 }
 0x444   : > { %19749 = vmatprep.mubr.msk.bf16.mxu0 %vm6541_vm10, %v21419_v20  ;;  %19778 = vmatpush3.bf16.msra.mxu0 %v24825_v48  ;;  %v25039_v48 = vld [vmem:[#allocation2 + $0x80] sm:$0x1]  ;;  %v9863_v20 = vrot.slane %v9862_v3, 4  ;;  %v9897_v39 = vrot.slane %v9896_v16, 4  ;;  %v9935_v5 = vrot.slane %v9934_v34, 4  ;;  %v9979_v27 = vshll.u32 %v9696_v33, 16 }
 0x445   : > { %19779 = vmatprep.subr.bf16.mxu0 %v21599_v11  ;;  %27869 = vst [vmem:[#allocation11_spill] sm:$0xff] %v25039_v48  ;;  %v9923_v14 = vshll.u32 %v25039_v48, 16  ;;  %v9944_v3 = vor.u32 %v9943_v18, %v25042_v22  ;;  %v9911_v49 = vrot.slane %v9910_v15, 4  ;;  %v21431_v15 = vld [vmem:[%s27578_s2 + $0x198] sm:$0xff]   ;;  %v25121_v34 = vrot.slane %v9958_v17, 4 }
 0x446   : > { %v9708_v45 = vld [vmem:[#allocation2 + $0xcc] sm:$0xf] }
 0x447   : > { %v9925_v56 = vrot.slane %v9923_v14, 5  ;;  %v9989_v14 = vshrl.u32 %v25089_v38, 16 }
 0x448   : > { %19780 = vmatpush3.bf16.msra.mxu0 %v21599_v11  ;;  %v9868_v11 = vsel %vm21867_vm4, %v9863_v20, %v24994_v54  ;;  %v9892_v54 = vsel %vm21867_vm4, %v9887_v41, %v25016_v0  ;;  %v9945_v20 = vrot.slane %v9944_v3, 4  ;;  %v25103_v0 = vld [vmem:[#allocation2 + $0xac] sm:$0xf]  ;;  %v9985_v41 = vshll.u32 %v25089_v38, 16  ;;  %v9699_v3 = vld [vmem:[#allocation2 + $0xa8] sm:$0xf] }
 0x449   : > { %19781 = vmatprep.subr.bf16.mxu0 %v21600_v53  ;;  %v25084_v16 = vcombine.low %v9868_v11, %v9878_v60  ;;  %v9926_v18 = vsel %vm21867_vm4, %v9921_v47, %v9925_v56  ;;  %27874 = vst [vmem:[#allocation18_spill] sm:$0xff] %v25103_v0  ;;  %v25105_v60 = vrot.slane %v9965_v36, 4  ;;  %v9916_v47 = vsel %vm21867_vm4, %v9911_v49, %v25022_v59  ;;  %v9702_v36 = vld [vmem:[#allocation2 + $0xb4] sm:$0xf]  ;;  %v25137_v56 = vld [vmem:[#allocation2 + $0xb8] sm:$0xf] }
 0x44a   : > { %19922 = vmatmul.mubr.msk.bf16.vlgmr.msra.gmra.mrb[20].mxu1 %vm6541_vm10, %v24959_v24  ;;  %v9961_v24 = vshll.u32 %v25050_v43, 16  ;;  %v10013_v37 = vshrl.u32 %v25103_v0, 16  ;;  %v25128_v11 = vcombine.low %v9916_v47, %v9926_v18  ;;  %27876 = vst [vmem:[#allocation26_spill] sm:$0xff] %v25137_v56  ;;  %v25150_v49 = vld [vmem:[#allocation2 + $0xc4] sm:$0xf]  ;;  %v10000_v17 = vshrl.u32 %v9699_v3, 16 }
 0x44b   : > { %19750 = vmatmul.mubr.msk.bf16.gmra.mrb[36].mxu0 %vm6541_vm10, %v21421_v30  ;;  %19925 = vmatprep.mubr.msk.bf16.mxu1 %vm6541_vm10, %v24966_v6  ;;  %v9901_v6 = vrot.slane %v9899_v50, 5  ;;  %v21601_v30 = vld [vmem:[%s27578_s2 + $0xd8] sm:$0xff]   ;;  %27877 = vst [vmem:[#allocation9_spill] sm:$0xff] %v25150_v49  ;;  %v10003_v33 = vshll.u32 %v9699_v3, 16  ;;  %v21434_v18 = vld [vmem:[%s27578_s2 + $0x1a0] sm:$0xff]  }
 0x44c   : > { %19954 = vmatpush3.bf16.msra.mxu1 %v24837_v12  ;;  %19753 = vmatprep.mubr.msk.bf16.mxu0 %vm6541_vm10, %v21422_v35  ;;  %v21426_v12 = vld [vmem:[%s27578_s2 + $0x190] sm:$0xff]   ;;  %v25101_v50 = vrot.slane %v9961_v24, 5  ;;  %v10009_v24 = vshll.u32 %v25103_v0, 16  ;;  %v21427_v47 = vld [vmem:[#allocation2 + $0x60] sm:$0xff]  }
 0x44d   : > { %19955 = vmatprep.subr.bf16.mxu1 %v21423_v2  ;;  %19782 = vmatpush3.bf16.msra.mxu0 %v21600_v53  ;;  %v9902_v13 = vsel %vm21867_vm4, %v9897_v39, %v9901_v6  ;;  %v9971_v53 = vshll.u32 %v25087_v46, 16  ;;  %v9949_v39 = vrot.slane %v9947_v25, 5  ;;  %v25135_v6 = vld [vmem:[#allocation2 + $0xa4] sm:$0x1] }
 0x44e   : > { %19783 = vmatprep.subr.bf16.mxu0 %v21601_v30  ;;  %v25110_v35 = vcombine.low %v9892_v54, %v9902_v13  ;;  %27875 = vst [vmem:[#allocation25_spill] sm:$0xff] %v25135_v6  ;;  %v25143_v54 = vrot.slane %v9985_v41, 5  ;;  %v25145_v13 = vrot.slane %v9989_v14, 4  ;;  %v21603_v41 = vld [vmem:[%s27578_s2 + $0xe8] sm:$0xff]   ;;  %v25170_v14 = vld [vmem:[#allocation2 + $0xb0] sm:$0x1] }
 0x44f   : > { %v9950_v59 = vsel %vm21867_vm4, %v9945_v20, %v9949_v39  ;;  %v25141_v25 = vrot.slane %v9971_v53, 5  ;;  %v9705_v53 = vld [vmem:[#allocation2 + $0xc0] sm:$0xf]  ;;  %27878 = vst [vmem:[#allocation12_spill] sm:$0xff] %v25170_v14  ;;  %v10027_v39 = vshll.u32 %v9702_v36, 16  ;;  %v10002_v20 = vrot.slane %v10000_v17, 4 }
 0x450   : > { %19956 = vmatpush3.bf16.msra.mxu1 %v21423_v2  ;;  %v21425_v2 = vld [vmem:[#allocation2 + $0x54] sm:$0xff]   ;;  %v9992_v3 = vor.u32 %v25145_v13, %v25143_v54  ;;  %v10048_v55 = vshrl.u32 %v9705_v53, 16  ;;  %v10051_v0 = vshll.u32 %v9705_v53, 16 }
 0x451   : > { %19957 = vmatprep.subr.bf16.mxu1 %v21426_v12  ;;  %19784 = vmatpush3.bf16.msra.mxu0 %v21601_v30  ;;  %v25152_v30 = vrot.slane %v9976_v40, 4  ;;  %v10033_v40 = vshll.u32 %v25137_v56, 16 }
 0x452   : > { %19926 = vmatmul.mubr.msk.bf16.gmra.mrb[24].mxu1 %vm6541_vm10, %v25001_v57  ;;  %v9940_v57 = vsel %vm21867_vm4, %v9935_v5, %v25042_v22  ;;  %v21602_v22 = vld [vmem:[%s27578_s2 + $0xe0] sm:$0xff]  }
 0x453   : > { %19754 = vmatmul.mubr.msk.bf16.gmra.mrb[40].mxu0 %vm6541_vm10, %v21424_v63  ;;  %19929 = vmatprep.mubr.msk.bf16.mxu1 %vm6541_vm10, %v25044_v21  ;;  %v9968_v21 = vor.u32 %v25105_v60, %v25101_v50  ;;  %v25159_v5 = vcombine.low %v9940_v57, %v9950_v59  ;;  %v25165_v63 = vrot.slane %v10009_v24, 5  ;;  %v10015_v60 = vrot.slane %v10013_v37, 4  ;;  %v25179_v59 = vld [vmem:[#allocation2 + $0xc] sm:$0xf] }
 0x454   : > { %19757 = vmatprep.mubr.msk.bf16.mxu0 %vm6541_vm10, %v21425_v2  ;;  %19958 = vmatpush3.bf16.msra.mxu1 %v21426_v12  ;;  %v25154_v12 = vrot.slane %v9979_v27, 5  ;;  %v10024_v2 = vshrl.u32 %v9702_v36, 16  ;;  %v10037_v27 = vshrl.u32 %v25137_v56, 16  ;;  %v9995_v24 = vshll.u32 %v25135_v6, 16  ;;  %27879 = vst [vmem:[#allocation13_spill] sm:$0xff] %v25179_v59 }
 0x455   : > { %19785 = vmatprep.subr.bf16.mxu0 %v21602_v22  ;;  %19959 = vmatprep.subr.bf16.mxu1 %v21431_v15  ;;  %v10057_v37 = vshll.u32 %v25150_v49, 16  ;;  %v10061_v57 = vshrl.u32 %v25150_v49, 16  ;;  %v10005_v36 = vrot.slane %v10003_v33, 5  ;;  %v10016_v13 = vor.u32 %v10015_v60, %v25165_v63  ;;  %v21604_v56 = vld [vmem:[#allocation2 + $0x10] sm:$0xf] }
 0x456   : > { %19786 = vmatpush3.bf16.msra.mxu0 %v21602_v22  ;;  %v21428_v22 = vld [vmem:[#allocation2 + $0x6c] sm:$0xff]   ;;  %v10019_v49 = vshll.u32 %v25170_v14, 16  ;;  %v8034_v17 = vshll.u32 %v21604_v56, 16  ;;  %v8038_v33 = vshrl.u32 %v21604_v56, 16  ;;  %v10026_v53 = vrot.slane %v10024_v2, 4 }
 0x457   : > { %19787 = vmatprep.subr.bf16.mxu0 %v21603_v41  ;;  %v10029_v6 = vrot.slane %v10027_v39, 5  ;;  %v10039_v38 = vrot.slane %v10037_v27, 4  ;;  %v10063_v60 = vrot.slane %v10061_v57, 4  ;;  %v8025_v14 = vshrl.u32 %v25179_v59, 16 }
 0x458   : > { %19960 = vmatpush3.bf16.msra.mxu1 %v21431_v15  ;;  %v21437_v15 = vld [vmem:[%s27578_s2 + $0x1a8] sm:$0xff]   ;;  %v8028_v56 = vshll.u32 %v25179_v59, 16  ;;  %v9969_v46 = vrot.slane %v9968_v21, 4  ;;  %v10050_v2 = vrot.slane %v10048_v55, 4  ;;  %v10053_v39 = vrot.slane %v10051_v0, 5  ;;  %v21429_v21 = vld [vmem:[#allocation2 + $0x78] sm:$0xff]  }
 0x459   : > { %19961 = vmatprep.subr.bf16.mxu1 %v21434_v18  ;;  %v25204_v27 = vrot.slane %v8034_v17, 5  ;;  %v10006_v57 = vor.u32 %v10005_v36, %v10002_v20  ;;  %v10017_v43 = vrot.slane %v10016_v13, 4  ;;  %v10021_v44 = vrot.slane %v10019_v49, 5  ;;  %v21430_v0 = vld [vmem:[#allocation2 + $0x84] sm:$0xff]   ;;  %v25224_v13 = vld [vmem:[#allocation2 + $0xd0] sm:$0xf] }
 0x45a   : > { %19788 = vmatpush3.bf16.msra.mxu0 %v21603_v41  ;;  %19930 = vmatmul.mubr.msk.bf16.gmra.mrb[28].mxu1 %vm6541_vm10, %v25082_v52  ;;  %v25192_v41 = vrot.slane %v10033_v40, 5  ;;  %v25194_v52 = vld [vmem:[#allocation2 + $0xbc] sm:$0x1]  ;;  %v9993_v40 = vrot.slane %v9992_v3, 4  ;;  %v10030_v48 = vor.u32 %v10029_v6, %v10026_v53  ;;  %v8030_v55 = vrot.slane %v8028_v56, 5 }
 0x45b   : > { %19758 = vmatmul.mubr.msk.bf16.gmra.mrb[44].mxu0 %vm6541_vm10, %v21427_v47  ;;  %19933 = vmatprep.mubr.msk.bf16.mxu1 %vm6541_vm10, %v25084_v16  ;;  %v25196_v47 = vrot.slane %v10057_v37, 5  ;;  %v9982_v16 = vor.u32 %v25154_v12, %v25152_v30  ;;  %v8040_v37 = vrot.slane %v8038_v33, 4  ;;  %v8027_v12 = vrot.slane %v8025_v14, 4 }
 0x45c   : > { %19761 = vmatprep.mubr.msk.bf16.mxu0 %vm6541_vm10, %v21428_v22  ;;  %19962 = vmatpush3.bf16.msra.mxu1 %v21434_v18  ;;  %v25202_v22 = vld [vmem:[#allocation2 + $0xc8] sm:$0x1]  ;;  %v9997_v18 = vrot.slane %v9995_v24, 5  ;;  %v10040_v59 = vor.u32 %v10039_v38, %v25192_v41  ;;  %v10043_v3 = vshll.u32 %v25194_v52, 16  ;;  %v10054_v24 = vor.u32 %v10053_v39, %v10050_v2  ;;  %v25226_v2 = vld [vmem:[#allocation2 + $0xd4] sm:$0x1] }
 0x45d   : > { %19963 = vmatprep.subr.bf16.mxu1 %v21437_v15  ;;  %v10064_v30 = vor.u32 %v10063_v60, %v25196_v47  ;;  %v10067_v17 = vshll.u32 %v25202_v22, 16  ;;  %v10072_v33 = vshrl.u32 %v9708_v45, 16  ;;  %v9974_v38 = vsel %vm21867_vm4, %v9969_v46, %v25141_v25  ;;  %v21605_v60 = vld [vmem:[#allocation2 + $0x14] sm:$0x1] }
 0x45e   : > { %v9983_v6 = vrot.slane %v9982_v16, 4  ;;  %v8041_v49 = vor.u32 %v8040_v37, %v25204_v27  ;;  %v10075_v20 = vshll.u32 %v9708_v45, 16  ;;  %v9998_v14 = vsel %vm21867_vm4, %v9993_v40, %v9997_v18 }
 0x45f   : > { %v10007_v36 = vrot.slane %v10006_v57, 4  ;;  %v10031_v46 = vrot.slane %v10030_v48, 4  ;;  %v10065_v25 = vrot.slane %v10064_v30, 4  ;;  %v8031_v53 = vor.u32 %v8030_v55, %v8027_v12  ;;  %v21432_v30 = vld [vmem:[#allocation2 + $0x90] sm:$0xff]  }
 0x460   : > { %19964 = vmatpush3.bf16.msra.mxu1 %v21437_v15  ;;  %v10041_v15 = vrot.slane %v10040_v59, 4  ;;  %v8044_v45 = vshll.u32 %v21605_v60, 16  ;;  %v10045_v56 = vrot.slane %v10043_v3, 5  ;;  %v10055_v16 = vrot.slane %v10054_v24, 4  ;;  %v21433_v3 = vld [vmem:[#allocation2 + $0x9c] sm:$0xff]  }
 0x461   : > { %v10074_v39 = vrot.slane %v10072_v33, 4  ;;  %v8042_v37 = vrot.slane %v8041_v49, 4  ;;  %v10077_v40 = vrot.slane %v10075_v20, 5  ;;  %v10081_v18 = vshll.u32 %v25224_v13, 16  ;;  %v10433_v33 = vld [vmem:[#allocation2 + $0x18] sm:$0xe] }
 0x462   : > { %19934 = vmatmul.mubr.msk.bf16.gmra.mrb[0].mxu1 %vm6541_vm10, %v25110_v35  ;;  %v10022_v35 = vsel %vm21867_vm4, %v10017_v43, %v10021_v44  ;;  %v10085_v44 = vshrl.u32 %v25224_v13, 16  ;;  %v27880_v48 = vsel %vm21867_vm4, %v25121_v34, %v25101_v50  ;;  %v9988_v59 = vsel %vm21867_vm4, %v9983_v6, %v25143_v54  ;;  %v7979_v34 = vld [vmem:[#allocation2 + $0x18] sm:$0xf] }
 0x463   : > { %19762 = vmatmul.mubr.msk.bf16.gmra.mrb[48].mxu0 %vm6541_vm10, %v21429_v21  ;;  %19937 = vmatprep.mubr.msk.bf16.mxu1 %vm6541_vm10, %v25128_v11  ;;  %v10069_v11 = vrot.slane %v10067_v17, 5  ;;  %v17873_v43 = vcombine.low %v27880_v48, %v9974_v38  ;;  %v10012_v57 = vsel %vm21867_vm4, %v10007_v36, %v25165_v63  ;;  %v10046_v21 = vsel %vm21867_vm4, %v10041_v15, %v10045_v56 }
 0x464   : > { %19765 = vmatprep.mubr.msk.bf16.mxu0 %vm6541_vm10, %v21430_v0  ;;  %v8032_v55 = vrot.slane %v8031_v53, 4  ;;  %v8046_v0 = vrot.slane %v8044_v45, 5  ;;  %v10091_v50 = vshll.u32 %v25226_v2, 16  ;;  %v17874_v24 = vcombine.low %v9988_v59, %v9998_v14  ;;  %v21606_v45 = vld [vmem:[#allocation2 + $0x1c] sm:$0xf]  ;;  %v21435_v59 = vld [vmem:[#allocation2 + $0xa8] sm:$0xff]  }
 0x465   : > { %v10070_v12 = vsel %vm21867_vm4, %v10065_v25, %v10069_v11  ;;  %v17875_v17 = vcombine.low %v10012_v57, %v10022_v35  ;;  %v10036_v54 = vsel %vm21867_vm4, %v10031_v46, %v25192_v41  ;;  %v10060_v63 = vsel %vm21867_vm4, %v10055_v16, %v25196_v47  ;;  %v10448_v25 = vld [vmem:[#allocation2 + $0xcc] sm:$0xe]  ;;  %v7982_v11 = vld [vmem:[#allocation2 + $0x24] sm:$0xf] }
 0x466   : > { %v8047_v38 = vsel %vm21867_vm4, %v8042_v37, %v8046_v0  ;;  %v10078_v6 = vor.u32 %v10077_v40, %v10074_v39  ;;  %v25257_v49 = vrot.slane %v10081_v18, 5  ;;  %v10087_v20 = vrot.slane %v10085_v44, 4  ;;  %v21607_v40 = vld [vmem:[#allocation2 + $0x28] sm:$0xf] }
 0x467   : > { %v25261_v41 = vcombine.low %v10036_v54, %v10046_v21  ;;  %v25263_v47 = vcombine.low %v10060_v63, %v10070_v12  ;;  %v8049_v14 = vshrl.u32 %v7979_v34, 16  ;;  %v8052_v36 = vshll.u32 %v7979_v34, 16  ;;  %v21436_v12 = vld [vmem:[#allocation2 + $0xb4] sm:$0xff]  }
 0x468   : > { %v25268_v35 = vrot.slane %v10091_v50, 5  ;;  %v17901_v15 = vrot.slane %v10433_v33, 9  ;;  %v10499_v46 = vrot.slane %v24820_v31, 5  ;;  %v10502_v60 = vrot.slane %v24884_v10, 5 }
 0x469   : > { %v8058_v56 = vshll.u32 %v21606_v45, 16  ;;  %v8062_v16 = vshrl.u32 %v21606_v45, 16  ;;  %v10079_v39 = vrot.slane %v10078_v6, 4  ;;  %v10088_v37 = vor.u32 %v10087_v20, %v25257_v49  ;;  %v7988_v45 = vld [vmem:[#allocation2 + $0x3c] sm:$0xf] }
 0x46a   : > { %19938 = vmatmul.mubr.msk.bf16.gmra.mrb[4].mxu1 %vm6541_vm10, %v25159_v5  ;;  %v8037_v5 = vsel %vm21867_vm4, %v8032_v55, %v25204_v27  ;;  %v8082_v18 = vshll.u32 %v21607_v40, 16  ;;  %v8086_v27 = vshrl.u32 %v21607_v40, 16  ;;  %v8051_v44 = vrot.slane %v8049_v14, 4  ;;  %v7985_v14 = vld [vmem:[#allocation2 + $0x30] sm:$0xf] }
 0x46b   : > { %19766 = vmatmul.mubr.msk.bf16.gmra.mrb[52].mxu0 %vm6541_vm10, %v21432_v30  ;;  %19941 = vmatprep.mubr.msk.bf16.mxu1 %vm6541_vm10, %v17873_v43  ;;  %v25271_v53 = vcombine.low %v8037_v5, %v8047_v38  ;;  %v8054_v48 = vrot.slane %v8052_v36, 5  ;;  %v17916_v43 = vrot.slane %v10448_v25, 9  ;;  %v10604_v31 = vrot.slane %v25224_v13, 5  ;;  %v21608_v5 = vld [vmem:[#allocation2 + $0x20] sm:$0x1] }
 0x46c   : > { %19769 = vmatprep.mubr.msk.bf16.mxu0 %vm6541_vm10, %v21433_v3  ;;  %v10501_v57 = vrot.slane %v10499_v46, 4  ;;  %v8073_v21 = vshrl.u32 %v7982_v11, 16  ;;  %v8076_v30 = vshll.u32 %v7982_v11, 16  ;;  %v10607_v10 = vrot.slane %v25226_v2, 5 }
 0x46d   : > { %v25277_v55 = vrot.slane %v8058_v56, 5  ;;  %v8064_v0 = vrot.slane %v8062_v16, 4  ;;  %v25281_v50 = vsel %vm22224_vm7, %v17916_v43, %v10604_v31  ;;  %v10606_v34 = vrot.slane %v10604_v31, 4  ;;  %v21610_v16 = vld [vmem:[#allocation2 + $0x40] sm:$0xf] }
 0x46e   : > { %v10089_v13 = vrot.slane %v10088_v37, 4  ;;  %v25287_v3 = vsel %vm22224_vm7, %v17901_v15, %v10499_v46  ;;  %v25289_v54 = vrot.slane %v8082_v18, 5  ;;  %v8088_v2 = vrot.slane %v8086_v27, 4  ;;  %v21611_v43 = vld [vmem:[#allocation2 + $0x2c] sm:$0x1] }
 0x46f   : > { %v10084_v63 = vsel %vm21867_vm4, %v10079_v39, %v25257_v49  ;;  %v8055_v33 = vor.u32 %v8054_v48, %v8051_v44  ;;  %v25302_v38 = vsel %vm22224_vm7, %v10501_v57, %v10502_v60  ;;  %v8075_v6 = vrot.slane %v8073_v21, 4  ;;  %v21609_v49 = vld [vmem:[#allocation2 + $0x34] sm:$0xf]  ;;  %v21438_v44 = vld [vmem:[#allocation2 + $0xc0] sm:$0xff]  }
 0x470   : > { %v8078_v20 = vrot.slane %v8076_v30, 5  ;;  %v8065_v36 = vor.u32 %v8064_v0, %v25277_v55  ;;  %v8068_v15 = vshll.u32 %v21608_v5, 16  ;;  %v8106_v46 = vshll.u32 %v21609_v49, 16  ;;  %v21612_v5 = vld [vmem:[#allocation2 + $0x4c] sm:$0xf] }
 0x471   : > { %v8110_v25 = vshrl.u32 %v21609_v49, 16  ;;  %v10094_v56 = vsel %vm21867_vm4, %v10089_v13, %v25268_v35  ;;  %v8089_v60 = vor.u32 %v8088_v2, %v25289_v54  ;;  %v8130_v11 = vshll.u32 %v21610_v16, 16 }
 0x472   : > { %19942 = vmatmul.mubr.msk.bf16.gmra.mrb[8].mxu1 %vm6541_vm10, %v17874_v24  ;;  %v25298_v24 = vsel %vm22224_vm7, %v10606_v34, %v10607_v10  ;;  %v8134_v39 = vshrl.u32 %v21610_v16, 16  ;;  %v17929_v37 = vcombine.low %v25287_v3, %v25302_v38  ;;  %v8056_v40 = vrot.slane %v8055_v33, 4 }
 0x473   : > { %19770 = vmatmul.mubr.msk.bf16.gmra.mrb[56].mxu0 %vm6541_vm10, %v21435_v59  ;;  %19945 = vmatprep.mubr.msk.bf16.mxu1 %vm6541_vm10, %v17875_v17  ;;  %v17944_v17 = vcombine.low %v25281_v50, %v25298_v24  ;;  %v8097_v18 = vshrl.u32 %v7985_v14, 16  ;;  %v8100_v27 = vshll.u32 %v7985_v14, 16  ;;  %v8079_v48 = vor.u32 %v8078_v20, %v8075_v6  ;;  %v7991_v14 = vld [vmem:[#allocation2 + $0x48] sm:$0xf]  ;;  %v21443_v50 = vld [vmem:[%s27579_s3 + $0x50] sm:$0xff]   ;;  %v21444_v24 = vld [vmem:[%s27579_s3 + $0x58] sm:$0xff]  }
 0x474   : > { %19773 = vmatprep.mubr.msk.bf16.mxu0 %vm6541_vm10, %v21436_v12  ;;  %v8092_v31 = vshll.u32 %v21611_v43, 16  ;;  %v8121_v59 = vshrl.u32 %v7988_v45, 16  ;;  %v8124_v57 = vshll.u32 %v7988_v45, 16  ;;  %v17878_v21 = vcombine.low %v10084_v63, %v10094_v56  ;;  %v21613_v56 = vld [vmem:[#allocation2 + $0x38] sm:$0x1] }
 0x475   : > { %v8066_v30 = vrot.slane %v8065_v36, 4  ;;  %v25313_v35 = vrot.slane %v8106_v46, 5  ;;  %v8112_v10 = vrot.slane %v8110_v25, 4  ;;  %v8090_v12 = vrot.slane %v8089_v60, 4  ;;  %v10434_v43 = vld [vmem:[#allocation2 + $0x24] sm:$0xe] }
 0x476   : > { %v10506_v0 = vrot.slane %v24857_v1, 5  ;;  %v25319_v34 = vrot.slane %v8130_v11, 5  ;;  %v8136_v13 = vrot.slane %v8134_v39, 4  ;;  %v8061_v3 = vsel %vm21867_vm4, %v8056_v40, %v25277_v55 }
 0x477   : > { %v8070_v2 = vrot.slane %v8068_v15, 5  ;;  %v8102_v63 = vrot.slane %v8100_v27, 5  ;;  %v8080_v33 = vrot.slane %v8079_v48, 4  ;;  %v8094_v38 = vrot.slane %v8092_v31, 5  ;;  %v21614_v27 = vld [vmem:[#allocation2 + $0x44] sm:$0x1] }
 0x478   : > { %v8123_v6 = vrot.slane %v8121_v59, 4  ;;  %v8126_v20 = vrot.slane %v8124_v57, 5  ;;  %v8154_v49 = vshll.u32 %v21612_v5, 16  ;;  %v10508_v55 = vrot.slane %v10506_v0, 4 }
 0x479   : > { %v8071_v36 = vsel %vm21867_vm4, %v8066_v30, %v8070_v2  ;;  %v8095_v46 = vsel %vm21867_vm4, %v8090_v12, %v8094_v38  ;;  %v10513_v15 = vrot.slane %v24866_v9, 5  ;;  %v8137_v25 = vor.u32 %v8136_v13, %v25319_v34 }
 0x47a   : > { %19946 = vmatmul.mubr.msk.bf16.gmra.mrb[12].mxu1 %vm6541_vm10, %v25261_v41  ;;  %v8099_v41 = vrot.slane %v8097_v18, 4  ;;  %v8116_v60 = vshll.u32 %v21613_v56, 16  ;;  %v8145_v16 = vshrl.u32 %v7991_v14, 16  ;;  %v8148_v11 = vshll.u32 %v7991_v14, 16 }
 0x47b   : > { %19774 = vmatmul.mubr.msk.bf16.gmra.mrb[60].mxu0 %vm6541_vm10, %v21438_v44  ;;  %19949 = vmatprep.mubr.msk.bf16.mxu1 %vm6541_vm10, %v25263_v47  ;;  %v8113_v47 = vor.u32 %v8112_v10, %v25313_v35  ;;  %v17698_v39 = vcombine.low %v8061_v3, %v8071_v36  ;;  %v8085_v40 = vsel %vm21867_vm4, %v8080_v33, %v25289_v54  ;;  %v8140_v44 = vshll.u32 %v21614_v27, 16  ;;  %v10435_v54 = vld [vmem:[#allocation2 + $0x30] sm:$0xe] }
 0x47c   : > { %19789 = vmatprep.mubr.msk.bf16.mxu0 %vm6541_vm10, %v25271_v53  ;;  %v8158_v53 = vshrl.u32 %v21612_v5, 16  ;;  %v8103_v45 = vor.u32 %v8102_v63, %v8099_v41  ;;  %v8127_v18 = vor.u32 %v8126_v20, %v8123_v6  ;;  %v17699_v48 = vcombine.low %v8085_v40, %v8095_v46  ;;  %v21615_v6 = vld [vmem:[#allocation2 + $0x40] sm:$0xf]  ;;  %v21616_v46 = vld [vmem:[#allocation2 + $0x50] sm:$0x1] }
 0x47d   : > { %v8114_v31 = vrot.slane %v8113_v47, 4  ;;  %v25340_v59 = vrot.slane %v8154_v49, 5  ;;  %v10509_v57 = vrot.slane %v24899_v7, 5  ;;  %v10515_v30 = vrot.slane %v10513_v15, 4 }
 0x47e   : > { %v8160_v9 = vrot.slane %v8158_v53, 4  ;;  %v8138_v10 = vrot.slane %v8137_v25, 4  ;;  %v8104_v12 = vrot.slane %v8103_v45, 4  ;;  %v8118_v13 = vrot.slane %v8116_v60, 5 }
 0x47f   : > { %v8147_v3 = vrot.slane %v8145_v16, 4  ;;  %v8150_v2 = vrot.slane %v8148_v11, 5  ;;  %v17902_v41 = vrot.slane %v10434_v43, 9  ;;  %v10516_v63 = vrot.slane %v24909_v62, 5 }
 0x480   : > { %v8128_v33 = vrot.slane %v8127_v18, 4  ;;  %v10510_v38 = vsel %vm22224_vm7, %v10508_v55, %v10509_v57  ;;  %v8119_v7 = vsel %vm21867_vm4, %v8114_v31, %v8118_v13  ;;  %v8161_v20 = vor.u32 %v8160_v9, %v25340_v59  ;;  %v10438_v13 = vld [vmem:[#allocation2 + $0x54] sm:$0xe] }
 0x481   : > { %v17903_v14 = vrot.slane %v10435_v54, 9  ;;  %v10517_v36 = vsel %vm22224_vm7, %v10515_v30, %v10516_v63  ;;  %v10527_v62 = vrot.slane %v24917_v58, 5  ;;  %v10507_v5 = vsel %vm22224_vm7, %v17902_v41, %v10506_v0 }
 0x482   : > { %19950 = vmatmul.mubr.msk.bf16.gmra.mrb[16].mxu1 %vm6541_vm10, %v17878_v21  ;;  %v8142_v21 = vrot.slane %v8140_v44, 5  ;;  %v8109_v49 = vsel %vm21867_vm4, %v8104_v12, %v25313_v35  ;;  %v8151_v53 = vor.u32 %v8150_v2, %v8147_v3  ;;  %v8164_v55 = vshll.u32 %v21616_v46, 16  ;;  %v10436_v35 = vld [vmem:[#allocation2 + $0x3c] sm:$0xe]  ;;  %v10439_v2 = vld [vmem:[#allocation2 + $0x60] sm:$0xe] }
 0x483   : > { %19790 = vmatmul.mubr.msk.bf16.vlgmr.msra.gmra.mrb[32].mxu0 %vm6541_vm10, %v17698_v39  ;;  %19965 = vmatprep.mubr.msk.bf16.mxu1 %vm6541_vm10, %v17929_v37  ;;  %v10520_v37 = vrot.slane %v21615_v6, 5  ;;  %v17930_v25 = vcombine.low %v10507_v5, %v10510_v38  ;;  %v10514_v45 = vsel %vm22224_vm7, %v17903_v14, %v10513_v15  ;;  %v17700_v56 = vcombine.low %v8109_v49, %v8119_v7  ;;  %v10437_v39 = vld [vmem:[#allocation2 + $0x48] sm:$0xe]  ;;  %v10440_v14 = vld [vmem:[#allocation2 + $0x6c] sm:$0xe] }
 0x484   : > { %19793 = vmatprep.mubr.msk.bf16.mxu0 %vm6541_vm10, %v17699_v48  ;;  %v8143_v47 = vsel %vm21867_vm4, %v8138_v10, %v8142_v21  ;;  %v8133_v58 = vsel %vm21867_vm4, %v8128_v33, %v25319_v34  ;;  %v17931_v1 = vcombine.low %v10514_v45, %v10517_v36  ;;  %v8162_v0 = vrot.slane %v8161_v20, 4  ;;  %v27883_v45 = vld [vmem:[#allocation10_spill] sm:$0xff] }
 0x485   : > { %v17701_v60 = vcombine.low %v8133_v58, %v8143_v47  ;;  %v10522_v16 = vrot.slane %v10520_v37, 4  ;;  %v10529_v11 = vrot.slane %v10527_v62, 4  ;;  %v10523_v15 = vrot.slane %v24923_v29, 5  ;;  %v10441_v47 = vld [vmem:[#allocation2 + $0x78] sm:$0xe] }
 0x486   : > { %v8152_v40 = vrot.slane %v8151_v53, 4  ;;  %v8166_v18 = vrot.slane %v8164_v55, 5  ;;  %v10530_v34 = vrot.slane %v24925_v4, 5  ;;  %v17904_v27 = vrot.slane %v10436_v35, 9  ;;  %v27882_v53 = vld [vmem:[#allocation23_spill] sm:$0xff] }
 0x487   : > { %v10524_v44 = vsel %vm22224_vm7, %v10522_v16, %v10523_v15  ;;  %v10534_v43 = vrot.slane %v24940_v8, 5  ;;  %v17905_v31 = vrot.slane %v10437_v39, 9  ;;  %v10541_v29 = vrot.slane %v24953_v19, 5  ;;  %v10443_v39 = vld [vmem:[#allocation2 + $0x90] sm:$0xe] }
 0x488   : > { %v8167_v48 = vsel %vm21867_vm4, %v8162_v0, %v8166_v18  ;;  %v10531_v9 = vsel %vm22224_vm7, %v10529_v11, %v10530_v34  ;;  %v10521_v57 = vsel %vm22224_vm7, %v17904_v27, %v10520_v37  ;;  %v8157_v4 = vsel %vm21867_vm4, %v8152_v40, %v25340_v59  ;;  %v10442_v0 = vld [vmem:[#allocation2 + $0x84] sm:$0xe]  ;;  %v27885_v40 = vld [vmem:[#allocation7_spill] sm:$0xff] }
 0x489   : > { %v17932_v30 = vcombine.low %v10521_v57, %v10524_v44  ;;  %v10528_v10 = vsel %vm22224_vm7, %v17905_v31, %v10527_v62  ;;  %v17702_v54 = vcombine.low %v8157_v4, %v8167_v48  ;;  %v10536_v8 = vrot.slane %v10534_v43, 4  ;;  %v27881_v62 = vld [vmem:[#allocation11_spill] sm:$0xff]  ;;  %v27884_v11 = vld [vmem:[#allocation8_spill] sm:$0xff]  ;;  %v27886_v44 = vld [vmem:[#allocation22_spill] sm:$0xff] }
 0x48a   : > { %19966 = vmatmul.mubr.msk.bf16.vlgmr.msra.gmra.mrb[20].mxu1 %vm6541_vm10, %v17930_v25  ;;  %v17933_v12 = vcombine.low %v10528_v10, %v10531_v9  ;;  %v10543_v19 = vrot.slane %v10541_v29, 4  ;;  %v10537_v3 = vrot.slane %v24973_v23, 5  ;;  %v10544_v59 = vrot.slane %v24997_v61, 5  ;;  %v27887_v9 = vld [vmem:[#allocation18_spill] sm:$0xff] }
 0x48b   : > { %19794 = vmatmul.mubr.msk.bf16.gmra.mrb[36].mxu0 %vm6541_vm10, %v17700_v56  ;;  %19969 = vmatprep.mubr.msk.bf16.mxu1 %vm6541_vm10, %v17931_v1  ;;  %v17906_v41 = vrot.slane %v10438_v13, 9  ;;  %v10548_v33 = vrot.slane %v24985_v51, 5  ;;  %v17907_v21 = vrot.slane %v10439_v2, 9  ;;  %v10555_v7 = vrot.slane %v24992_v32, 5  ;;  %v27888_v13 = vld [vmem:[#allocation25_spill] sm:$0xff]  ;;  %v27889_v2 = vld [vmem:[#allocation12_spill] sm:$0xff] }
 0x48c   : > { %19797 = vmatprep.mubr.msk.bf16.mxu0 %vm6541_vm10, %v17701_v60  ;;  %v10538_v63 = vsel %vm22224_vm7, %v10536_v8, %v10537_v3  ;;  %v10545_v38 = vsel %vm22224_vm7, %v10543_v19, %v10544_v59  ;;  %v10551_v51 = vrot.slane %v25036_v42, 5  ;;  %v10558_v32 = vrot.slane %v27881_v62, 5  ;;  %v10445_v3 = vld [vmem:[#allocation2 + $0xa8] sm:$0xe] }
 0x48d   : > { %v10535_v6 = vsel %vm22224_vm7, %v17906_v41, %v10534_v43  ;;  %v10542_v23 = vsel %vm22224_vm7, %v17907_v21, %v10541_v29  ;;  %v10550_v20 = vrot.slane %v10548_v33, 4  ;;  %v10557_v36 = vrot.slane %v10555_v7, 4 }
 0x48e   : > { %v17934_v37 = vcombine.low %v10535_v6, %v10538_v63  ;;  %v17935_v61 = vcombine.low %v10542_v23, %v10545_v38  ;;  %v17908_v5 = vrot.slane %v10440_v14, 9  ;;  %v10562_v46 = vrot.slane %v27882_v53, 5  ;;  %v27891_v6 = vld [vmem:[#allocation9_spill] sm:$0xff] }
 0x48f   : > { %v10552_v49 = vsel %vm22224_vm7, %v10550_v20, %v10551_v51  ;;  %v17909_v55 = vrot.slane %v10441_v47, 9  ;;  %v10559_v25 = vsel %vm22224_vm7, %v10557_v36, %v10558_v32  ;;  %v10569_v56 = vrot.slane %v27883_v45, 5  ;;  %v10446_v51 = vld [vmem:[#allocation2 + $0xb4] sm:$0xe]  ;;  %v10447_v32 = vld [vmem:[#allocation2 + $0xc0] sm:$0xe] }
 0x490   : > { %v10549_v58 = vsel %vm22224_vm7, %v17908_v5, %v10548_v33  ;;  %v10564_v16 = vrot.slane %v10562_v46, 4  ;;  %v10565_v15 = vrot.slane %v27884_v11, 5  ;;  %v10572_v18 = vrot.slane %v27885_v40, 5  ;;  %v27890_v33 = vld [vmem:[#allocation26_spill] sm:$0xff]  ;;  %v25487_v40 = vld [vmem:[%s27579_s3] sm:$0xff]  }
 0x491   : > { %v17936_v1 = vcombine.low %v10549_v58, %v10552_v49  ;;  %v10556_v42 = vsel %vm22224_vm7, %v17909_v55, %v10555_v7  ;;  %v10571_v35 = vrot.slane %v10569_v56, 4  ;;  %v17910_v34 = vrot.slane %v10442_v0, 9  ;;  %v21440_v58 = vld [vmem:[%s27579_s3 + $0x38] sm:$0xff]  }
 0x492   : > { %19970 = vmatmul.mubr.msk.bf16.gmra.mrb[24].mxu1 %vm6541_vm10, %v17932_v30  ;;  %v17937_v60 = vcombine.low %v10556_v42, %v10559_v25  ;;  %v10566_v27 = vsel %vm22224_vm7, %v10564_v16, %v10565_v15  ;;  %v10576_v48 = vrot.slane %v27886_v44, 5  ;;  %v17911_v43 = vrot.slane %v10443_v39, 9  ;;  %v21442_v42 = vld [vmem:[%s27579_s3 + $0x48] sm:$0xff]  }
 0x493   : > { %19798 = vmatmul.mubr.msk.bf16.gmra.mrb[40].mxu0 %vm6541_vm10, %v17702_v54  ;;  %19973 = vmatprep.mubr.msk.bf16.mxu1 %vm6541_vm10, %v17933_v12  ;;  %v10573_v31 = vsel %vm22224_vm7, %v10571_v35, %v10572_v18  ;;  %v10583_v29 = vrot.slane %v27887_v9, 5  ;;  %v10563_v57 = vsel %vm22224_vm7, %v17910_v34, %v10562_v46  ;;  %v10444_v12 = vld [vmem:[#allocation2 + $0x9c] sm:$0xe]  ;;  %v10579_v19 = vrot.slane %v27888_v13, 5  ;;  %v11562_v16 = vld [vmem:[#allocation2 + $0x8] sm:$0x1] }
 0x494   : > { %v17938_v4 = vcombine.low %v10563_v57, %v10566_v27  ;;  %v10570_v30 = vsel %vm22224_vm7, %v17911_v43, %v10569_v56  ;;  %v10578_v54 = vrot.slane %v10576_v48, 4  ;;  %v10586_v59 = vrot.slane %v27889_v2, 5 }
 0x495   : > { %v17939_v10 = vcombine.low %v10570_v30, %v10573_v31  ;;  %v10585_v8 = vrot.slane %v10583_v29, 4  ;;  %v17912_v41 = vrot.slane %v10444_v12, 9  ;;  %v10590_v21 = vrot.slane %v27890_v33, 5 }
 0x496   : > { %v10580_v63 = vsel %vm22224_vm7, %v10578_v54, %v10579_v19  ;;  %v17913_v38 = vrot.slane %v10445_v3, 9  ;;  %v10593_v62 = vrot.slane %v25194_v52, 5  ;;  %v10600_v5 = vrot.slane %v25202_v22, 5  ;;  %v21439_v52 = vld [vmem:[%s27579_s3 + $0x30] sm:$0xff]  }
 0x497   : > { %v10587_v7 = vsel %vm22224_vm7, %v10585_v8, %v10586_v59  ;;  %v10577_v23 = vsel %vm22224_vm7, %v17912_v41, %v10576_v48  ;;  %v10592_v36 = vrot.slane %v10590_v21, 4  ;;  %v17914_v49 = vrot.slane %v10446_v51, 9  ;;  %19997 = vmatprep.subr.bf16.mxu1 %v21439_v52 }
 0x498   : > { %v10584_v20 = vsel %vm22224_vm7, %v17913_v38, %v10583_v29  ;;  %v17915_v46 = vrot.slane %v10447_v32, 9  ;;  %19998 = vmatpush3.bf16.msra.mxu1 %v21439_v52  ;;  %v11598_v39 = vshll.u32 %v11562_v16, 16  ;;  %v25538_v32 = vld [vmem:[%s27581_s5] ss:$0 sm:$0xff] }
 0x499   : > { %v17941_v14 = vcombine.low %v10584_v20, %v10587_v7  ;;  %v10594_v53 = vsel %vm22224_vm7, %v10592_v36, %v10593_v62  ;;  %v10591_v25 = vsel %vm22224_vm7, %v17914_v49, %v10590_v21  ;;  %19999 = vmatprep.subr.bf16.mxu1 %v21440_v58 }
 0x49a   : > { %19974 = vmatmul.mubr.msk.bf16.gmra.mrb[28].mxu1 %vm6541_vm10, %v17934_v37  ;;  %v10597_v37 = vrot.slane %v27891_v6, 5  ;;  %v17942_v45 = vcombine.low %v10591_v25, %v10594_v53  ;;  %v11600_v31 = vrot.slane %v11598_v39, 5 }
 0x49b   : > { %19977 = vmatprep.mubr.msk.bf16.mxu1 %vm6541_vm10, %v17935_v61  ;;  %v17940_v61 = vcombine.low %v10577_v23, %v10580_v63 }
 0x49c   : > { %v10599_v47 = vrot.slane %v10597_v37, 4  ;;  %v10598_v56 = vsel %vm22224_vm7, %v17915_v46, %v10597_v37  ;;  %20000 = vmatpush3.bf16.msra.mxu1 %v21440_v58 }
 0x49e   : > { %v10601_v55 = vsel %vm22224_vm7, %v10599_v47, %v10600_v5 }
 0x49f   : > { %v17943_v22 = vcombine.low %v10598_v56, %v10601_v55 }
 0x4a2   : > { %19978 = vmatmul.mubr.msk.bf16.gmra.mrb[0].mxu1 %vm6541_vm10, %v17936_v1  ;;  %v21441_v1 = vld [vmem:[%s27579_s3 + $0x40] sm:$0xff]  }
 0x4a3   : > { %19981 = vmatprep.mubr.msk.bf16.mxu1 %vm6541_vm10, %v17937_v60  ;;  %20001 = vmatprep.subr.bf16.mxu1 %v21441_v1  ;;  %v11519_v60 = vld [vmem:[#allocation2 + $0x4] sm:$0xf] }
 0x4a4   : > { %20002 = vmatpush3.bf16.msra.mxu1 %v21441_v1  ;;  %v11588_v11 = vshll.u32 %v11519_v60, 16  ;;  %v11592_v15 = vshrl.u32 %v11519_v60, 16 }
 0x4a5   : > { %20003 = vmatprep.subr.bf16.mxu1 %v21442_v42 }
 0x4a6   : > { %v11590_v27 = vrot.slane %v11588_v11, 5  ;;  %v11594_v44 = vrot.slane %v11592_v15, 4 }
 0x4a8   : > { %20004 = vmatpush3.bf16.msra.mxu1 %v21442_v42  ;;  %v11595_v43 = vor.u32 %v11594_v44, %v11590_v27 }
 0x4a9   : > { %20005 = vmatprep.subr.bf16.mxu1 %v21443_v50 }
 0x4aa   : > { %19982 = vmatmul.mubr.msk.bf16.gmra.mrb[4].mxu1 %vm6541_vm10, %v17938_v4  ;;  %v11596_v29 = vrot.slane %v11595_v43, 4 }
 0x4ab   : > { %19985 = vmatprep.mubr.msk.bf16.mxu1 %vm6541_vm10, %v17939_v10 }
 0x4ac   : > { %20006 = vmatpush3.bf16.msra.mxu1 %v21443_v50  ;;  %v11601_v4 = vsel %vm21867_vm4, %v11596_v29, %v11600_v31 }
 0x4ad   : > { %20007 = vmatprep.subr.bf16.mxu1 %v21444_v24 }
 0x4b0   : > { %20008 = vmatpush3.bf16.msra.mxu1 %v21444_v24 }
 0x4b1   : > { %20041 = vmatprep.subr.bf16.mxu1 %v25487_v40 }
 0x4b2   : > { %19986 = vmatmul.mubr.msk.bf16.gmra.mrb[8].mxu1 %vm6541_vm10, %v17940_v61 }
 0x4b3   : > { %19989 = vmatprep.mubr.msk.bf16.mxu1 %vm6541_vm10, %v17941_v14 }
 0x4ba   : > { %19990 = vmatmul.mubr.msk.bf16.gmra.mrb[12].mxu1 %vm6541_vm10, %v17942_v45 }
 0x4bb   : > { %19993 = vmatprep.mubr.msk.bf16.mxu1 %vm6541_vm10, %v17943_v22 }
 0x4c2   : > { %19994 = vmatmul.mubr.msk.bf16.gmra.mrb[16].mxu1 %vm6541_vm10, %v17944_v17  ;;  %v11518_v17 = vld [vmem:[#allocation2] sm:$0xf] }
 0x4c3   : > { %v11579_v0 = vshrl.u32 %v11518_v17, 16  ;;  %v11582_v35 = vshll.u32 %v11518_v17, 16 }
 0x4c5   : > { %v11581_v18 = vrot.slane %v11579_v0, 4  ;;  %v11584_v34 = vrot.slane %v11582_v35, 5 }
 0x4c7   : > { %v11585_v48 = vor.u32 %v11584_v34, %v11581_v18 }
 0x4c9   : > { %v11586_v9 = vrot.slane %v11585_v48, 4 }
 0x4cb   : > { %v11591_v57 = vsel %vm21867_vm4, %v11586_v9, %v11590_v27 }
 0x4cc   : > { %v18012_v30 = vcombine.low %v11591_v57, %v11601_v4 }
 0x4ce   : > { %20009 = vmatprep.mubr.msk.bf16.mxu1 %vm6541_vm10, %v18012_v30 }
 0x52e   : > { %v25495_v10 = vpop.f32.mrb[44].mxu0 }
 0x52f   : > { %v25497_v54 = vpop.f32.mrb[45].mxu0 }
 0x530   : > { %v25499_v12 = vpop.f32.mrb[46].mxu0 }
 0x531   : > { %v25501_v8 = vpop.f32.mrb[47].mxu0 }
 0x536   : > { %v25503_v13 = vpop.f32.mrb[48].mxu0 }
 0x537   : > { %v25505_v19 = vpop.f32.mrb[49].mxu0 }
 0x538   : > { %v25507_v3 = vpop.f32.mrb[50].mxu0 }
 0x539   : > { %v25509_v2 = vpop.f32.mrb[51].mxu0 }
 0x53e   : > { %v25511_v59 = vpop.f32.mrb[52].mxu0 }
 0x53f   : > { %v25513_v41 = vpop.f32.mrb[53].mxu0 }
 0x540   : > { %v25515_v63 = vpop.f32.mrb[54].mxu0 }
 0x541   : > { %v25517_v33 = vpop.f32.mrb[55].mxu0 }
 0x546   : > { %v25519_v21 = vpop.f32.mrb[56].mxu0 }
 0x547   : > { %v25521_v38 = vpop.f32.mrb[57].mxu0 }
 0x548   : > { %v25523_v7 = vpop.f32.mrb[58].mxu0 }
 0x549   : > { %v25525_v6 = vpop.f32.mrb[59].mxu0 }
 0x54e   : > { %v25527_v37 = vpop.f32.mrb[60].mxu0 }
 0x54f   : > { %v25529_v23 = vpop.f32.mrb[61].mxu0 }
 0x550   : > { %v25531_v61 = vpop.f32.mrb[62].mxu0 }
 0x551   : > { %v25533_v20 = vpop.f32.mrb[63].mxu0 }
 0x556   : > { %v19791_v14 = vpop.f32.mrb[32].mxu0 }
 0x557   : > { %v8587_v36 = vpop.f32.mrb[33].mxu0 }
 0x558   : > { %v19792_v51 = vpop.f32.mrb[34].mxu0 }
 0x559   : > { %v8590_v47 = vpop.f32.mrb[35].mxu0 }
 0x55d   : > { %v19967_v62 = vpop.f32.mrb[20].mxu1 }
 0x55e   : > { %v19795_v5 = vpop.f32.mrb[36].mxu0  ;;  %v20405_v49 = vadd.f32 %v19967_v62, %v19791_v14  ;;  %v10788_v53 = vpop.f32.mrb[21].mxu1 }
 0x55f   : > { %v8603_v46 = vpop.f32.mrb[37].mxu0  ;;  %v20406_v55 = vadd.f32 %v10788_v53, %v8587_v36  ;;  %v19968_v25 = vpop.f32.mrb[22].mxu1 }
 0x560   : > { %v25540_v45 = vpop.f32.mrb[38].mxu0  ;;  %v10956_v56 = vadd.f32 %v20405_v49, %v25538_v32  ;;  %v20407_v52 = vadd.f32 %v19968_v25, %v19792_v51  ;;  %v10791_v22 = vpop.f32.mrb[23].mxu1  ;;  %v11413_v25 = vld [vmem:[#allocation2 + $0x18] sm:$0xf] }
 0x561   : > { %v25543_v58 = vpop.f32.mrb[39].mxu0  ;;  %v10954_v1 = vadd.f32 %v20406_v55, %v25538_v32  ;;  %v20408_v42 = vadd.f32 %v10791_v22, %v8590_v47 }
 0x562   : > { %v18526_v50 = vpack.c.bf16 %v10956_v56, %v10956_v56  ;;  %v10957_v24 = vadd.f32 %v20407_v52, %v25538_v32 }
 0x563   : > { %v18524_v17 = vpack.c.bf16 %v10954_v1, %v10954_v1  ;;  %v10955_v60 = vadd.f32 %v20408_v42, %v25538_v32 }
 0x564   : > { %v11100_v16 = vshrl.u32 %v18526_v50, 16  ;;  %v18527_v0 = vpack.c.bf16 %v10957_v24, %v10957_v24  ;;  %v11103_v35 = vshll.u32 %v18526_v50, 16 }
 0x565   : > { %v11083_v11 = vshrl.u32 %v18524_v17, 16  ;;  %v11086_v15 = vshll.u32 %v18524_v17, 16  ;;  %v18525_v39 = vpack.c.bf16 %v10955_v60, %v10955_v60  ;;  %v19971_v18 = vpop.f32.mrb[24].mxu1  ;;  %v27896_v60 = vld [vmem:[#allocation13_spill] sm:$0xff] }
 0x566   : > { %v19799_v34 = vpop.f32.mrb[40].mxu0  ;;  %v11102_v27 = vrot.slane %v11100_v16, 7  ;;  %v11108_v44 = vshrl.u32 %v18527_v0, 16  ;;  %v11111_v48 = vshll.u32 %v18527_v0, 16  ;;  %v20409_v43 = vadd.f32 %v19971_v18, %v19795_v5  ;;  %v10804_v31 = vpop.f32.mrb[25].mxu1 }
 0x567   : > { %v8619_v9 = vpop.f32.mrb[41].mxu0  ;;  %v11085_v57 = vrot.slane %v11083_v11, 7  ;;  %v11091_v4 = vshrl.u32 %v18525_v39, 16  ;;  %v11094_v30 = vshll.u32 %v18525_v39, 16  ;;  %v20410_v14 = vadd.f32 %v10804_v31, %v8603_v46  ;;  %v19972_v36 = vpop.f32.mrb[26].mxu1 }
 0x568   : > { %v19800_v51 = vpop.f32.mrb[42].mxu0  ;;  %v11105_v47 = vor.u32 %v11103_v35, %v11102_v27  ;;  %v11106_v62 = vrot.slane %v11102_v27, 4  ;;  %v11110_v49 = vrot.slane %v11108_v44, 7  ;;  %v10960_v53 = vadd.f32 %v20409_v43, %v25538_v32  ;;  %v10807_v5 = vpop.f32.mrb[27].mxu1  ;;  %v11417_v0 = vld [vmem:[#allocation2 + $0x20] sm:$0x1] }
 0x569   : > { %v8622_v55 = vpop.f32.mrb[43].mxu0  ;;  %v11088_v56 = vor.u32 %v11086_v15, %v11085_v57  ;;  %v11089_v52 = vrot.slane %v11085_v57, 4  ;;  %v11093_v1 = vrot.slane %v11091_v4, 7  ;;  %v10958_v46 = vadd.f32 %v20410_v14, %v25538_v32  ;;  %v11410_v44 = vld [vmem:[#allocation2 + $0x14] sm:$0x1] }
 0x56a   : > { %v11414_v42 = vsel %vm25550_vm3, %v11105_v47, %v11413_v25  ;;  %v11113_v50 = vor.u32 %v11111_v48, %v11110_v49  ;;  %v11115_v24 = vrot.slane %v11110_v49, 4  ;;  %v18530_v17 = vpack.c.bf16 %v10960_v53, %v10960_v53 }
 0x56b   : > { %11415 = vst [vmem:[#allocation2 + $0x18] sm:$0xf] %v11414_v42  ;;  %v11404_v16 = vsel %vm25550_vm3, %v11088_v56, %v27896_v60  ;;  %v11096_v35 = vor.u32 %v11094_v30, %v11093_v1  ;;  %v11098_v11 = vrot.slane %v11093_v1, 4  ;;  %v18528_v15 = vpack.c.bf16 %v10958_v46, %v10958_v46  ;;  %v11427_v60 = vld [vmem:[#allocation2 + $0x30] sm:$0xf] }
 0x56c   : > { %11405 = vst [vmem:[#allocation2 + $0xc] sm:$0xf] %v11404_v16  ;;  %v11114_v18 = vsel %vm24030_vm15, %v11106_v62, %v11113_v50  ;;  %v11418_v27 = vsel %vm25557_vm5, %v11115_v24, %v11417_v0  ;;  %v11134_v48 = vshrl.u32 %v18530_v17, 16  ;;  %v11137_v57 = vshll.u32 %v18530_v17, 16 }
 0x56d   : > { %11416 = vst.msk [vmem:[#allocation2 + $0x1c] sm:$0xf] %vm11402_vm1, %v11114_v18  ;;  %11419 = vst [vmem:[#allocation2 + $0x20] sm:$0x1] %v11418_v27  ;;  %v11097_v43 = vsel %vm24030_vm15, %v11089_v52, %v11096_v35  ;;  %v11411_v31 = vsel %vm25557_vm5, %v11098_v11, %v11410_v44  ;;  %v11117_v4 = vshrl.u32 %v18528_v15, 16  ;;  %v19975_v30 = vpop.f32.mrb[28].mxu1  ;;  %v20411_v47 = vadd.f32 %v19972_v36, %v25540_v45 }
 0x56e   : > { %11407 = vst.msk [vmem:[#allocation2 + $0x10] sm:$0xf] %vm11402_vm1, %v11097_v43  ;;  %11412 = vst [vmem:[#allocation2 + $0x14] sm:$0x1] %v11411_v31  ;;  %v25577_v14 = vrot.slane %v11134_v48, 7  ;;  %v20412_v62 = vadd.f32 %v10807_v5, %v25543_v58  ;;  %v20413_v49 = vadd.f32 %v19975_v30, %v19799_v34  ;;  %v10820_v53 = vpop.f32.mrb[29].mxu1 }
 0x56f   : > { %v11119_v25 = vrot.slane %v11117_v4, 7  ;;  %v11120_v56 = vshll.u32 %v18528_v15, 16  ;;  %v20414_v52 = vadd.f32 %v10820_v53, %v8619_v9  ;;  %v19976_v1 = vpop.f32.mrb[30].mxu1  ;;  %v10961_v50 = vadd.f32 %v20411_v47, %v25538_v32  ;;  %v11420_v36 = vld [vmem:[#allocation2 + $0x24] sm:$0xf] }
 0x570   : > { %v11139_v46 = vor.u32 %v11137_v57, %v25577_v14  ;;  %v11140_v42 = vrot.slane %v25577_v14, 4  ;;  %v10959_v24 = vadd.f32 %v20412_v62, %v25538_v32  ;;  %v10823_v17 = vpop.f32.mrb[31].mxu1  ;;  %v10964_v58 = vadd.f32 %v20413_v49, %v25538_v32 }
 0x571   : > { %v11122_v16 = vor.u32 %v11120_v56, %v11119_v25  ;;  %v11123_v45 = vrot.slane %v11119_v25, 4  ;;  %v10962_v34 = vadd.f32 %v20414_v52, %v25538_v32  ;;  %v18531_v5 = vpack.c.bf16 %v10961_v50, %v10961_v50  ;;  %v11431_v56 = vld [vmem:[#allocation2 + $0x38] sm:$0x1]  ;;  %v11424_v52 = vld [vmem:[#allocation2 + $0x2c] sm:$0x1] }
 0x572   : > { %v11428_v9 = vsel %vm25550_vm3, %v11139_v46, %v11427_v60  ;;  %v18529_v0 = vpack.c.bf16 %v10959_v24, %v10959_v24  ;;  %v20415_v35 = vadd.f32 %v19976_v1, %v19800_v51  ;;  %v18534_v15 = vpack.c.bf16 %v10964_v58, %v10964_v58 }
 0x573   : > { %11429 = vst [vmem:[#allocation2 + $0x30] sm:$0xf] %v11428_v9  ;;  %v11421_v11 = vsel %vm25550_vm3, %v11122_v16, %v11420_v36  ;;  %v18532_v18 = vpack.c.bf16 %v10962_v34, %v10962_v34  ;;  %v20416_v27 = vadd.f32 %v10823_v17, %v8622_v55  ;;  %v11142_v44 = vshrl.u32 %v18531_v5, 16  ;;  %v11441_v34 = vld [vmem:[#allocation2 + $0x48] sm:$0xf] }
 0x574   : > { %11422 = vst [vmem:[#allocation2 + $0x24] sm:$0xf] %v11421_v11  ;;  %v11145_v48 = vshll.u32 %v18531_v5, 16  ;;  %v11125_v43 = vshrl.u32 %v18529_v0, 16  ;;  %v11128_v31 = vshll.u32 %v18529_v0, 16  ;;  %v11168_v57 = vshrl.u32 %v18534_v15, 16 }
 0x575   : > { %v11171_v4 = vshll.u32 %v18534_v15, 16  ;;  %v11151_v30 = vshrl.u32 %v18532_v18, 16  ;;  %v11154_v14 = vshll.u32 %v18532_v18, 16  ;;  %v19979_v47 = vpop.f32.mrb[0].mxu1  ;;  %v11144_v62 = vrot.slane %v11142_v44, 7 }
 0x576   : > { %v11127_v49 = vrot.slane %v11125_v43, 7  ;;  %v10965_v51 = vadd.f32 %v20415_v35, %v25538_v32  ;;  %v10963_v53 = vadd.f32 %v20416_v27, %v25538_v32  ;;  %v10836_v25 = vpop.f32.mrb[1].mxu1  ;;  %v25593_v55 = vrot.slane %v11168_v57, 7  ;;  %v11434_v18 = vld [vmem:[#allocation2 + $0x3c] sm:$0xf] }
 0x577   : > { %v25595_v1 = vrot.slane %v11151_v30, 7  ;;  %v20417_v46 = vadd.f32 %v19979_v47, %v25495_v10  ;;  %v20418_v50 = vadd.f32 %v10836_v25, %v25497_v54  ;;  %v19980_v24 = vpop.f32.mrb[2].mxu1  ;;  %v11147_v17 = vor.u32 %v11145_v48, %v11144_v62 }
 0x578   : > { %v11149_v60 = vrot.slane %v11144_v62, 4  ;;  %v11130_v16 = vor.u32 %v11128_v31, %v11127_v49  ;;  %v11132_v58 = vrot.slane %v11127_v49, 4  ;;  %v10839_v9 = vpop.f32.mrb[3].mxu1  ;;  %v11173_v36 = vor.u32 %v11171_v4, %v25593_v55 }
 0x579   : > { %v11174_v5 = vrot.slane %v25593_v55, 4  ;;  %v11156_v0 = vor.u32 %v11154_v14, %v25595_v1  ;;  %v11157_v35 = vrot.slane %v25595_v1, 4  ;;  %v11148_v10 = vsel %vm24030_vm15, %v11140_v42, %v11147_v17 }
 0x57a   : > { %v11432_v54 = vsel %vm25557_vm5, %v11149_v60, %v11431_v56  ;;  %v11131_v11 = vsel %vm24030_vm15, %v11123_v45, %v11130_v16  ;;  %v11425_v15 = vsel %vm25557_vm5, %v11132_v58, %v11424_v52  ;;  %11430 = vst.msk [vmem:[#allocation2 + $0x34] sm:$0xf] %vm11402_vm1, %v11148_v10  ;;  %v11442_v27 = vsel %vm25550_vm3, %v11173_v36, %v11441_v34  ;;  %v11445_v36 = vld [vmem:[#allocation2 + $0x50] sm:$0x1] }
 0x57b   : > { %11433 = vst [vmem:[#allocation2 + $0x38] sm:$0x1] %v11432_v54  ;;  %11423 = vst.msk [vmem:[#allocation2 + $0x28] sm:$0xf] %vm11402_vm1, %v11131_v11  ;;  %v11435_v42 = vsel %vm25550_vm3, %v11156_v0, %v11434_v18  ;;  %v18535_v44 = vpack.c.bf16 %v10965_v51, %v10965_v51  ;;  %v18533_v48 = vpack.c.bf16 %v10963_v53, %v10963_v53  ;;  %v11438_v0 = vld [vmem:[#allocation2 + $0x44] sm:$0x1] }
 0x57c   : > { %11426 = vst [vmem:[#allocation2 + $0x2c] sm:$0x1] %v11425_v15  ;;  %11443 = vst [vmem:[#allocation2 + $0x48] sm:$0xf] %v11442_v27  ;;  %v10968_v45 = vadd.f32 %v20417_v46, %v25538_v32  ;;  %v10966_v43 = vadd.f32 %v20418_v50, %v25538_v32  ;;  %v20419_v31 = vadd.f32 %v19980_v24, %v25499_v12 }
 0x57d   : > { %11436 = vst [vmem:[#allocation2 + $0x3c] sm:$0xf] %v11435_v42  ;;  %v20420_v57 = vadd.f32 %v10839_v9, %v25501_v8  ;;  %v11176_v4 = vshrl.u32 %v18535_v44, 16  ;;  %v11179_v30 = vshll.u32 %v18535_v44, 16  ;;  %v11159_v14 = vshrl.u32 %v18533_v48, 16  ;;  %v19983_v62 = vpop.f32.mrb[4].mxu1 }
 0x57e   : > { %v11162_v47 = vshll.u32 %v18533_v48, 16  ;;  %v18538_v49 = vpack.c.bf16 %v10968_v45, %v10968_v45  ;;  %v18536_v25 = vpack.c.bf16 %v10966_v43, %v10966_v43  ;;  %v10969_v51 = vadd.f32 %v20419_v31, %v25538_v32  ;;  %v10852_v56 = vpop.f32.mrb[5].mxu1  ;;  %v11455_v42 = vld [vmem:[#allocation2 + $0x60] sm:$0xf]  ;;  %v11448_v44 = vld [vmem:[#allocation2 + $0x54] sm:$0xf] }
 0x57f   : > { %v10967_v53 = vadd.f32 %v20420_v57, %v25538_v32  ;;  %v11178_v52 = vrot.slane %v11176_v4, 7  ;;  %v11161_v55 = vrot.slane %v11159_v14, 7  ;;  %v20421_v1 = vadd.f32 %v19983_v62, %v25503_v13  ;;  %v19984_v46 = vpop.f32.mrb[6].mxu1  ;;  %v11520_v31 = vld [vmem:[#allocation2 + $0xc] sm:$0xf] }
 0x580   : > { %v20422_v12 = vadd.f32 %v10852_v56, %v25505_v19  ;;  %v11202_v8 = vshrl.u32 %v18538_v49, 16  ;;  %v11205_v50 = vshll.u32 %v18538_v49, 16  ;;  %v11185_v24 = vshrl.u32 %v18536_v25, 16  ;;  %v10855_v60 = vpop.f32.mrb[7].mxu1 }
 0x581   : > { %v11188_v17 = vshll.u32 %v18536_v25, 16  ;;  %v11181_v16 = vor.u32 %v11179_v30, %v11178_v52  ;;  %v11183_v58 = vrot.slane %v11178_v52, 4  ;;  %v11164_v34 = vor.u32 %v11162_v47, %v11161_v55 }
 0x582   : > { %v11166_v9 = vrot.slane %v11161_v55, 4  ;;  %v11204_v10 = vrot.slane %v11202_v8, 7  ;;  %v11187_v54 = vrot.slane %v11185_v24, 7  ;;  %v18539_v11 = vpack.c.bf16 %v10969_v51, %v10969_v51  ;;  %v11452_v24 = vld [vmem:[#allocation2 + $0x5c] sm:$0x1] }
 0x583   : > { %v18537_v15 = vpack.c.bf16 %v10967_v53, %v10967_v53  ;;  %v11182_v13 = vsel %vm24030_vm15, %v11174_v5, %v11181_v16  ;;  %v11446_v19 = vsel %vm25557_vm5, %v11183_v58, %v11445_v36  ;;  %v11165_v18 = vsel %vm24030_vm15, %v11157_v35, %v11164_v34  ;;  %v11521_v58 = vld [vmem:[#allocation2 + $0x10] sm:$0xf] }
 0x584   : > { %v11439_v27 = vsel %vm25557_vm5, %v11166_v9, %v11438_v0  ;;  %11444 = vst.msk [vmem:[#allocation2 + $0x4c] sm:$0xf] %vm11402_vm1, %v11182_v13  ;;  %11447 = vst [vmem:[#allocation2 + $0x50] sm:$0x1] %v11446_v19  ;;  %v11207_v48 = vor.u32 %v11205_v50, %v11204_v10  ;;  %v11208_v45 = vrot.slane %v11204_v10, 4  ;;  %v11190_v5 = vor.u32 %v11188_v17, %v11187_v54 }
 0x585   : > { %11437 = vst.msk [vmem:[#allocation2 + $0x40] sm:$0xf] %vm11402_vm1, %v11165_v18  ;;  %11440 = vst [vmem:[#allocation2 + $0x44] sm:$0x1] %v11439_v27  ;;  %v11191_v43 = vrot.slane %v11187_v54, 4  ;;  %v11210_v57 = vshrl.u32 %v18539_v11, 16  ;;  %v10972_v49 = vadd.f32 %v20421_v1, %v25538_v32  ;;  %v10970_v25 = vadd.f32 %v20422_v12, %v25538_v32 }
 0x586   : > { %v11213_v4 = vshll.u32 %v18539_v11, 16  ;;  %v11193_v30 = vshrl.u32 %v18537_v15, 16  ;;  %v11196_v35 = vshll.u32 %v18537_v15, 16  ;;  %v25635_v14 = vpop.f32.mrb[8].mxu1  ;;  %v11456_v47 = vsel %vm25550_vm3, %v11207_v48, %v11455_v42  ;;  %v11459_v50 = vld [vmem:[#allocation2 + $0x68] sm:$0x1] }
 0x587   : > { %v11449_v62 = vsel %vm25550_vm3, %v11190_v5, %v11448_v44  ;;  %v25643_v51 = vpop.f32.mrb[9].mxu1  ;;  %11457 = vst [vmem:[#allocation2 + $0x60] sm:$0xf] %v11456_v47  ;;  %v11212_v53 = vrot.slane %v11210_v57, 7  ;;  %v20423_v52 = vadd.f32 %v19984_v46, %v25507_v3  ;;  %v20424_v55 = vadd.f32 %v10855_v60, %v25509_v2  ;;  %v11563_v44 = vld [vmem:[#allocation2 + $0x14] sm:$0x1] }
 0x588   : > { %11450 = vst [vmem:[#allocation2 + $0x54] sm:$0xf] %v11449_v62  ;;  %v11195_v56 = vrot.slane %v11193_v30, 7  ;;  %v25647_v8 = vpop.f32.mrb[10].mxu1  ;;  %v18542_v17 = vpack.c.bf16 %v10972_v49, %v10972_v49  ;;  %v18540_v16 = vpack.c.bf16 %v10970_v25, %v10970_v25  ;;  %v11603_v1 = vshrl.u32 %v11520_v31, 16 }
 0x589   : > { %v11606_v34 = vshll.u32 %v11520_v31, 16  ;;  %v25649_v12 = vpop.f32.mrb[11].mxu1  ;;  %v11215_v9 = vor.u32 %v11213_v4, %v11212_v53  ;;  %v11217_v36 = vrot.slane %v11212_v53, 4  ;;  %v10973_v27 = vadd.f32 %v20423_v52, %v25538_v32  ;;  %v11469_v48 = vld [vmem:[#allocation2 + $0x78] sm:$0xf] }
 0x58a   : > { %v11198_v0 = vor.u32 %v11196_v35, %v11195_v56  ;;  %v11200_v10 = vrot.slane %v11195_v56, 4  ;;  %v11236_v54 = vshrl.u32 %v18542_v17, 16  ;;  %v11239_v11 = vshll.u32 %v18542_v17, 16  ;;  %v11522_v49 = vld [vmem:[#allocation2 + $0x18] sm:$0xf] }
 0x58b   : > { %v11219_v3 = vshrl.u32 %v18540_v16, 16  ;;  %v11222_v46 = vshll.u32 %v18540_v16, 16  ;;  %v11216_v2 = vsel %vm24030_vm15, %v11208_v45, %v11215_v9  ;;  %v11460_v60 = vsel %vm25557_vm5, %v11217_v36, %v11459_v50  ;;  %v11462_v45 = vld [vmem:[#allocation2 + $0x6c] sm:$0xf]  ;;  %v11523_v50 = vld [vmem:[#allocation2 + $0x1c] sm:$0xf] }
 0x58c   : > { %v11199_v15 = vsel %vm24030_vm15, %v11191_v43, %v11198_v0  ;;  %v11453_v13 = vsel %vm25557_vm5, %v11200_v10, %v11452_v24  ;;  %11458 = vst.msk [vmem:[#allocation2 + $0x64] sm:$0xf] %vm11402_vm1, %v11216_v2  ;;  %11461 = vst [vmem:[#allocation2 + $0x68] sm:$0x1] %v11460_v60  ;;  %v25661_v19 = vrot.slane %v11236_v54, 7  ;;  %v10971_v42 = vadd.f32 %v20424_v55, %v25538_v32 }
 0x58d   : > { %11451 = vst.msk [vmem:[#allocation2 + $0x58] sm:$0xf] %vm11402_vm1, %v11199_v15  ;;  %11454 = vst [vmem:[#allocation2 + $0x5c] sm:$0x1] %v11453_v13  ;;  %v25663_v18 = vrot.slane %v11219_v3, 7  ;;  %v11605_v5 = vrot.slane %v11603_v1, 4  ;;  %v18543_v53 = vpack.c.bf16 %v10973_v27, %v10973_v27 }
 0x58e   : > { %v11608_v43 = vrot.slane %v11606_v34, 5  ;;  %v11612_v31 = vshll.u32 %v11521_v58, 16  ;;  %v11616_v57 = vshrl.u32 %v11521_v58, 16  ;;  %v25667_v4 = vpop.f32.mrb[12].mxu1  ;;  %v11241_v30 = vor.u32 %v11239_v11, %v25661_v19  ;;  %v15197_v26 = vld [vmem:[#allocation2 + $0x60] sm:$0xf] }
 0x58f   : > { %v11242_v35 = vrot.slane %v25661_v19, 4  ;;  %v11224_v47 = vor.u32 %v11222_v46, %v25663_v18  ;;  %v11225_v62 = vrot.slane %v25663_v18, 4  ;;  %v25673_v25 = vpop.f32.mrb[13].mxu1  ;;  %v18541_v56 = vpack.c.bf16 %v10971_v42, %v10971_v42  ;;  %v11473_v19 = vld [vmem:[#allocation2 + $0x80] sm:$0x1] }
 0x590   : > { %v11609_v52 = vor.u32 %v11608_v43, %v11605_v5  ;;  %v11614_v55 = vrot.slane %v11612_v31, 5  ;;  %v25675_v24 = vpop.f32.mrb[14].mxu1  ;;  %v11470_v17 = vsel %vm25550_vm3, %v11241_v30, %v11469_v48  ;;  %v11618_v58 = vrot.slane %v11616_v57, 4  ;;  %v11466_v18 = vld [vmem:[#allocation2 + $0x74] sm:$0x1] }
 0x591   : > { %v11463_v16 = vsel %vm25550_vm3, %v11224_v47, %v11462_v45  ;;  %v11622_v1 = vshll.u32 %v11563_v44, 16  ;;  %v25681_v34 = vpop.f32.mrb[15].mxu1  ;;  %11471 = vst [vmem:[#allocation2 + $0x78] sm:$0xf] %v11470_v17  ;;  %v11244_v9 = vshrl.u32 %v18543_v53, 16  ;;  %v11247_v36 = vshll.u32 %v18543_v53, 16 }
 0x592   : > { %11464 = vst [vmem:[#allocation2 + $0x6c] sm:$0xf] %v11463_v16  ;;  %v11227_v0 = vshrl.u32 %v18541_v56, 16  ;;  %v11230_v10 = vshll.u32 %v18541_v56, 16  ;;  %v11610_v54 = vrot.slane %v11609_v52, 4  ;;  %v11619_v11 = vor.u32 %v11618_v58, %v11614_v55 }
 0x593   : > { %v11624_v3 = vrot.slane %v11622_v1, 5  ;;  %v11627_v46 = vshrl.u32 %v11522_v49, 16  ;;  %v11246_v2 = vrot.slane %v11244_v9, 7  ;;  %v11630_v15 = vshll.u32 %v11522_v49, 16  ;;  %v11564_v57 = vld [vmem:[#allocation2 + $0x20] sm:$0x1] }
 0x594   : > { %v11229_v60 = vrot.slane %v11227_v0, 7  ;;  %v11636_v13 = vshll.u32 %v11523_v50, 16  ;;  %v11615_v27 = vsel %vm21867_vm4, %v11610_v54, %v11614_v55  ;;  %v11620_v42 = vrot.slane %v11619_v11, 4  ;;  %v11524_v52 = vld [vmem:[#allocation2 + $0x24] sm:$0xf] }
 0x595   : > { %v11629_v44 = vrot.slane %v11627_v46, 4  ;;  %v11640_v48 = vshrl.u32 %v11523_v50, 16  ;;  %v11249_v45 = vor.u32 %v11247_v36, %v11246_v2  ;;  %v11251_v5 = vrot.slane %v11246_v2, 4  ;;  %v25685_v30 = vpop.f32.mrb[16].mxu1  ;;  %v25716_v2 = vld [vmem:[#allocation2 + $0x28] sm:$0xf] }
 0x596   : > { %v11232_v43 = vor.u32 %v11230_v10, %v11229_v60  ;;  %v11234_v31 = vrot.slane %v11229_v60, 4  ;;  %v11625_v47 = vsel %vm21867_vm4, %v11620_v42, %v11624_v3  ;;  %v11632_v49 = vrot.slane %v11630_v15, 5  ;;  %v25689_v17 = vpop.f32.mrb[17].mxu1  ;;  %v21446_v10 = vld [vmem:[%s27579_s3 + $0x8] sm:$0xff]  }
 0x597   : > { %v11638_v53 = vrot.slane %v11636_v13, 5  ;;  %v11642_v56 = vrot.slane %v11640_v48, 4  ;;  %v11250_v55 = vsel %vm24030_vm15, %v11242_v35, %v11249_v45  ;;  %v11474_v50 = vsel %vm25557_vm5, %v11251_v5, %v11473_v19  ;;  %v25699_v1 = vpop.f32.mrb[18].mxu1 }
 0x598   : > { %v11233_v16 = vsel %vm24030_vm15, %v11225_v62, %v11232_v43  ;;  %v11467_v58 = vsel %vm25557_vm5, %v11234_v31, %v11466_v18  ;;  %11472 = vst.msk [vmem:[#allocation2 + $0x7c] sm:$0xf] %vm11402_vm1, %v11250_v55  ;;  %11475 = vst [vmem:[#allocation2 + $0x80] sm:$0x1] %v11474_v50  ;;  %v18013_v9 = vcombine.low %v11615_v27, %v11625_v47  ;;  %v11646_v0 = vshll.u32 %v11564_v57, 16  ;;  %v25706_v62 = vpop.f32.mrb[19].mxu1 }
 0x599   : > { %11465 = vst.msk [vmem:[#allocation2 + $0x70] sm:$0xf] %vm11402_vm1, %v11233_v16  ;;  %11468 = vst [vmem:[#allocation2 + $0x74] sm:$0x1] %v11467_v58  ;;  %v11633_v36 = vor.u32 %v11632_v49, %v11629_v44  ;;  %v11643_v35 = vor.u32 %v11642_v56, %v11638_v53  ;;  %v20425_v54 = vadd.f32 %v25635_v14, %v25511_v59  ;;  %v11651_v19 = vshrl.u32 %v11524_v52, 16  ;;  %v21447_v59 = vld [vmem:[%s27579_s3 + $0x10] sm:$0xff]  }
 0x59a   : > { %v20426_v11 = vadd.f32 %v25643_v51, %v25513_v41  ;;  %v20427_v3 = vadd.f32 %v25647_v8, %v25515_v63  ;;  %v20428_v46 = vadd.f32 %v25649_v12, %v25517_v33  ;;  %20010 = vmatmul.mubr.msk.bf16.vlgmr.msra.gmra.mrb[32].mxu1 %vm6541_vm10, %v18013_v9  ;;  %v11648_v13 = vrot.slane %v11646_v0, 5  ;;  %v21448_v16 = vld [vmem:[%s27579_s3 + $0x18] sm:$0xff]   ;;  %v11483_v0 = vld [vmem:[#allocation2 + $0x90] sm:$0xf] }
 0x59b   : > { %v11634_v60 = vrot.slane %v11633_v36, 4  ;;  %v11644_v15 = vrot.slane %v11643_v35, 4  ;;  %20042 = vmatpush3.bf16.msra.mxu1 %v25487_v40  ;;  %v10976_v41 = vadd.f32 %v20425_v54, %v25538_v32  ;;  %v11653_v12 = vrot.slane %v11651_v19, 4  ;;  %v11476_v54 = vld [vmem:[#allocation2 + $0x84] sm:$0xf] }
 0x59c   : > { %v10974_v63 = vadd.f32 %v20426_v11, %v25538_v32  ;;  %v10977_v33 = vadd.f32 %v20427_v3, %v25538_v32  ;;  %v10975_v14 = vadd.f32 %v20428_v46, %v25538_v32  ;;  %v11654_v18 = vshll.u32 %v11524_v52, 16  ;;  %20043 = vmatprep.subr.bf16.mxu1 %v21446_v10 }
 0x59d   : > { %v11639_v51 = vsel %vm21867_vm4, %v11634_v60, %v11638_v53  ;;  %v11649_v8 = vsel %vm21867_vm4, %v11644_v15, %v11648_v13  ;;  %v18546_v42 = vpack.c.bf16 %v10976_v41, %v10976_v41  ;;  %v11660_v5 = vshll.u32 %v25716_v2, 16  ;;  %v11565_v53 = vld [vmem:[#allocation2 + $0x2c] sm:$0x1]  ;;  %v21449_v15 = vld [vmem:[%s27579_s3 + $0x20] sm:$0xff]  }
 0x59e   : > { %v18014_v27 = vcombine.low %v11639_v51, %v11649_v8  ;;  %v18544_v40 = vpack.c.bf16 %v10974_v63, %v10974_v63  ;;  %v18547_v44 = vpack.c.bf16 %v10977_v33, %v10977_v33  ;;  %v18545_v48 = vpack.c.bf16 %v10975_v14, %v10975_v14  ;;  %v11487_v33 = vld [vmem:[#allocation2 + $0x98] sm:$0x1]  ;;  %v11480_v14 = vld [vmem:[#allocation2 + $0x8c] sm:$0x1] }
 0x59f   : > { %v11656_v45 = vrot.slane %v11654_v18, 5  ;;  %v11664_v43 = vshrl.u32 %v25716_v2, 16  ;;  %v11270_v31 = vshrl.u32 %v18546_v42, 16  ;;  %v11273_v57 = vshll.u32 %v18546_v42, 16  ;;  %20044 = vmatpush3.bf16.msra.mxu1 %v21446_v10  ;;  %v25737_v10 = vld [vmem:[#allocation2 + $0x30] sm:$0xf] }
 0x5a0   : > { %20013 = vmatprep.mubr.msk.bf16.mxu1 %vm6541_vm10, %v18014_v27  ;;  %v11253_v47 = vshrl.u32 %v18544_v40, 16  ;;  %v11256_v49 = vshll.u32 %v18544_v40, 16  ;;  %v11278_v56 = vshrl.u32 %v18547_v44, 16  ;;  %v11281_v52 = vshll.u32 %v18547_v44, 16  ;;  %20045 = vmatprep.subr.bf16.mxu1 %v21447_v59 }
 0x5a1   : > { %v11261_v55 = vshrl.u32 %v18545_v48, 16  ;;  %v11264_v50 = vshll.u32 %v18545_v48, 16  ;;  %v11272_v58 = vrot.slane %v11270_v31, 7  ;;  %v11657_v36 = vor.u32 %v11656_v45, %v11653_v12  ;;  %v25746_v48 = vld [vmem:[#allocation2 + $0x34] sm:$0xf] }
 0x5a2   : > { %v11255_v9 = vrot.slane %v11253_v47, 7  ;;  %v11662_v35 = vrot.slane %v11660_v5, 5  ;;  %v11280_v11 = vrot.slane %v11278_v56, 7  ;;  %v11666_v46 = vrot.slane %v11664_v43, 4  ;;  %v11566_v45 = vld [vmem:[#allocation2 + $0x38] sm:$0x1] }
 0x5a3   : > { %v11263_v3 = vrot.slane %v11261_v55, 7  ;;  %v11670_v60 = vshll.u32 %v11565_v53, 16  ;;  %v11275_v13 = vor.u32 %v11273_v57, %v11272_v58  ;;  %v11276_v19 = vrot.slane %v11272_v58, 4  ;;  %20046 = vmatpush3.bf16.msra.mxu1 %v21447_v59  ;;  %v21450_v58 = vld [vmem:[%s27579_s3 + $0x28] sm:$0xff]  }
 0x5a4   : > { %v11258_v41 = vor.u32 %v11256_v49, %v11255_v9  ;;  %v11259_v63 = vrot.slane %v11255_v9, 4  ;;  %v11283_v51 = vor.u32 %v11281_v52, %v11280_v11  ;;  %v11285_v8 = vrot.slane %v11280_v11, 4  ;;  %20047 = vmatprep.subr.bf16.mxu1 %v21448_v16 }
 0x5a5   : > { %v11266_v12 = vor.u32 %v11264_v50, %v11263_v3  ;;  %v11268_v18 = vrot.slane %v11263_v3, 4  ;;  %v11484_v27 = vsel %vm25550_vm3, %v11275_v13, %v11483_v0  ;;  %v11658_v40 = vrot.slane %v11657_v36, 4  ;;  %v25773_v0 = vld [vmem:[#allocation2 + $0x3c] sm:$0xf] }
 0x5a6   : > { %v11477_v42 = vsel %vm25550_vm3, %v11258_v41, %v11476_v54  ;;  %v11667_v44 = vor.u32 %v11666_v46, %v11662_v35  ;;  %11485 = vst [vmem:[#allocation2 + $0x90] sm:$0xf] %v11484_v27  ;;  %v11284_v59 = vsel %vm24030_vm15, %v11276_v19, %v11283_v51  ;;  %v11488_v5 = vsel %vm25557_vm5, %v11285_v8, %v11487_v33 }
 0x5a7   : > { %11478 = vst [vmem:[#allocation2 + $0x84] sm:$0xf] %v11477_v42  ;;  %v11267_v43 = vsel %vm24030_vm15, %v11259_v63, %v11266_v12  ;;  %v11481_v31 = vsel %vm25557_vm5, %v11268_v18, %v11480_v14  ;;  %11486 = vst.msk [vmem:[#allocation2 + $0x94] sm:$0xf] %vm11402_vm1, %v11284_v59  ;;  %v11663_v57 = vsel %vm21867_vm4, %v11658_v40, %v11662_v35  ;;  %v11672_v49 = vrot.slane %v11670_v60, 5  ;;  %v25786_v63 = vld [vmem:[%s27579_s3 + $0x60] sm:$0xff]  }
 0x5a8   : > { %11489 = vst [vmem:[#allocation2 + $0x98] sm:$0x1] %v11488_v5  ;;  %11479 = vst.msk [vmem:[#allocation2 + $0x88] sm:$0xf] %vm11402_vm1, %v11267_v43  ;;  %v11668_v47 = vrot.slane %v11667_v44, 4  ;;  %v11675_v53 = vshrl.u32 %v25737_v10, 16  ;;  %20048 = vmatpush3.bf16.msra.mxu1 %v21448_v16  ;;  %v20429_v35 = vadd.f32 %v25667_v4, %v25519_v21  ;;  %v20430_v16 = vadd.f32 %v25673_v25, %v25521_v38 }
 0x5a9   : > { %11482 = vst [vmem:[#allocation2 + $0x8c] sm:$0x1] %v11481_v31  ;;  %v11678_v56 = vshll.u32 %v25737_v10, 16  ;;  %v11684_v52 = vshll.u32 %v25746_v48, 16  ;;  %v11688_v55 = vshrl.u32 %v25746_v48, 16  ;;  %v11694_v50 = vshll.u32 %v11566_v45, 16  ;;  %20049 = vmatprep.subr.bf16.mxu1 %v21449_v15 }
 0x5aa   : > { %v11673_v9 = vsel %vm21867_vm4, %v11668_v47, %v11672_v49  ;;  %v11677_v36 = vrot.slane %v11675_v53, 4  ;;  %v10980_v13 = vadd.f32 %v20429_v35, %v25538_v32  ;;  %v10978_v19 = vadd.f32 %v20430_v16, %v25538_v32  ;;  %v25795_v59 = vld [vmem:[#allocation2 + $0x40] sm:$0xf]  ;;  %v11567_v5 = vld [vmem:[#allocation2 + $0x44] sm:$0x1] }
 0x5ab   : > { %v18015_v54 = vcombine.low %v11663_v57, %v11673_v9  ;;  %v11680_v11 = vrot.slane %v11678_v56, 5  ;;  %v11686_v3 = vrot.slane %v11684_v52, 5  ;;  %v11690_v46 = vrot.slane %v11688_v55, 4  ;;  %v11497_v47 = vld [vmem:[#allocation2 + $0xa8] sm:$0xf] }
 0x5ac   : > { %v11696_v60 = vrot.slane %v11694_v50, 5  ;;  %v20431_v41 = vadd.f32 %v25675_v24, %v25523_v7  ;;  %20050 = vmatpush3.bf16.msra.mxu1 %v21449_v15  ;;  %v20432_v38 = vadd.f32 %v25681_v34, %v25525_v6  ;;  %v11699_v25 = vshrl.u32 %v25773_v0, 16  ;;  %v11490_v49 = vld [vmem:[#allocation2 + $0x9c] sm:$0xf] }
 0x5ad   : > { %20014 = vmatmul.mubr.msk.bf16.gmra.mrb[36].mxu1 %vm6541_vm10, %v18015_v54  ;;  %v11681_v21 = vor.u32 %v11680_v11, %v11677_v36  ;;  %v11691_v4 = vor.u32 %v11690_v46, %v11686_v3  ;;  %20051 = vmatprep.subr.bf16.mxu1 %v21450_v58  ;;  %v18550_v33 = vpack.c.bf16 %v10980_v13, %v10980_v13  ;;  %v11702_v24 = vshll.u32 %v25773_v0, 16  ;;  %v11494_v13 = vld [vmem:[#allocation2 + $0xa4] sm:$0x1] }
 0x5ae   : > { %v18548_v14 = vpack.c.bf16 %v10978_v19, %v10978_v19  ;;  %v10981_v7 = vadd.f32 %v20431_v41, %v25538_v32  ;;  %v10979_v8 = vadd.f32 %v20432_v38, %v25538_v32  ;;  %v11701_v12 = vrot.slane %v11699_v25, 4 }
 0x5af   : > { %v11682_v15 = vrot.slane %v11681_v21, 4  ;;  %v11692_v51 = vrot.slane %v11691_v4, 4  ;;  %v11304_v6 = vshrl.u32 %v18550_v33, 16  ;;  %v11307_v34 = vshll.u32 %v18550_v33, 16  ;;  %v25805_v21 = vld [vmem:[#allocation2 + $0x48] sm:$0xf] }
 0x5b0   : > { %v11287_v18 = vshrl.u32 %v18548_v14, 16  ;;  %v11290_v27 = vshll.u32 %v18548_v14, 16  ;;  %20052 = vmatpush3.bf16.msra.mxu1 %v21450_v58  ;;  %v18551_v44 = vpack.c.bf16 %v10981_v7, %v10981_v7  ;;  %v18549_v45 = vpack.c.bf16 %v10979_v8, %v10979_v8  ;;  %v25807_v14 = vld [vmem:[#allocation2 + $0x4c] sm:$0xf]  ;;  %v25809_v8 = vld [vmem:[#allocation2 + $0x50] sm:$0x1] }
 0x5b1   : > { %v11687_v42 = vsel %vm21867_vm4, %v11682_v15, %v11686_v3  ;;  %v11697_v40 = vsel %vm21867_vm4, %v11692_v51, %v11696_v60  ;;  %20085 = vmatprep.subr.bf16.mxu1 %v25786_v63  ;;  %v11306_v43 = vrot.slane %v11304_v6, 7  ;;  %v11704_v57 = vrot.slane %v11702_v24, 5  ;;  %v11501_v60 = vld [vmem:[#allocation2 + $0xb0] sm:$0x1] }
 0x5b2   : > { %v18016_v32 = vcombine.low %v11687_v42, %v11697_v40  ;;  %v11289_v31 = vrot.slane %v11287_v18, 7  ;;  %v11312_v53 = vshrl.u32 %v18551_v44, 16  ;;  %v11315_v56 = vshll.u32 %v18551_v44, 16 }
 0x5b3   : > { %v11295_v52 = vshrl.u32 %v18549_v45, 16  ;;  %v11298_v55 = vshll.u32 %v18549_v45, 16  ;;  %v11309_v50 = vor.u32 %v11307_v34, %v11306_v43  ;;  %v11310_v58 = vrot.slane %v11306_v43, 4 }
 0x5b4   : > { %20017 = vmatprep.mubr.msk.bf16.mxu1 %vm6541_vm10, %v18016_v32  ;;  %v11292_v9 = vor.u32 %v11290_v27, %v11289_v31  ;;  %v11293_v36 = vrot.slane %v11289_v31, 4  ;;  %v11314_v35 = vrot.slane %v11312_v53, 7  ;;  %v11705_v54 = vor.u32 %v11704_v57, %v11701_v12 }
 0x5b5   : > { %v11297_v16 = vrot.slane %v11295_v52, 7  ;;  %v11708_v11 = vshll.u32 %v25795_v59, 16  ;;  %v11498_v3 = vsel %vm25550_vm3, %v11309_v50, %v11497_v47  ;;  %v11712_v19 = vshrl.u32 %v25795_v59, 16 }
 0x5b6   : > { %v11491_v46 = vsel %vm25550_vm3, %v11292_v9, %v11490_v49  ;;  %v11718_v41 = vshll.u32 %v11567_v5, 16  ;;  %11499 = vst [vmem:[#allocation2 + $0xa8] sm:$0xf] %v11498_v3  ;;  %v11317_v4 = vor.u32 %v11315_v56, %v11314_v35  ;;  %v11319_v38 = vrot.slane %v11314_v35, 4 }
 0x5b7   : > { %11492 = vst [vmem:[#allocation2 + $0x9c] sm:$0xf] %v11491_v46  ;;  %v11300_v25 = vor.u32 %v11298_v55, %v11297_v16  ;;  %v11302_v33 = vrot.slane %v11297_v16, 4  ;;  %v11706_v7 = vrot.slane %v11705_v54, 4  ;;  %v11710_v24 = vrot.slane %v11708_v11, 5 }
 0x5b8   : > { %v11714_v15 = vrot.slane %v11712_v19, 4  ;;  %v11720_v51 = vrot.slane %v11718_v41, 5  ;;  %v11318_v12 = vsel %vm24030_vm15, %v11310_v58, %v11317_v4  ;;  %v11502_v6 = vsel %vm25557_vm5, %v11319_v38, %v11501_v60  ;;  %v21617_v55 = vld [vmem:[%s27581_s5] ss:$0 sm:$0xff]  ;;  %v25835_v58 = vld [vmem:[#allocation2 + $0x54] sm:$0xf] }
 0x5b9   : > { %v11301_v34 = vsel %vm24030_vm15, %v11293_v36, %v11300_v25  ;;  %v11495_v18 = vsel %vm25557_vm5, %v11302_v33, %v11494_v13  ;;  %11500 = vst.msk [vmem:[#allocation2 + $0xac] sm:$0xf] %vm11402_vm1, %v11318_v12  ;;  %11503 = vst [vmem:[#allocation2 + $0xb0] sm:$0x1] %v11502_v6  ;;  %v11711_v27 = vsel %vm21867_vm4, %v11706_v7, %v11710_v24  ;;  %v11723_v40 = vshrl.u32 %v25805_v21, 16 }
 0x5ba   : > { %11493 = vst.msk [vmem:[#allocation2 + $0xa0] sm:$0xf] %vm11402_vm1, %v11301_v34  ;;  %11496 = vst [vmem:[#allocation2 + $0xa4] sm:$0x1] %v11495_v18  ;;  %v11715_v42 = vor.u32 %v11714_v15, %v11710_v24  ;;  %v11726_v44 = vshll.u32 %v25805_v21, 16  ;;  %v11732_v45 = vshll.u32 %v25807_v14, 16  ;;  %v20433_v43 = vadd.f32 %v25685_v30, %v25527_v37 }
 0x5bb   : > { %v11736_v5 = vshrl.u32 %v25807_v14, 16  ;;  %v11742_v32 = vshll.u32 %v25809_v8, 16  ;;  %v11725_v57 = vrot.slane %v11723_v40, 4  ;;  %v20434_v49 = vadd.f32 %v25689_v17, %v25529_v23  ;;  %v25849_v33 = vld [vmem:[#allocation2 + $0x58] sm:$0xf] }
 0x5bc   : > { %v11716_v31 = vrot.slane %v11715_v42, 4  ;;  %v11728_v47 = vrot.slane %v11726_v44, 5  ;;  %v11734_v53 = vrot.slane %v11732_v45, 5  ;;  %v10984_v50 = vadd.f32 %v21617_v55, %v20433_v43  ;;  %v11511_v18 = vld [vmem:[#allocation2 + $0xc0] sm:$0xf] }
 0x5bd   : > { %v11738_v56 = vrot.slane %v11736_v5, 4  ;;  %v11744_v52 = vrot.slane %v11742_v32, 5  ;;  %v10982_v30 = vadd.f32 %v21617_v55, %v20434_v49  ;;  %v20435_v36 = vadd.f32 %v25699_v1, %v25531_v61  ;;  %v11504_v45 = vld [vmem:[#allocation2 + $0xb4] sm:$0xf] }
 0x5be   : > { %v11721_v9 = vsel %vm21867_vm4, %v11716_v31, %v11720_v51  ;;  %v11729_v37 = vor.u32 %v11728_v47, %v11725_v57  ;;  %v18554_v17 = vpack.c.bf16 %v10984_v50, %v10984_v50  ;;  %v20436_v16 = vadd.f32 %v25706_v62, %v25533_v20  ;;  %v25855_v57 = vld [vmem:[#allocation2 + $0x5c] sm:$0x1] }
 0x5bf   : > { %v18017_v35 = vcombine.low %v11711_v27, %v11721_v9  ;;  %v11739_v23 = vor.u32 %v11738_v56, %v11734_v53  ;;  %v18552_v11 = vpack.c.bf16 %v10982_v30, %v10982_v30  ;;  %v10985_v3 = vadd.f32 %v21617_v55, %v20435_v36  ;;  %v25861_v9 = vld [vmem:[#allocation2 + $0x60] sm:$0xf] }
 0x5c0   : > { %v11730_v54 = vrot.slane %v11729_v37, 4  ;;  %v11747_v46 = vshrl.u32 %v25835_v58, 16  ;;  %v11338_v13 = vshrl.u32 %v18554_v17, 16  ;;  %v11341_v19 = vshll.u32 %v18554_v17, 16 }
 0x5c1   : > { %20018 = vmatmul.mubr.msk.bf16.gmra.mrb[40].mxu1 %vm6541_vm10, %v18017_v35  ;;  %v11740_v60 = vrot.slane %v11739_v23, 4  ;;  %v10983_v41 = vadd.f32 %v21617_v55, %v20436_v16  ;;  %v11321_v1 = vshrl.u32 %v18552_v11, 16  ;;  %v11324_v4 = vshll.u32 %v18552_v11, 16  ;;  %v11515_v55 = vld [vmem:[#allocation2 + $0xc8] sm:$0x1] }
 0x5c2   : > { %v11735_v61 = vsel %vm21867_vm4, %v11730_v54, %v11734_v53  ;;  %v18555_v38 = vpack.c.bf16 %v10985_v3, %v10985_v3  ;;  %v11340_v62 = vrot.slane %v11338_v13, 7  ;;  %v11749_v7 = vrot.slane %v11747_v46, 4  ;;  %v25863_v23 = vld [vmem:[#allocation2 + $0x64] sm:$0xf]  ;;  %v11508_v16 = vld [vmem:[#allocation2 + $0xbc] sm:$0x1] }
 0x5c3   : > { %v11745_v20 = vsel %vm21867_vm4, %v11740_v60, %v11744_v52  ;;  %v18553_v25 = vpack.c.bf16 %v10983_v41, %v10983_v41  ;;  %v11323_v15 = vrot.slane %v11321_v1, 7  ;;  %v11750_v32 = vshll.u32 %v25835_v58, 16  ;;  %v25870_v3 = vld [vmem:[#allocation2 + $0x68] sm:$0x1]  ;;  %v25878_v41 = vld [vmem:[#allocation2 + $0x6c] sm:$0xf] }
 0x5c4   : > { %v18018_v24 = vcombine.low %v11735_v61, %v11745_v20  ;;  %v11346_v51 = vshrl.u32 %v18555_v38, 16  ;;  %v11349_v12 = vshll.u32 %v18555_v38, 16  ;;  %v11343_v6 = vor.u32 %v11341_v19, %v11340_v62 }
 0x5c5   : > { %v11344_v34 = vrot.slane %v11340_v62, 4  ;;  %v11329_v27 = vshrl.u32 %v18553_v25, 16  ;;  %v11332_v42 = vshll.u32 %v18553_v25, 16  ;;  %v11326_v40 = vor.u32 %v11324_v4, %v11323_v15  ;;  %v25885_v25 = vld [vmem:[#allocation2 + $0x70] sm:$0xf] }
 0x5c6   : > { %20021 = vmatprep.mubr.msk.bf16.mxu1 %vm6541_vm10, %v18018_v24  ;;  %v11327_v44 = vrot.slane %v11323_v15, 4  ;;  %v11348_v5 = vrot.slane %v11346_v51, 7  ;;  %v11512_v43 = vsel %vm25550_vm3, %v11343_v6, %v11511_v18  ;;  %v11756_v47 = vshll.u32 %v25849_v33, 16  ;;  %v25889_v51 = vld [vmem:[#allocation2 + $0x74] sm:$0x1] }
 0x5c7   : > { %v11331_v31 = vrot.slane %v11329_v27, 7  ;;  %v11760_v49 = vshrl.u32 %v25849_v33, 16  ;;  %11513 = vst [vmem:[#allocation2 + $0xc0] sm:$0xf] %v11512_v43  ;;  %v11505_v53 = vsel %vm25550_vm3, %v11326_v40, %v11504_v45  ;;  %v11752_v50 = vrot.slane %v11750_v32, 5 }
 0x5c8   : > { %v11351_v56 = vor.u32 %v11349_v12, %v11348_v5  ;;  %v11353_v52 = vrot.slane %v11348_v5, 4  ;;  %11506 = vst [vmem:[#allocation2 + $0xb4] sm:$0xf] %v11505_v53  ;;  %v11758_v36 = vrot.slane %v11756_v47, 5  ;;  %v11766_v11 = vshll.u32 %v25855_v57, 16 }
 0x5c9   : > { %v11334_v37 = vor.u32 %v11332_v42, %v11331_v31  ;;  %v11336_v30 = vrot.slane %v11331_v31, 4  ;;  %v11762_v35 = vrot.slane %v11760_v49, 4  ;;  %v11753_v54 = vor.u32 %v11752_v50, %v11749_v7  ;;  %v25895_v42 = vld [vmem:[#allocation2 + $0x78] sm:$0xf]  ;;  %v25898_v32 = vld [vmem:[#allocation2 + $0x7c] sm:$0xf] }
 0x5ca   : > { %v11352_v17 = vsel %vm24030_vm15, %v11344_v34, %v11351_v56  ;;  %v11516_v29 = vsel %vm25557_vm5, %v11353_v52, %v11515_v55  ;;  %v11771_v19 = vshrl.u32 %v25861_v9, 16  ;;  %v11768_v1 = vrot.slane %v11766_v11, 5  ;;  %v25910_v11 = vld [vmem:[#allocation2 + $0x84] sm:$0xf] }
 0x5cb   : > { %11514 = vst.msk [vmem:[#allocation2 + $0xc4] sm:$0xf] %vm11402_vm1, %v11352_v17  ;;  %11517 = vst [vmem:[#allocation2 + $0xc8] sm:$0x1] %v11516_v29  ;;  %v11335_v46 = vsel %vm24030_vm15, %v11327_v44, %v11334_v37  ;;  %v11509_v60 = vsel %vm25557_vm5, %v11336_v30, %v11508_v16  ;;  %v11763_v13 = vor.u32 %v11762_v35, %v11758_v36  ;;  %v11754_v61 = vrot.slane %v11753_v54, 4 }
 0x5cc   : > { %11507 = vst.msk [vmem:[#allocation2 + $0xb8] sm:$0xf] %vm11402_vm1, %v11335_v46  ;;  %11510 = vst [vmem:[#allocation2 + $0xbc] sm:$0x1] %v11509_v60  ;;  %v11774_v4 = vshll.u32 %v25861_v9, 16  ;;  %v11780_v38 = vshll.u32 %v25863_v23, 16 }
 0x5cd   : > { %v11764_v20 = vrot.slane %v11763_v13, 4  ;;  %v11773_v39 = vrot.slane %v11771_v19, 4  ;;  %v11784_v62 = vshrl.u32 %v25863_v23, 16  ;;  %v11790_v22 = vshll.u32 %v25870_v3, 16  ;;  %v25905_v35 = vld [vmem:[#allocation2 + $0x80] sm:$0x1] }
 0x5ce   : > { %v11759_v7 = vsel %vm21867_vm4, %v11754_v61, %v11758_v36  ;;  %v11776_v24 = vrot.slane %v11774_v4, 5  ;;  %v11782_v15 = vrot.slane %v11780_v38, 5  ;;  %v11795_v12 = vshrl.u32 %v25878_v41, 16  ;;  %v25915_v61 = vld [vmem:[#allocation2 + $0x88] sm:$0xf] }
 0x5cf   : > { %v11769_v6 = vsel %vm21867_vm4, %v11764_v20, %v11768_v1  ;;  %v11786_v34 = vrot.slane %v11784_v62, 4  ;;  %v11792_v18 = vrot.slane %v11790_v22, 5  ;;  %v11798_v27 = vshll.u32 %v25878_v41, 16 }
 0x5d0   : > { %v18019_v40 = vcombine.low %v11759_v7, %v11769_v6  ;;  %v11777_v44 = vor.u32 %v11776_v24, %v11773_v39  ;;  %v11797_v45 = vrot.slane %v11795_v12, 4  ;;  %v11804_v5 = vshll.u32 %v25885_v25, 16  ;;  %v25921_v24 = vld [vmem:[#allocation2 + $0x90] sm:$0xf]  ;;  %v25924_v6 = vld [vmem:[#allocation2 + $0x8c] sm:$0x1] }
 0x5d1   : > { %v11787_v43 = vor.u32 %v11786_v34, %v11782_v15  ;;  %v11800_v31 = vrot.slane %v11798_v27, 5  ;;  %v11808_v47 = vshrl.u32 %v25885_v25, 16  ;;  %v11814_v49 = vshll.u32 %v25889_v51, 16 }
 0x5d2   : > { %20022 = vmatmul.mubr.msk.bf16.gmra.mrb[44].mxu1 %vm6541_vm10, %v18019_v40  ;;  %v11778_v53 = vrot.slane %v11777_v44, 4  ;;  %v11806_v56 = vrot.slane %v11804_v5, 5  ;;  %v11819_v52 = vshrl.u32 %v25895_v42, 16  ;;  %v11822_v55 = vshll.u32 %v25895_v42, 16  ;;  %v25931_v5 = vld [vmem:[#allocation2 + $0x94] sm:$0xf] }
 0x5d3   : > { %v11788_v50 = vrot.slane %v11787_v43, 4  ;;  %v11801_v37 = vor.u32 %v11800_v31, %v11797_v45  ;;  %v11810_v30 = vrot.slane %v11808_v47, 4  ;;  %v11816_v36 = vrot.slane %v11814_v49, 5 }
 0x5d4   : > { %v11783_v17 = vsel %vm21867_vm4, %v11778_v53, %v11782_v15  ;;  %v11821_v29 = vrot.slane %v11819_v52, 4  ;;  %v11824_v16 = vrot.slane %v11822_v55, 5  ;;  %v11828_v54 = vshll.u32 %v25898_v32, 16  ;;  %v25936_v55 = vld [vmem:[#allocation2 + $0x98] sm:$0x1] }
 0x5d5   : > { %v11793_v46 = vsel %vm21867_vm4, %v11788_v50, %v11792_v18  ;;  %v11802_v60 = vrot.slane %v11801_v37, 4  ;;  %v11811_v13 = vor.u32 %v11810_v30, %v11806_v56  ;;  %v11832_v19 = vshrl.u32 %v25898_v32, 16 }
 0x5d6   : > { %v18020_v1 = vcombine.low %v11783_v17, %v11793_v46  ;;  %v11825_v4 = vor.u32 %v11824_v16, %v11821_v29  ;;  %v11830_v38 = vrot.slane %v11828_v54, 5  ;;  %v11838_v20 = vshll.u32 %v25905_v35, 16  ;;  %v25943_v29 = vld [vmem:[#allocation2 + $0x9c] sm:$0xf] }
 0x5d7   : > { %v11807_v39 = vsel %vm21867_vm4, %v11802_v60, %v11806_v56  ;;  %v11812_v62 = vrot.slane %v11811_v13, 4  ;;  %v11834_v22 = vrot.slane %v11832_v19, 4  ;;  %v11843_v7 = vshrl.u32 %v25910_v11, 16  ;;  %v25947_v13 = vld [vmem:[#allocation2 + $0xa0] sm:$0xf] }
 0x5d8   : > { %20025 = vmatprep.mubr.msk.bf16.mxu1 %vm6541_vm10, %v18020_v1  ;;  %v11826_v15 = vrot.slane %v11825_v4, 4  ;;  %v11840_v12 = vrot.slane %v11838_v20, 5  ;;  %v11846_v34 = vshll.u32 %v25910_v11, 16  ;;  %v11852_v18 = vshll.u32 %v25915_v61, 16 }
 0x5d9   : > { %v11817_v27 = vsel %vm21867_vm4, %v11812_v62, %v11816_v36  ;;  %v11835_v40 = vor.u32 %v11834_v22, %v11830_v38  ;;  %v11845_v44 = vrot.slane %v11843_v7, 4  ;;  %v11856_v45 = vshrl.u32 %v25915_v61, 16 }
 0x5da   : > { %v18021_v43 = vcombine.low %v11807_v39, %v11817_v27  ;;  %v11831_v31 = vsel %vm21867_vm4, %v11826_v15, %v11830_v38  ;;  %v11848_v47 = vrot.slane %v11846_v34, 5  ;;  %v11854_v49 = vrot.slane %v11852_v18, 5  ;;  %v25954_v34 = vld [vmem:[#allocation2 + $0xa8] sm:$0xf] }
 0x5db   : > { %v11836_v53 = vrot.slane %v11835_v40, 4  ;;  %v11858_v56 = vrot.slane %v11856_v45, 4  ;;  %v11862_v52 = vshll.u32 %v25924_v6, 16  ;;  %v11867_v50 = vshrl.u32 %v25921_v24, 16 }
 0x5dc   : > { %20026 = vmatmul.mubr.msk.bf16.gmra.mrb[48].mxu1 %vm6541_vm10, %v18021_v43  ;;  %v11849_v37 = vor.u32 %v11848_v47, %v11845_v44  ;;  %v11870_v30 = vshll.u32 %v25921_v24, 16  ;;  %v11876_v36 = vshll.u32 %v25931_v5, 16  ;;  %v11880_v17 = vshrl.u32 %v25931_v5, 16  ;;  %v25960_v44 = vld [vmem:[#allocation2 + $0xa4] sm:$0x1] }
 0x5dd   : > { %v11841_v16 = vsel %vm21867_vm4, %v11836_v53, %v11840_v12  ;;  %v11859_v54 = vor.u32 %v11858_v56, %v11854_v49  ;;  %v11864_v46 = vrot.slane %v11862_v52, 5  ;;  %v11869_v60 = vrot.slane %v11867_v50, 4  ;;  %v25962_v43 = vld [vmem:[#allocation2 + $0xac] sm:$0xf] }
 0x5de   : > { %v18022_v19 = vcombine.low %v11831_v31, %v11841_v16  ;;  %v11850_v1 = vrot.slane %v11849_v37, 4  ;;  %v11872_v4 = vrot.slane %v11870_v30, 5  ;;  %v11878_v38 = vrot.slane %v11876_v36, 5 }
 0x5df   : > { %v11860_v20 = vrot.slane %v11859_v54, 4  ;;  %v11882_v39 = vrot.slane %v11880_v17, 4  ;;  %v11886_v62 = vshll.u32 %v25936_v55, 16  ;;  %v11891_v22 = vshrl.u32 %v25943_v29, 16  ;;  %v25970_v54 = vld [vmem:[#allocation2 + $0xb4] sm:$0xf] }
 0x5e0   : > { %20029 = vmatprep.mubr.msk.bf16.mxu1 %vm6541_vm10, %v18022_v19  ;;  %v11873_v7 = vor.u32 %v11872_v4, %v11869_v60  ;;  %v11894_v15 = vshll.u32 %v25943_v29, 16  ;;  %v11900_v12 = vshll.u32 %v25947_v13, 16  ;;  %v11855_v18 = vsel %vm21867_vm4, %v11850_v1, %v11854_v49  ;;  %v25976_v4 = vld [vmem:[#allocation2 + $0xb8] sm:$0xf] }
 0x5e1   : > { %v11865_v27 = vsel %vm21867_vm4, %v11860_v20, %v11864_v46  ;;  %v11883_v40 = vor.u32 %v11882_v39, %v11878_v38  ;;  %v11893_v45 = vrot.slane %v11891_v22, 4  ;;  %v11888_v53 = vrot.slane %v11886_v62, 5  ;;  %v25978_v62 = vld [vmem:[#allocation2 + $0xb0] sm:$0x1] }
 0x5e2   : > { %v18023_v31 = vcombine.low %v11855_v18, %v11865_v27  ;;  %v11874_v47 = vrot.slane %v11873_v7, 4  ;;  %v11896_v56 = vrot.slane %v11894_v15, 5  ;;  %v11902_v50 = vrot.slane %v11900_v12, 5 }
 0x5e3   : > { %v11884_v52 = vrot.slane %v11883_v40, 4  ;;  %v11904_v37 = vshrl.u32 %v25947_v13, 16  ;;  %v11915_v30 = vshrl.u32 %v25954_v34, 16  ;;  %v11910_v36 = vshll.u32 %v25960_v44, 16  ;;  %v25983_v40 = vld [vmem:[#allocation2 + $0xbc] sm:$0x1] }
 0x5e4   : > { %20030 = vmatmul.mubr.msk.bf16.gmra.mrb[52].mxu1 %vm6541_vm10, %v18023_v31  ;;  %v11897_v49 = vor.u32 %v11896_v56, %v11893_v45  ;;  %v11918_v17 = vshll.u32 %v25954_v34, 16  ;;  %v11924_v16 = vshll.u32 %v25962_v43, 16  ;;  %v11879_v46 = vsel %vm21867_vm4, %v11874_v47, %v11878_v38 }
 0x5e5   : > { %v11889_v60 = vsel %vm21867_vm4, %v11884_v52, %v11888_v53  ;;  %v11906_v19 = vrot.slane %v11904_v37, 4  ;;  %v11917_v1 = vrot.slane %v11915_v30, 4  ;;  %v11928_v12 = vshrl.u32 %v25962_v43, 16 }
 0x5e6   : > { %v18024_v20 = vcombine.low %v11879_v46, %v11889_v60  ;;  %v11898_v39 = vrot.slane %v11897_v49, 4  ;;  %v11920_v22 = vrot.slane %v11918_v17, 5  ;;  %v11926_v15 = vrot.slane %v11924_v16, 5 }
 0x5e7   : > { %v11907_v7 = vor.u32 %v11906_v19, %v11902_v50  ;;  %v11939_v18 = vshrl.u32 %v25970_v54, 16  ;;  %v11912_v38 = vrot.slane %v11910_v36, 5  ;;  %v11942_v45 = vshll.u32 %v25970_v54, 16 }
 0x5e8   : > { %20033 = vmatprep.mubr.msk.bf16.mxu1 %vm6541_vm10, %v18024_v20  ;;  %v11921_v27 = vor.u32 %v11920_v22, %v11917_v1  ;;  %v11948_v31 = vshll.u32 %v25976_v4, 16  ;;  %v11930_v53 = vrot.slane %v11928_v12, 4  ;;  %v11934_v56 = vshll.u32 %v25978_v62, 16 }
 0x5e9   : > { %v11908_v47 = vrot.slane %v11907_v7, 4  ;;  %v11941_v52 = vrot.slane %v11939_v18, 4  ;;  %v11903_v37 = vsel %vm21867_vm4, %v11898_v39, %v11902_v50  ;;  %v11944_v30 = vrot.slane %v11942_v45, 5 }
 0x5ea   : > { %v11950_v49 = vrot.slane %v11948_v31, 5  ;;  %v11952_v17 = vshrl.u32 %v25976_v4, 16  ;;  %v11922_v16 = vrot.slane %v11921_v27, 4  ;;  %v11931_v46 = vor.u32 %v11930_v53, %v11926_v15 }
 0x5eb   : > { %v11913_v36 = vsel %vm21867_vm4, %v11908_v47, %v11912_v38  ;;  %v11958_v60 = vshll.u32 %v25983_v40, 16  ;;  %v11945_v1 = vor.u32 %v11944_v30, %v11941_v52  ;;  %v11936_v7 = vrot.slane %v11934_v56, 5 }
 0x5ec   : > { %v18025_v19 = vcombine.low %v11903_v37, %v11913_v36  ;;  %v11954_v20 = vrot.slane %v11952_v17, 4  ;;  %v11932_v22 = vrot.slane %v11931_v46, 4  ;;  %v11927_v39 = vsel %vm21867_vm4, %v11922_v16, %v11926_v15  ;;  %v21618_v46 = vld [vmem:[#allocation2] sm:$0xf] }
 0x5ed   : > { %v11946_v12 = vrot.slane %v11945_v1, 4  ;;  %v11960_v38 = vrot.slane %v11958_v60, 5  ;;  %v18057_v27 = vcombine.low %v25835_v58, %v25849_v33  ;;  %v18058_v53 = vcombine.low %v25861_v9, %v25863_v23  ;;  %v26022_v60 = vld [vmem:[#allocation2 + $0x4] sm:$0xf]  ;;  %v21620_v1 = vld [vmem:[#allocation2 + $0xc] sm:$0xf] }
 0x5ee   : > { %20034 = vmatmul.mubr.msk.bf16.gmra.mrb[56].mxu1 %vm6541_vm10, %v18025_v19  ;;  %v11955_v50 = vor.u32 %v11954_v20, %v11950_v49  ;;  %v11937_v18 = vsel %vm21867_vm4, %v11932_v22, %v11936_v7  ;;  %v18059_v56 = vcombine.low %v25878_v41, %v25885_v25  ;;  %v18060_v15 = vcombine.low %v25895_v42, %v25898_v32  ;;  %v26027_v20 = vld [vmem:[#allocation2 + $0x10] sm:$0xf]  ;;  %v21452_v7 = vld [vmem:[%s27579_s3 + $0x68] sm:$0xff]   ;;  %v12593_v9 = vld [vmem:[#allocation2] sm:$0xe] }
 0x5ef   : > { %v18026_v45 = vcombine.low %v11927_v39, %v11937_v18  ;;  %v11951_v31 = vsel %vm21867_vm4, %v11946_v12, %v11950_v49  ;;  %v18061_v52 = vcombine.low %v25910_v11, %v25915_v61  ;;  %v18050_v19 = vcombine.low %v21618_v46, %v26022_v60  ;;  %v12600_v12 = vld [vmem:[#allocation2 + $0x54] sm:$0xe]  ;;  %v26033_v39 = vld [vmem:[#allocation2 + $0x1c] sm:$0xf]  ;;  %v21624_v46 = vld [vmem:[#allocation2 + $0x24] sm:$0xf] }
 0x5f0   : > { %v11956_v47 = vrot.slane %v11955_v50, 4  ;;  %v18051_v22 = vcombine.low %v21620_v1, %v26027_v20  ;;  %v21622_v50 = vld [vmem:[#allocation2 + $0x18] sm:$0xf]  ;;  %v21453_v1 = vld [vmem:[%s27579_s3 + $0x70] sm:$0xff]   ;;  %v12702_v17 = vrot.slane %v25870_v3, 5  ;;  %v18056_v37 = vcombine.low %v25805_v21, %v25807_v14 }
 0x5f1   : > { %20037 = vmatprep.mubr.msk.bf16.mxu1 %vm6541_vm10, %v18026_v45  ;;  %v18052_v18 = vcombine.low %v21622_v50, %v26033_v39  ;;  %v12692_v45 = vrot.slane %v25849_v33, 5  ;;  %v12695_v50 = vrot.slane %v25855_v57, 5  ;;  %v12606_v49 = vld [vmem:[#allocation2 + $0x9c] sm:$0xe]  ;;  %v27898_v58 = vcombine.low %v25921_v24, %v25931_v5 }
 0x5f2   : > { %v11961_v30 = vsel %vm21867_vm4, %v11956_v47, %v11960_v38  ;;  %v12601_v38 = vld [vmem:[#allocation2 + $0x60] sm:$0xe]  ;;  %v12699_v47 = vrot.slane %v25863_v23, 5  ;;  %v12643_v33 = vrot.slane %v26022_v60, 5  ;;  %v18088_v23 = vrot.slane %v12593_v9, 9 }
 0x5f3   : > { %v18027_v16 = vcombine.low %v11951_v31, %v11961_v30  ;;  %v18095_v31 = vrot.slane %v12600_v12, 9  ;;  %v12602_v30 = vld [vmem:[#allocation2 + $0x6c] sm:$0xe]  ;;  %v18096_v36 = vrot.slane %v12601_v38, 9  ;;  %v12720_v38 = vrot.slane %v25915_v61, 5 }
 0x5f4   : > { %v12645_v41 = vrot.slane %v12643_v33, 4  ;;  %v27899_v42 = vcombine.low %v25943_v29, %v25947_v13  ;;  %v12644_v11 = vsel %vm22224_vm7, %v18088_v23, %v12643_v33  ;;  %v12650_v24 = vrot.slane %v26027_v20, 5  ;;  %v21630_v9 = vld [vmem:[#allocation2 + $0x2c] sm:$0x1] }
 0x5f5   : > { %v26050_v12 = vsel %vm22224_vm7, %v18095_v31, %v12692_v45  ;;  %v26062_v57 = vsel %vm22224_vm7, %v18096_v36, %v12699_v47  ;;  %v12713_v31 = vrot.slane %v25898_v32, 5  ;;  %v27900_v32 = vcombine.low %v25954_v34, %v25962_v43 }
 0x5f6   : > { %20038 = vmatmul.mubr.msk.bf16.gmra.mrb[60].mxu1 %vm6541_vm10, %v18027_v16  ;;  %v12603_v16 = vld [vmem:[#allocation2 + $0x78] sm:$0xe]  ;;  %v27901_v29 = vcombine.low %v25970_v54, %v25976_v4  ;;  %v12667_v23 = vrot.slane %v21630_v9, 5 }
 0x5f7   : > { %20053 = vmatprep.mubr.msk.bf16.mxu1 %vm6541_vm10, %v18050_v19  ;;  %v18053_v19 = vcombine.low %v21624_v46, %v25716_v2  ;;  %v21457_v2 = vld [vmem:[%s27579_s3 + $0x78] sm:$0xff]  }
 0x5fe   : > { %20054 = vmatmul.mubr.msk.bf16.vlgmr.msra.gmra.mrb[32].mxu1 %vm6541_vm10, %v18051_v22  ;;  %v12694_v22 = vrot.slane %v12692_v45, 4  ;;  %v18098_v45 = vrot.slane %v12603_v16, 9  ;;  %v12715_v16 = vrot.slane %v12713_v31, 4 }
 0x5ff   : > { %20057 = vmatprep.mubr.msk.bf16.mxu1 %vm6541_vm10, %v18052_v18  ;;  %20086 = vmatpush3.bf16.msra.mxu1 %v25786_v63  ;;  %v18054_v63 = vcombine.low %v25737_v10, %v25746_v48  ;;  %v12701_v18 = vrot.slane %v12699_v47, 4  ;;  %v18097_v10 = vrot.slane %v12602_v30, 9  ;;  %v12706_v48 = vrot.slane %v25885_v25, 5  ;;  %v21625_v25 = vld [vmem:[#allocation2 + $0x8] sm:$0x1] }
 0x600   : > { %20087 = vmatprep.subr.bf16.mxu1 %v21452_v7  ;;  %v26058_v46 = vsel %vm22224_vm7, %v12694_v22, %v12695_v50  ;;  %v12604_v22 = vld [vmem:[#allocation2 + $0x84] sm:$0xe]  ;;  %v12709_v30 = vrot.slane %v25889_v51, 5  ;;  %v12605_v50 = vld [vmem:[#allocation2 + $0x90] sm:$0xe]  ;;  %v12727_v51 = vrot.slane %v25931_v5, 5 }
 0x601   : > { %v26069_v3 = vsel %vm22224_vm7, %v12701_v18, %v12702_v17  ;;  %v26076_v47 = vsel %vm22224_vm7, %v18097_v10, %v12706_v48  ;;  %v26081_v17 = vsel %vm22224_vm7, %v18098_v45, %v12713_v31  ;;  %v12716_v18 = vrot.slane %v25905_v35, 5 }
 0x602   : > { %v18099_v10 = vrot.slane %v12604_v22, 9  ;;  %v18100_v31 = vrot.slane %v12605_v50, 9  ;;  %v18055_v22 = vcombine.low %v25773_v0, %v25795_v59  ;;  %v18101_v45 = vrot.slane %v12606_v49, 9 }
 0x603   : > { %20088 = vmatpush3.bf16.msra.mxu1 %v21452_v7  ;;  %v12708_v7 = vrot.slane %v12706_v48, 4  ;;  %v12723_v48 = vrot.slane %v25924_v6, 5  ;;  %v26097_v35 = vsel %vm22224_vm7, %v12715_v16, %v12716_v18  ;;  %v21461_v6 = vld [vmem:[%s27579_s3 + $0x80] sm:$0xff]   ;;  %v12734_v18 = vrot.slane %v25947_v13, 5  ;;  %v12594_v13 = vld [vmem:[#allocation2 + $0xc] sm:$0xe] }
 0x604   : > { %20089 = vmatprep.subr.bf16.mxu1 %v21453_v1  ;;  %v26109_v16 = vsel %vm22224_vm7, %v18099_v10, %v12720_v38  ;;  %v26117_v0 = vsel %vm22224_vm7, %v18100_v31, %v12727_v51  ;;  %v12608_v10 = vld [vmem:[#allocation2 + $0xb4] sm:$0xe]  ;;  %v12657_v5 = vrot.slane %v26033_v39, 5  ;;  %v21628_v39 = vld [vmem:[#allocation2 + $0x28] sm:$0xf] }
 0x605   : > { %v26088_v36 = vsel %vm22224_vm7, %v12708_v7, %v12709_v30  ;;  %v12730_v7 = vrot.slane %v25936_v55, 5  ;;  %v12607_v30 = vld [vmem:[#allocation2 + $0xa8] sm:$0xe] }
 0x606   : > { %20058 = vmatmul.mubr.msk.bf16.gmra.mrb[36].mxu1 %vm6541_vm10, %v18053_v19  ;;  %v12722_v19 = vrot.slane %v12720_v38, 4  ;;  %v12741_v38 = vrot.slane %v25962_v43, 5  ;;  %v18102_v31 = vrot.slane %v12607_v30, 9  ;;  %v18103_v30 = vrot.slane %v12608_v10, 9  ;;  %v21626_v43 = vld [vmem:[#allocation2 + $0x14] sm:$0x1] }
 0x607   : > { %20061 = vmatprep.mubr.msk.bf16.mxu1 %vm6541_vm10, %v18054_v63  ;;  %20090 = vmatpush3.bf16.msra.mxu1 %v21453_v1  ;;  %v12729_v63 = vrot.slane %v12727_v51, 4  ;;  %v12737_v51 = vrot.slane %v25960_v44, 5  ;;  %v12659_v34 = vrot.slane %v12657_v5, 4 }
 0x608   : > { %20091 = vmatprep.subr.bf16.mxu1 %v21457_v2  ;;  %v26113_v50 = vsel %vm22224_vm7, %v12722_v19, %v12723_v48  ;;  %v12736_v19 = vrot.slane %v12734_v18, 4  ;;  %v12743_v49 = vrot.slane %v12741_v38, 4  ;;  %v26139_v48 = vsel %vm22224_vm7, %v18101_v45, %v12734_v18 }
 0x609   : > { %v26124_v55 = vsel %vm22224_vm7, %v12729_v63, %v12730_v7  ;;  %v21464_v63 = vld [vmem:[%s27579_s3 + $0x88] sm:$0xff]   ;;  %v12744_v7 = vrot.slane %v25978_v62, 5  ;;  %v26147_v21 = vsel %vm22224_vm7, %v18102_v31, %v12741_v38  ;;  %v12751_v18 = vrot.slane %v25983_v40, 5  ;;  %v14274_v40 = vld [vmem:[#allocation2 + $0x90] sm:$0xe] }
 0x60a   : > { %v26143_v44 = vsel %vm22224_vm7, %v12736_v19, %v12737_v51  ;;  %v12664_v51 = vrot.slane %v21628_v39, 5  ;;  %v26404_v38 = vld [vmem:[#allocation2 + $0xa0] sm:$0xf]  ;;  %v18265_v62 = vrot.slane %v14274_v40, 9 }
 0x60b   : > { %20092 = vmatpush3.bf16.msra.mxu1 %v21457_v2  ;;  %v12748_v2 = vrot.slane %v25976_v4, 5  ;;  %v26154_v1 = vsel %vm22224_vm7, %v12743_v49, %v12744_v7  ;;  %v21629_v4 = vld [vmem:[#allocation2 + $0x34] sm:$0xf] }
 0x60c   : > { %20093 = vmatprep.subr.bf16.mxu1 %v21461_v6 }
 0x60d   : > { %v12750_v45 = vrot.slane %v12748_v2, 4  ;;  %v26165_v10 = vsel %vm22224_vm7, %v18103_v30, %v12748_v2  ;;  %v21467_v30 = vld [vmem:[%s27579_s3 + $0x98] sm:$0xff]  }
 0x60e   : > { %20062 = vmatmul.mubr.msk.bf16.gmra.mrb[40].mxu1 %vm6541_vm10, %v18055_v22  ;;  %v21466_v22 = vld [vmem:[%s27579_s3 + $0x90] sm:$0xff]  }
 0x60f   : > { %20065 = vmatprep.mubr.msk.bf16.mxu1 %vm6541_vm10, %v18056_v37  ;;  %20094 = vmatpush3.bf16.msra.mxu1 %v21461_v6  ;;  %v26169_v19 = vsel %vm22224_vm7, %v12750_v45, %v12751_v18  ;;  %v21627_v37 = vld [vmem:[#allocation2 + $0x20] sm:$0x1]  ;;  %v18089_v6 = vrot.slane %v12594_v13, 9  ;;  %v12666_v18 = vrot.slane %v12664_v51, 4  ;;  %v21469_v13 = vld [vmem:[%s27579_s3 + $0xa8] sm:$0xff]  }
 0x610   : > { %20095 = vmatprep.subr.bf16.mxu1 %v21464_v63  ;;  %v12660_v60 = vrot.slane %v21627_v37, 5  ;;  %v12599_v37 = vld [vmem:[#allocation2 + $0x48] sm:$0xe] }
 0x611   : > { %v12651_v49 = vsel %vm22224_vm7, %v18089_v6, %v12650_v24  ;;  %v21470_v6 = vld [vmem:[%s27579_s3 + $0xb0] sm:$0xff]  }
 0x612   : > { %v12661_v54 = vsel %vm22224_vm7, %v12659_v34, %v12660_v60  ;;  %v12688_v60 = vrot.slane %v25809_v8, 5 }
 0x613   : > { %20096 = vmatpush3.bf16.msra.mxu1 %v21464_v63  ;;  %v12671_v63 = vrot.slane %v21629_v4, 5 }
 0x614   : > { %20129 = vmatprep.subr.bf16.mxu1 %v21466_v22 }
 0x615   : > { %v12673_v33 = vrot.slane %v12671_v63, 4 }
 0x616   : > { %20066 = vmatmul.mubr.msk.bf16.gmra.mrb[44].mxu1 %vm6541_vm10, %v18057_v27  ;;  %v12646_v27 = vrot.slane %v21625_v25, 5  ;;  %v21631_v25 = vld [vmem:[#allocation2 + $0x38] sm:$0x1] }
 0x617   : > { %20069 = vmatprep.mubr.msk.bf16.mxu1 %vm6541_vm10, %v18058_v53 }
 0x618   : > { %v12647_v61 = vsel %vm22224_vm7, %v12645_v41, %v12646_v27  ;;  %v12597_v41 = vld [vmem:[#allocation2 + $0x30] sm:$0xe]  ;;  %v12674_v27 = vrot.slane %v21631_v25, 5  ;;  %v26286_v25 = vld [vmem:[#allocation2 + $0x44] sm:$0x1] }
 0x619   : > { %v18116_v53 = vcombine.low %v12644_v11, %v12647_v61  ;;  %v12668_v11 = vsel %vm22224_vm7, %v12666_v18, %v12667_v23  ;;  %v12678_v61 = vrot.slane %v25795_v59, 5  ;;  %v26275_v18 = vld [vmem:[#allocation2 + $0x34] sm:$0xf]  ;;  %v14266_v23 = vld [vmem:[#allocation2 + $0x30] sm:$0xe] }
 0x61b   : > { %v12680_v34 = vrot.slane %v12678_v61, 4 }
 0x61e   : > { %20070 = vmatmul.mubr.msk.bf16.gmra.mrb[48].mxu1 %vm6541_vm10, %v18059_v56  ;;  %v12652_v56 = vrot.slane %v12650_v24, 4  ;;  %v18092_v24 = vrot.slane %v12597_v41, 9  ;;  %v27902_v41 = vcombine.low %v26050_v12, %v26058_v46  ;;  %v18257_v46 = vrot.slane %v14266_v23, 9 }
 0x61f   : > { %20073 = vmatprep.mubr.msk.bf16.mxu1 %vm6541_vm10, %v18060_v15  ;;  %v12653_v15 = vrot.slane %v21626_v43, 5  ;;  %v12598_v43 = vld [vmem:[#allocation2 + $0x3c] sm:$0xe] }
 0x621   : > { %v12654_v20 = vsel %vm22224_vm7, %v12652_v56, %v12653_v15 }
 0x622   : > { %v18117_v7 = vcombine.low %v12651_v49, %v12654_v20  ;;  %v18093_v20 = vrot.slane %v12598_v43, 9 }
 0x626   : > { %20074 = vmatmul.mubr.msk.bf16.gmra.mrb[52].mxu1 %vm6541_vm10, %v18061_v52  ;;  %v12595_v52 = vld [vmem:[#allocation2 + $0x18] sm:$0xe] }
 0x627   : > { %20077 = vmatprep.mubr.msk.bf16.mxu1 %vm6541_vm10, %v27898_v58  ;;  %v18090_v31 = vrot.slane %v12595_v52, 9  ;;  %v12596_v58 = vld [vmem:[#allocation2 + $0x24] sm:$0xe] }
 0x629   : > { %v12658_v2 = vsel %vm22224_vm7, %v18090_v31, %v12657_v5  ;;  %v12685_v5 = vrot.slane %v25807_v14, 5  ;;  %v21632_v14 = vld [vmem:[#allocation2 + $0x44] sm:$0x1] }
 0x62a   : > { %v18118_v45 = vcombine.low %v12658_v2, %v12661_v54  ;;  %v12681_v52 = vrot.slane %v21632_v14, 5  ;;  %v12679_v54 = vsel %vm22224_vm7, %v18093_v20, %v12678_v61  ;;  %v26270_v2 = vld [vmem:[#allocation2 + $0x28] sm:$0xf]  ;;  %v26294_v61 = vld [vmem:[#allocation2 + $0x50] sm:$0x1] }
 0x62b   : > { %v12687_v15 = vrot.slane %v12685_v5, 4  ;;  %v14343_v9 = vrot.slane %v26270_v2, 5 }
 0x62c   : > { %v12682_v39 = vsel %vm22224_vm7, %v12680_v34, %v12681_v52  ;;  %v14269_v52 = vld [vmem:[#allocation2 + $0x54] sm:$0xe] }
 0x62d   : > { %v12689_v31 = vsel %vm22224_vm7, %v12687_v15, %v12688_v60  ;;  %v18121_v4 = vcombine.low %v12679_v54, %v12682_v39  ;;  %v14360_v15 = vrot.slane %v26286_v25, 5  ;;  %v26318_v60 = vld [vmem:[#allocation2 + $0x68] sm:$0x1] }
 0x62e   : > { %20078 = vmatmul.mubr.msk.bf16.gmra.mrb[56].mxu1 %vm6541_vm10, %v27899_v42  ;;  %v21468_v42 = vld [vmem:[%s27579_s3 + $0xa0] sm:$0xff]  }
 0x62f   : > { %20081 = vmatprep.mubr.msk.bf16.mxu1 %vm6541_vm10, %v27900_v32  ;;  %v18091_v32 = vrot.slane %v12596_v58, 9  ;;  %v26277_v58 = vld [vmem:[#allocation2 + $0x38] sm:$0x1] }
 0x636   : > { %20082 = vmatmul.mubr.msk.bf16.gmra.mrb[60].mxu1 %vm6541_vm10, %v27901_v29  ;;  %v12672_v29 = vsel %vm22224_vm7, %v18092_v24, %v12671_v63  ;;  %v21471_v63 = vld [vmem:[%s27579_s3 + $0xb8] sm:$0xff]   ;;  %v14345_v24 = vrot.slane %v14343_v9, 4 }
 0x637   : > { %20097 = vmatprep.mubr.msk.bf16.mxu1 %vm6541_vm10, %v18116_v53  ;;  %v12665_v53 = vsel %vm22224_vm7, %v18091_v32, %v12664_v51  ;;  %v18094_v51 = vrot.slane %v12599_v37, 9  ;;  %v27903_v32 = vcombine.low %v26062_v57, %v26069_v3  ;;  %v26304_v57 = vld [vmem:[#allocation2 + $0x5c] sm:$0x1]  ;;  %v26316_v37 = vld [vmem:[#allocation2 + $0x64] sm:$0xf] }
 0x638   : > { %v18119_v56 = vcombine.low %v12665_v53, %v12668_v11  ;;  %v26292_v11 = vld [vmem:[#allocation2 + $0x4c] sm:$0xf]  ;;  %v14350_v53 = vrot.slane %v26275_v18, 5 }
 0x639   : > { %v12686_v8 = vsel %vm22224_vm7, %v18094_v51, %v12685_v5  ;;  %v26297_v5 = vld [vmem:[#allocation2 + $0x58] sm:$0xf]  ;;  %v14364_v14 = vrot.slane %v26292_v11, 5 }
 0x63a   : > { %v18122_v49 = vcombine.low %v12686_v8, %v12689_v31  ;;  %v14352_v43 = vrot.slane %v14350_v53, 4  ;;  %v14371_v8 = vrot.slane %v26297_v5, 5 }
 0x63b   : > { %v14366_v54 = vrot.slane %v14364_v14, 4 }
 0x63e   : > { %20098 = vmatmul.mubr.msk.bf16.vlgmr.msra.gmra.mrb[32].mxu1 %vm6541_vm10, %v18117_v7  ;;  %v26268_v7 = vld [vmem:[%s27579_s3 + $0xc0] sm:$0xff]  }
 0x63f   : > { %20101 = vmatprep.mubr.msk.bf16.mxu1 %vm6541_vm10, %v18118_v45  ;;  %20130 = vmatpush3.bf16.msra.mxu1 %v21466_v22  ;;  %v12675_v22 = vsel %vm22224_vm7, %v12673_v33, %v12674_v27  ;;  %v26273_v45 = vld [vmem:[#allocation2 + $0x2c] sm:$0x1]  ;;  %v26279_v33 = vld [vmem:[#allocation2 + $0x40] sm:$0xf] }
 0x640   : > { %20131 = vmatprep.subr.bf16.mxu1 %v21467_v30  ;;  %v18120_v59 = vcombine.low %v12672_v29, %v12675_v22  ;;  %v14346_v22 = vrot.slane %v26273_v45, 5  ;;  %v14353_v29 = vrot.slane %v26277_v58, 5 }
 0x642   : > { %v26308_v3 = vsel %vm22224_vm7, %v14345_v24, %v14346_v22  ;;  %v26330_v31 = vsel %vm22224_vm7, %v14352_v43, %v14353_v29  ;;  %v26352_v24 = vld [vmem:[#allocation2 + $0x7c] sm:$0xf]  ;;  %v27913_v29 = vcombine.low %v26081_v17, %v26097_v35  ;;  %v14378_v43 = vrot.slane %v26316_v37, 5 }
 0x643   : > { %20132 = vmatpush3.bf16.msra.mxu1 %v21467_v30  ;;  %v14265_v30 = vld [vmem:[#allocation2 + $0x24] sm:$0xe]  ;;  %27905 = vst [vmem:[#allocation15_spill] sm:$0xff] %v26308_v3  ;;  %27908 = vst [vmem:[#allocation19_spill] sm:$0xff] %v26330_v31  ;;  %v14381_v35 = vrot.slane %v26318_v60, 5 }
 0x644   : > { %20133 = vmatprep.subr.bf16.mxu1 %v21468_v42  ;;  %v18256_v27 = vrot.slane %v14265_v30, 9  ;;  %v26729_v3 = vld [vmem:[#allocation2 + $0x58] sm:$0xf] }
 0x646   : > { %20102 = vmatmul.mubr.msk.bf16.gmra.mrb[36].mxu1 %vm6541_vm10, %v18119_v56  ;;  %v26301_v12 = vsel %vm22224_vm7, %v18256_v27, %v14343_v9  ;;  %v14268_v56 = vld [vmem:[#allocation2 + $0x48] sm:$0xe]  ;;  %v14271_v27 = vld [vmem:[#allocation2 + $0x6c] sm:$0xe] }
 0x647   : > { %20105 = vmatprep.mubr.msk.bf16.mxu1 %vm6541_vm10, %v18120_v59  ;;  %20134 = vmatpush3.bf16.msra.mxu1 %v21468_v42  ;;  %v14267_v42 = vld [vmem:[#allocation2 + $0x3c] sm:$0xe]  ;;  %27904 = vst [vmem:[#allocation14_spill] sm:$0xff] %v26301_v12  ;;  %v14357_v59 = vrot.slane %v26279_v33, 5  ;;  %v18259_v51 = vrot.slane %v14268_v56, 9  ;;  %v14374_v56 = vrot.slane %v26304_v57, 5 }
 0x648   : > { %20135 = vmatprep.subr.bf16.mxu1 %v21469_v13  ;;  %v21493_v12 = vld [vmem:[#allocation2 + $0xc0] sm:$0xff]  }
 0x649   : > { %v14359_v39 = vrot.slane %v14357_v59, 4  ;;  %v26344_v23 = vsel %vm22224_vm7, %v18259_v51, %v14364_v14  ;;  %v26374_v14 = vld [vmem:[#allocation2 + $0x88] sm:$0xf]  ;;  %v26382_v51 = vld [vmem:[#allocation2 + $0x94] sm:$0xf] }
 0x64a   : > { %27910 = vst [vmem:[#allocation21_spill] sm:$0xff] %v26344_v23  ;;  %v14399_v34 = vrot.slane %v26374_v14, 5 }
 0x64b   : > { %20136 = vmatpush3.bf16.msra.mxu1 %v21469_v13  ;;  %v18258_v13 = vrot.slane %v14267_v42, 9  ;;  %v26340_v9 = vsel %vm22224_vm7, %v14359_v39, %v14360_v15  ;;  %v27911_v42 = vcombine.low %v26076_v47, %v26088_v36  ;;  %v26365_v36 = vld [vmem:[#allocation2 + $0x80] sm:$0x1]  ;;  %v14272_v15 = vld [vmem:[#allocation2 + $0x78] sm:$0xe] }
 0x64c   : > { %20137 = vmatprep.subr.bf16.mxu1 %v21470_v6  ;;  %27909 = vst [vmem:[#allocation20_spill] sm:$0xff] %v26340_v9  ;;  %v18263_v47 = vrot.slane %v14272_v15, 9  ;;  %v14395_v30 = vrot.slane %v26365_v36, 5 }
 0x64d   : > { %v26326_v20 = vsel %vm22224_vm7, %v18258_v13, %v14357_v59 }
 0x64e   : > { %20106 = vmatmul.mubr.msk.bf16.gmra.mrb[40].mxu1 %vm6541_vm10, %v18121_v4  ;;  %27907 = vst [vmem:[#allocation17_spill] sm:$0xff] %v26326_v20  ;;  %v14367_v4 = vrot.slane %v26294_v61, 5 }
 0x64f   : > { %20109 = vmatprep.mubr.msk.bf16.mxu1 %vm6541_vm10, %v18122_v49  ;;  %20138 = vmatpush3.bf16.msra.mxu1 %v21470_v6  ;;  %v26322_v6 = vsel %vm22224_vm7, %v18257_v46, %v14350_v53  ;;  %v26334_v49 = vld [vmem:[#allocation2 + $0x70] sm:$0xf]  ;;  %v14373_v53 = vrot.slane %v14371_v8, 4 }
 0x650   : > { %20139 = vmatprep.subr.bf16.mxu1 %v21471_v63  ;;  %27906 = vst [vmem:[#allocation16_spill] sm:$0xff] %v26322_v6  ;;  %v26358_v46 = vsel %vm22224_vm7, %v14366_v54, %v14367_v4  ;;  %v14385_v39 = vrot.slane %v26334_v49, 5  ;;  %v14380_v4 = vrot.slane %v14378_v43, 4 }
 0x651   : > { %27912 = vst [vmem:[#allocation11_spill] sm:$0xff] %v26358_v46  ;;  %v26378_v17 = vsel %vm22224_vm7, %v14373_v53, %v14374_v56  ;;  %v13528_v53 = vld [vmem:[#allocation2 + $0x98] sm:$0x1] }
 0x652   : > { %27915 = vst [vmem:[#allocation10_spill] sm:$0xff] %v26378_v17  ;;  %v26400_v54 = vsel %vm22224_vm7, %v14380_v4, %v14381_v35  ;;  %v26416_v4 = vld [vmem:[#allocation2 + $0xac] sm:$0xf] }
 0x653   : > { %20140 = vmatpush3.bf16.msra.mxu1 %v21471_v63  ;;  %v14270_v63 = vld [vmem:[#allocation2 + $0x60] sm:$0xe]  ;;  %27918 = vst [vmem:[#allocation22_spill] sm:$0xff] %v26400_v54 }
 0x654   : > { %20173 = vmatprep.subr.bf16.mxu1 %v26268_v7  ;;  %v18261_v59 = vrot.slane %v14270_v63, 9  ;;  %v14392_v63 = vrot.slane %v26352_v24, 5 }
 0x656   : > { %20110 = vmatmul.mubr.msk.bf16.gmra.mrb[44].mxu1 %vm6541_vm10, %v27902_v41  ;;  %v18260_v41 = vrot.slane %v14269_v52, 9  ;;  %v18262_v52 = vrot.slane %v14271_v27, 9  ;;  %v26392_v56 = vsel %vm22224_vm7, %v18261_v59, %v14378_v43  ;;  %v14394_v22 = vrot.slane %v14392_v63, 4 }
 0x657   : > { %20113 = vmatprep.mubr.msk.bf16.mxu1 %vm6541_vm10, %v27903_v32  ;;  %v26350_v32 = vld [vmem:[#allocation2 + $0x74] sm:$0x1]  ;;  %27916 = vst [vmem:[#allocation8_spill] sm:$0xff] %v26392_v56  ;;  %v26414_v15 = vsel %vm22224_vm7, %v18263_v47, %v14392_v63  ;;  %v14401_v59 = vrot.slane %v14399_v34, 4  ;;  %v13534_v47 = vld [vmem:[#allocation2 + $0xb0] sm:$0x1] }
 0x658   : > { %v26371_v13 = vsel %vm22224_vm7, %v18260_v41, %v14371_v8  ;;  %v14388_v8 = vrot.slane %v26350_v32, 5  ;;  %v14273_v41 = vld [vmem:[#allocation2 + $0x84] sm:$0xe]  ;;  %v26396_v27 = vsel %vm22224_vm7, %v18262_v52, %v14385_v39  ;;  %27920 = vst [vmem:[#allocation25_spill] sm:$0xff] %v26414_v15  ;;  %v14275_v52 = vld [vmem:[#allocation2 + $0x9c] sm:$0xe]  ;;  %v26422_v17 = vsel %vm22224_vm7, %v14394_v22, %v14395_v30 }
 0x659   : > { %27914 = vst [vmem:[#allocation23_spill] sm:$0xff] %v26371_v13  ;;  %27917 = vst [vmem:[#allocation7_spill] sm:$0xff] %v26396_v27  ;;  %v18264_v35 = vrot.slane %v14273_v41, 9  ;;  %v14406_v30 = vrot.slane %v26382_v51, 5  ;;  %v14276_v22 = vld [vmem:[#allocation2 + $0xa8] sm:$0xe] }
 0x65a   : > { %27921 = vst [vmem:[#allocation12_spill] sm:$0xff] %v26422_v17  ;;  %v18266_v63 = vrot.slane %v14275_v52, 9  ;;  %v14420_v15 = vrot.slane %v26416_v4, 5  ;;  %v18267_v52 = vrot.slane %v14276_v22, 9 }
 0x65b   : > { %v26433_v41 = vsel %vm22224_vm7, %v18264_v35, %v14399_v34  ;;  %v14413_v34 = vrot.slane %v26404_v38, 5  ;;  %v14408_v35 = vrot.slane %v14406_v30, 4 }
 0x65c   : > { %27923 = vst [vmem:[#allocation26_spill] sm:$0xff] %v26433_v41 }
 0x65e   : > { %20114 = vmatmul.mubr.msk.bf16.gmra.mrb[48].mxu1 %vm6541_vm10, %v27911_v42  ;;  %v26388_v42 = vld [vmem:[#allocation2 + $0x8c] sm:$0x1] }
 0x65f   : > { %20117 = vmatprep.mubr.msk.bf16.mxu1 %vm6541_vm10, %v27913_v29  ;;  %v14387_v29 = vrot.slane %v14385_v39, 4  ;;  %v13531_v39 = vld [vmem:[#allocation2 + $0xa4] sm:$0x1] }
 0x660   : > { %v14416_v17 = vrot.slane %v13531_v39, 5  ;;  %v14422_v39 = vrot.slane %v14420_v15, 4 }
 0x661   : > { %v26410_v43 = vsel %vm22224_vm7, %v14387_v29, %v14388_v8  ;;  %v14402_v8 = vrot.slane %v26388_v42, 5  ;;  %v27922_v29 = vcombine.low %v26109_v16, %v26113_v50  ;;  %v26440_v16 = vld [vmem:[#allocation2 + $0xb8] sm:$0xf] }
 0x662   : > { %27919 = vst [vmem:[#allocation18_spill] sm:$0xff] %v26410_v43  ;;  %v27924_v43 = vcombine.low %v26117_v0, %v26124_v55  ;;  %v14277_v0 = vld [vmem:[#allocation2 + $0xb4] sm:$0xe]  ;;  %v13537_v55 = vld [vmem:[#allocation2 + $0xbc] sm:$0x1]  ;;  %v14427_v41 = vrot.slane %v26440_v16, 5 }
 0x663   : > { %v26444_v50 = vsel %vm22224_vm7, %v14401_v59, %v14402_v8  ;;  %v26456_v59 = vsel %vm22224_vm7, %v18266_v63, %v14413_v34  ;;  %v26458_v8 = vld [vmem:[#allocation2 + $0xc4] sm:$0xf]  ;;  %v26473_v63 = vsel %vm22224_vm7, %v18267_v52, %v14420_v15  ;;  %v18268_v22 = vrot.slane %v14277_v0, 9 }
 0x664   : > { %27925 = vst [vmem:[#allocation9_spill] sm:$0xff] %v26444_v50  ;;  %27927 = vst [vmem:[#allocation24_spill] sm:$0xff] %v26456_v59  ;;  %v14423_v50 = vrot.slane %v13534_v47, 5  ;;  %v14430_v27 = vrot.slane %v13537_v55, 5  ;;  %v27932_v15 = vcombine.low %v26139_v48, %v26143_v44  ;;  %v27935_v55 = vcombine.low %v26147_v21, %v26154_v1  ;;  %v21472_v1 = vld [vmem:[#allocation2 + $0xc] sm:$0xff]   ;;  %v21480_v59 = vld [vmem:[#allocation2 + $0x54] sm:$0xff]  }
 0x665   : > { %27930 = vst [vmem:[#allocation29_spill] sm:$0xff] %v26473_v63  ;;  %v26490_v0 = vsel %vm22224_vm7, %v18268_v22, %v14427_v41  ;;  %v27938_v21 = vcombine.low %v26165_v10, %v26169_v19  ;;  %v21478_v22 = vld [vmem:[%s27579_s3 + $0xc8] sm:$0xff]   ;;  %v21481_v10 = vld [vmem:[%s27579_s3 + $0xd0] sm:$0xff]  }
 0x666   : > { %20118 = vmatmul.mubr.msk.bf16.gmra.mrb[52].mxu1 %vm6541_vm10, %v27922_v29  ;;  %v14409_v29 = vrot.slane %v13528_v53, 5  ;;  %v14415_v53 = vrot.slane %v14413_v34, 4  ;;  %v13540_v34 = vld [vmem:[#allocation2 + $0xc8] sm:$0x1]  ;;  %v26479_v47 = vsel %vm22224_vm7, %v14422_v39, %v14423_v50  ;;  %27933 = vst [vmem:[#allocation31_spill] sm:$0xff] %v26490_v0 }
 0x667   : > { %20121 = vmatprep.mubr.msk.bf16.mxu1 %vm6541_vm10, %v27924_v43  ;;  %v26452_v43 = vsel %vm22224_vm7, %v18265_v62, %v14406_v30  ;;  %27931 = vst [vmem:[#allocation30_spill] sm:$0xff] %v26479_v47  ;;  %v14278_v62 = vld [vmem:[#allocation2 + $0xc0] sm:$0xe]  ;;  %v14437_v44 = vrot.slane %v13540_v34, 5  ;;  %v21475_v34 = vld [vmem:[#allocation2 + $0x24] sm:$0xff]  }
 0x668   : > { %27926 = vst [vmem:[#allocation13_spill] sm:$0xff] %v26452_v43  ;;  %v26462_v40 = vsel %vm22224_vm7, %v14408_v35, %v14409_v29  ;;  %v26469_v30 = vsel %vm22224_vm7, %v14415_v53, %v14416_v17  ;;  %v14429_v35 = vrot.slane %v14427_v41, 4  ;;  %v14434_v53 = vrot.slane %v26458_v8, 5  ;;  %v26526_v19 = vld [vmem:[#allocation2 + $0x10] sm:$0xf]  ;;  %v21489_v17 = vld [vmem:[%s27579_s3 + $0xe0] sm:$0xff]  }
 0x669   : > { %27928 = vst [vmem:[#allocation27_spill] sm:$0xff] %v26462_v40  ;;  %27929 = vst [vmem:[#allocation28_spill] sm:$0xff] %v26469_v30  ;;  %v18269_v39 = vrot.slane %v14278_v62, 9  ;;  %v21473_v62 = vld [vmem:[#allocation2 + $0x18] sm:$0xff]   ;;  %v21479_v0 = vld [vmem:[#allocation2 + $0x48] sm:$0xff]  }
 0x66a   : > { %v26494_v50 = vsel %vm22224_vm7, %v14429_v35, %v14430_v27  ;;  %v14436_v48 = vrot.slane %v14434_v53, 4  ;;  %v13493_v35 = vld [vmem:[#allocation2 + $0xc] sm:$0xf] }
 0x66b   : > { %27934 = vst [vmem:[#allocation32_spill] sm:$0xff] %v26494_v50  ;;  %v21492_v47 = vld [vmem:[%s27579_s3 + $0xe8] sm:$0xff]  }
 0x66c   : > { %v26508_v41 = vsel %vm22224_vm7, %v14436_v48, %v14437_v44  ;;  %v21476_v48 = vld [vmem:[#allocation2 + $0x30] sm:$0xff]   ;;  %v21477_v44 = vld [vmem:[#allocation2 + $0x3c] sm:$0xff]  }
 0x66d   : > { %27937 = vst [vmem:[#allocation34_spill] sm:$0xff] %v26508_v41 }
 0x66e   : > { %20122 = vmatmul.mubr.msk.bf16.gmra.mrb[56].mxu1 %vm6541_vm10, %v27932_v15  ;;  %v26504_v15 = vsel %vm22224_vm7, %v18269_v39, %v14434_v53  ;;  %v13551_v53 = vshll.u32 %v26526_v19, 16  ;;  %v13496_v39 = vld [vmem:[#allocation2 + $0x18] sm:$0xf] }
 0x66f   : > { %20125 = vmatprep.mubr.msk.bf16.mxu1 %vm6541_vm10, %v27935_v55  ;;  %27936 = vst [vmem:[#allocation33_spill] sm:$0xff] %v26504_v15  ;;  %v13555_v55 = vshrl.u32 %v26526_v19, 16  ;;  %v26544_v15 = vld [vmem:[#allocation2 + $0x14] sm:$0x1] }
 0x670   : > { %v26537_v27 = vrot.slane %v13551_v53, 5  ;;  %v13561_v40 = vshll.u32 %v26544_v15, 16 }
 0x671   : > { %v13557_v52 = vrot.slane %v13555_v55, 4 }
 0x676   : > { %20126 = vmatmul.mubr.msk.bf16.gmra.mrb[60].mxu1 %vm6541_vm10, %v27938_v21  ;;  %v13542_v21 = vshrl.u32 %v13493_v35, 16 }
 0x677   : > { %20141 = vmatprep.mubr.msk.bf16.mxu1 %vm6541_vm10, %v21472_v1  ;;  %v26533_v1 = vld [vmem:[#allocation2 + $0x1c] sm:$0xf] }
 0x678   : > { %27939 = vst [vmem:[#allocation35_spill] sm:$0xff] %v26533_v1  ;;  %v13575_v29 = vshll.u32 %v26533_v1, 16  ;;  %v13579_v41 = vshrl.u32 %v26533_v1, 16  ;;  %v26762_v1 = vld [vmem:[#allocation2 + $0x70] sm:$0xf] }
 0x679   : > { %27958 = vst [vmem:[#allocation54_spill] sm:$0xff] %v26762_v1 }
 0x67a   : > { %v13577_v63 = vrot.slane %v13575_v29, 5  ;;  %v13581_v30 = vrot.slane %v13579_v41, 4  ;;  %v26559_v41 = vld [vmem:[%s27579_s3 + $0xf0] sm:$0xff]  }
 0x67c   : > { %v13582_v29 = vor.u32 %v13581_v30, %v13577_v63  ;;  %v13609_v30 = vshll.u32 %v26273_v45, 16  ;;  %v13505_v45 = vld [vmem:[#allocation2 + $0x3c] sm:$0xf] }
 0x67e   : > { %20142 = vmatmul.mubr.msk.bf16.vlgmr.msra.gmra.mrb[32].mxu1 %vm6541_vm10, %v21473_v62  ;;  %v13545_v62 = vshll.u32 %v13493_v35, 16  ;;  %v13544_v35 = vrot.slane %v13542_v21, 4  ;;  %v13583_v43 = vrot.slane %v13582_v29, 4 }
 0x67f   : > { %20145 = vmatprep.mubr.msk.bf16.mxu1 %vm6541_vm10, %v21475_v34  ;;  %20174 = vmatpush3.bf16.msra.mxu1 %v26268_v7  ;;  %v21485_v7 = vld [vmem:[%s27579_s3 + $0xd8] sm:$0xff]   ;;  %v13569_v34 = vshll.u32 %v13496_v39, 16 }
 0x680   : > { %20175 = vmatprep.subr.bf16.mxu1 %v21478_v22 }
 0x683   : > { %20176 = vmatpush3.bf16.msra.mxu1 %v21478_v22  ;;  %v13566_v22 = vshrl.u32 %v13496_v39, 16  ;;  %v13547_v39 = vrot.slane %v13545_v62, 5 }
 0x684   : > { %20177 = vmatprep.subr.bf16.mxu1 %v21481_v10 }
 0x685   : > { %v13568_v50 = vrot.slane %v13566_v22, 4  ;;  %v13548_v21 = vor.u32 %v13547_v39, %v13544_v35  ;;  %v13502_v35 = vld [vmem:[#allocation2 + $0x30] sm:$0xf] }
 0x686   : > { %20146 = vmatmul.mubr.msk.bf16.gmra.mrb[36].mxu1 %vm6541_vm10, %v21476_v48  ;;  %v13499_v48 = vld [vmem:[#allocation2 + $0x24] sm:$0xf]  ;;  %v13617_v54 = vshll.u32 %v13502_v35, 16 }
 0x687   : > { %20149 = vmatprep.mubr.msk.bf16.mxu1 %vm6541_vm10, %v21477_v44  ;;  %20178 = vmatpush3.bf16.msra.mxu1 %v21481_v10  ;;  %v13571_v44 = vrot.slane %v13569_v34, 5  ;;  %v13558_v10 = vor.u32 %v13557_v52, %v26537_v27  ;;  %v13590_v53 = vshrl.u32 %v13499_v48, 16  ;;  %v13593_v55 = vshll.u32 %v13499_v48, 16 }
 0x688   : > { %20179 = vmatprep.subr.bf16.mxu1 %v21485_v7  ;;  %v13599_v48 = vshll.u32 %v26270_v2, 16 }
 0x689   : > { %v13572_v62 = vor.u32 %v13571_v44, %v13568_v50  ;;  %v13559_v52 = vrot.slane %v13558_v10, 4  ;;  %v13592_v22 = vrot.slane %v13590_v53, 4  ;;  %v13595_v34 = vrot.slane %v13593_v55, 5  ;;  %v21482_v55 = vld [vmem:[#allocation2 + $0x60] sm:$0xff]  }
 0x68a   : > { %v13563_v50 = vrot.slane %v13561_v40, 5  ;;  %v26565_v53 = vrot.slane %v13599_v48, 5  ;;  %v13614_v40 = vshrl.u32 %v13502_v35, 16  ;;  %v13651_v48 = vshrl.u32 %v26279_v33, 16  ;;  %v13508_v35 = vld [vmem:[#allocation2 + $0x48] sm:$0xf] }
 0x68b   : > { %20180 = vmatpush3.bf16.msra.mxu1 %v21485_v7  ;;  %v26553_v7 = vld [vmem:[#allocation2 + $0x20] sm:$0x1]  ;;  %v13596_v10 = vor.u32 %v13595_v34, %v13592_v22  ;;  %v13647_v34 = vshll.u32 %v26279_v33, 16 }
 0x68c   : > { %20181 = vmatprep.subr.bf16.mxu1 %v21489_v17  ;;  %27940 = vst [vmem:[#allocation36_spill] sm:$0xff] %v26553_v7  ;;  %v13585_v39 = vshll.u32 %v26553_v7, 16  ;;  %v13564_v44 = vsel %vm21867_vm4, %v13559_v52, %v13563_v50  ;;  %v26584_v50 = vrot.slane %v13609_v30, 5  ;;  %v15955_v7 = vld [vmem:[#allocation2 + $0x60] sm:$0xe] }
 0x68d   : > { %v26591_v56 = vrot.slane %v13647_v34, 5  ;;  %v13699_v34 = vshrl.u32 %v26297_v5, 16 }
 0x68e   : > { %20150 = vmatmul.mubr.msk.bf16.gmra.mrb[40].mxu1 %vm6541_vm10, %v21479_v0  ;;  %v13603_v0 = vshrl.u32 %v26270_v2, 16  ;;  %v13587_v22 = vrot.slane %v13585_v39, 5  ;;  %v13616_v39 = vrot.slane %v13614_v40, 4  ;;  %v13511_v40 = vld [vmem:[#allocation2 + $0x54] sm:$0xf] }
 0x68f   : > { %20153 = vmatprep.mubr.msk.bf16.mxu1 %vm6541_vm10, %v21480_v59  ;;  %20182 = vmatpush3.bf16.msra.mxu1 %v21489_v17  ;;  %v13549_v59 = vrot.slane %v13548_v21, 4  ;;  %v13573_v17 = vrot.slane %v13572_v62, 4  ;;  %v21483_v21 = vld [vmem:[#allocation2 + $0x6c] sm:$0xff]   ;;  %v13623_v62 = vshll.u32 %v26275_v18, 16  ;;  %v13686_v23 = vshrl.u32 %v13511_v40, 16 }
 0x690   : > { %20183 = vmatprep.subr.bf16.mxu1 %v21492_v47  ;;  %v13605_v2 = vrot.slane %v13603_v0, 4 }
 0x691   : > { %v13554_v52 = vsel %vm21867_vm4, %v13549_v59, %v26537_v27  ;;  %v13578_v0 = vsel %vm21867_vm4, %v13573_v17, %v13577_v63  ;;  %v13588_v27 = vsel %vm21867_vm4, %v13583_v43, %v13587_v22  ;;  %v26589_v33 = vrot.slane %v13623_v62, 5  ;;  %v21484_v62 = vld [vmem:[#allocation2 + $0x78] sm:$0xff]  }
 0x692   : > { %v26578_v29 = vcombine.low %v13554_v52, %v13564_v44  ;;  %v13606_v59 = vor.u32 %v13605_v2, %v26565_v53  ;;  %v13638_v44 = vshrl.u32 %v13505_v45, 16  ;;  %v13641_v52 = vshll.u32 %v13505_v45, 16 }
 0x693   : > { %20184 = vmatpush3.bf16.msra.mxu1 %v21492_v47  ;;  %v13627_v47 = vshrl.u32 %v26275_v18, 16  ;;  %v26582_v18 = vrot.slane %v13596_v10, 4  ;;  %v13653_v63 = vrot.slane %v13651_v48, 4  ;;  %v13662_v17 = vshrl.u32 %v13508_v35, 16  ;;  %v21486_v48 = vld [vmem:[#allocation2 + $0x84] sm:$0xff]  }
 0x694   : > { %20217 = vmatprep.subr.bf16.mxu1 %v26559_v41  ;;  %v13665_v10 = vshll.u32 %v13508_v35, 16  ;;  %v26593_v30 = vcombine.low %v13578_v0, %v13588_v27  ;;  %v13671_v2 = vshll.u32 %v26292_v11, 16  ;;  %v13633_v22 = vshll.u32 %v26277_v58, 16 }
 0x695   : > { %v13602_v43 = vsel %vm21867_vm4, %v26582_v18, %v26565_v53  ;;  %v13695_v45 = vshll.u32 %v26297_v5, 16  ;;  %v13640_v27 = vrot.slane %v13638_v44, 4  ;;  %v13643_v13 = vrot.slane %v13641_v52, 5  ;;  %v13514_v53 = vld [vmem:[#allocation2 + $0x60] sm:$0xf] }
 0x696   : > { %20154 = vmatmul.mubr.msk.bf16.gmra.mrb[44].mxu1 %vm6541_vm10, %v21482_v55  ;;  %v13619_v55 = vrot.slane %v13617_v54, 5  ;;  %v13675_v54 = vshrl.u32 %v26292_v11, 16  ;;  %v13654_v11 = vor.u32 %v13653_v63, %v26591_v56  ;;  %v13657_v18 = vshll.u32 %v26286_v25, 16 }
 0x697   : > { %20157 = vmatprep.mubr.msk.bf16.mxu1 %vm6541_vm10, %v21483_v21  ;;  %v13629_v21 = vrot.slane %v13627_v47, 4  ;;  %v13607_v47 = vrot.slane %v13606_v59, 4  ;;  %v13664_v59 = vrot.slane %v13662_v17, 4  ;;  %v13667_v46 = vrot.slane %v13665_v10, 5 }
 0x698   : > { %v13620_v0 = vor.u32 %v13619_v55, %v13616_v39  ;;  %v26609_v58 = vrot.slane %v13671_v2, 5  ;;  %v13677_v5 = vrot.slane %v13675_v54, 4  ;;  %v13689_v39 = vshll.u32 %v13511_v40, 16 }
 0x699   : > { %v13630_v35 = vor.u32 %v13629_v21, %v26589_v33  ;;  %v26611_v55 = vrot.slane %v13695_v45, 5  ;;  %v13701_v21 = vrot.slane %v13699_v34, 4  ;;  %v13710_v44 = vshrl.u32 %v13514_v53, 16  ;;  %v21487_v34 = vld [vmem:[#allocation2 + $0x90] sm:$0xff]  }
 0x69a   : > { %v13713_v52 = vshll.u32 %v13514_v53, 16  ;;  %v13612_v63 = vsel %vm21867_vm4, %v13607_v47, %v26584_v50  ;;  %v13635_v25 = vrot.slane %v13633_v22, 5  ;;  %v13644_v17 = vor.u32 %v13643_v13, %v13640_v27  ;;  %v21488_v47 = vld [vmem:[#allocation2 + $0x9c] sm:$0xff]  }
 0x69b   : > { %v13631_v10 = vrot.slane %v13630_v35, 4  ;;  %v13655_v9 = vrot.slane %v13654_v11, 4  ;;  %v13668_v2 = vor.u32 %v13667_v46, %v13664_v59  ;;  %v13678_v54 = vor.u32 %v13677_v5, %v26609_v58 }
 0x69c   : > { %v13688_v20 = vrot.slane %v13686_v23, 4  ;;  %v13691_v40 = vrot.slane %v13689_v39, 5  ;;  %v13719_v45 = vshll.u32 %v26316_v37, 16  ;;  %v13702_v53 = vor.u32 %v13701_v21, %v26611_v55 }
 0x69d   : > { %v13712_v31 = vrot.slane %v13710_v44, 4  ;;  %v13715_v6 = vrot.slane %v13713_v52, 5  ;;  %v13723_v50 = vshrl.u32 %v26316_v37, 16  ;;  %v26620_v22 = vcombine.low %v13602_v43, %v13612_v63  ;;  %v26653_v63 = vld [vmem:[#allocation2 + $0x1c] sm:$0xf] }
 0x69e   : > { %20158 = vmatmul.mubr.msk.bf16.gmra.mrb[48].mxu1 %vm6541_vm10, %v21484_v62  ;;  %v13621_v62 = vrot.slane %v13620_v0, 4  ;;  %v13645_v13 = vrot.slane %v13644_v17, 4  ;;  %v13681_v23 = vshll.u32 %v26294_v61, 16  ;;  %v13517_v0 = vld [vmem:[#allocation2 + $0x6c] sm:$0xf]  ;;  %v13636_v35 = vsel %vm21867_vm4, %v13631_v10, %v13635_v25  ;;  %27941 = vst [vmem:[#allocation37_spill] sm:$0xff] %v26653_v63 }
 0x69f   : > { %20161 = vmatprep.mubr.msk.bf16.mxu1 %vm6541_vm10, %v21486_v48  ;;  %v13659_v48 = vrot.slane %v13657_v18, 5  ;;  %v26631_v37 = vrot.slane %v13668_v2, 4  ;;  %v13705_v43 = vshll.u32 %v26304_v57, 16  ;;  %v26635_v11 = vrot.slane %v13678_v54, 4  ;;  %v26661_v17 = vld [vmem:[#allocation2 + $0x20] sm:$0x1] }
 0x6a0   : > { %v13626_v46 = vsel %vm21867_vm4, %v13621_v62, %v26589_v33  ;;  %v13692_v33 = vor.u32 %v13691_v40, %v13688_v20  ;;  %v26637_v18 = vrot.slane %v13719_v45, 5  ;;  %v13729_v61 = vshll.u32 %v26318_v60, 16  ;;  %v26651_v20 = vld [vmem:[#allocation2 + $0x78] sm:$0xf]  ;;  %v21490_v60 = vld [vmem:[#allocation2 + $0xa8] sm:$0xff]   ;;  %27942 = vst [vmem:[#allocation38_spill] sm:$0xff] %v26661_v17 }
 0x6a1   : > { %v13660_v27 = vsel %vm21867_vm4, %v13655_v9, %v13659_v48  ;;  %v26640_v59 = vrot.slane %v13702_v53, 4  ;;  %v13716_v5 = vor.u32 %v13715_v6, %v13712_v31  ;;  %v26642_v39 = vrot.slane %v13723_v50, 4  ;;  %v21491_v10 = vld [vmem:[#allocation2 + $0xb4] sm:$0xff]   ;;  %v26675_v40 = vld [vmem:[#allocation2 + $0x28] sm:$0xf] }
 0x6a2   : > { %v13734_v21 = vshrl.u32 %v13517_v0, 16  ;;  %v26644_v9 = vcombine.low %v13626_v46, %v13636_v35  ;;  %v13650_v57 = vsel %vm21867_vm4, %v13645_v13, %v26591_v56  ;;  %v26649_v44 = vrot.slane %v13681_v23, 5  ;;  %27943 = vst [vmem:[#allocation39_spill] sm:$0xff] %v26675_v40  ;;  %v26689_v46 = vld [vmem:[#allocation2 + $0x34] sm:$0xf] }
 0x6a3   : > { %v13737_v52 = vshll.u32 %v13517_v0, 16  ;;  %v26655_v62 = vcombine.low %v13650_v57, %v13660_v27  ;;  %v26657_v6 = vrot.slane %v13705_v43, 5  ;;  %v13743_v31 = vshll.u32 %v26334_v49, 16  ;;  %27945 = vst [vmem:[#allocation41_spill] sm:$0xff] %v26689_v46  ;;  %v26695_v35 = vld [vmem:[#allocation2 + $0x38] sm:$0x1] }
 0x6a4   : > { %v13747_v25 = vshrl.u32 %v26334_v49, 16  ;;  %v26671_v2 = vrot.slane %v13692_v33, 4  ;;  %v26673_v54 = vrot.slane %v13729_v61, 5  ;;  %v15949_v49 = vld [vmem:[#allocation2 + $0x18] sm:$0xe]  ;;  %v26685_v50 = vrot.slane %v13734_v21, 4 }
 0x6a5   : > { %v26691_v13 = vrot.slane %v13737_v52, 5  ;;  %27946 = vst [vmem:[#allocation42_spill] sm:$0xff] %v26695_v35  ;;  %v16015_v27 = vrot.slane %v26653_v63, 5  ;;  %v15950_v43 = vld [vmem:[#allocation2 + $0x24] sm:$0xe]  ;;  %v26699_v33 = vrot.slane %v13743_v31, 5 }
 0x6a6   : > { %20162 = vmatmul.mubr.msk.bf16.gmra.mrb[52].mxu1 %vm6541_vm10, %v21487_v34  ;;  %v26681_v34 = vrot.slane %v13716_v5, 4  ;;  %v26701_v61 = vrot.slane %v13747_v25, 4  ;;  %v26704_v21 = vld [vmem:[#allocation2 + $0x40] sm:$0xf]  ;;  %v18420_v57 = vrot.slane %v15949_v49, 9  ;;  %v16018_v48 = vrot.slane %v26661_v17, 5 }
 0x6a7   : > { %20165 = vmatprep.mubr.msk.bf16.mxu1 %vm6541_vm10, %v21488_v47  ;;  %v26687_v47 = vld [vmem:[#allocation2 + $0x2c] sm:$0x1]  ;;  %27947 = vst [vmem:[#allocation43_spill] sm:$0xff] %v26704_v21  ;;  %v15951_v52 = vld [vmem:[#allocation2 + $0x30] sm:$0xe]  ;;  %v16017_v56 = vrot.slane %v16015_v27, 4 }
 0x6a8   : > { %27944 = vst [vmem:[#allocation40_spill] sm:$0xff] %v26687_v47  ;;  %v26708_v45 = vld [vmem:[#allocation2 + $0x44] sm:$0x1]  ;;  %v26713_v25 = vld [vmem:[#allocation2 + $0x4c] sm:$0xf]  ;;  %v26717_v5 = vsel %vm22224_vm7, %v18420_v57, %v16015_v27  ;;  %v18421_v49 = vrot.slane %v15950_v43, 9 }
 0x6a9   : > { %27948 = vst [vmem:[#allocation44_spill] sm:$0xff] %v26708_v45  ;;  %27949 = vst [vmem:[#allocation45_spill] sm:$0xff] %v26717_v5  ;;  %v26720_v0 = vld [vmem:[#allocation2 + $0x50] sm:$0x1]  ;;  %v26724_v53 = vsel %vm22224_vm7, %v16017_v56, %v16018_v48  ;;  %v16025_v17 = vrot.slane %v26687_v47, 5  ;;  %v16032_v57 = vrot.slane %v26695_v35, 5 }
 0x6aa   : > { %27950 = vst [vmem:[#allocation46_spill] sm:$0xff] %v26720_v0  ;;  %27951 = vst [vmem:[#allocation47_spill] sm:$0xff] %v26724_v53  ;;  %v15952_v31 = vld [vmem:[#allocation2 + $0x3c] sm:$0xe]  ;;  %v26734_v56 = vld [vmem:[#allocation2 + $0x5c] sm:$0x1] }
 0x6ab   : > { %27952 = vst [vmem:[#allocation48_spill] sm:$0xff] %v26734_v56  ;;  %v16036_v27 = vrot.slane %v26704_v21, 5  ;;  %v15954_v53 = vld [vmem:[#allocation2 + $0x54] sm:$0xe]  ;;  %v26749_v5 = vld [vmem:[#allocation2 + $0x64] sm:$0xf] }
 0x6ac   : > { %27956 = vst [vmem:[#allocation52_spill] sm:$0xff] %v26749_v5  ;;  %v15199_v35 = vld [vmem:[#allocation2 + $0x68] sm:$0x1]  ;;  %v16043_v21 = vrot.slane %v26713_v25, 5 }
 0x6ae   : > { %20166 = vmatmul.mubr.msk.bf16.gmra.mrb[56].mxu1 %vm6541_vm10, %v21490_v60  ;;  %v16022_v60 = vrot.slane %v26675_v40, 5  ;;  %v18422_v40 = vrot.slane %v15951_v52, 9 }
 0x6af   : > { %20169 = vmatprep.mubr.msk.bf16.mxu1 %vm6541_vm10, %v21491_v10  ;;  %v16029_v10 = vrot.slane %v26689_v46, 5  ;;  %v15953_v46 = vld [vmem:[#allocation2 + $0x48] sm:$0xe] }
 0x6b0   : > { %v16024_v23 = vrot.slane %v16022_v60, 4  ;;  %v26738_v48 = vsel %vm22224_vm7, %v18421_v49, %v16022_v60  ;;  %v18423_v49 = vrot.slane %v15952_v31, 9  ;;  %v16046_v31 = vrot.slane %v26720_v0, 5  ;;  %v15205_v0 = vld [vmem:[#allocation2 + $0x80] sm:$0x1] }
 0x6b1   : > { %v16031_v43 = vrot.slane %v16029_v10, 4  ;;  %27953 = vst [vmem:[#allocation49_spill] sm:$0xff] %v26738_v48  ;;  %v26746_v63 = vsel %vm22224_vm7, %v18422_v40, %v16029_v10  ;;  %v18424_v10 = vrot.slane %v15953_v46, 9  ;;  %v15202_v46 = vld [vmem:[#allocation2 + $0x74] sm:$0x1]  ;;  %v16057_v48 = vrot.slane %v26749_v5, 5 }
 0x6b2   : > { %v26742_v52 = vsel %vm22224_vm7, %v16024_v23, %v16025_v17  ;;  %27955 = vst [vmem:[#allocation51_spill] sm:$0xff] %v26746_v63  ;;  %v16039_v17 = vrot.slane %v26708_v45, 5  ;;  %v16038_v23 = vrot.slane %v16036_v27, 4  ;;  %v26766_v47 = vsel %vm22224_vm7, %v18423_v49, %v16036_v27  ;;  %v15956_v49 = vld [vmem:[#allocation2 + $0x6c] sm:$0xe] }
 0x6b3   : > { %27954 = vst [vmem:[#allocation50_spill] sm:$0xff] %v26742_v52  ;;  %v26755_v60 = vsel %vm22224_vm7, %v16031_v43, %v16032_v57  ;;  %27959 = vst [vmem:[#allocation55_spill] sm:$0xff] %v26766_v47  ;;  %v18425_v43 = vrot.slane %v15954_v53, 9  ;;  %v16050_v57 = vrot.slane %v26729_v3, 5  ;;  %v16053_v27 = vrot.slane %v26734_v56, 5  ;;  %v21495_v53 = vld [vmem:[%s27579_s3 + $0xf8] sm:$0xff]  }
 0x6b4   : > { %27957 = vst [vmem:[#allocation53_spill] sm:$0xff] %v26755_v60  ;;  %v26774_v40 = vsel %vm22224_vm7, %v16038_v23, %v16039_v17  ;;  %v16045_v60 = vrot.slane %v16043_v21, 4  ;;  %v26781_v63 = vld [vmem:[#allocation2 + $0x7c] sm:$0xf]  ;;  %v16060_v23 = vrot.slane %v15199_v35, 5  ;;  %v18427_v47 = vrot.slane %v15956_v49, 9 }
 0x6b5   : > { %27960 = vst [vmem:[#allocation56_spill] sm:$0xff] %v26774_v40  ;;  %v16052_v52 = vrot.slane %v16050_v57, 4  ;;  %v15957_v56 = vld [vmem:[#allocation2 + $0x78] sm:$0xe]  ;;  %v15207_v45 = vld [vmem:[#allocation2 + $0x88] sm:$0xf] }
 0x6b6   : > { %20170 = vmatmul.mubr.msk.bf16.gmra.mrb[60].mxu1 %vm6541_vm10, %v21493_v12  ;;  %v26778_v12 = vsel %vm22224_vm7, %v18424_v10, %v16043_v21  ;;  %v26788_v17 = vsel %vm22224_vm7, %v16045_v60, %v16046_v31  ;;  %v26792_v21 = vsel %vm22224_vm7, %v18425_v43, %v16050_v57  ;;  %v16064_v10 = vrot.slane %v26762_v1, 5  ;;  %v15958_v60 = vld [vmem:[#allocation2 + $0x84] sm:$0xe]  ;;  %v15208_v31 = vld [vmem:[#allocation2 + $0x8c] sm:$0x1] }
 0x6b7   : > { %20185 = vmatprep.mubr.msk.bf16.mxu1 %vm6541_vm10, %v26578_v29  ;;  %27961 = vst [vmem:[#allocation57_spill] sm:$0xff] %v26778_v12  ;;  %v18426_v29 = vrot.slane %v15955_v7, 9  ;;  %27962 = vst [vmem:[#allocation58_spill] sm:$0xff] %v26788_v17  ;;  %v26799_v7 = vsel %vm22224_vm7, %v16052_v52, %v16053_v27  ;;  %v16059_v40 = vrot.slane %v16057_v48, 4  ;;  %v15210_v5 = vld [vmem:[#allocation2 + $0x94] sm:$0xf] }
 0x6b8   : > { %27963 = vst [vmem:[#allocation59_spill] sm:$0xff] %v26792_v21  ;;  %27964 = vst [vmem:[#allocation60_spill] sm:$0xff] %v26799_v7  ;;  %v16066_v57 = vrot.slane %v16064_v10, 4  ;;  %v16067_v1 = vrot.slane %v15202_v46, 5  ;;  %v15211_v52 = vld [vmem:[#allocation2 + $0x98] sm:$0x1]  ;;  %v26816_v49 = vsel %vm22224_vm7, %v18427_v47, %v16064_v10 }
 0x6b9   : > { %v26805_v35 = vsel %vm22224_vm7, %v18426_v29, %v16057_v48  ;;  %v26812_v27 = vsel %vm22224_vm7, %v16059_v40, %v16060_v23  ;;  %27967 = vst [vmem:[#allocation63_spill] sm:$0xff] %v26816_v49  ;;  %v18428_v43 = vrot.slane %v15957_v56, 9  ;;  %v16071_v7 = vrot.slane %v26781_v63, 5  ;;  %v15213_v48 = vld [vmem:[#allocation2 + $0xa0] sm:$0xf] }
 0x6ba   : > { %27965 = vst [vmem:[#allocation61_spill] sm:$0xff] %v26805_v35  ;;  %27966 = vst [vmem:[#allocation62_spill] sm:$0xff] %v26812_v27  ;;  %v26823_v29 = vsel %vm22224_vm7, %v16066_v57, %v16067_v1  ;;  %v18429_v21 = vrot.slane %v15958_v60, 9  ;;  %v16078_v17 = vrot.slane %v15207_v45, 5  ;;  %v15959_v12 = vld [vmem:[#allocation2 + $0x90] sm:$0xe] }
 0x6bb   : > { %27968 = vst [vmem:[#allocation64_spill] sm:$0xff] %v26823_v29  ;;  %v15216_v40 = vld [vmem:[#allocation2 + $0xac] sm:$0xf]  ;;  %v26831_v56 = vsel %vm22224_vm7, %v18428_v43, %v16071_v7  ;;  %v16073_v23 = vrot.slane %v16071_v7, 4  ;;  %v16074_v10 = vrot.slane %v15205_v0, 5  ;;  %v16081_v60 = vrot.slane %v15208_v31, 5 }
 0x6bc   : > { %v15960_v46 = vld [vmem:[#allocation2 + $0x9c] sm:$0xe]  ;;  %v15214_v1 = vld [vmem:[#allocation2 + $0xa4] sm:$0x1]  ;;  %v16080_v45 = vrot.slane %v16078_v17, 4  ;;  %v16085_v57 = vrot.slane %v15210_v5, 5 }
 0x6bd   : > { %v21496_v7 = vld [vmem:[%s27579_s3 + $0x100] sm:$0xff]   ;;  %v15217_v0 = vld [vmem:[#allocation2 + $0xb0] sm:$0x1]  ;;  %v26845_v43 = vsel %vm22224_vm7, %v16073_v23, %v16074_v10  ;;  %v16092_v47 = vrot.slane %v15213_v48, 5  ;;  %v15219_v29 = vld [vmem:[#allocation2 + $0xb8] sm:$0xf] }
 0x6be   : > { %20186 = vmatmul.mubr.msk.bf16.vlgmr.msra.gmra.mrb[32].mxu1 %vm6541_vm10, %v26593_v30  ;;  %v26838_v30 = vsel %vm22224_vm7, %v18429_v21, %v16078_v17  ;;  %v26851_v5 = vsel %vm22224_vm7, %v16080_v45, %v16081_v60  ;;  %v16087_v17 = vrot.slane %v16085_v57, 4  ;;  %v18431_v31 = vrot.slane %v15960_v46, 9  ;;  %v15961_v49 = vld [vmem:[#allocation2 + $0xa8] sm:$0xe]  ;;  %v15962_v23 = vld [vmem:[#allocation2 + $0xb4] sm:$0xe] }
 0x6bf   : > { %20189 = vmatprep.mubr.msk.bf16.mxu1 %vm6541_vm10, %v26620_v22  ;;  %20218 = vmatpush3.bf16.msra.mxu1 %v26559_v41  ;;  %27969 = vst [vmem:[#allocation65_spill] sm:$0xff] %v26838_v30  ;;  %v18430_v22 = vrot.slane %v15959_v12, 9  ;;  %v16088_v41 = vrot.slane %v15211_v52, 5  ;;  %27970 = vst [vmem:[#allocation66_spill] sm:$0xff] %v26851_v5  ;;  %v27971_v27 = vshll.u32 %v26352_v24, 16  ;;  %v16094_v52 = vrot.slane %v16092_v47, 4 }
 0x6c0   : > { %20219 = vmatprep.subr.bf16.mxu1 %v21495_v53  ;;  %v16095_v48 = vrot.slane %v15214_v1, 5  ;;  %v15220_v10 = vld [vmem:[#allocation2 + $0xbc] sm:$0x1]  ;;  %v15222_v21 = vld [vmem:[#allocation2 + $0xc4] sm:$0xf]  ;;  %v16099_v60 = vrot.slane %v15216_v40, 5 }
 0x6c1   : > { %v26855_v35 = vrot.slane %v27971_v27, 5  ;;  %v26861_v45 = vsel %vm22224_vm7, %v18430_v22, %v16085_v57  ;;  %v26865_v46 = vsel %vm22224_vm7, %v16087_v17, %v16088_v41  ;;  %v26869_v27 = vsel %vm22224_vm7, %v18431_v31, %v16092_v47  ;;  %v15963_v17 = vld [vmem:[#allocation2 + $0xc0] sm:$0xe]  ;;  %v15223_v12 = vld [vmem:[#allocation2 + $0xc8] sm:$0x1]  ;;  %v28048_v28 = vld [vmem:[#allocation55_spill] sm:$0xff] }
 0x6c2   : > { %27972 = vst [vmem:[#allocation67_spill] sm:$0xff] %v26861_v45  ;;  %27973 = vst [vmem:[#allocation68_spill] sm:$0xff] %v26865_v46  ;;  %v26878_v57 = vsel %vm22224_vm7, %v16094_v52, %v16095_v48  ;;  %v18432_v22 = vrot.slane %v15961_v49, 9  ;;  %v16106_v41 = vrot.slane %v15219_v29, 5  ;;  %v16101_v40 = vrot.slane %v16099_v60, 4 }
 0x6c3   : > { %20220 = vmatpush3.bf16.msra.mxu1 %v21495_v53  ;;  %v21497_v53 = vld [vmem:[%s27579_s3 + $0x108] sm:$0xff]   ;;  %v18459_v47 = vcombine.low %v26869_v27, %v26878_v57  ;;  %v16102_v31 = vrot.slane %v15217_v0, 5  ;;  %v18433_v5 = vrot.slane %v15962_v23, 9  ;;  %v27974_v30 = vshrl.u32 %v26352_v24, 16 }
 0x6c4   : > { %20221 = vmatprep.subr.bf16.mxu1 %v21496_v7  ;;  %v16108_v46 = vrot.slane %v16106_v41, 4  ;;  %v16109_v45 = vrot.slane %v15220_v10, 5  ;;  %v16113_v52 = vrot.slane %v15222_v21, 5  ;;  %v26890_v49 = vsel %vm22224_vm7, %v18432_v22, %v16099_v60 }
 0x6c5   : > { %v13773_v1 = vrot.slane %v27974_v30, 4  ;;  %v26894_v29 = vsel %vm22224_vm7, %v16101_v40, %v16102_v31  ;;  %v18434_v24 = vrot.slane %v15963_v17, 9  ;;  %v13523_v30 = vld [vmem:[#allocation2 + $0x84] sm:$0xf]  ;;  %v16116_v48 = vrot.slane %v15223_v12, 5 }
 0x6c6   : > { %20190 = vmatmul.mubr.msk.bf16.gmra.mrb[36].mxu1 %vm6541_vm10, %v26644_v9  ;;  %v26898_v9 = vsel %vm22224_vm7, %v18433_v5, %v16106_v41  ;;  %v26907_v0 = vsel %vm22224_vm7, %v16108_v46, %v16109_v45  ;;  %v16115_v21 = vrot.slane %v16113_v52, 4  ;;  %v27975_v5 = vor.u32 %v26642_v39, %v26637_v18 }
 0x6c7   : > { %20193 = vmatprep.mubr.msk.bf16.mxu1 %vm6541_vm10, %v26655_v62  ;;  %20222 = vmatpush3.bf16.msra.mxu1 %v21496_v7  ;;  %v21498_v62 = vld [vmem:[%s27579_s3 + $0x110] sm:$0xff]   ;;  %v18460_v7 = vcombine.low %v26890_v49, %v26894_v29  ;;  %v13740_v10 = vor.u32 %v26691_v13, %v26685_v50  ;;  %v27976_v60 = vshrl.u32 %v26651_v20, 16  ;;  %v18461_v41 = vcombine.low %v26898_v9, %v26907_v0 }
 0x6c8   : > { %20223 = vmatprep.subr.bf16.mxu1 %v21497_v53  ;;  %v13727_v23 = vrot.slane %v27975_v5, 4  ;;  %v13791_v17 = vshll.u32 %v26374_v14, 16  ;;  %v13795_v45 = vshrl.u32 %v26374_v14, 16  ;;  %v26922_v12 = vsel %vm22224_vm7, %v18434_v24, %v16113_v52 }
 0x6c9   : > { %v13760_v22 = vrot.slane %v27976_v60, 4  ;;  %v26926_v39 = vsel %vm22224_vm7, %v16115_v21, %v16116_v48  ;;  %v27977_v50 = vshll.u32 %v26651_v20, 16  ;;  %v13782_v46 = vshrl.u32 %v13523_v30, 16 }
 0x6ca   : > { %v13785_v40 = vshll.u32 %v13523_v30, 16  ;;  %v18462_v31 = vcombine.low %v26922_v12, %v26926_v39  ;;  %v27978_v14 = vsel %vm21867_vm4, %v26635_v11, %v26649_v44  ;;  %v27979_v52 = vsel %vm21867_vm4, %v26631_v37, %v26609_v58  ;;  %v21499_v11 = vld [vmem:[%s27579_s3 + $0x118] sm:$0xff]  }
 0x6cb   : > { %v13763_v13 = vrot.slane %v27977_v50, 5  ;;  %20224 = vmatpush3.bf16.msra.mxu1 %v21497_v53  ;;  %v18221_v24 = vcombine.low %v27979_v52, %v27978_v14  ;;  %v13698_v20 = vsel %vm21867_vm4, %v26671_v2, %v26611_v55  ;;  %v27980_v53 = vor.u32 %v26701_v61, %v26699_v33 }
 0x6cc   : > { %v13774_v21 = vor.u32 %v13773_v1, %v26855_v35  ;;  %20225 = vmatprep.subr.bf16.mxu1 %v21498_v62  ;;  %v27981_v58 = vsel %vm21867_vm4, %v26640_v59, %v26657_v6  ;;  %v13722_v55 = vsel %vm21867_vm4, %v26681_v34, %v26637_v18  ;;  %v13732_v44 = vsel %vm21867_vm4, %v13727_v23, %v26673_v54  ;;  %v13526_v6 = vld [vmem:[#allocation2 + $0x90] sm:$0xf] }
 0x6cd   : > { %v13751_v30 = vrot.slane %v27980_v53, 4  ;;  %v18222_v37 = vcombine.low %v13698_v20, %v27981_v58  ;;  %v27982_v2 = vshll.u32 %v26350_v32, 16  ;;  %v13777_v1 = vshll.u32 %v26365_v36, 16  ;;  %v26977_v32 = vld [vmem:[%s27579_s3 + $0x120] sm:$0xff]  }
 0x6ce   : > { %20194 = vmatmul.mubr.msk.bf16.gmra.mrb[40].mxu1 %vm6541_vm10, %v18221_v24  ;;  %v26969_v48 = vrot.slane %v13791_v17, 5  ;;  %v13797_v59 = vrot.slane %v13795_v45, 4  ;;  %v13741_v5 = vrot.slane %v13740_v10, 4  ;;  %v13764_v60 = vor.u32 %v13763_v13, %v13760_v22  ;;  %v13529_v22 = vld [vmem:[#allocation2 + $0x9c] sm:$0xf] }
 0x6cf   : > { %v13755_v61 = vrot.slane %v27982_v2, 5  ;;  %20197 = vmatprep.mubr.msk.bf16.mxu1 %vm6541_vm10, %v18222_v37  ;;  %v13784_v18 = vrot.slane %v13782_v46, 4  ;;  %v13787_v34 = vrot.slane %v13785_v40, 5  ;;  %20226 = vmatpush3.bf16.msra.mxu1 %v21498_v62  ;;  %v18223_v50 = vcombine.low %v13722_v55, %v13732_v44 }
 0x6d0   : > { %v13775_v23 = vrot.slane %v13774_v21, 4  ;;  %20227 = vmatprep.subr.bf16.mxu1 %v21499_v11  ;;  %v13806_v36 = vshrl.u32 %v13526_v6, 16  ;;  %v13809_v17 = vshll.u32 %v13526_v6, 16  ;;  %v13815_v45 = vshll.u32 %v26382_v51, 16 }
 0x6d1   : > { %v13756_v54 = vsel %vm21867_vm4, %v13751_v30, %v13755_v61  ;;  %v13819_v10 = vshrl.u32 %v26382_v51, 16  ;;  %v13779_v13 = vrot.slane %v13777_v1, 5  ;;  %v13798_v62 = vor.u32 %v13797_v59, %v26969_v48 }
 0x6d2   : > { %v13839_v46 = vshll.u32 %v26404_v38, 16  ;;  %v13843_v40 = vshrl.u32 %v26404_v38, 16  ;;  %v13746_v14 = vsel %vm21867_vm4, %v13741_v5, %v26699_v33  ;;  %v13765_v52 = vrot.slane %v13764_v60, 4  ;;  %v13532_v5 = vld [vmem:[#allocation2 + $0xa8] sm:$0xf] }
 0x6d3   : > { %v13788_v24 = vor.u32 %v13787_v34, %v13784_v18  ;;  %v13801_v20 = vshll.u32 %v26388_v42, 16  ;;  %20228 = vmatpush3.bf16.msra.mxu1 %v21499_v11  ;;  %v18224_v53 = vcombine.low %v13746_v14, %v13756_v54  ;;  %v13780_v51 = vsel %vm21867_vm4, %v13775_v23, %v13779_v13  ;;  %v13535_v54 = vld [vmem:[#allocation2 + $0xb4] sm:$0xf] }
 0x6d4   : > { %v13830_v30 = vshrl.u32 %v13529_v22, 16  ;;  %v13833_v21 = vshll.u32 %v13529_v22, 16  ;;  %20261 = vmatprep.subr.bf16.mxu1 %v26977_v32  ;;  %v13808_v58 = vrot.slane %v13806_v36, 4  ;;  %v13811_v37 = vrot.slane %v13809_v17, 5 }
 0x6d5   : > { %v26991_v38 = vrot.slane %v13815_v45, 5  ;;  %v13821_v55 = vrot.slane %v13819_v10, 4  ;;  %v13799_v33 = vrot.slane %v13798_v62, 4  ;;  %v26994_v44 = vrot.slane %v13839_v46, 5  ;;  %v21633_v10 = vld [vmem:[#allocation2 + $0x98] sm:$0x1] }
 0x6d6   : > { %20198 = vmatmul.mubr.msk.bf16.gmra.mrb[44].mxu1 %vm6541_vm10, %v18223_v50  ;;  %v13845_v42 = vrot.slane %v13843_v40, 4  ;;  %v13770_v11 = vsel %vm21867_vm4, %v13765_v52, %v26855_v35  ;;  %v13789_v2 = vrot.slane %v13788_v24, 4  ;;  %v13803_v1 = vrot.slane %v13801_v20, 5 }
 0x6d7   : > { %20201 = vmatprep.mubr.msk.bf16.mxu1 %vm6541_vm10, %v18224_v53  ;;  %v18225_v61 = vcombine.low %v13770_v11, %v13780_v51  ;;  %v13832_v59 = vrot.slane %v13830_v30, 4  ;;  %v13835_v6 = vrot.slane %v13833_v21, 5  ;;  %v13812_v60 = vor.u32 %v13811_v37, %v13808_v58 }
 0x6d8   : > { %v13822_v18 = vor.u32 %v13821_v55, %v26991_v38  ;;  %v13863_v34 = vshll.u32 %v26416_v4, 16  ;;  %v13867_v50 = vshrl.u32 %v26416_v4, 16  ;;  %v13804_v23 = vsel %vm21867_vm4, %v13799_v33, %v13803_v1  ;;  %v21634_v4 = vld [vmem:[#allocation2 + $0xa4] sm:$0x1]  ;;  %v13538_v1 = vld [vmem:[#allocation2 + $0xc0] sm:$0xf] }
 0x6d9   : > { %v13846_v36 = vor.u32 %v13845_v42, %v26994_v44  ;;  %v13887_v35 = vshll.u32 %v26440_v16, 16  ;;  %v13891_v17 = vshrl.u32 %v26440_v16, 16  ;;  %v13794_v45 = vsel %vm21867_vm4, %v13789_v2, %v26969_v48 }
 0x6da   : > { %v13825_v22 = vshll.u32 %v21633_v10, 16  ;;  %v13854_v13 = vshrl.u32 %v13532_v5, 16  ;;  %v13857_v62 = vshll.u32 %v13532_v5, 16  ;;  %v13836_v46 = vor.u32 %v13835_v6, %v13832_v59  ;;  %v21635_v5 = vld [vmem:[#allocation2 + $0xc4] sm:$0xf] }
 0x6db   : > { %v13849_v40 = vshll.u32 %v21634_v4, 16  ;;  %v13878_v14 = vshrl.u32 %v13535_v54, 16  ;;  %v13881_v52 = vshll.u32 %v13535_v54, 16  ;;  %v18226_v24 = vcombine.low %v13794_v45, %v13804_v23  ;;  %v21636_v23 = vld [vmem:[#allocation2 + $0xb0] sm:$0x1] }
 0x6dc   : > { %v13823_v20 = vrot.slane %v13822_v18, 4  ;;  %v13865_v53 = vrot.slane %v13863_v34, 5  ;;  %v13869_v51 = vrot.slane %v13867_v50, 4  ;;  %v13813_v16 = vrot.slane %v13812_v60, 4 }
 0x6dd   : > { %v13847_v30 = vrot.slane %v13846_v36, 4  ;;  %v13889_v21 = vrot.slane %v13887_v35, 5  ;;  %v13893_v58 = vrot.slane %v13891_v17, 4  ;;  %v13827_v48 = vrot.slane %v13825_v22, 5  ;;  %v21637_v22 = vld [vmem:[#allocation2 + $0xbc] sm:$0x1] }
 0x6de   : > { %20202 = vmatmul.mubr.msk.bf16.gmra.mrb[48].mxu1 %vm6541_vm10, %v18225_v61  ;;  %v13856_v37 = vrot.slane %v13854_v13, 4  ;;  %v13859_v55 = vrot.slane %v13857_v62, 5  ;;  %v13837_v33 = vrot.slane %v13836_v46, 4  ;;  %v13851_v42 = vrot.slane %v13849_v40, 5 }
 0x6df   : > { %20205 = vmatprep.mubr.msk.bf16.mxu1 %vm6541_vm10, %v18226_v24  ;;  %v13880_v11 = vrot.slane %v13878_v14, 4  ;;  %v13883_v2 = vrot.slane %v13881_v52, 5  ;;  %v13828_v59 = vsel %vm21867_vm4, %v13823_v20, %v13827_v48  ;;  %v13870_v6 = vor.u32 %v13869_v51, %v13865_v53 }
 0x6e0   : > { %v13911_v61 = vshll.u32 %v26458_v8, 16  ;;  %v13915_v60 = vshrl.u32 %v21635_v5, 16  ;;  %v13818_v18 = vsel %vm21867_vm4, %v13813_v16, %v26991_v38  ;;  %v13852_v34 = vsel %vm21867_vm4, %v13847_v30, %v13851_v42 }
 0x6e1   : > { %v13894_v50 = vor.u32 %v13893_v58, %v13889_v21  ;;  %v13860_v54 = vor.u32 %v13859_v55, %v13856_v37  ;;  %v13873_v36 = vshll.u32 %v21636_v23, 16  ;;  %v13902_v35 = vshrl.u32 %v13538_v1, 16 }
 0x6e2   : > { %v13905_v17 = vshll.u32 %v13538_v1, 16  ;;  %v18227_v45 = vcombine.low %v13818_v18, %v13828_v59  ;;  %v13842_v8 = vsel %vm21867_vm4, %v13837_v33, %v26994_v44  ;;  %v13884_v10 = vor.u32 %v13883_v2, %v13880_v11  ;;  %v21638_v33 = vld [vmem:[#allocation2 + $0xc8] sm:$0x1]  ;;  %v27983_v18 = vld [vmem:[#allocation35_spill] sm:$0xff] }
 0x6e3   : > { %v13897_v13 = vshll.u32 %v21637_v22, 16  ;;  %v18228_v62 = vcombine.low %v13842_v8, %v13852_v34  ;;  %v13871_v46 = vrot.slane %v13870_v6, 4  ;;  %v13913_v38 = vrot.slane %v13911_v61, 5 }
 0x6e4   : > { %v13917_v4 = vrot.slane %v13915_v60, 4  ;;  %v13895_v40 = vrot.slane %v13894_v50, 4  ;;  %v13861_v14 = vrot.slane %v13860_v54, 4  ;;  %v13875_v52 = vrot.slane %v13873_v36, 5 }
 0x6e5   : > { %v13904_v24 = vrot.slane %v13902_v35, 4  ;;  %v13907_v20 = vrot.slane %v13905_v17, 5  ;;  %v13885_v51 = vrot.slane %v13884_v10, 4  ;;  %v13899_v16 = vrot.slane %v13897_v13, 5 }
 0x6e6   : > { %20206 = vmatmul.mubr.msk.bf16.gmra.mrb[52].mxu1 %vm6541_vm10, %v18227_v45  ;;  %v13876_v44 = vsel %vm21867_vm4, %v13871_v46, %v13875_v52  ;;  %v13918_v30 = vor.u32 %v13917_v4, %v13913_v38  ;;  %v14329_v48 = vrot.slane %v26526_v19, 5  ;;  %v13866_v37 = vsel %vm21867_vm4, %v13861_v14, %v13865_v53  ;;  %v14263_v19 = vld [vmem:[#allocation2 + $0xc] sm:$0xe]  ;;  %v27984_v45 = vld [vmem:[#allocation36_spill] sm:$0xff]  ;;  %v27986_v4 = vld [vmem:[#allocation15_spill] sm:$0xff] }
 0x6e7   : > { %20209 = vmatprep.mubr.msk.bf16.mxu1 %vm6541_vm10, %v18228_v62  ;;  %v13900_v58 = vsel %vm21867_vm4, %v13895_v40, %v13899_v16  ;;  %v13908_v55 = vor.u32 %v13907_v20, %v13904_v24  ;;  %v13921_v42 = vshll.u32 %v21638_v33, 16  ;;  %v18229_v11 = vcombine.low %v13866_v37, %v13876_v44  ;;  %v21501_v46 = vld [vmem:[%s27579_s3 + $0x128] sm:$0xff]   ;;  %v21502_v14 = vld [vmem:[%s27579_s3 + $0x130] sm:$0xff]   ;;  %v21503_v52 = vld [vmem:[%s27579_s3 + $0x138] sm:$0xff]  }
 0x6e8   : > { %v13890_v2 = vsel %vm21867_vm4, %v13885_v51, %v13889_v21  ;;  %v13919_v59 = vrot.slane %v13918_v30, 4  ;;  %v14331_v6 = vrot.slane %v14329_v48, 4  ;;  %v14332_v60 = vrot.slane %v26544_v15, 5  ;;  %v14264_v15 = vld [vmem:[#allocation2 + $0x18] sm:$0xe]  ;;  %v27988_v24 = vld [vmem:[#allocation16_spill] sm:$0xff] }
 0x6e9   : > { %v18230_v1 = vcombine.low %v13890_v2, %v13900_v58  ;;  %v13909_v61 = vrot.slane %v13908_v55, 4  ;;  %v13923_v5 = vrot.slane %v13921_v42, 5  ;;  %v14336_v34 = vrot.slane %v27983_v18, 5  ;;  %v27989_v20 = vld [vmem:[#allocation19_spill] sm:$0xff]  ;;  %v27991_v16 = vld [vmem:[#allocation17_spill] sm:$0xff]  ;;  %v27992_v44 = vld [vmem:[#allocation20_spill] sm:$0xff] }
 0x6ea   : > { %v18254_v50 = vrot.slane %v14263_v19, 9  ;;  %v14333_v21 = vsel %vm22224_vm7, %v14331_v6, %v14332_v60  ;;  %v14339_v8 = vrot.slane %v27984_v45, 5  ;;  %v18255_v10 = vrot.slane %v14264_v15, 9  ;;  %v21505_v58 = vld [vmem:[%s27579_s3 + $0x148] sm:$0xff]   ;;  %v27995_v37 = vld [vmem:[#allocation11_spill] sm:$0xff]  ;;  %v27998_v42 = vld [vmem:[#allocation10_spill] sm:$0xff] }
 0x6eb   : > { %v13924_v53 = vsel %vm21867_vm4, %v13919_v59, %v13923_v5  ;;  %v13914_v54 = vsel %vm21867_vm4, %v13909_v61, %v13913_v38  ;;  %v14338_v17 = vrot.slane %v14336_v34, 4  ;;  %v27985_v38 = vld [vmem:[#allocation14_spill] sm:$0xff]  ;;  %v27990_v51 = vcombine.low %v27988_v24, %v27989_v20  ;;  %v27997_v33 = vld [vmem:[#allocation23_spill] sm:$0xff]  ;;  %v28006_v60 = vld [vmem:[#allocation25_spill] sm:$0xff] }
 0x6ec   : > { %v18231_v23 = vcombine.low %v13914_v54, %v13924_v53  ;;  %v14330_v36 = vsel %vm22224_vm7, %v18254_v50, %v14329_v48  ;;  %v14337_v13 = vsel %vm22224_vm7, %v18255_v10, %v14336_v34  ;;  %v27987_v40 = vcombine.low %v27985_v38, %v27986_v4  ;;  %v27994_v48 = vld [vmem:[#allocation21_spill] sm:$0xff]  ;;  %v21508_v2 = vld [vmem:[%s27579_s3 + $0x150] sm:$0xff]   ;;  %v28003_v61 = vld [vmem:[#allocation7_spill] sm:$0xff] }
 0x6ed   : > { %v18282_v35 = vcombine.low %v14330_v36, %v14333_v21  ;;  %v14340_v22 = vsel %vm22224_vm7, %v14338_v17, %v14339_v8  ;;  %v27993_v30 = vcombine.low %v27991_v16, %v27992_v44  ;;  %v27996_v55 = vcombine.low %v27994_v48, %v27995_v37  ;;  %v28001_v59 = vld [vmem:[#allocation22_spill] sm:$0xff]  ;;  %v28007_v53 = vld [vmem:[#allocation12_spill] sm:$0xff]  ;;  %v28010_v50 = vld [vmem:[#allocation9_spill] sm:$0xff] }
 0x6ee   : > { %20210 = vmatmul.mubr.msk.bf16.gmra.mrb[56].mxu1 %vm6541_vm10, %v18229_v11  ;;  %v18283_v62 = vcombine.low %v14337_v13, %v14340_v22  ;;  %v27999_v11 = vcombine.low %v27997_v33, %v27998_v42  ;;  %v28004_v5 = vld [vmem:[#allocation18_spill] sm:$0xff]  ;;  %v28008_v18 = vcombine.low %v28006_v60, %v28007_v53  ;;  %v28012_v54 = vld [vmem:[#allocation13_spill] sm:$0xff]  ;;  %v28016_v17 = vld [vmem:[#allocation28_spill] sm:$0xff] }
 0x6ef   : > { %20213 = vmatprep.mubr.msk.bf16.mxu1 %vm6541_vm10, %v18230_v1  ;;  %v28000_v1 = vld [vmem:[#allocation8_spill] sm:$0xff]  ;;  %v28005_v19 = vcombine.low %v28003_v61, %v28004_v5  ;;  %v28009_v34 = vld [vmem:[#allocation26_spill] sm:$0xff]  ;;  %v28018_v45 = vld [vmem:[#allocation29_spill] sm:$0xff] }
 0x6f0   : > { %v28002_v6 = vcombine.low %v28000_v1, %v28001_v59  ;;  %v28011_v21 = vcombine.low %v28009_v34, %v28010_v50  ;;  %v28019_v8 = vld [vmem:[#allocation30_spill] sm:$0xff]  ;;  %v28021_v22 = vld [vmem:[#allocation31_spill] sm:$0xff]  ;;  %v28022_v13 = vld [vmem:[#allocation32_spill] sm:$0xff] }
 0x6f1   : > { %v28020_v10 = vcombine.low %v28018_v45, %v28019_v8  ;;  %v28024_v38 = vld [vmem:[#allocation33_spill] sm:$0xff]  ;;  %v28025_v4 = vld [vmem:[#allocation34_spill] sm:$0xff]  ;;  %v21515_v20 = vld [vmem:[%s27579_s3 + $0x160] sm:$0xff]  }
 0x6f2   : > { %v21509_v24 = vld [vmem:[#allocation2 + $0x30] sm:$0xff]   ;;  %v21519_v16 = vld [vmem:[%s27579_s3 + $0x168] sm:$0xff]   ;;  %v21514_v48 = vld [vmem:[#allocation2 + $0x60] sm:$0xff]  }
 0x6f3   : > { %v21511_v44 = vld [vmem:[#allocation2 + $0x48] sm:$0xff]   ;;  %v27155_v37 = vld [vmem:[%s27579_s3 + $0x180] sm:$0xff]   ;;  %v21517_v33 = vld [vmem:[#allocation2 + $0x78] sm:$0xff]  }
 0x6f4   : > { %v15179_v42 = vld [vmem:[#allocation2 + $0x18] sm:$0xf]  ;;  %v21518_v61 = vld [vmem:[#allocation2 + $0x84] sm:$0xff]   ;;  %v21520_v5 = vld [vmem:[#allocation2 + $0x90] sm:$0xff]  }
 0x6f5   : > { %v15228_v59 = vshrl.u32 %v15179_v42, 16  ;;  %v15182_v53 = vld [vmem:[#allocation2 + $0x24] sm:$0xf]  ;;  %v28029_v45 = vld [vmem:[#allocation38_spill] sm:$0xff] }
 0x6f6   : > { %20214 = vmatmul.mubr.msk.bf16.gmra.mrb[60].mxu1 %vm6541_vm10, %v18231_v23  ;;  %v28013_v23 = vld [vmem:[#allocation27_spill] sm:$0xff]  ;;  %v15252_v50 = vshrl.u32 %v15182_v53, 16  ;;  %v15247_v8 = vshll.u32 %v28029_v45, 16  ;;  %v27187_v45 = vld [vmem:[#allocation2 + $0xd0] sm:$0xf] }
 0x6f7   : > { %20229 = vmatprep.mubr.msk.bf16.mxu1 %vm6541_vm10, %v18282_v35  ;;  %v28014_v36 = vcombine.low %v28012_v54, %v28013_v23  ;;  %v28015_v35 = vld [vmem:[#allocation24_spill] sm:$0xff]  ;;  %v15255_v54 = vshll.u32 %v15182_v53, 16  ;;  %v28028_v23 = vld [vmem:[#allocation39_spill] sm:$0xff] }
 0x6f8   : > { %v28017_v15 = vcombine.low %v28015_v35, %v28016_v17  ;;  %v15265_v35 = vshrl.u32 %v28028_v23, 16  ;;  %v15185_v17 = vld [vmem:[#allocation2 + $0x30] sm:$0xf] }
 0x6fe   : > { %20230 = vmatmul.mubr.msk.bf16.vlgmr.msra.gmra.mrb[32].mxu1 %vm6541_vm10, %v18283_v62  ;;  %v28023_v62 = vcombine.low %v28021_v22, %v28022_v13  ;;  %v15254_v22 = vrot.slane %v15252_v50, 4  ;;  %v21522_v13 = vld [vmem:[#allocation2 + $0xa8] sm:$0xff]  }
 0x6ff   : > { %20233 = vmatprep.mubr.msk.bf16.mxu1 %vm6541_vm10, %v27987_v40  ;;  %20262 = vmatpush3.bf16.msra.mxu1 %v26977_v32  ;;  %v21504_v32 = vld [vmem:[%s27579_s3 + $0x140] sm:$0xff]   ;;  %v28026_v40 = vcombine.low %v28024_v38, %v28025_v4  ;;  %v15276_v4 = vshrl.u32 %v15185_v17, 16 }
 0x700   : > { %20263 = vmatprep.subr.bf16.mxu1 %v21501_v46 }
 0x703   : > { %20264 = vmatpush3.bf16.msra.mxu1 %v21501_v46  ;;  %v21506_v46 = vld [vmem:[#allocation2 + $0x18] sm:$0xff]  }
 0x704   : > { %20265 = vmatprep.subr.bf16.mxu1 %v21502_v14 }
 0x706   : > { %20234 = vmatmul.mubr.msk.bf16.gmra.mrb[36].mxu1 %vm6541_vm10, %v27990_v51  ;;  %v21510_v51 = vld [vmem:[#allocation2 + $0x3c] sm:$0xff]  }
 0x707   : > { %20237 = vmatprep.mubr.msk.bf16.mxu1 %vm6541_vm10, %v27993_v30  ;;  %20266 = vmatpush3.bf16.msra.mxu1 %v21502_v14  ;;  %v21507_v14 = vld [vmem:[#allocation2 + $0x24] sm:$0xff]   ;;  %v21523_v30 = vld [vmem:[%s27579_s3 + $0x170] sm:$0xff]  }
 0x708   : > { %20267 = vmatprep.subr.bf16.mxu1 %v21503_v52 }
 0x70b   : > { %20268 = vmatpush3.bf16.msra.mxu1 %v21503_v52  ;;  %v21512_v52 = vld [vmem:[%s27579_s3 + $0x158] sm:$0xff]  }
 0x70c   : > { %20269 = vmatprep.subr.bf16.mxu1 %v21504_v32 }
 0x70e   : > { %20238 = vmatmul.mubr.msk.bf16.gmra.mrb[40].mxu1 %vm6541_vm10, %v27996_v55  ;;  %v21516_v55 = vld [vmem:[#allocation2 + $0x6c] sm:$0xff]  }
 0x70f   : > { %20241 = vmatprep.mubr.msk.bf16.mxu1 %vm6541_vm10, %v27999_v11  ;;  %20270 = vmatpush3.bf16.msra.mxu1 %v21504_v32  ;;  %v21513_v32 = vld [vmem:[#allocation2 + $0x54] sm:$0xff]   ;;  %v28027_v11 = vld [vmem:[#allocation37_spill] sm:$0xff] }
 0x710   : > { %20271 = vmatprep.subr.bf16.mxu1 %v21505_v58  ;;  %v15241_v1 = vshrl.u32 %v28027_v11, 16 }
 0x712   : > { %v15243_v60 = vrot.slane %v15241_v1, 4 }
 0x713   : > { %20272 = vmatpush3.bf16.msra.mxu1 %v21505_v58  ;;  %v21526_v58 = vld [vmem:[%s27579_s3 + $0x178] sm:$0xff]  }
 0x714   : > { %20305 = vmatprep.subr.bf16.mxu1 %v21508_v2 }
 0x716   : > { %20242 = vmatmul.mubr.msk.bf16.gmra.mrb[44].mxu1 %vm6541_vm10, %v28002_v6  ;;  %v15231_v6 = vshll.u32 %v15179_v42, 16 }
 0x717   : > { %20245 = vmatprep.mubr.msk.bf16.mxu1 %vm6541_vm10, %v28005_v19 }
 0x718   : > { %v15233_v34 = vrot.slane %v15231_v6, 5  ;;  %v21524_v6 = vld [vmem:[#allocation2 + $0xb4] sm:$0xff]  }
 0x71e   : > { %20246 = vmatmul.mubr.msk.bf16.gmra.mrb[48].mxu1 %vm6541_vm10, %v28008_v18  ;;  %v15230_v18 = vrot.slane %v15228_v59, 4 }
 0x71f   : > { %20249 = vmatprep.mubr.msk.bf16.mxu1 %vm6541_vm10, %v28011_v21 }
 0x726   : > { %20250 = vmatmul.mubr.msk.bf16.gmra.mrb[52].mxu1 %vm6541_vm10, %v28014_v36  ;;  %v15261_v36 = vshll.u32 %v28028_v23, 16 }
 0x727   : > { %20253 = vmatprep.mubr.msk.bf16.mxu1 %vm6541_vm10, %v28017_v15  ;;  %v15234_v15 = vor.u32 %v15233_v34, %v15230_v18  ;;  %v28032_v34 = vld [vmem:[#allocation42_spill] sm:$0xff] }
 0x728   : > { %v27167_v38 = vrot.slane %v15261_v36, 5  ;;  %v15295_v50 = vshll.u32 %v28032_v34, 16  ;;  %v15191_v36 = vld [vmem:[#allocation2 + $0x48] sm:$0xf] }
 0x72e   : > { %20254 = vmatmul.mubr.msk.bf16.gmra.mrb[56].mxu1 %vm6541_vm10, %v28020_v10  ;;  %v21521_v10 = vld [vmem:[#allocation2 + $0x9c] sm:$0xff]  }
 0x72f   : > { %20257 = vmatprep.mubr.msk.bf16.mxu1 %vm6541_vm10, %v28023_v62 }
 0x736   : > { %20258 = vmatmul.mubr.msk.bf16.gmra.mrb[60].mxu1 %vm6541_vm10, %v28026_v40  ;;  %v15267_v40 = vrot.slane %v15265_v35, 4 }
 0x737   : > { %20273 = vmatprep.mubr.msk.bf16.mxu1 %vm6541_vm10, %v21506_v46  ;;  %v15257_v46 = vrot.slane %v15255_v54, 5 }
 0x73e   : > { %20274 = vmatmul.mubr.msk.bf16.vlgmr.msra.gmra.mrb[32].mxu1 %vm6541_vm10, %v21507_v14  ;;  %v15279_v14 = vshll.u32 %v15185_v17, 16 }
 0x73f   : > { %20277 = vmatprep.mubr.msk.bf16.mxu1 %vm6541_vm10, %v21509_v24  ;;  %20306 = vmatpush3.bf16.msra.mxu1 %v21508_v2  ;;  %v15237_v2 = vshll.u32 %v28027_v11, 16 }
 0x740   : > { %20307 = vmatprep.subr.bf16.mxu1 %v21512_v52  ;;  %v15281_v42 = vrot.slane %v15279_v14, 5  ;;  %v15357_v14 = vshll.u32 %v26729_v3, 16 }
 0x741   : > { %v15239_v19 = vrot.slane %v15237_v2, 5 }
 0x743   : > { %20308 = vmatpush3.bf16.msra.mxu1 %v21512_v52  ;;  %v15244_v21 = vor.u32 %v15243_v60, %v15239_v19  ;;  %v28030_v52 = vld [vmem:[#allocation41_spill] sm:$0xff] }
 0x744   : > { %20309 = vmatprep.subr.bf16.mxu1 %v21515_v20  ;;  %v15285_v24 = vshll.u32 %v28030_v52, 16 }
 0x745   : > { %v15245_v62 = vrot.slane %v15244_v21, 4  ;;  %v28033_v21 = vld [vmem:[#allocation43_spill] sm:$0xff] }
 0x746   : > { %20278 = vmatmul.mubr.msk.bf16.gmra.mrb[36].mxu1 %vm6541_vm10, %v21510_v51  ;;  %v15235_v51 = vrot.slane %v15234_v15, 4  ;;  %v27177_v11 = vrot.slane %v15285_v24, 5  ;;  %v15309_v54 = vshll.u32 %v28033_v21, 16  ;;  %v15313_v23 = vshrl.u32 %v28033_v21, 16  ;;  %v28034_v21 = vld [vmem:[#allocation44_spill] sm:$0xff] }
 0x747   : > { %20281 = vmatprep.mubr.msk.bf16.mxu1 %vm6541_vm10, %v21511_v44  ;;  %20310 = vmatpush3.bf16.msra.mxu1 %v21515_v20  ;;  %v15289_v20 = vshrl.u32 %v28030_v52, 16  ;;  %v28031_v44 = vld [vmem:[#allocation40_spill] sm:$0xff]  ;;  %v15333_v15 = vshll.u32 %v26713_v25, 16  ;;  %v15361_v52 = vshrl.u32 %v26729_v3, 16 }
 0x748   : > { %20311 = vmatprep.subr.bf16.mxu1 %v21519_v16  ;;  %v15240_v1 = vsel %vm21867_vm4, %v15235_v51, %v15239_v19  ;;  %v15315_v51 = vrot.slane %v15313_v23, 4 }
 0x749   : > { %v15291_v2 = vrot.slane %v15289_v20, 4  ;;  %v27197_v20 = vrot.slane %v15309_v54, 5  ;;  %v15319_v54 = vshll.u32 %v28034_v21, 16 }
 0x74b   : > { %20312 = vmatpush3.bf16.msra.mxu1 %v21519_v16  ;;  %v15249_v16 = vrot.slane %v15247_v8, 5  ;;  %v15292_v19 = vor.u32 %v15291_v2, %v27177_v11  ;;  %v27189_v8 = vld [vmem:[#allocation2 + $0xd4] sm:$0x1]  ;;  %v15297_v2 = vrot.slane %v15295_v50, 5 }
 0x74c   : > { %20313 = vmatprep.subr.bf16.mxu1 %v21523_v30 }
 0x74e   : > { %20282 = vmatmul.mubr.msk.bf16.gmra.mrb[40].mxu1 %vm6541_vm10, %v21513_v32  ;;  %v15188_v32 = vld [vmem:[#allocation2 + $0x3c] sm:$0xf] }
 0x74f   : > { %20285 = vmatprep.mubr.msk.bf16.mxu1 %vm6541_vm10, %v21514_v48  ;;  %20314 = vmatpush3.bf16.msra.mxu1 %v21523_v30  ;;  %v15271_v30 = vshll.u32 %v28031_v44, 16  ;;  %v15258_v48 = vor.u32 %v15257_v46, %v15254_v22  ;;  %v15300_v59 = vshrl.u32 %v15188_v32, 16  ;;  %v15303_v53 = vshll.u32 %v15188_v32, 16 }
 0x750   : > { %20315 = vmatprep.subr.bf16.mxu1 %v21526_v58  ;;  %v15337_v22 = vshrl.u32 %v26713_v25, 16  ;;  %v16123_v46 = vrot.slane %v27189_v8, 5  ;;  %v15293_v32 = vrot.slane %v15292_v19, 4  ;;  %v15327_v25 = vshll.u32 %v15191_v36, 16 }
 0x751   : > { %v15273_v60 = vrot.slane %v15271_v30, 5  ;;  %v15259_v18 = vrot.slane %v15258_v48, 4  ;;  %v21527_v30 = vld [vmem:[#allocation2 + $0xcc] sm:$0xff]  }
 0x752   : > { %v15298_v50 = vsel %vm21867_vm4, %v15293_v32, %v15297_v2 }
 0x753   : > { %20316 = vmatpush3.bf16.msra.mxu1 %v21526_v58  ;;  %v15250_v58 = vsel %vm21867_vm4, %v15245_v62, %v15249_v16  ;;  %v16120_v62 = vrot.slane %v27187_v45, 5  ;;  %v15324_v16 = vshrl.u32 %v15191_v36, 16  ;;  %v15316_v36 = vor.u32 %v15315_v51, %v27197_v20 }
 0x754   : > { %20349 = vmatprep.subr.bf16.mxu1 %v27155_v37  ;;  %v15321_v51 = vrot.slane %v15319_v54, 5 }
 0x755   : > { %v16122_v44 = vrot.slane %v16120_v62, 4  ;;  %v15326_v19 = vrot.slane %v15324_v16, 4  ;;  %v28037_v16 = vld [vmem:[#allocation48_spill] sm:$0xff] }
 0x756   : > { %20286 = vmatmul.mubr.msk.bf16.gmra.mrb[44].mxu1 %vm6541_vm10, %v21516_v55  ;;  %v15278_v55 = vrot.slane %v15276_v4, 4  ;;  %v15305_v4 = vrot.slane %v15303_v53, 5 }
 0x757   : > { %20289 = vmatprep.mubr.msk.bf16.mxu1 %vm6541_vm10, %v21517_v33  ;;  %v15268_v33 = vor.u32 %v15267_v40, %v27167_v38  ;;  %v15194_v40 = vld [vmem:[#allocation2 + $0x54] sm:$0xf]  ;;  %v27207_v3 = vsel %vm22224_vm7, %v16122_v44, %v16123_v46  ;;  %v15367_v44 = vshll.u32 %v28037_v16, 16 }
 0x758   : > { %v15282_v17 = vor.u32 %v15281_v42, %v15278_v55  ;;  %v15339_v55 = vrot.slane %v15337_v22, 4  ;;  %v15351_v42 = vshll.u32 %v15194_v40, 16  ;;  %v15372_v22 = vshrl.u32 %v15197_v26, 16 }
 0x759   : > { %v15269_v35 = vrot.slane %v15268_v33, 4  ;;  %v15348_v33 = vshrl.u32 %v15194_v40, 16 }
 0x75a   : > { %v15283_v34 = vrot.slane %v15282_v17, 4 }
 0x75b   : > { %v15274_v53 = vsel %vm21867_vm4, %v15269_v35, %v15273_v60  ;;  %v15353_v60 = vrot.slane %v15351_v42, 5  ;;  %v15374_v42 = vrot.slane %v15372_v22, 4 }
 0x75e   : > { %20290 = vmatmul.mubr.msk.bf16.gmra.mrb[48].mxu1 %vm6541_vm10, %v21518_v61  ;;  %v21525_v61 = vld [vmem:[#allocation2 + $0xc0] sm:$0xff]  }
 0x75f   : > { %20293 = vmatprep.mubr.msk.bf16.mxu1 %vm6541_vm10, %v21520_v5  ;;  %v18382_v5 = vcombine.low %v15240_v1, %v15250_v58  ;;  %v27199_v58 = vrot.slane %v15333_v15, 5  ;;  %v27209_v1 = vrot.slane %v15357_v14, 5  ;;  %v15329_v15 = vrot.slane %v15327_v25, 5  ;;  %v15200_v14 = vld [vmem:[#allocation2 + $0x6c] sm:$0xf] }
 0x760   : > { %v15399_v21 = vshll.u32 %v15200_v14, 16 }
 0x761   : > { %v15330_v32 = vor.u32 %v15329_v15, %v15326_v19  ;;  %v15203_v19 = vld [vmem:[#allocation2 + $0x78] sm:$0xf] }
 0x766   : > { %20294 = vmatmul.mubr.msk.bf16.gmra.mrb[52].mxu1 %vm6541_vm10, %v21521_v10  ;;  %v15302_v10 = vrot.slane %v15300_v59, 4  ;;  %v15363_v59 = vrot.slane %v15361_v52, 4 }
 0x767   : > { %20297 = vmatprep.mubr.msk.bf16.mxu1 %vm6541_vm10, %v21522_v13  ;;  %v15964_v13 = vld [vmem:[#allocation2 + $0xcc] sm:$0xe] }
 0x768   : > { %v18435_v24 = vrot.slane %v15964_v13, 9  ;;  %v15306_v23 = vor.u32 %v15305_v4, %v15302_v10  ;;  %v15364_v17 = vor.u32 %v15363_v59, %v27209_v1  ;;  %v15375_v13 = vshll.u32 %v15197_v26, 16  ;;  %v28035_v10 = vld [vmem:[#allocation46_spill] sm:$0xff]  ;;  %v28036_v4 = vld [vmem:[#allocation52_spill] sm:$0xff] }
 0x769   : > { %v15343_v46 = vshll.u32 %v28035_v10, 16  ;;  %v15381_v40 = vshll.u32 %v28036_v4, 16  ;;  %v15396_v59 = vshrl.u32 %v15200_v14, 16  ;;  %v15369_v26 = vrot.slane %v15367_v44, 5 }
 0x76a   : > { %v27203_v48 = vsel %vm22224_vm7, %v18435_v24, %v16120_v62  ;;  %v15288_v62 = vsel %vm21867_vm4, %v15283_v34, %v27177_v11  ;;  %v15307_v24 = vrot.slane %v15306_v23, 4  ;;  %v21529_v11 = vld [vmem:[%s27579_s3 + $0x188] sm:$0xff]   ;;  %v15377_v2 = vrot.slane %v15375_v13, 5  ;;  %v21530_v13 = vld [vmem:[%s27579_s3 + $0x190] sm:$0xff]  }
 0x76b   : > { %v18384_v52 = vcombine.low %v15288_v62, %v15298_v50  ;;  %v28038_v50 = vld [vmem:[#allocation54_spill] sm:$0xff]  ;;  %v15401_v10 = vrot.slane %v15399_v21, 5  ;;  %v15429_v14 = vshll.u32 %v26781_v63, 16 }
 0x76c   : > { %v15312_v54 = vsel %vm21867_vm4, %v15307_v24, %v27197_v20  ;;  %v15405_v23 = vshll.u32 %v28038_v50, 16 }
 0x76e   : > { %20298 = vmatmul.mubr.msk.bf16.gmra.mrb[56].mxu1 %vm6541_vm10, %v21524_v6  ;;  %v18463_v6 = vcombine.low %v27203_v48, %v27207_v3 }
 0x76f   : > { %20301 = vmatprep.mubr.msk.bf16.mxu1 %vm6541_vm10, %v21525_v61  ;;  %v15264_v61 = vsel %vm21867_vm4, %v15259_v18, %v27167_v38  ;;  %v15340_v38 = vor.u32 %v15339_v55, %v27199_v58  ;;  %v15350_v18 = vrot.slane %v15348_v33, 4  ;;  %v15365_v33 = vrot.slane %v15364_v17, 4  ;;  %v21639_v17 = vld [vmem:[#allocation2 + $0x68] sm:$0x1] }
 0x770   : > { %v18383_v35 = vcombine.low %v15264_v61, %v15274_v53  ;;  %v15345_v61 = vrot.slane %v15343_v46, 5  ;;  %v27236_v53 = vrot.slane %v15381_v40, 5  ;;  %v15391_v22 = vshll.u32 %v21639_v17, 16 }
 0x771   : > { %v15341_v25 = vrot.slane %v15340_v38, 4  ;;  %v15354_v55 = vor.u32 %v15353_v60, %v15350_v18  ;;  %v15331_v38 = vrot.slane %v15330_v32, 4  ;;  %v15370_v20 = vsel %vm21867_vm4, %v15365_v33, %v15369_v26 }
 0x772   : > { %v15420_v46 = vshrl.u32 %v15203_v19, 16  ;;  %v27256_v40 = vrot.slane %v15405_v23, 5 }
 0x773   : > { %v15346_v18 = vsel %vm21867_vm4, %v15341_v25, %v15345_v61  ;;  %v15355_v60 = vrot.slane %v15354_v55, 4  ;;  %v15393_v25 = vrot.slane %v15391_v22, 5  ;;  %v15206_v55 = vld [vmem:[#allocation2 + $0x84] sm:$0xf] }
 0x774   : > { %v15447_v26 = vshll.u32 %v15206_v55, 16 }
 0x775   : > { %v15360_v16 = vsel %vm21867_vm4, %v15355_v60, %v27209_v1 }
 0x776   : > { %20302 = vmatmul.mubr.msk.bf16.gmra.mrb[60].mxu1 %vm6541_vm10, %v21527_v30  ;;  %v15317_v30 = vrot.slane %v15316_v36, 4  ;;  %v15409_v36 = vshrl.u32 %v28038_v50, 16  ;;  %v21641_v50 = vld [vmem:[#allocation2 + $0x88] sm:$0xf] }
 0x777   : > { %20317 = vmatprep.mubr.msk.bf16.mxu1 %vm6541_vm10, %v18382_v5  ;;  %v15385_v5 = vshrl.u32 %v28036_v4, 16  ;;  %v15423_v4 = vshll.u32 %v15203_v19, 16  ;;  %v15453_v23 = vshll.u32 %v21641_v50, 16 }
 0x778   : > { %v15322_v15 = vsel %vm21867_vm4, %v15317_v30, %v15321_v51  ;;  %v15336_v51 = vsel %vm21867_vm4, %v15331_v38, %v27199_v58  ;;  %v18387_v30 = vcombine.low %v15360_v16, %v15370_v20  ;;  %v21642_v38 = vld [vmem:[#allocation2 + $0x94] sm:$0xf]  ;;  %v21532_v20 = vld [vmem:[%s27579_s3 + $0x1a0] sm:$0xff]  }
 0x779   : > { %v15387_v34 = vrot.slane %v15385_v5, 4  ;;  %v15411_v5 = vrot.slane %v15409_v36, 4  ;;  %v18385_v24 = vcombine.low %v15312_v54, %v15322_v15  ;;  %v18386_v44 = vcombine.low %v15336_v51, %v15346_v18  ;;  %v15212_v51 = vld [vmem:[#allocation2 + $0x9c] sm:$0xf] }
 0x77a   : > { %v15425_v58 = vrot.slane %v15423_v4, 5  ;;  %v15444_v54 = vshrl.u32 %v15206_v55, 16  ;;  %v15457_v36 = vshrl.u32 %v21641_v50, 16  ;;  %v15477_v18 = vshll.u32 %v21642_v38, 16 }
 0x77b   : > { %v15388_v62 = vor.u32 %v15387_v34, %v27236_v53  ;;  %v15412_v1 = vor.u32 %v15411_v5, %v27256_v40  ;;  %v27271_v34 = vrot.slane %v15429_v14, 5  ;;  %v15481_v60 = vshrl.u32 %v21642_v38, 16 }
 0x77c   : > { %v15446_v5 = vrot.slane %v15444_v54, 4  ;;  %v15449_v14 = vrot.slane %v15447_v26, 5 }
 0x77d   : > { %v15389_v61 = vrot.slane %v15388_v62, 4  ;;  %v15413_v62 = vrot.slane %v15412_v1, 4 }
 0x77e   : > { %20318 = vmatmul.mubr.msk.bf16.vlgmr.msra.gmra.mrb[32].mxu1 %vm6541_vm10, %v18383_v35  ;;  %v15378_v35 = vor.u32 %v15377_v2, %v15374_v42  ;;  %v21640_v42 = vld [vmem:[#allocation2 + $0x74] sm:$0x1] }
 0x77f   : > { %20321 = vmatprep.mubr.msk.bf16.mxu1 %vm6541_vm10, %v18384_v52  ;;  %20350 = vmatpush3.bf16.msra.mxu1 %v27155_v37  ;;  %v15398_v37 = vrot.slane %v15396_v59, 4  ;;  %v15433_v52 = vshrl.u32 %v26781_v63, 16  ;;  %v21531_v63 = vld [vmem:[%s27579_s3 + $0x198] sm:$0xff]   ;;  %v15415_v2 = vshll.u32 %v21640_v42, 16  ;;  %v15422_v59 = vrot.slane %v15420_v46, 4 }
 0x780   : > { %20351 = vmatprep.subr.bf16.mxu1 %v21529_v11  ;;  %v15379_v32 = vrot.slane %v15378_v35, 4  ;;  %v21643_v46 = vld [vmem:[#allocation2 + $0x80] sm:$0x1] }
 0x781   : > { %v15402_v33 = vor.u32 %v15401_v10, %v15398_v37  ;;  %v15435_v21 = vrot.slane %v15433_v52, 4  ;;  %v15417_v22 = vrot.slane %v15415_v2, 5  ;;  %v15394_v37 = vsel %vm21867_vm4, %v15389_v61, %v15393_v25  ;;  %v21533_v25 = vld [vmem:[%s27579_s3 + $0x1a8] sm:$0xff]  }
 0x782   : > { %v15384_v35 = vsel %vm21867_vm4, %v15379_v32, %v27236_v53  ;;  %v15439_v4 = vshll.u32 %v21643_v46, 16  ;;  %v27283_v52 = vrot.slane %v15453_v23, 5  ;;  %v15483_v32 = vrot.slane %v15481_v60, 4  ;;  %v21645_v23 = vld [vmem:[#allocation2 + $0xa0] sm:$0xf] }
 0x783   : > { %20352 = vmatpush3.bf16.msra.mxu1 %v21529_v11  ;;  %v15209_v11 = vld [vmem:[#allocation2 + $0x90] sm:$0xf]  ;;  %v15403_v17 = vrot.slane %v15402_v33, 4  ;;  %v15436_v10 = vor.u32 %v15435_v21, %v27271_v34  ;;  %v18388_v55 = vcombine.low %v15384_v35, %v15394_v37  ;;  %v15495_v61 = vshll.u32 %v15212_v51, 16  ;;  %v21644_v21 = vld [vmem:[#allocation2 + $0x8c] sm:$0x1] }
 0x784   : > { %20353 = vmatprep.subr.bf16.mxu1 %v21530_v13  ;;  %v15468_v19 = vshrl.u32 %v15209_v11, 16  ;;  %v15471_v15 = vshll.u32 %v15209_v11, 16  ;;  %v15492_v11 = vshrl.u32 %v15212_v51, 16  ;;  %v15441_v1 = vrot.slane %v15439_v4, 5 }
 0x785   : > { %v15408_v42 = vsel %vm21867_vm4, %v15403_v17, %v27256_v40  ;;  %v15437_v2 = vrot.slane %v15436_v10, 4  ;;  %v15463_v54 = vshll.u32 %v21644_v21, 16 }
 0x786   : > { %20322 = vmatmul.mubr.msk.bf16.gmra.mrb[36].mxu1 %vm6541_vm10, %v18385_v24  ;;  %v15459_v24 = vrot.slane %v15457_v36, 4  ;;  %v15470_v16 = vrot.slane %v15468_v19, 4  ;;  %v15473_v53 = vrot.slane %v15471_v15, 5  ;;  %v15501_v36 = vshll.u32 %v21645_v23, 16  ;;  %v15215_v15 = vld [vmem:[#allocation2 + $0xa8] sm:$0xf] }
 0x787   : > { %20325 = vmatprep.mubr.msk.bf16.mxu1 %vm6541_vm10, %v18386_v44  ;;  %20354 = vmatpush3.bf16.msra.mxu1 %v21530_v13  ;;  %v15426_v13 = vor.u32 %v15425_v58, %v15422_v59  ;;  %v27285_v44 = vrot.slane %v15477_v18, 5  ;;  %v15450_v59 = vor.u32 %v15449_v14, %v15446_v5  ;;  %v15505_v19 = vshrl.u32 %v21645_v23, 16  ;;  %v21646_v18 = vld [vmem:[#allocation2 + $0x98] sm:$0x1]  ;;  %v21650_v23 = vld [vmem:[#allocation2 + $0xc4] sm:$0xf] }
 0x788   : > { %20355 = vmatprep.subr.bf16.mxu1 %v21531_v63  ;;  %v15460_v58 = vor.u32 %v15459_v24, %v27283_v52  ;;  %v15442_v38 = vsel %vm21867_vm4, %v15437_v2, %v15441_v1  ;;  %v15487_v60 = vshll.u32 %v21646_v18, 16  ;;  %v15494_v37 = vrot.slane %v15492_v11, 4 }
 0x789   : > { %v15427_v33 = vrot.slane %v15426_v13, 4  ;;  %v15484_v26 = vor.u32 %v15483_v32, %v27285_v44  ;;  %v15519_v4 = vshll.u32 %v15215_v15, 16  ;;  %v15465_v14 = vrot.slane %v15463_v54, 5  ;;  %v21649_v54 = vld [vmem:[#allocation2 + $0xb8] sm:$0xf] }
 0x78a   : > { %v15461_v13 = vrot.slane %v15460_v58, 4  ;;  %v27304_v24 = vrot.slane %v15501_v36, 5  ;;  %v15507_v51 = vrot.slane %v15505_v19, 4  ;;  %v15573_v36 = vshll.u32 %v21650_v23, 16 }
 0x78b   : > { %20356 = vmatpush3.bf16.msra.mxu1 %v21531_v63  ;;  %v15418_v63 = vsel %vm21867_vm4, %v15413_v62, %v15417_v22  ;;  %v15432_v50 = vsel %vm21867_vm4, %v15427_v33, %v27271_v34  ;;  %v15451_v22 = vrot.slane %v15450_v59, 4  ;;  %v15497_v62 = vrot.slane %v15495_v61, 5 }
 0x78c   : > { %20357 = vmatprep.subr.bf16.mxu1 %v21532_v20  ;;  %v18389_v40 = vcombine.low %v15408_v42, %v15418_v63  ;;  %v15485_v46 = vrot.slane %v15484_v26, 4  ;;  %v15516_v34 = vshrl.u32 %v15215_v15, 16  ;;  %v18390_v5 = vcombine.low %v15432_v50, %v15442_v38  ;;  %v21648_v63 = vld [vmem:[#allocation2 + $0xa4] sm:$0x1]  ;;  %v15221_v26 = vld [vmem:[#allocation2 + $0xc0] sm:$0xf] }
 0x78d   : > { %v15466_v33 = vsel %vm21867_vm4, %v15461_v13, %v15465_v14  ;;  %v15498_v42 = vor.u32 %v15497_v62, %v15494_v37  ;;  %v15511_v2 = vshll.u32 %v21648_v63, 16  ;;  %v15521_v61 = vrot.slane %v15519_v4, 5  ;;  %v15224_v13 = vld [vmem:[#allocation2 + $0xcc] sm:$0xf] }
 0x78e   : > { %20326 = vmatmul.mubr.msk.bf16.gmra.mrb[40].mxu1 %vm6541_vm10, %v18387_v30  ;;  %v15474_v30 = vor.u32 %v15473_v53, %v15470_v16  ;;  %v15489_v16 = vrot.slane %v15487_v60, 5  ;;  %v15518_v11 = vrot.slane %v15516_v34, 4  ;;  %v15508_v1 = vor.u32 %v15507_v51, %v27304_v24 }
 0x78f   : > { %20329 = vmatprep.mubr.msk.bf16.mxu1 %vm6541_vm10, %v18388_v55  ;;  %20358 = vmatpush3.bf16.msra.mxu1 %v21532_v20  ;;  %v21647_v20 = vld [vmem:[#allocation2 + $0xac] sm:$0xf]  ;;  %v15218_v55 = vld [vmem:[#allocation2 + $0xb4] sm:$0xf]  ;;  %v15577_v19 = vshrl.u32 %v21650_v23, 16  ;;  %v15499_v38 = vrot.slane %v15498_v42, 4 }
 0x790   : > { %20359 = vmatprep.subr.bf16.mxu1 %v21533_v25  ;;  %v15525_v35 = vshll.u32 %v21647_v20, 16  ;;  %v15529_v17 = vshrl.u32 %v21647_v20, 16  ;;  %v15475_v10 = vrot.slane %v15474_v30, 4  ;;  %v15490_v58 = vsel %vm21867_vm4, %v15485_v46, %v15489_v16  ;;  %v21651_v20 = vld [vmem:[#allocation2 + $0xb0] sm:$0x1] }
 0x791   : > { %v15540_v21 = vshrl.u32 %v15218_v55, 16  ;;  %v15553_v30 = vshrl.u32 %v21649_v54, 16  ;;  %v15543_v50 = vshll.u32 %v15218_v55, 16  ;;  %v15513_v18 = vrot.slane %v15511_v2, 5  ;;  %v21653_v23 = vld [vmem:[#allocation2 + $0xc8] sm:$0x1] }
 0x792   : > { %v27307_v53 = vrot.slane %v15525_v35, 5  ;;  %v15531_v32 = vrot.slane %v15529_v17, 4  ;;  %v15480_v59 = vsel %vm21867_vm4, %v15475_v10, %v27285_v44  ;;  %v15522_v60 = vor.u32 %v15521_v61, %v15518_v11 }
 0x793   : > { %20360 = vmatpush3.bf16.msra.mxu1 %v21533_v25  ;;  %v15456_v25 = vsel %vm21867_vm4, %v15451_v22, %v27283_v52  ;;  %v15549_v52 = vshll.u32 %v21649_v54, 16  ;;  %v18392_v44 = vcombine.low %v15480_v59, %v15490_v58  ;;  %v15535_v35 = vshll.u32 %v21651_v20, 16 }
 0x794   : > { %v18391_v15 = vcombine.low %v15456_v25, %v15466_v33  ;;  %v15564_v17 = vshrl.u32 %v15221_v26, 16  ;;  %v15567_v22 = vshll.u32 %v15221_v26, 16  ;;  %v15509_v37 = vrot.slane %v15508_v1, 4  ;;  %v21652_v1 = vld [vmem:[#allocation2 + $0xbc] sm:$0x1] }
 0x795   : > { %v15542_v62 = vrot.slane %v15540_v21, 4  ;;  %v15551_v10 = vrot.slane %v15549_v52, 5  ;;  %v15555_v46 = vrot.slane %v15553_v30, 4  ;;  %v15545_v4 = vrot.slane %v15543_v50, 5 }
 0x796   : > { %20330 = vmatmul.mubr.msk.bf16.gmra.mrb[44].mxu1 %vm6541_vm10, %v18389_v40  ;;  %v15532_v40 = vor.u32 %v15531_v32, %v27307_v53  ;;  %v15579_v14 = vrot.slane %v15577_v19, 4  ;;  %v15588_v51 = vshrl.u32 %v15224_v13, 16  ;;  %v15591_v16 = vshll.u32 %v15224_v13, 16 }
 0x797   : > { %20333 = vmatprep.mubr.msk.bf16.mxu1 %vm6541_vm10, %v18390_v5  ;;  %v15575_v5 = vrot.slane %v15573_v36, 5  ;;  %v15597_v32 = vshll.u32 %v27187_v45, 16  ;;  %v15601_v55 = vshrl.u32 %v27187_v45, 16  ;;  %v15523_v25 = vrot.slane %v15522_v60, 4 }
 0x798   : > { %v15533_v34 = vrot.slane %v15532_v40, 4  ;;  %v15537_v33 = vrot.slane %v15535_v35, 5  ;;  %v15566_v42 = vrot.slane %v15564_v17, 4  ;;  %v15569_v63 = vrot.slane %v15567_v22, 5 }
 0x799   : > { %v15504_v2 = vsel %vm21867_vm4, %v15499_v38, %v27304_v24  ;;  %v15514_v59 = vsel %vm21867_vm4, %v15509_v37, %v15513_v18  ;;  %v15556_v58 = vor.u32 %v15555_v46, %v15551_v10  ;;  %v15546_v61 = vor.u32 %v15545_v4, %v15542_v62 }
 0x79a   : > { %v15538_v11 = vsel %vm21867_vm4, %v15533_v34, %v15537_v33  ;;  %v15559_v21 = vshll.u32 %v21652_v1, 16  ;;  %v15580_v54 = vor.u32 %v15579_v14, %v15575_v5  ;;  %v15590_v45 = vrot.slane %v15588_v51, 4  ;;  %v28043_v33 = vld [vmem:[#allocation50_spill] sm:$0xff] }
 0x79b   : > { %v15593_v52 = vrot.slane %v15591_v16, 5  ;;  %v15599_v30 = vrot.slane %v15597_v32, 5  ;;  %v15603_v26 = vrot.slane %v15601_v55, 4  ;;  %v18393_v40 = vcombine.low %v15504_v2, %v15514_v59  ;;  %v28040_v55 = vld [vmem:[#allocation47_spill] sm:$0xff]  ;;  %v28046_v2 = vld [vmem:[#allocation53_spill] sm:$0xff]  ;;  %v28052_v1 = vld [vmem:[#allocation58_spill] sm:$0xff] }
 0x79c   : > { %v15528_v24 = vsel %vm21867_vm4, %v15523_v25, %v27307_v53  ;;  %v15570_v50 = vor.u32 %v15569_v63, %v15566_v42  ;;  %v15583_v36 = vshll.u32 %v21653_v23, 16  ;;  %v15581_v38 = vrot.slane %v15580_v54, 4  ;;  %v28045_v63 = vld [vmem:[#allocation51_spill] sm:$0xff] }
 0x79d   : > { %v18394_v19 = vcombine.low %v15528_v24, %v15538_v11  ;;  %v15547_v18 = vrot.slane %v15546_v61, 4  ;;  %v15594_v60 = vor.u32 %v15593_v52, %v15590_v45  ;;  %v15604_v20 = vor.u32 %v15603_v26, %v15599_v30  ;;  %v28051_v61 = vld [vmem:[#allocation57_spill] sm:$0xff]  ;;  %v28054_v54 = vld [vmem:[#allocation59_spill] sm:$0xff]  ;;  %v28055_v45 = vld [vmem:[#allocation60_spill] sm:$0xff] }
 0x79e   : > { %20334 = vmatmul.mubr.msk.bf16.gmra.mrb[48].mxu1 %vm6541_vm10, %v18391_v15  ;;  %v15557_v15 = vrot.slane %v15556_v58, 4  ;;  %v15607_v35 = vshll.u32 %v27189_v8, 16  ;;  %v15571_v17 = vrot.slane %v15570_v50, 4  ;;  %v15585_v22 = vrot.slane %v15583_v36, 5  ;;  %v28049_v58 = vld [vmem:[#allocation56_spill] sm:$0xff]  ;;  %v28058_v26 = vld [vmem:[#allocation62_spill] sm:$0xff] }
 0x79f   : > { %20337 = vmatprep.mubr.msk.bf16.mxu1 %vm6541_vm10, %v18392_v44  ;;  %v15561_v44 = vrot.slane %v15559_v21, 5  ;;  %v15552_v37 = vsel %vm21867_vm4, %v15547_v18, %v15551_v10  ;;  %v15595_v62 = vrot.slane %v15594_v60, 4  ;;  %v15605_v46 = vrot.slane %v15604_v20, 4  ;;  %v28039_v10 = vld [vmem:[#allocation45_spill] sm:$0xff]  ;;  %v28060_v24 = vld [vmem:[#allocation63_spill] sm:$0xff]  ;;  %v28061_v50 = vld [vmem:[#allocation64_spill] sm:$0xff] }
 0x7a0   : > { %v15586_v13 = vsel %vm21867_vm4, %v15581_v38, %v15585_v22  ;;  %v15609_v34 = vrot.slane %v15607_v35, 5  ;;  %v15576_v14 = vsel %vm21867_vm4, %v15571_v17, %v15575_v5  ;;  %v28041_v25 = vcombine.low %v28039_v10, %v28040_v55  ;;  %v28042_v5 = vld [vmem:[#allocation49_spill] sm:$0xff]  ;;  %v28067_v38 = vld [vmem:[#allocation67_spill] sm:$0xff]  ;;  %v28068_v18 = vld [vmem:[#allocation68_spill] sm:$0xff] }
 0x7a1   : > { %v15562_v53 = vsel %vm21867_vm4, %v15557_v15, %v15561_v44  ;;  %v18396_v51 = vcombine.low %v15576_v14, %v15586_v13  ;;  %v15600_v8 = vsel %vm21867_vm4, %v15595_v62, %v15599_v30  ;;  %v28044_v42 = vcombine.low %v28042_v5, %v28043_v33  ;;  %v28057_v30 = vld [vmem:[#allocation61_spill] sm:$0xff]  ;;  %v28065_v15 = vld [vmem:[#allocation66_spill] sm:$0xff] }
 0x7a2   : > { %v18395_v4 = vcombine.low %v15552_v37, %v15562_v53  ;;  %v15610_v16 = vsel %vm21867_vm4, %v15605_v46, %v15609_v34  ;;  %v28047_v59 = vcombine.low %v28045_v63, %v28046_v2  ;;  %v28050_v11 = vcombine.low %v28048_v28, %v28049_v58 }
 0x7a3   : > { %v18397_v32 = vcombine.low %v15600_v8, %v15610_v16  ;;  %v28053_v21 = vcombine.low %v28051_v61, %v28052_v1  ;;  %v28056_v52 = vcombine.low %v28054_v54, %v28055_v45  ;;  %v28062_v23 = vcombine.low %v28060_v24, %v28061_v50 }
 0x7a4   : > { %v28063_v36 = vcombine.low %v26831_v56, %v26845_v43  ;;  %v28069_v60 = vcombine.low %v28067_v38, %v28068_v18  ;;  %v27421_v56 = vld [vmem:[%s27582_s6] ss:$0 sm:$0xff]  ;;  %vm16502_vm4 = vcmask 261120  }
 0x7a6   : > { %20338 = vmatmul.mubr.msk.bf16.gmra.mrb[52].mxu1 %vm6541_vm10, %v18393_v40  ;;  %v28059_v40 = vcombine.low %v28057_v30, %v28058_v26 }
 0x7a7   : > { %20341 = vmatprep.mubr.msk.bf16.mxu1 %vm6541_vm10, %v18394_v19  ;;  %v28064_v19 = vld [vmem:[#allocation65_spill] sm:$0xff] }
 0x7a8   : > { %v28066_v44 = vcombine.low %v28064_v19, %v28065_v15 }
 0x7ae   : > { %20342 = vmatmul.mubr.msk.bf16.gmra.mrb[56].mxu1 %vm6541_vm10, %v18395_v4 }
 0x7af   : > { %20345 = vmatprep.mubr.msk.bf16.mxu1 %vm6541_vm10, %v18396_v51 }
 0x7b6   : > { %20346 = vmatmul.mubr.msk.bf16.gmra.mrb[60].mxu1 %vm6541_vm10, %v18397_v32 }
 0x7b7   : > { %20361 = vmatprep.mubr.msk.bf16.mxu1 %vm6541_vm10, %v28041_v25 }
 0x7be   : > { %20362 = vmatmul.mubr.msk.bf16.vlgmr.msra.gmra.mrb[32].mxu1 %vm6541_vm10, %v28044_v42 }
 0x7bf   : > { %20365 = vmatprep.mubr.msk.bf16.mxu1 %vm6541_vm10, %v28047_v59 }
 0x7c6   : > { %20366 = vmatmul.mubr.msk.bf16.gmra.mrb[36].mxu1 %vm6541_vm10, %v28050_v11 }
 0x7c7   : > { %20369 = vmatprep.mubr.msk.bf16.mxu1 %vm6541_vm10, %v28053_v21 }
 0x7ce   : > { %20370 = vmatmul.mubr.msk.bf16.gmra.mrb[40].mxu1 %vm6541_vm10, %v28056_v52 }
 0x7cf   : > { %20373 = vmatprep.mubr.msk.bf16.mxu1 %vm6541_vm10, %v28059_v40 }
 0x7d6   : > { %20374 = vmatmul.mubr.msk.bf16.gmra.mrb[44].mxu1 %vm6541_vm10, %v28062_v23 }
 0x7d7   : > { %20377 = vmatprep.mubr.msk.bf16.mxu1 %vm6541_vm10, %v28063_v36 }
 0x7de   : > { %20378 = vmatmul.mubr.msk.bf16.gmra.mrb[48].mxu1 %vm6541_vm10, %v28066_v44 }
 0x7df   : > { %20381 = vmatprep.mubr.msk.bf16.mxu1 %vm6541_vm10, %v28069_v60 }
 0x7e6   : > { %20382 = vmatmul.mubr.msk.bf16.gmra.mrb[52].mxu1 %vm6541_vm10, %v18459_v47 }
 0x7e7   : > { %20385 = vmatprep.mubr.msk.bf16.mxu1 %vm6541_vm10, %v18460_v7 }
 0x7ee   : > { %20386 = vmatmul.mubr.msk.bf16.gmra.mrb[56].mxu1 %vm6541_vm10, %v18461_v41 }
 0x7ef   : > { %20389 = vmatprep.mubr.msk.bf16.mxu1 %vm6541_vm10, %v18462_v31 }
 0x7f6   : > { %20390 = vmatmul.mubr.msk.bf16.gmra.mrb[60].mxu1 %vm6541_vm10, %v18463_v6 }
 0x891   : > { %v20363_v43 = vpop.f32.mrb[32].mxu1 }
 0x892   : > { %v16472_v27 = vadd.f32 %v20363_v43, %v27421_v56  ;;  %v16304_v57 = vpop.f32.mrb[33].mxu1 }
 0x893   : > { %v16470_v47 = vadd.f32 %v27421_v56, %v16304_v57  ;;  %v20364_v49 = vpop.f32.mrb[34].mxu1 }
 0x894   : > { %16505 = vst.msk [vmem:[#allocation3 + $0x10] sm:$0xff] %vm16502_vm4, %v16472_v27  ;;  %v16473_v29 = vadd.f32 %v20364_v49, %v27421_v56  ;;  %v16307_v9 = vpop.f32.mrb[35].mxu1 }
 0x895   : > { %16503 = vst.msk [vmem:[#allocation3] sm:$0xff] %vm16502_vm4, %v16470_v47  ;;  %v16471_v7 = vadd.f32 %v27421_v56, %v16307_v9 }
 0x896   : > { %16506 = vst.msk [vmem:[#allocation3 + $0x18] sm:$0xff] %vm16502_vm4, %v16473_v29 }
 0x897   : > { %16504 = vst.msk [vmem:[#allocation3 + $0x8] sm:$0xff] %vm16502_vm4, %v16471_v7 }
 0x899   : > { %v20367_v0 = vpop.f32.mrb[36].mxu1 }
 0x89a   : > { %v16476_v41 = vadd.f32 %v20367_v0, %v27421_v56  ;;  %v16320_v12 = vpop.f32.mrb[37].mxu1 }
 0x89b   : > { %v16474_v39 = vadd.f32 %v27421_v56, %v16320_v12  ;;  %v20368_v31 = vpop.f32.mrb[38].mxu1 }
 0x89c   : > { %16509 = vst.msk [vmem:[#allocation3 + $0x30] sm:$0xff] %vm16502_vm4, %v16476_v41  ;;  %v16477_v48 = vadd.f32 %v20368_v31, %v27421_v56  ;;  %v16323_v3 = vpop.f32.mrb[39].mxu1 }
 0x89d   : > { %v16537_v6 = vld [vmem:[#allocation3 + $0x10] ss:$2 sm:$0xff]  ;;  %v16569_v20 = vld [vmem:[#allocation3 + $0x11] ss:$2 sm:$0xff]  ;;  %16507 = vst.msk [vmem:[#allocation3 + $0x20] sm:$0xff] %vm16502_vm4, %v16474_v39  ;;  %v16475_v35 = vadd.f32 %v27421_v56, %v16323_v3 }
 0x89e   : > { %v16599_v17 = vmax.f32 %v16537_v6, %v16569_v20  ;;  %v16535_v22 = vld [vmem:[#allocation3] ss:$2 sm:$0xff]  ;;  %v16567_v53 = vld [vmem:[#allocation3 + $0x1] ss:$2 sm:$0xff]  ;;  %16510 = vst.msk [vmem:[#allocation3 + $0x38] sm:$0xff] %vm16502_vm4, %v16477_v48 }
 0x89f   : > { %v16598_v13 = vmax.f32 %v16535_v22, %v16567_v53  ;;  %16508 = vst.msk [vmem:[#allocation3 + $0x28] sm:$0xff] %vm16502_vm4, %v16475_v35 }
 0x8a0   : > { %v16615_v37 = vsel %vm16502_vm4, %v16599_v17, -inf }
 0x8a1   : > { %v16614_v62 = vsel %vm16502_vm4, %v16598_v13, -inf  ;;  %v20371_v46 = vpop.f32.mrb[40].mxu1 }
 0x8a2   : > { %v16616_v34 = vmax.f32 %v16614_v62, %v16615_v37  ;;  %v16480_v4 = vadd.f32 %v20371_v46, %v27421_v56  ;;  %v16336_v14 = vpop.f32.mrb[41].mxu1 }
 0x8a3   : > { %v16478_v51 = vadd.f32 %v27421_v56, %v16336_v14  ;;  %v20372_v8 = vpop.f32.mrb[42].mxu1 }
 0x8a4   : > { %16513 = vst.msk [vmem:[#allocation3 + $0x50] sm:$0xff] %vm16502_vm4, %v16480_v4  ;;  %v16481_v16 = vadd.f32 %v20372_v8, %v27421_v56  ;;  %v16339_v32 = vpop.f32.mrb[43].mxu1  ;;  %16638 = vst.msk [vmem:[%s27448_s8] sm:$0xff] %vm16502_vm4, %v16616_v34 }
 0x8a5   : > { %v16541_v10 = vld [vmem:[#allocation3 + $0x30] ss:$2 sm:$0xff]  ;;  %v16573_v55 = vld [vmem:[#allocation3 + $0x31] ss:$2 sm:$0xff]  ;;  %16511 = vst.msk [vmem:[#allocation3 + $0x40] sm:$0xff] %vm16502_vm4, %v16478_v51  ;;  %v16479_v25 = vadd.f32 %v27421_v56, %v16339_v32 }
 0x8a6   : > { %v16601_v5 = vmax.f32 %v16541_v10, %v16573_v55  ;;  %v16539_v33 = vld [vmem:[#allocation3 + $0x20] ss:$2 sm:$0xff]  ;;  %v16571_v42 = vld [vmem:[#allocation3 + $0x21] ss:$2 sm:$0xff]  ;;  %16514 = vst.msk [vmem:[#allocation3 + $0x58] sm:$0xff] %vm16502_vm4, %v16481_v16 }
 0x8a7   : > { %v16600_v63 = vmax.f32 %v16539_v33, %v16571_v42  ;;  %16512 = vst.msk [vmem:[#allocation3 + $0x48] sm:$0xff] %vm16502_vm4, %v16479_v25 }
 0x8a8   : > { %v16618_v2 = vsel %vm16502_vm4, %v16601_v5, -inf }
 0x8a9   : > { %v16617_v59 = vsel %vm16502_vm4, %v16600_v63, -inf  ;;  %v20375_v28 = vpop.f32.mrb[44].mxu1 }
 0x8aa   : > { %v16619_v58 = vmax.f32 %v16617_v59, %v16618_v2  ;;  %v16484_v11 = vadd.f32 %v20375_v28, %v27421_v56  ;;  %v16352_v61 = vpop.f32.mrb[45].mxu1 }
 0x8ab   : > { %v16482_v1 = vadd.f32 %v27421_v56, %v16352_v61  ;;  %v20376_v21 = vpop.f32.mrb[46].mxu1 }
 0x8ac   : > { %16517 = vst.msk [vmem:[#allocation3 + $0x70] sm:$0xff] %vm16502_vm4, %v16484_v11  ;;  %v16485_v54 = vadd.f32 %v20376_v21, %v27421_v56  ;;  %v16355_v45 = vpop.f32.mrb[47].mxu1  ;;  %16639 = vst.msk [vmem:[%s27448_s8 + $0x8] sm:$0xff] %vm16502_vm4, %v16619_v58 }
 0x8ad   : > { %v16545_v52 = vld [vmem:[#allocation3 + $0x50] ss:$2 sm:$0xff]  ;;  %v16577_v30 = vld [vmem:[#allocation3 + $0x51] ss:$2 sm:$0xff]  ;;  %16515 = vst.msk [vmem:[#allocation3 + $0x60] sm:$0xff] %vm16502_vm4, %v16482_v1  ;;  %v16483_v26 = vadd.f32 %v27421_v56, %v16355_v45 }
 0x8ae   : > { %v16603_v40 = vmax.f32 %v16545_v52, %v16577_v30  ;;  %v16543_v24 = vld [vmem:[#allocation3 + $0x40] ss:$2 sm:$0xff]  ;;  %v16575_v50 = vld [vmem:[#allocation3 + $0x41] ss:$2 sm:$0xff]  ;;  %16518 = vst.msk [vmem:[#allocation3 + $0x78] sm:$0xff] %vm16502_vm4, %v16485_v54 }
 0x8af   : > { %v16602_v23 = vmax.f32 %v16543_v24, %v16575_v50  ;;  %16516 = vst.msk [vmem:[#allocation3 + $0x68] sm:$0xff] %vm16502_vm4, %v16483_v26 }
 0x8b0   : > { %v16621_v36 = vsel %vm16502_vm4, %v16603_v40, -inf }
 0x8b1   : > { %v16620_v19 = vsel %vm16502_vm4, %v16602_v23, -inf  ;;  %v20379_v15 = vpop.f32.mrb[48].mxu1 }
 0x8b2   : > { %v16622_v44 = vmax.f32 %v16620_v19, %v16621_v36  ;;  %v16488_v38 = vadd.f32 %v20379_v15, %v27421_v56  ;;  %v16368_v18 = vpop.f32.mrb[49].mxu1 }
 0x8b3   : > { %v16486_v60 = vadd.f32 %v27421_v56, %v16368_v18  ;;  %v20380_v43 = vpop.f32.mrb[50].mxu1 }
 0x8b4   : > { %16521 = vst.msk [vmem:[#allocation3 + $0x90] sm:$0xff] %vm16502_vm4, %v16488_v38  ;;  %v16489_v27 = vadd.f32 %v20380_v43, %v27421_v56  ;;  %v16371_v57 = vpop.f32.mrb[51].mxu1  ;;  %16640 = vst.msk [vmem:[%s27448_s8 + $0x10] sm:$0xff] %vm16502_vm4, %v16622_v44 }
 0x8b5   : > { %v16549_v47 = vld [vmem:[#allocation3 + $0x70] ss:$2 sm:$0xff]  ;;  %v16581_v49 = vld [vmem:[#allocation3 + $0x71] ss:$2 sm:$0xff]  ;;  %16519 = vst.msk [vmem:[#allocation3 + $0x80] sm:$0xff] %vm16502_vm4, %v16486_v60  ;;  %v16487_v29 = vadd.f32 %v27421_v56, %v16371_v57 }
 0x8b6   : > { %v16605_v9 = vmax.f32 %v16549_v47, %v16581_v49  ;;  %v16547_v7 = vld [vmem:[#allocation3 + $0x60] ss:$2 sm:$0xff]  ;;  %v16579_v0 = vld [vmem:[#allocation3 + $0x61] ss:$2 sm:$0xff]  ;;  %16522 = vst.msk [vmem:[#allocation3 + $0x98] sm:$0xff] %vm16502_vm4, %v16489_v27 }
 0x8b7   : > { %v16604_v41 = vmax.f32 %v16547_v7, %v16579_v0  ;;  %16520 = vst.msk [vmem:[#allocation3 + $0x88] sm:$0xff] %vm16502_vm4, %v16487_v29 }
 0x8b8   : > { %v16624_v12 = vsel %vm16502_vm4, %v16605_v9, -inf }
 0x8b9   : > { %v16623_v39 = vsel %vm16502_vm4, %v16604_v41, -inf  ;;  %v20383_v31 = vpop.f32.mrb[52].mxu1 }
 0x8ba   : > { %v16625_v48 = vmax.f32 %v16623_v39, %v16624_v12  ;;  %v16492_v3 = vadd.f32 %v20383_v31, %v27421_v56  ;;  %v16384_v6 = vpop.f32.mrb[53].mxu1 }
 0x8bb   : > { %v16490_v20 = vadd.f32 %v27421_v56, %v16384_v6  ;;  %v20384_v35 = vpop.f32.mrb[54].mxu1 }
 0x8bc   : > { %16525 = vst.msk [vmem:[#allocation3 + $0xb0] sm:$0xff] %vm16502_vm4, %v16492_v3  ;;  %v16493_v17 = vadd.f32 %v20384_v35, %v27421_v56  ;;  %v16387_v22 = vpop.f32.mrb[55].mxu1  ;;  %16641 = vst.msk [vmem:[%s27448_s8 + $0x18] sm:$0xff] %vm16502_vm4, %v16625_v48 }
 0x8bd   : > { %v16553_v53 = vld [vmem:[#allocation3 + $0x90] ss:$2 sm:$0xff]  ;;  %v16585_v13 = vld [vmem:[#allocation3 + $0x91] ss:$2 sm:$0xff]  ;;  %16523 = vst.msk [vmem:[#allocation3 + $0xa0] sm:$0xff] %vm16502_vm4, %v16490_v20  ;;  %v16491_v37 = vadd.f32 %v27421_v56, %v16387_v22 }
 0x8be   : > { %v16607_v62 = vmax.f32 %v16553_v53, %v16585_v13  ;;  %v16551_v46 = vld [vmem:[#allocation3 + $0x80] ss:$2 sm:$0xff]  ;;  %v16583_v34 = vld [vmem:[#allocation3 + $0x81] ss:$2 sm:$0xff]  ;;  %16526 = vst.msk [vmem:[#allocation3 + $0xb8] sm:$0xff] %vm16502_vm4, %v16493_v17 }
 0x8bf   : > { %v16606_v4 = vmax.f32 %v16551_v46, %v16583_v34  ;;  %16524 = vst.msk [vmem:[#allocation3 + $0xa8] sm:$0xff] %vm16502_vm4, %v16491_v37 }
 0x8c0   : > { %v16627_v14 = vsel %vm16502_vm4, %v16607_v62, -inf }
 0x8c1   : > { %v16626_v51 = vsel %vm16502_vm4, %v16606_v4, -inf  ;;  %v20387_v8 = vpop.f32.mrb[56].mxu1 }
 0x8c2   : > { %v16628_v16 = vmax.f32 %v16626_v51, %v16627_v14  ;;  %v16496_v32 = vadd.f32 %v20387_v8, %v27421_v56  ;;  %v16400_v10 = vpop.f32.mrb[57].mxu1 }
 0x8c3   : > { %v16494_v55 = vadd.f32 %v27421_v56, %v16400_v10  ;;  %v20388_v25 = vpop.f32.mrb[58].mxu1 }
 0x8c4   : > { %16529 = vst.msk [vmem:[#allocation3 + $0xd0] sm:$0xff] %vm16502_vm4, %v16496_v32  ;;  %v16497_v5 = vadd.f32 %v20388_v25, %v27421_v56  ;;  %v16403_v33 = vpop.f32.mrb[59].mxu1  ;;  %16642 = vst.msk [vmem:[%s27448_s8 + $0x20] sm:$0xff] %vm16502_vm4, %v16628_v16 }
 0x8c5   : > { %v16557_v42 = vld [vmem:[#allocation3 + $0xb0] ss:$2 sm:$0xff]  ;;  %v16589_v63 = vld [vmem:[#allocation3 + $0xb1] ss:$2 sm:$0xff]  ;;  %16527 = vst.msk [vmem:[#allocation3 + $0xc0] sm:$0xff] %vm16502_vm4, %v16494_v55  ;;  %v16495_v2 = vadd.f32 %v27421_v56, %v16403_v33 }
 0x8c6   : > { %v16609_v59 = vmax.f32 %v16557_v42, %v16589_v63  ;;  %v16555_v28 = vld [vmem:[#allocation3 + $0xa0] ss:$2 sm:$0xff]  ;;  %v16587_v58 = vld [vmem:[#allocation3 + $0xa1] ss:$2 sm:$0xff]  ;;  %16530 = vst.msk [vmem:[#allocation3 + $0xd8] sm:$0xff] %vm16502_vm4, %v16497_v5 }
 0x8c7   : > { %v16608_v11 = vmax.f32 %v16555_v28, %v16587_v58  ;;  %16528 = vst.msk [vmem:[#allocation3 + $0xc8] sm:$0xff] %vm16502_vm4, %v16495_v2 }
 0x8c8   : > { %v16630_v61 = vsel %vm16502_vm4, %v16609_v59, -inf }
 0x8c9   : > { %v16629_v1 = vsel %vm16502_vm4, %v16608_v11, -inf  ;;  %v20391_v21 = vpop.f32.mrb[60].mxu1 }
 0x8ca   : > { %v16631_v54 = vmax.f32 %v16629_v1, %v16630_v61  ;;  %v16500_v45 = vadd.f32 %v20391_v21, %v27421_v56  ;;  %v16416_v52 = vpop.f32.mrb[61].mxu1 }
 0x8cb   : > { %v16498_v30 = vadd.f32 %v27421_v56, %v16416_v52  ;;  %v20392_v26 = vpop.f32.mrb[62].mxu1 }
 0x8cc   : > { %16533 = vst.msk [vmem:[#allocation3 + $0xf0] sm:$0xff] %vm16502_vm4, %v16500_v45  ;;  %v16501_v40 = vadd.f32 %v20392_v26, %v27421_v56  ;;  %v16419_v24 = vpop.f32.mrb[63].mxu1  ;;  %16643 = vst.msk [vmem:[%s27448_s8 + $0x28] sm:$0xff] %vm16502_vm4, %v16631_v54 }
 0x8cd   : > { %v16561_v50 = vld [vmem:[#allocation3 + $0xd0] ss:$2 sm:$0xff]  ;;  %v16593_v23 = vld [vmem:[#allocation3 + $0xd1] ss:$2 sm:$0xff]  ;;  %16531 = vst.msk [vmem:[#allocation3 + $0xe0] sm:$0xff] %vm16502_vm4, %v16498_v30  ;;  %v16499_v36 = vadd.f32 %v27421_v56, %v16419_v24 }
 0x8ce   : > { %v16611_v19 = vmax.f32 %v16561_v50, %v16593_v23  ;;  %v16559_v15 = vld [vmem:[#allocation3 + $0xc0] ss:$2 sm:$0xff]  ;;  %v16591_v44 = vld [vmem:[#allocation3 + $0xc1] ss:$2 sm:$0xff]  ;;  %16534 = vst.msk [vmem:[#allocation3 + $0xf8] sm:$0xff] %vm16502_vm4, %v16501_v40 }
 0x8cf   : > { %v16610_v38 = vmax.f32 %v16559_v15, %v16591_v44  ;;  %16532 = vst.msk [vmem:[#allocation3 + $0xe8] sm:$0xff] %vm16502_vm4, %v16499_v36 }
 0x8d0   : > { %v16633_v18 = vsel %vm16502_vm4, %v16611_v19, -inf }
 0x8d1   : > { %v16632_v60 = vsel %vm16502_vm4, %v16610_v38, -inf }
 0x8d2   : > { %v16634_v43 = vmax.f32 %v16632_v60, %v16633_v18 }
 0x8d4   : > { %16644 = vst.msk [vmem:[%s27448_s8 + $0x30] sm:$0xff] %vm16502_vm4, %v16634_v43 }
 0x8d5   : > { %v16565_v56 = vld [vmem:[#allocation3 + $0xf0] ss:$2 sm:$0xff]  ;;  %v16597_v27 = vld [vmem:[#allocation3 + $0xf1] ss:$2 sm:$0xff] }
 0x8d6   : > { %v16613_v57 = vmax.f32 %v16565_v56, %v16597_v27  ;;  %v16563_v47 = vld [vmem:[#allocation3 + $0xe0] ss:$2 sm:$0xff]  ;;  %v16595_v49 = vld [vmem:[#allocation3 + $0xe1] ss:$2 sm:$0xff] }
 0x8d7   : > { %v16612_v29 = vmax.f32 %v16563_v47, %v16595_v49 }
 0x8d8   : > { %v16636_v9 = vsel %vm16502_vm4, %v16613_v57, -inf }
 0x8d9   : > { %v16635_v7 = vsel %vm16502_vm4, %v16612_v29, -inf }
 0x8da   : > { %v16637_v0 = vmax.f32 %v16635_v7, %v16636_v9 }
 0x8dc   : > { %16645 = vst.msk [vmem:[%s27448_s8 + $0x38] sm:$0xff] %vm16502_vm4, %v16637_v0 }
 0x8dd   : > { %21667 = shalt.err (!%p21664_p3)
}
 0x8de   : > { %s21668_s20 = scalar_lea.hbm %s27527_s15, 1024  ;;  %s21672_s23 = scalar_lea.hbm %s27583_s7, 2048 }
 0x8df   : > { %p21669_p4 = scmp.ne.s32.totalorder %s27527_s15, %s21668_s20  ;;  %p21673_p9 = scmp.lt.u32.totalorder %s27527_s15, %s27583_s7 }
 0x8e0   : > { %p21674_p10 = scmp.lt.u32.totalorder %s21672_s23, %s21668_s20  ;;  %p21676_p12 = scmp.lt.u32.totalorder %s21668_s20, %s27527_s15 }
 0x8e1   : > { %p21670_p7 = pnand %p21669_p4, %p21800_p5 }
 0x8e2   : > { %p21675_p11 = por %p21674_p10, %p21673_p9 }
 0x8e3   : > { %p21671_p8 = pneg %p21670_p7 }
 0x8e4   : > { %p21677_p13 = por %p21676_p12, %p21675_p11 }
 0x8e6   : > { %p21678_p0 = pnand %p21677_p13, %p21671_p8 }
 0x8e8   : > { %21681 = shalt.err (!%p21678_p0)
}
 0x8e9   : > { %s21720_s13 = smov 128   ;;  %s21721_s14 = smov 8  }
 0x8ea   : > { %21183 = dma.vmem_to_hbm [thread:$0]  (%p21800_p5), %s27529_s9, 1024, %s27527_s15, %s27535_s28, %s21720_s13, %s21720_s13, %s21721_s14  }
 0x8eb PF: > { %p21189_p1 = scmp.ge.s32.totalorder %s21716_s27, 2  ;;  %s16675_s16 = sand.u32 1, %s21704_s24  }
 0x8ec   : > { %s16676_s17 = scalar_lea.sflag [#allocation5], %s16675_s16 }
 0x8ed   : > { %p21186_p2 = pnand %p21189_p1, %p21804_p6 }
 0x8ef   : > { %21699 = dma.done.wait (!%p21186_p2), %s16676_s17, 1024  }
 0x8f0   : > { %21701 = vsyncadd (!%p21186_p2), %s16676_s17, 4294966272  ;;  %p17_p3 = scmp.ge.s32.totalorder %s21787_s30, 4   ;;  %s28070_s24 = smov %s21708_s25 }
 0x8f1   : > { %s28071_s25 = smov %s21712_s26  ;;  %s28072_s26 = smov %s21798_s10 }
 0x8f2   : > { %s28073_s27 = smov %s21787_s30  ;;  %19 = sbr.rel (!%p17_p3) target bundleno = 3 (0x3), region = 142 }
 0x8f9   :  { %16681 = vsyncpa [#allocation5], 1 }
 0x8fa   :  { %16683 = vsyncpa [#allocation5 + $0x1], 1 }

</bundles_post_ra>
